<compile_context>
chip_gen: v5e
topology: v5e:2x2
jax: 0.10.0
libtpu: 0.0.40
codegen_flags: <defaults>
</compile_context>

<pallas_src>
import functools

import jax
import jax.numpy as jnp
from jax.experimental import pallas as pl
from jax.experimental.pallas import tpu as pltpu


# ------------------------------ fused kernel -------------------------------- #

def fused_model2d_kernel(x_ref, mask_ref, w1t_ref, b1c_ref, w2t_ref, b2c_ref,
                         w1l_ref, b1l_ref, w2l_ref, b2l_ref,
                         o_ref, y1_ref, cols_ref, flat_ref, *, H, W, base):
    """One block of `bsize` samples of Model2d, entirely in VMEM.

    x_ref   : (1, 1, L + 2*base) f32   zero-padded flattened inputs (L = bsize*H*W)
    mask_ref: (9, L) f32               {0,1} 'SAME'-boundary mask per 3x3 tap
    w1t_ref : (C1, 9) f32              conv1 weights, [cout, tap]
    b1c_ref : (C1, 1) f32
    w2t_ref : (C2, 9*C1) bf16          conv2 weights, [cout, tap*C1 + cin]
    b2c_ref : (C2, 1) f32
    w1l_ref : (C2*H*W, HID) bf16       lin1 weight (torch flatten row order)
    b1l_ref : (1, HID) f32
    w2l_ref : (HID, 128) f32           lin2 weight^T, zero-padded 3 -> 128 cols
    b2l_ref : (1, 128) f32
    o_ref   : (1, bsize, 128) f32      padded logits for this block
    y1_ref  : (C1, L + 2*base) bf16    scratch: conv1 output (lane-over-allocated)
    cols_ref: (9*C1, L) bf16           scratch: conv2 im2col
    flat_ref: (bsize, C2*H*W) f32      scratch: torch-order flattened conv output
    """
    HW = H * W
    C1 = w1t_ref.shape[0]
    C2 = w2t_ref.shape[0]
    L = cols_ref.shape[1]                       # bsize * H * W
    bsize = flat_ref.shape[0]
    offs = [(dy - 1) * W + (dx - 1) for dy in range(3) for dx in range(3)]

    # ---- conv1: 3x3 SAME, Cin=1 -> C1.  K=1 per tap => VPU broadcast FMAs on
    # dense (C1, L) tiles.  Tap = unaligned lane-window read + boundary mask.
    acc1 = jnp.zeros((C1, L), jnp.float32)
    for t in range(9):
        win = x_ref[0, :, base + offs[t]: base + offs[t] + L]        # (1, L)
        tap = jnp.where(mask_ref[t:t + 1, :] != 0.0, win, 0.0)
        acc1 = acc1 + w1t_ref[:, t:t + 1] * tap                      # (C1, L)
    y1_ref[:, base:base + L] = (
        jnp.maximum(acc1 + b1c_ref[...], 0.0).astype(y1_ref.dtype))

    # ---- conv2: 3x3 SAME, C1 -> C2.  Build the im2col rows (sublane axis) in
    # VMEM, then ONE lane-dense MXU matmul with the full K = 9*C1 contraction.
    # Out-of-range window lanes hold garbage but are always masked to zero.
    for t in range(9):
        win = y1_ref[:, base + offs[t]: base + offs[t] + L]          # (C1, L) bf16
        cols_ref[t * C1:(t + 1) * C1, :] = jnp.where(
            mask_ref[t:t + 1, :] != 0.0, win, jnp.zeros((), win.dtype))
    y2 = jnp.dot(w2t_ref[...], cols_ref[...],
                 preferred_element_type=jnp.float32)                 # (C2, L)
    y2 = jnp.maximum(y2 + b2c_ref[...], 0.0)

    # ---- torch.flatten(x, 1): per sample, lay out channels-major (C,H,W).
    # Aligned 256-lane slices of y2 are concatenated into one row per sample.
    for b in range(bsize):
        flat_ref[b:b + 1, :] = jnp.concatenate(
            [y2[c:c + 1, b * HW:(b + 1) * HW] for c in range(C2)], axis=1)

    # ---- MLP head: batched, lane-dense matmuls (bf16 operands, f32 acc).
    flat = flat_ref[...].astype(w1l_ref.dtype)                       # (bsize, C2*HW)
    h = jnp.dot(flat, w1l_ref[...], preferred_element_type=jnp.float32)
    h = jnp.maximum(h + b1l_ref[...], 0.0)                           # (bsize, HID)
    out = jnp.dot(h, w2l_ref[...], preferred_element_type=jnp.float32)
    o_ref[0] = out + b2l_ref[...]                                    # (bsize, 128)


# ------------------------------- wrapper ------------------------------------ #

_BASE = 128          # lane over-allocation so every 3x3 tap is a pure window read
_OUT_PAD = 128       # padded logits block (lane-dense output stores)


def _tap_masks(bsize, H, W):
    """(9, bsize*H*W) float {0,1}: 1 where the 3x3 'SAME' tap is in-bounds."""
    HW = H * W
    q = jnp.arange(bsize * HW, dtype=jnp.int32) % HW
    hh, ww = q // W, q % W
    rows = []
    for dy in range(3):
        for dx in range(3):
            dh, dw = dy - 1, dx - 1
            rows.append((hh + dh >= 0) & (hh + dh < H) &
                        (ww + dw >= 0) & (ww + dw < W))
    return jnp.stack(rows, axis=0).astype(jnp.float32)


def make_forward(out_dim=3, max_block=16):
    @jax.jit
    def forward(x_nchw, prep):
        N, C, H, W = x_nchw.shape
        assert C == 1, "Model2d's conv1 is Conv2d(1, ...)"
        HW = H * W
        C1 = prep["w1t"].shape[0]
        C2 = prep["w2t"].shape[0]
        assert prep["w1l"].shape[0] == C2 * HW

        # Batch block: big enough for real matmul M dims, but keep >=2 grid
        # steps so v7x's two TensorCores both get work.
        bsize = 1 if N <= 1 else max(1, min(max_block, pl.cdiv(N, 2)))
        g = pl.cdiv(N, bsize)
        n_pad = g * bsize
        L = bsize * HW
        Lp = L + 2 * _BASE

        x = x_nchw.reshape(N, HW)
        if n_pad != N:
            x = jnp.pad(x, ((0, n_pad - N), (0, 0)))
        x = jnp.pad(x.reshape(g, L), ((0, 0), (_BASE, _BASE))).reshape(g, 1, Lp)

        mask = _tap_masks(bsize, H, W)                       # (9, L)
        kernel = functools.partial(fused_model2d_kernel, H=H, W=W, base=_BASE)

        out = pl.pallas_call(
            kernel,
            out_shape=jax.ShapeDtypeStruct((g, bsize, _OUT_PAD), jnp.float32),
            grid=(g,),
            in_specs=[
                pl.BlockSpec((1, 1, Lp), lambda i: (i, 0, 0)),
                pl.BlockSpec(mask.shape, lambda i: (0, 0)),
                pl.BlockSpec(prep["w1t"].shape, lambda i: (0, 0)),
                pl.BlockSpec(prep["b1c"].shape, lambda i: (0, 0)),
                pl.BlockSpec(prep["w2t"].shape, lambda i: (0, 0)),
                pl.BlockSpec(prep["b2c"].shape, lambda i: (0, 0)),
                pl.BlockSpec(prep["w1l"].shape, lambda i: (0, 0)),
                pl.BlockSpec(prep["b1l"].shape, lambda i: (0, 0)),
                pl.BlockSpec(prep["w2l"].shape, lambda i: (0, 0)),
                pl.BlockSpec(prep["b2l"].shape, lambda i: (0, 0)),
            ],
            out_specs=pl.BlockSpec((1, bsize, _OUT_PAD), lambda i: (i, 0, 0)),
            scratch_shapes=[
                pltpu.VMEM((C1, Lp), jnp.bfloat16),          # conv1 output
                pltpu.VMEM((9 * C1, L), jnp.bfloat16),       # conv2 im2col
                pltpu.VMEM((bsize, C2 * HW), jnp.float32),   # torch-order flatten
            ],
            compiler_params=pltpu.CompilerParams(
                dimension_semantics=("parallel",)),
        )(x, mask, prep["w1t"], prep["b1c"], prep["w2t"], prep["b2c"],
          prep["w1l"], prep["b1l"], prep["w2l"], prep["b2l"])
        return out.reshape(n_pad, _OUT_PAD)[:N, :out_dim]

    return forward


# --------------------------- params & reference ----------------------------- #

def init_params(key, linear_2d_size, hidden=256, out=3):
    ks = jax.random.split(key, 8)
    u = lambda k, shape, bound: jax.random.uniform(
        k, shape, jnp.float32, -bound, bound)
    return {
        # conv weights in HWIO: (3, 3, Cin, Cout)
        "conv1_w": u(ks[0], (3, 3, 1, 16), (1.0 / (1 * 9)) ** 0.5),
        "conv1_b": u(ks[1], (16,), (1.0 / (1 * 9)) ** 0.5),
        "conv2_w": u(ks[2], (3, 3, 16, 8), (1.0 / (16 * 9)) ** 0.5),
        "conv2_b": u(ks[3], (8,), (1.0 / (16 * 9)) ** 0.5),
        # linear weights stored as (in, out); rows of lin1_w follow torch's
        # flatten(x, 1) order, i.e. (C, H, W).
        "lin1_w": u(ks[4], (linear_2d_size, hidden), (1.0 / linear_2d_size) ** 0.5),
        "lin1_b": u(ks[5], (hidden,), (1.0 / linear_2d_size) ** 0.5),
        "lin2_w": u(ks[6], (hidden, out), (1.0 / hidden) ** 0.5),
        "lin2_b": u(ks[7], (out,), (1.0 / hidden) ** 0.5),
    }


def prepare_params(p):
    """One-time host-side repack of PyTorch-layout weights for the kernel."""
    C1 = p["conv1_w"].shape[-1]
    C2 = p["conv2_w"].shape[-1]
    hid = p["lin1_w"].shape[-1]
    out_dim = p["lin2_w"].shape[-1]
    f32, bf16 = jnp.float32, jnp.bfloat16
    return {
        "w1t": p["conv1_w"].reshape(9, C1).T.astype(f32),              # (C1, 9)
        "b1c": p["conv1_b"].reshape(C1, 1).astype(f32),
        "w2t": p["conv2_w"].reshape(9 * C1, C2).T.astype(bf16),        # (C2, 9*C1)
        "b2c": p["conv2_b"].reshape(C2, 1).astype(f32),
        "w1l": p["lin1_w"].astype(bf16),                               # (C2*HW, HID)
        "b1l": p["lin1_b"].reshape(1, hid).astype(f32),
        "w2l": jnp.zeros((hid, _OUT_PAD), f32).at[:, :out_dim].set(p["lin2_w"]),
        "b2l": jnp.zeros((1, _OUT_PAD), f32).at[0, :out_dim].set(p["lin2_b"]),
    }


def reference_forward(x_nchw, p):
    """Pure-JAX (XLA) reference for numerical comparison."""
    dn = ("NCHW", "HWIO", "NCHW")
    y = jax.lax.conv_general_dilated(x_nchw, p["conv1_w"], (1, 1), "SAME",
                                     dimension_numbers=dn)
    y = jax.nn.relu(y + p["conv1_b"][None, :, None, None])
    y = jax.lax.conv_general_dilated(y, p["conv2_w"], (1, 1), "SAME",
                                     dimension_numbers=dn)
    y = jax.nn.relu(y + p["conv2_b"][None, :, None, None])
    flat = y.reshape(y.shape[0], -1)
    h = jax.nn.relu(flat @ p["lin1_w"] + p["lin1_b"])
    return h @ p["lin2_w"] + p["lin2_b"]


# ---------------------------------- main ------------------------------------ #

if __name__ == "__main__":
    N, C, H, W = 16, 1, 16, 16               # Conv2d(1, ...) => C must be 1
    linear_2d_size = 8 * H * W               # flattened conv2 output size

    key = jax.random.PRNGKey(0)
    k_x, k_p = jax.random.split(key)
    x = jax.random.normal(k_x, (N, C, H, W), jnp.float32)
    params = init_params(k_p, linear_2d_size)
    prep = prepare_params(params)            # one-time weight repack, not per-step

    forward = make_forward(out_dim=3)
    out = jax.block_until_ready(forward(x, prep))
    assert out.shape == (N, 3) and out.dtype == jnp.float32

    ref = jax.block_until_ready(reference_forward(x, params))
    # conv2 / lin1 use bf16 MXU operands (f32 accumulation), so compare at a
    # bf16-appropriate tolerance against the f32 reference.
    assert jnp.allclose(out, ref, rtol=3e-2, atol=3e-2), (out, ref)

    print("KERNEL_OK")
</pallas_src>

<mosaic_0001>
module attributes {stable_mosaic.version = 11 : i64} {
  func.func @fused_model2d_kernel(%arg0: i32, %arg1: memref<1x1x2304xf32, #tpu.memory_space<vmem>>, %arg2: memref<9x2048xf32, #tpu.memory_space<vmem>>, %arg3: memref<16x9xf32, #tpu.memory_space<vmem>>, %arg4: memref<16x1xf32, #tpu.memory_space<vmem>>, %arg5: memref<8x144xbf16, #tpu.memory_space<vmem>>, %arg6: memref<8x1xf32, #tpu.memory_space<vmem>>, %arg7: memref<2048x256xbf16, #tpu.memory_space<vmem>>, %arg8: memref<1x256xf32, #tpu.memory_space<vmem>>, %arg9: memref<256x128xf32, #tpu.memory_space<vmem>>, %arg10: memref<1x128xf32, #tpu.memory_space<vmem>>, %arg11: memref<1x8x128xf32, #tpu.memory_space<vmem>>, %arg12: memref<16x2304xbf16, #tpu.memory_space<vmem>>, %arg13: memref<144x2048xbf16, #tpu.memory_space<vmem>>, %arg14: memref<8x2048xf32, #tpu.memory_space<vmem>>) attributes {dimension_semantics = [#tpu.dimension_semantics<parallel>], iteration_bounds = array<i64: 2>, scalar_prefetch = 0 : i64, scratch_operands = 3 : i64, tpu.core_type = #tpu.core_type<tc>, window_params = [{transform_indices = @transform_0, window_bounds = array<i64: 1, 1, 2304>}, {pipeline_mode = #tpu.pipeline_mode<synchronous>, transform_indices = @transform_1, window_bounds = array<i64: 9, 2048>}, {pipeline_mode = #tpu.pipeline_mode<synchronous>, transform_indices = @transform_2, window_bounds = array<i64: 16, 9>}, {pipeline_mode = #tpu.pipeline_mode<synchronous>, transform_indices = @transform_3, window_bounds = array<i64: 16, 1>}, {pipeline_mode = #tpu.pipeline_mode<synchronous>, transform_indices = @transform_4, window_bounds = array<i64: 8, 144>}, {pipeline_mode = #tpu.pipeline_mode<synchronous>, transform_indices = @transform_5, window_bounds = array<i64: 8, 1>}, {pipeline_mode = #tpu.pipeline_mode<synchronous>, transform_indices = @transform_6, window_bounds = array<i64: 2048, 256>}, {pipeline_mode = #tpu.pipeline_mode<synchronous>, transform_indices = @transform_7, window_bounds = array<i64: 1, 256>}, {pipeline_mode = #tpu.pipeline_mode<synchronous>, transform_indices = @transform_8, window_bounds = array<i64: 256, 128>}, {pipeline_mode = #tpu.pipeline_mode<synchronous>, transform_indices = @transform_9, window_bounds = array<i64: 1, 128>}, {transform_indices = @transform_10, window_bounds = array<i64: 1, 8, 128>}]} {
    %cst = arith.constant 0.000000e+00 : f32
    %0 = vector.broadcast %cst : f32 to vector<16x2048xf32>
    %c0 = arith.constant 0 : index
    %c0_0 = arith.constant 0 : index
    %c111 = arith.constant 111 : index
    %1 = vector.load %arg1[%c0, %c0_0, %c111] : memref<1x1x2304xf32, #tpu.memory_space<vmem>>, vector<1x1x2048xf32>
    %2 = vector.shape_cast %1 : vector<1x1x2048xf32> to vector<1x2048xf32>
    %c0_1 = arith.constant 0 : index
    %c0_2 = arith.constant 0 : index
    %3 = vector.load %arg2[%c0_1, %c0_2] : memref<9x2048xf32, #tpu.memory_space<vmem>>, vector<1x2048xf32>
    %cst_3 = arith.constant 0.000000e+00 : f32
    %4 = vector.broadcast %cst_3 : f32 to vector<1x2048xf32>
    %5 = arith.cmpf one, %3, %4 : vector<1x2048xf32>
    %cst_4 = arith.constant 0.000000e+00 : f32
    %6 = vector.broadcast %cst_4 : f32 to vector<1x2048xf32>
    %7 = arith.select %5, %2, %6 : vector<1x2048xi1>, vector<1x2048xf32>
    %c0_5 = arith.constant 0 : index
    %c0_6 = arith.constant 0 : index
    %8 = vector.load %arg3[%c0_5, %c0_6] : memref<16x9xf32, #tpu.memory_space<vmem>>, vector<16x1xf32>
    %9 = vector.broadcast %8 : vector<16x1xf32> to vector<16x2048xf32>
    %10 = vector.broadcast %7 : vector<1x2048xf32> to vector<16x2048xf32>
    %11 = arith.mulf %9, %10 : vector<16x2048xf32>
    %12 = arith.addf %0, %11 : vector<16x2048xf32>
    %c0_7 = arith.constant 0 : index
    %c0_8 = arith.constant 0 : index
    %c112 = arith.constant 112 : index
    %13 = vector.load %arg1[%c0_7, %c0_8, %c112] : memref<1x1x2304xf32, #tpu.memory_space<vmem>>, vector<1x1x2048xf32>
    %14 = vector.shape_cast %13 : vector<1x1x2048xf32> to vector<1x2048xf32>
    %c1 = arith.constant 1 : index
    %c0_9 = arith.constant 0 : index
    %15 = vector.load %arg2[%c1, %c0_9] : memref<9x2048xf32, #tpu.memory_space<vmem>>, vector<1x2048xf32>
    %cst_10 = arith.constant 0.000000e+00 : f32
    %16 = vector.broadcast %cst_10 : f32 to vector<1x2048xf32>
    %17 = arith.cmpf one, %15, %16 : vector<1x2048xf32>
    %cst_11 = arith.constant 0.000000e+00 : f32
    %18 = vector.broadcast %cst_11 : f32 to vector<1x2048xf32>
    %19 = arith.select %17, %14, %18 : vector<1x2048xi1>, vector<1x2048xf32>
    %c0_12 = arith.constant 0 : index
    %c1_13 = arith.constant 1 : index
    %20 = vector.load %arg3[%c0_12, %c1_13] : memref<16x9xf32, #tpu.memory_space<vmem>>, vector<16x1xf32>
    %21 = vector.broadcast %20 : vector<16x1xf32> to vector<16x2048xf32>
    %22 = vector.broadcast %19 : vector<1x2048xf32> to vector<16x2048xf32>
    %23 = arith.mulf %21, %22 : vector<16x2048xf32>
    %24 = arith.addf %12, %23 : vector<16x2048xf32>
    %c0_14 = arith.constant 0 : index
    %c0_15 = arith.constant 0 : index
    %c113 = arith.constant 113 : index
    %25 = vector.load %arg1[%c0_14, %c0_15, %c113] : memref<1x1x2304xf32, #tpu.memory_space<vmem>>, vector<1x1x2048xf32>
    %26 = vector.shape_cast %25 : vector<1x1x2048xf32> to vector<1x2048xf32>
    %c2 = arith.constant 2 : index
    %c0_16 = arith.constant 0 : index
    %27 = vector.load %arg2[%c2, %c0_16] : memref<9x2048xf32, #tpu.memory_space<vmem>>, vector<1x2048xf32>
    %cst_17 = arith.constant 0.000000e+00 : f32
    %28 = vector.broadcast %cst_17 : f32 to vector<1x2048xf32>
    %29 = arith.cmpf one, %27, %28 : vector<1x2048xf32>
    %cst_18 = arith.constant 0.000000e+00 : f32
    %30 = vector.broadcast %cst_18 : f32 to vector<1x2048xf32>
    %31 = arith.select %29, %26, %30 : vector<1x2048xi1>, vector<1x2048xf32>
    %c0_19 = arith.constant 0 : index
    %c2_20 = arith.constant 2 : index
    %32 = vector.load %arg3[%c0_19, %c2_20] : memref<16x9xf32, #tpu.memory_space<vmem>>, vector<16x1xf32>
    %33 = vector.broadcast %32 : vector<16x1xf32> to vector<16x2048xf32>
    %34 = vector.broadcast %31 : vector<1x2048xf32> to vector<16x2048xf32>
    %35 = arith.mulf %33, %34 : vector<16x2048xf32>
    %36 = arith.addf %24, %35 : vector<16x2048xf32>
    %c0_21 = arith.constant 0 : index
    %c0_22 = arith.constant 0 : index
    %c127 = arith.constant 127 : index
    %37 = vector.load %arg1[%c0_21, %c0_22, %c127] : memref<1x1x2304xf32, #tpu.memory_space<vmem>>, vector<1x1x2048xf32>
    %38 = vector.shape_cast %37 : vector<1x1x2048xf32> to vector<1x2048xf32>
    %c3 = arith.constant 3 : index
    %c0_23 = arith.constant 0 : index
    %39 = vector.load %arg2[%c3, %c0_23] : memref<9x2048xf32, #tpu.memory_space<vmem>>, vector<1x2048xf32>
    %cst_24 = arith.constant 0.000000e+00 : f32
    %40 = vector.broadcast %cst_24 : f32 to vector<1x2048xf32>
    %41 = arith.cmpf one, %39, %40 : vector<1x2048xf32>
    %cst_25 = arith.constant 0.000000e+00 : f32
    %42 = vector.broadcast %cst_25 : f32 to vector<1x2048xf32>
    %43 = arith.select %41, %38, %42 : vector<1x2048xi1>, vector<1x2048xf32>
    %c0_26 = arith.constant 0 : index
    %c3_27 = arith.constant 3 : index
    %44 = vector.load %arg3[%c0_26, %c3_27] : memref<16x9xf32, #tpu.memory_space<vmem>>, vector<16x1xf32>
    %45 = vector.broadcast %44 : vector<16x1xf32> to vector<16x2048xf32>
    %46 = vector.broadcast %43 : vector<1x2048xf32> to vector<16x2048xf32>
    %47 = arith.mulf %45, %46 : vector<16x2048xf32>
    %48 = arith.addf %36, %47 : vector<16x2048xf32>
    %c0_28 = arith.constant 0 : index
    %c0_29 = arith.constant 0 : index
    %c128 = arith.constant 128 : index
    %49 = vector.load %arg1[%c0_28, %c0_29, %c128] : memref<1x1x2304xf32, #tpu.memory_space<vmem>>, vector<1x1x2048xf32>
    %50 = vector.shape_cast %49 : vector<1x1x2048xf32> to vector<1x2048xf32>
    %c4 = arith.constant 4 : index
    %c0_30 = arith.constant 0 : index
    %51 = vector.load %arg2[%c4, %c0_30] : memref<9x2048xf32, #tpu.memory_space<vmem>>, vector<1x2048xf32>
    %cst_31 = arith.constant 0.000000e+00 : f32
    %52 = vector.broadcast %cst_31 : f32 to vector<1x2048xf32>
    %53 = arith.cmpf one, %51, %52 : vector<1x2048xf32>
    %cst_32 = arith.constant 0.000000e+00 : f32
    %54 = vector.broadcast %cst_32 : f32 to vector<1x2048xf32>
    %55 = arith.select %53, %50, %54 : vector<1x2048xi1>, vector<1x2048xf32>
    %c0_33 = arith.constant 0 : index
    %c4_34 = arith.constant 4 : index
    %56 = vector.load %arg3[%c0_33, %c4_34] : memref<16x9xf32, #tpu.memory_space<vmem>>, vector<16x1xf32>
    %57 = vector.broadcast %56 : vector<16x1xf32> to vector<16x2048xf32>
    %58 = vector.broadcast %55 : vector<1x2048xf32> to vector<16x2048xf32>
    %59 = arith.mulf %57, %58 : vector<16x2048xf32>
    %60 = arith.addf %48, %59 : vector<16x2048xf32>
    %c0_35 = arith.constant 0 : index
    %c0_36 = arith.constant 0 : index
    %c129 = arith.constant 129 : index
    %61 = vector.load %arg1[%c0_35, %c0_36, %c129] : memref<1x1x2304xf32, #tpu.memory_space<vmem>>, vector<1x1x2048xf32>
    %62 = vector.shape_cast %61 : vector<1x1x2048xf32> to vector<1x2048xf32>
    %c5 = arith.constant 5 : index
    %c0_37 = arith.constant 0 : index
    %63 = vector.load %arg2[%c5, %c0_37] : memref<9x2048xf32, #tpu.memory_space<vmem>>, vector<1x2048xf32>
    %cst_38 = arith.constant 0.000000e+00 : f32
    %64 = vector.broadcast %cst_38 : f32 to vector<1x2048xf32>
    %65 = arith.cmpf one, %63, %64 : vector<1x2048xf32>
    %cst_39 = arith.constant 0.000000e+00 : f32
    %66 = vector.broadcast %cst_39 : f32 to vector<1x2048xf32>
    %67 = arith.select %65, %62, %66 : vector<1x2048xi1>, vector<1x2048xf32>
    %c0_40 = arith.constant 0 : index
    %c5_41 = arith.constant 5 : index
    %68 = vector.load %arg3[%c0_40, %c5_41] : memref<16x9xf32, #tpu.memory_space<vmem>>, vector<16x1xf32>
    %69 = vector.broadcast %68 : vector<16x1xf32> to vector<16x2048xf32>
    %70 = vector.broadcast %67 : vector<1x2048xf32> to vector<16x2048xf32>
    %71 = arith.mulf %69, %70 : vector<16x2048xf32>
    %72 = arith.addf %60, %71 : vector<16x2048xf32>
    %c0_42 = arith.constant 0 : index
    %c0_43 = arith.constant 0 : index
    %c143 = arith.constant 143 : index
    %73 = vector.load %arg1[%c0_42, %c0_43, %c143] : memref<1x1x2304xf32, #tpu.memory_space<vmem>>, vector<1x1x2048xf32>
    %74 = vector.shape_cast %73 : vector<1x1x2048xf32> to vector<1x2048xf32>
    %c6 = arith.constant 6 : index
    %c0_44 = arith.constant 0 : index
    %75 = vector.load %arg2[%c6, %c0_44] : memref<9x2048xf32, #tpu.memory_space<vmem>>, vector<1x2048xf32>
    %cst_45 = arith.constant 0.000000e+00 : f32
    %76 = vector.broadcast %cst_45 : f32 to vector<1x2048xf32>
    %77 = arith.cmpf one, %75, %76 : vector<1x2048xf32>
    %cst_46 = arith.constant 0.000000e+00 : f32
    %78 = vector.broadcast %cst_46 : f32 to vector<1x2048xf32>
    %79 = arith.select %77, %74, %78 : vector<1x2048xi1>, vector<1x2048xf32>
    %c0_47 = arith.constant 0 : index
    %c6_48 = arith.constant 6 : index
    %80 = vector.load %arg3[%c0_47, %c6_48] : memref<16x9xf32, #tpu.memory_space<vmem>>, vector<16x1xf32>
    %81 = vector.broadcast %80 : vector<16x1xf32> to vector<16x2048xf32>
    %82 = vector.broadcast %79 : vector<1x2048xf32> to vector<16x2048xf32>
    %83 = arith.mulf %81, %82 : vector<16x2048xf32>
    %84 = arith.addf %72, %83 : vector<16x2048xf32>
    %c0_49 = arith.constant 0 : index
    %c0_50 = arith.constant 0 : index
    %c144 = arith.constant 144 : index
    %85 = vector.load %arg1[%c0_49, %c0_50, %c144] : memref<1x1x2304xf32, #tpu.memory_space<vmem>>, vector<1x1x2048xf32>
    %86 = vector.shape_cast %85 : vector<1x1x2048xf32> to vector<1x2048xf32>
    %c7 = arith.constant 7 : index
    %c0_51 = arith.constant 0 : index
    %87 = vector.load %arg2[%c7, %c0_51] : memref<9x2048xf32, #tpu.memory_space<vmem>>, vector<1x2048xf32>
    %cst_52 = arith.constant 0.000000e+00 : f32
    %88 = vector.broadcast %cst_52 : f32 to vector<1x2048xf32>
    %89 = arith.cmpf one, %87, %88 : vector<1x2048xf32>
    %cst_53 = arith.constant 0.000000e+00 : f32
    %90 = vector.broadcast %cst_53 : f32 to vector<1x2048xf32>
    %91 = arith.select %89, %86, %90 : vector<1x2048xi1>, vector<1x2048xf32>
    %c0_54 = arith.constant 0 : index
    %c7_55 = arith.constant 7 : index
    %92 = vector.load %arg3[%c0_54, %c7_55] : memref<16x9xf32, #tpu.memory_space<vmem>>, vector<16x1xf32>
    %93 = vector.broadcast %92 : vector<16x1xf32> to vector<16x2048xf32>
    %94 = vector.broadcast %91 : vector<1x2048xf32> to vector<16x2048xf32>
    %95 = arith.mulf %93, %94 : vector<16x2048xf32>
    %96 = arith.addf %84, %95 : vector<16x2048xf32>
    %c0_56 = arith.constant 0 : index
    %c0_57 = arith.constant 0 : index
    %c145 = arith.constant 145 : index
    %97 = vector.load %arg1[%c0_56, %c0_57, %c145] : memref<1x1x2304xf32, #tpu.memory_space<vmem>>, vector<1x1x2048xf32>
    %98 = vector.shape_cast %97 : vector<1x1x2048xf32> to vector<1x2048xf32>
    %c8 = arith.constant 8 : index
    %c0_58 = arith.constant 0 : index
    %99 = vector.load %arg2[%c8, %c0_58] : memref<9x2048xf32, #tpu.memory_space<vmem>>, vector<1x2048xf32>
    %cst_59 = arith.constant 0.000000e+00 : f32
    %100 = vector.broadcast %cst_59 : f32 to vector<1x2048xf32>
    %101 = arith.cmpf one, %99, %100 : vector<1x2048xf32>
    %cst_60 = arith.constant 0.000000e+00 : f32
    %102 = vector.broadcast %cst_60 : f32 to vector<1x2048xf32>
    %103 = arith.select %101, %98, %102 : vector<1x2048xi1>, vector<1x2048xf32>
    %c0_61 = arith.constant 0 : index
    %c8_62 = arith.constant 8 : index
    %104 = vector.load %arg3[%c0_61, %c8_62] : memref<16x9xf32, #tpu.memory_space<vmem>>, vector<16x1xf32>
    %105 = vector.broadcast %104 : vector<16x1xf32> to vector<16x2048xf32>
    %106 = vector.broadcast %103 : vector<1x2048xf32> to vector<16x2048xf32>
    %107 = arith.mulf %105, %106 : vector<16x2048xf32>
    %108 = arith.addf %96, %107 : vector<16x2048xf32>
    %c0_63 = arith.constant 0 : index
    %c0_64 = arith.constant 0 : index
    %109 = vector.load %arg4[%c0_63, %c0_64] : memref<16x1xf32, #tpu.memory_space<vmem>>, vector<16x1xf32>
    %110 = vector.broadcast %109 : vector<16x1xf32> to vector<16x2048xf32>
    %111 = arith.addf %108, %110 : vector<16x2048xf32>
    %cst_65 = arith.constant 0.000000e+00 : f32
    %112 = vector.broadcast %cst_65 : f32 to vector<16x2048xf32>
    %113 = arith.maximumf %111, %112 : vector<16x2048xf32>
    %114 = arith.truncf %113 : vector<16x2048xf32> to vector<16x2048xbf16>
    %c0_66 = arith.constant 0 : index
    %c128_67 = arith.constant 128 : index
    %115 = vector.load %arg12[%c0_66, %c128_67] : memref<16x2304xbf16, #tpu.memory_space<vmem>>, vector<16x2048xbf16>
    tpu.vector_store %arg12[%c0_66, %c128_67], %114 {strides = array<i32>} : memref<16x2304xbf16, #tpu.memory_space<vmem>>, vector<16x2048xbf16>,
    %c0_68 = arith.constant 0 : index
    %c111_69 = arith.constant 111 : index
    %116 = vector.load %arg12[%c0_68, %c111_69] : memref<16x2304xbf16, #tpu.memory_space<vmem>>, vector<16x2048xbf16>
    %c0_70 = arith.constant 0 : index
    %c0_71 = arith.constant 0 : index
    %117 = vector.load %arg2[%c0_70, %c0_71] : memref<9x2048xf32, #tpu.memory_space<vmem>>, vector<1x2048xf32>
    %cst_72 = arith.constant 0.000000e+00 : f32
    %118 = vector.broadcast %cst_72 : f32 to vector<1x2048xf32>
    %119 = arith.cmpf one, %117, %118 : vector<1x2048xf32>
    %cst_73 = arith.constant 0.000000e+00 : bf16
    %120 = vector.shape_cast %119 : vector<1x2048xi1> to vector<1x2048xi1>
    %121 = vector.broadcast %120 : vector<1x2048xi1> to vector<16x2048xi1>
    %122 = vector.broadcast %cst_73 : bf16 to vector<16x2048xbf16>
    %123 = arith.select %121, %116, %122 : vector<16x2048xi1>, vector<16x2048xbf16>
    %c0_74 = arith.constant 0 : index
    %c0_75 = arith.constant 0 : index
    %124 = vector.load %arg13[%c0_74, %c0_75] : memref<144x2048xbf16, #tpu.memory_space<vmem>>, vector<16x2048xbf16>
    tpu.vector_store %arg13[%c0_74, %c0_75], %123 {strides = array<i32>} : memref<144x2048xbf16, #tpu.memory_space<vmem>>, vector<16x2048xbf16>,
    %c0_76 = arith.constant 0 : index
    %c112_77 = arith.constant 112 : index
    %125 = vector.load %arg12[%c0_76, %c112_77] : memref<16x2304xbf16, #tpu.memory_space<vmem>>, vector<16x2048xbf16>
    %c1_78 = arith.constant 1 : index
    %c0_79 = arith.constant 0 : index
    %126 = vector.load %arg2[%c1_78, %c0_79] : memref<9x2048xf32, #tpu.memory_space<vmem>>, vector<1x2048xf32>
    %cst_80 = arith.constant 0.000000e+00 : f32
    %127 = vector.broadcast %cst_80 : f32 to vector<1x2048xf32>
    %128 = arith.cmpf one, %126, %127 : vector<1x2048xf32>
    %cst_81 = arith.constant 0.000000e+00 : bf16
    %129 = vector.shape_cast %128 : vector<1x2048xi1> to vector<1x2048xi1>
    %130 = vector.broadcast %129 : vector<1x2048xi1> to vector<16x2048xi1>
    %131 = vector.broadcast %cst_81 : bf16 to vector<16x2048xbf16>
    %132 = arith.select %130, %125, %131 : vector<16x2048xi1>, vector<16x2048xbf16>
    %c16 = arith.constant 16 : index
    %c0_82 = arith.constant 0 : index
    %133 = vector.load %arg13[%c16, %c0_82] : memref<144x2048xbf16, #tpu.memory_space<vmem>>, vector<16x2048xbf16>
    tpu.vector_store %arg13[%c16, %c0_82], %132 {strides = array<i32>} : memref<144x2048xbf16, #tpu.memory_space<vmem>>, vector<16x2048xbf16>,
    %c0_83 = arith.constant 0 : index
    %c113_84 = arith.constant 113 : index
    %134 = vector.load %arg12[%c0_83, %c113_84] : memref<16x2304xbf16, #tpu.memory_space<vmem>>, vector<16x2048xbf16>
    %c2_85 = arith.constant 2 : index
    %c0_86 = arith.constant 0 : index
    %135 = vector.load %arg2[%c2_85, %c0_86] : memref<9x2048xf32, #tpu.memory_space<vmem>>, vector<1x2048xf32>
    %cst_87 = arith.constant 0.000000e+00 : f32
    %136 = vector.broadcast %cst_87 : f32 to vector<1x2048xf32>
    %137 = arith.cmpf one, %135, %136 : vector<1x2048xf32>
    %cst_88 = arith.constant 0.000000e+00 : bf16
    %138 = vector.shape_cast %137 : vector<1x2048xi1> to vector<1x2048xi1>
    %139 = vector.broadcast %138 : vector<1x2048xi1> to vector<16x2048xi1>
    %140 = vector.broadcast %cst_88 : bf16 to vector<16x2048xbf16>
    %141 = arith.select %139, %134, %140 : vector<16x2048xi1>, vector<16x2048xbf16>
    %c32 = arith.constant 32 : index
    %c0_89 = arith.constant 0 : index
    %142 = vector.load %arg13[%c32, %c0_89] : memref<144x2048xbf16, #tpu.memory_space<vmem>>, vector<16x2048xbf16>
    tpu.vector_store %arg13[%c32, %c0_89], %141 {strides = array<i32>} : memref<144x2048xbf16, #tpu.memory_space<vmem>>, vector<16x2048xbf16>,
    %c0_90 = arith.constant 0 : index
    %c127_91 = arith.constant 127 : index
    %143 = vector.load %arg12[%c0_90, %c127_91] : memref<16x2304xbf16, #tpu.memory_space<vmem>>, vector<16x2048xbf16>
    %c3_92 = arith.constant 3 : index
    %c0_93 = arith.constant 0 : index
    %144 = vector.load %arg2[%c3_92, %c0_93] : memref<9x2048xf32, #tpu.memory_space<vmem>>, vector<1x2048xf32>
    %cst_94 = arith.constant 0.000000e+00 : f32
    %145 = vector.broadcast %cst_94 : f32 to vector<1x2048xf32>
    %146 = arith.cmpf one, %144, %145 : vector<1x2048xf32>
    %cst_95 = arith.constant 0.000000e+00 : bf16
    %147 = vector.shape_cast %146 : vector<1x2048xi1> to vector<1x2048xi1>
    %148 = vector.broadcast %147 : vector<1x2048xi1> to vector<16x2048xi1>
    %149 = vector.broadcast %cst_95 : bf16 to vector<16x2048xbf16>
    %150 = arith.select %148, %143, %149 : vector<16x2048xi1>, vector<16x2048xbf16>
    %c48 = arith.constant 48 : index
    %c0_96 = arith.constant 0 : index
    %151 = vector.load %arg13[%c48, %c0_96] : memref<144x2048xbf16, #tpu.memory_space<vmem>>, vector<16x2048xbf16>
    tpu.vector_store %arg13[%c48, %c0_96], %150 {strides = array<i32>} : memref<144x2048xbf16, #tpu.memory_space<vmem>>, vector<16x2048xbf16>,
    %c0_97 = arith.constant 0 : index
    %c128_98 = arith.constant 128 : index
    %152 = vector.load %arg12[%c0_97, %c128_98] : memref<16x2304xbf16, #tpu.memory_space<vmem>>, vector<16x2048xbf16>
    %c4_99 = arith.constant 4 : index
    %c0_100 = arith.constant 0 : index
    %153 = vector.load %arg2[%c4_99, %c0_100] : memref<9x2048xf32, #tpu.memory_space<vmem>>, vector<1x2048xf32>
    %cst_101 = arith.constant 0.000000e+00 : f32
    %154 = vector.broadcast %cst_101 : f32 to vector<1x2048xf32>
    %155 = arith.cmpf one, %153, %154 : vector<1x2048xf32>
    %cst_102 = arith.constant 0.000000e+00 : bf16
    %156 = vector.shape_cast %155 : vector<1x2048xi1> to vector<1x2048xi1>
    %157 = vector.broadcast %156 : vector<1x2048xi1> to vector<16x2048xi1>
    %158 = vector.broadcast %cst_102 : bf16 to vector<16x2048xbf16>
    %159 = arith.select %157, %152, %158 : vector<16x2048xi1>, vector<16x2048xbf16>
    %c64 = arith.constant 64 : index
    %c0_103 = arith.constant 0 : index
    %160 = vector.load %arg13[%c64, %c0_103] : memref<144x2048xbf16, #tpu.memory_space<vmem>>, vector<16x2048xbf16>
    tpu.vector_store %arg13[%c64, %c0_103], %159 {strides = array<i32>} : memref<144x2048xbf16, #tpu.memory_space<vmem>>, vector<16x2048xbf16>,
    %c0_104 = arith.constant 0 : index
    %c129_105 = arith.constant 129 : index
    %161 = vector.load %arg12[%c0_104, %c129_105] : memref<16x2304xbf16, #tpu.memory_space<vmem>>, vector<16x2048xbf16>
    %c5_106 = arith.constant 5 : index
    %c0_107 = arith.constant 0 : index
    %162 = vector.load %arg2[%c5_106, %c0_107] : memref<9x2048xf32, #tpu.memory_space<vmem>>, vector<1x2048xf32>
    %cst_108 = arith.constant 0.000000e+00 : f32
    %163 = vector.broadcast %cst_108 : f32 to vector<1x2048xf32>
    %164 = arith.cmpf one, %162, %163 : vector<1x2048xf32>
    %cst_109 = arith.constant 0.000000e+00 : bf16
    %165 = vector.shape_cast %164 : vector<1x2048xi1> to vector<1x2048xi1>
    %166 = vector.broadcast %165 : vector<1x2048xi1> to vector<16x2048xi1>
    %167 = vector.broadcast %cst_109 : bf16 to vector<16x2048xbf16>
    %168 = arith.select %166, %161, %167 : vector<16x2048xi1>, vector<16x2048xbf16>
    %c80 = arith.constant 80 : index
    %c0_110 = arith.constant 0 : index
    %169 = vector.load %arg13[%c80, %c0_110] : memref<144x2048xbf16, #tpu.memory_space<vmem>>, vector<16x2048xbf16>
    tpu.vector_store %arg13[%c80, %c0_110], %168 {strides = array<i32>} : memref<144x2048xbf16, #tpu.memory_space<vmem>>, vector<16x2048xbf16>,
    %c0_111 = arith.constant 0 : index
    %c143_112 = arith.constant 143 : index
    %170 = vector.load %arg12[%c0_111, %c143_112] : memref<16x2304xbf16, #tpu.memory_space<vmem>>, vector<16x2048xbf16>
    %c6_113 = arith.constant 6 : index
    %c0_114 = arith.constant 0 : index
    %171 = vector.load %arg2[%c6_113, %c0_114] : memref<9x2048xf32, #tpu.memory_space<vmem>>, vector<1x2048xf32>
    %cst_115 = arith.constant 0.000000e+00 : f32
    %172 = vector.broadcast %cst_115 : f32 to vector<1x2048xf32>
    %173 = arith.cmpf one, %171, %172 : vector<1x2048xf32>
    %cst_116 = arith.constant 0.000000e+00 : bf16
    %174 = vector.shape_cast %173 : vector<1x2048xi1> to vector<1x2048xi1>
    %175 = vector.broadcast %174 : vector<1x2048xi1> to vector<16x2048xi1>
    %176 = vector.broadcast %cst_116 : bf16 to vector<16x2048xbf16>
    %177 = arith.select %175, %170, %176 : vector<16x2048xi1>, vector<16x2048xbf16>
    %c96 = arith.constant 96 : index
    %c0_117 = arith.constant 0 : index
    %178 = vector.load %arg13[%c96, %c0_117] : memref<144x2048xbf16, #tpu.memory_space<vmem>>, vector<16x2048xbf16>
    tpu.vector_store %arg13[%c96, %c0_117], %177 {strides = array<i32>} : memref<144x2048xbf16, #tpu.memory_space<vmem>>, vector<16x2048xbf16>,
    %c0_118 = arith.constant 0 : index
    %c144_119 = arith.constant 144 : index
    %179 = vector.load %arg12[%c0_118, %c144_119] : memref<16x2304xbf16, #tpu.memory_space<vmem>>, vector<16x2048xbf16>
    %c7_120 = arith.constant 7 : index
    %c0_121 = arith.constant 0 : index
    %180 = vector.load %arg2[%c7_120, %c0_121] : memref<9x2048xf32, #tpu.memory_space<vmem>>, vector<1x2048xf32>
    %cst_122 = arith.constant 0.000000e+00 : f32
    %181 = vector.broadcast %cst_122 : f32 to vector<1x2048xf32>
    %182 = arith.cmpf one, %180, %181 : vector<1x2048xf32>
    %cst_123 = arith.constant 0.000000e+00 : bf16
    %183 = vector.shape_cast %182 : vector<1x2048xi1> to vector<1x2048xi1>
    %184 = vector.broadcast %183 : vector<1x2048xi1> to vector<16x2048xi1>
    %185 = vector.broadcast %cst_123 : bf16 to vector<16x2048xbf16>
    %186 = arith.select %184, %179, %185 : vector<16x2048xi1>, vector<16x2048xbf16>
    %c112_124 = arith.constant 112 : index
    %c0_125 = arith.constant 0 : index
    %187 = vector.load %arg13[%c112_124, %c0_125] : memref<144x2048xbf16, #tpu.memory_space<vmem>>, vector<16x2048xbf16>
    tpu.vector_store %arg13[%c112_124, %c0_125], %186 {strides = array<i32>} : memref<144x2048xbf16, #tpu.memory_space<vmem>>, vector<16x2048xbf16>,
    %c0_126 = arith.constant 0 : index
    %c145_127 = arith.constant 145 : index
    %188 = vector.load %arg12[%c0_126, %c145_127] : memref<16x2304xbf16, #tpu.memory_space<vmem>>, vector<16x2048xbf16>
    %c8_128 = arith.constant 8 : index
    %c0_129 = arith.constant 0 : index
    %189 = vector.load %arg2[%c8_128, %c0_129] : memref<9x2048xf32, #tpu.memory_space<vmem>>, vector<1x2048xf32>
    %cst_130 = arith.constant 0.000000e+00 : f32
    %190 = vector.broadcast %cst_130 : f32 to vector<1x2048xf32>
    %191 = arith.cmpf one, %189, %190 : vector<1x2048xf32>
    %cst_131 = arith.constant 0.000000e+00 : bf16
    %192 = vector.shape_cast %191 : vector<1x2048xi1> to vector<1x2048xi1>
    %193 = vector.broadcast %192 : vector<1x2048xi1> to vector<16x2048xi1>
    %194 = vector.broadcast %cst_131 : bf16 to vector<16x2048xbf16>
    %195 = arith.select %193, %188, %194 : vector<16x2048xi1>, vector<16x2048xbf16>
    %c128_132 = arith.constant 128 : index
    %c0_133 = arith.constant 0 : index
    %196 = vector.load %arg13[%c128_132, %c0_133] : memref<144x2048xbf16, #tpu.memory_space<vmem>>, vector<16x2048xbf16>
    tpu.vector_store %arg13[%c128_132, %c0_133], %195 {strides = array<i32>} : memref<144x2048xbf16, #tpu.memory_space<vmem>>, vector<16x2048xbf16>,
    %c0_134 = arith.constant 0 : index
    %c0_135 = arith.constant 0 : index
    %197 = vector.load %arg5[%c0_134, %c0_135] : memref<8x144xbf16, #tpu.memory_space<vmem>>, vector<8x144xbf16>
    %c0_136 = arith.constant 0 : index
    %c0_137 = arith.constant 0 : index
    %198 = vector.load %arg13[%c0_136, %c0_137] : memref<144x2048xbf16, #tpu.memory_space<vmem>>, vector<144x2048xbf16>
    %cst_138 = arith.constant dense<0.000000e+00> : vector<8x2048xf32>
    %199 = tpu.matmul %197, %198, %cst_138 {dimension_numbers = #tpu.dot_dimension_numbers<[1], [0], [0], [1], [0, 0, 1, 1], [], []>} : vector<8x144xbf16>, vector<144x2048xbf16>, vector<8x2048xf32> -> vector<8x2048xf32>
    %c0_139 = arith.constant 0 : index
    %c0_140 = arith.constant 0 : index
    %200 = vector.load %arg6[%c0_139, %c0_140] : memref<8x1xf32, #tpu.memory_space<vmem>>, vector<8x1xf32>
    %201 = vector.broadcast %200 : vector<8x1xf32> to vector<8x2048xf32>
    %202 = arith.addf %199, %201 : vector<8x2048xf32>
    %cst_141 = arith.constant 0.000000e+00 : f32
    %203 = vector.broadcast %cst_141 : f32 to vector<8x2048xf32>
    %204 = arith.maximumf %202, %203 : vector<8x2048xf32>
    %205 = vector.extract_strided_slice %204 {offsets = [0, 0], sizes = [1, 256], strides = [1, 1]} : vector<8x2048xf32> to vector<1x256xf32>
    %206 = vector.extract_strided_slice %204 {offsets = [1, 0], sizes = [1, 256], strides = [1, 1]} : vector<8x2048xf32> to vector<1x256xf32>
    %207 = vector.extract_strided_slice %204 {offsets = [2, 0], sizes = [1, 256], strides = [1, 1]} : vector<8x2048xf32> to vector<1x256xf32>
    %208 = vector.extract_strided_slice %204 {offsets = [3, 0], sizes = [1, 256], strides = [1, 1]} : vector<8x2048xf32> to vector<1x256xf32>
    %209 = vector.extract_strided_slice %204 {offsets = [4, 0], sizes = [1, 256], strides = [1, 1]} : vector<8x2048xf32> to vector<1x256xf32>
    %210 = vector.extract_strided_slice %204 {offsets = [5, 0], sizes = [1, 256], strides = [1, 1]} : vector<8x2048xf32> to vector<1x256xf32>
    %211 = vector.extract_strided_slice %204 {offsets = [6, 0], sizes = [1, 256], strides = [1, 1]} : vector<8x2048xf32> to vector<1x256xf32>
    %212 = vector.extract_strided_slice %204 {offsets = [7, 0], sizes = [1, 256], strides = [1, 1]} : vector<8x2048xf32> to vector<1x256xf32>
    %213 = tpu.concatenate %205, %206, %207, %208, %209, %210, %211, %212 in 1 : vector<1x256xf32>, vector<1x256xf32>, vector<1x256xf32>, vector<1x256xf32>, vector<1x256xf32>, vector<1x256xf32>, vector<1x256xf32>, vector<1x256xf32> -> vector<1x2048xf32>
    %c0_142 = arith.constant 0 : index
    %c0_143 = arith.constant 0 : index
    %214 = vector.load %arg14[%c0_142, %c0_143] : memref<8x2048xf32, #tpu.memory_space<vmem>>, vector<1x2048xf32>
    tpu.vector_store %arg14[%c0_142, %c0_143], %213 {strides = array<i32>} : memref<8x2048xf32, #tpu.memory_space<vmem>>, vector<1x2048xf32>,
    %215 = vector.extract_strided_slice %204 {offsets = [0, 256], sizes = [1, 256], strides = [1, 1]} : vector<8x2048xf32> to vector<1x256xf32>
    %216 = vector.extract_strided_slice %204 {offsets = [1, 256], sizes = [1, 256], strides = [1, 1]} : vector<8x2048xf32> to vector<1x256xf32>
    %217 = vector.extract_strided_slice %204 {offsets = [2, 256], sizes = [1, 256], strides = [1, 1]} : vector<8x2048xf32> to vector<1x256xf32>
    %218 = vector.extract_strided_slice %204 {offsets = [3, 256], sizes = [1, 256], strides = [1, 1]} : vector<8x2048xf32> to vector<1x256xf32>
    %219 = vector.extract_strided_slice %204 {offsets = [4, 256], sizes = [1, 256], strides = [1, 1]} : vector<8x2048xf32> to vector<1x256xf32>
    %220 = vector.extract_strided_slice %204 {offsets = [5, 256], sizes = [1, 256], strides = [1, 1]} : vector<8x2048xf32> to vector<1x256xf32>
    %221 = vector.extract_strided_slice %204 {offsets = [6, 256], sizes = [1, 256], strides = [1, 1]} : vector<8x2048xf32> to vector<1x256xf32>
    %222 = vector.extract_strided_slice %204 {offsets = [7, 256], sizes = [1, 256], strides = [1, 1]} : vector<8x2048xf32> to vector<1x256xf32>
    %223 = tpu.concatenate %215, %216, %217, %218, %219, %220, %221, %222 in 1 : vector<1x256xf32>, vector<1x256xf32>, vector<1x256xf32>, vector<1x256xf32>, vector<1x256xf32>, vector<1x256xf32>, vector<1x256xf32>, vector<1x256xf32> -> vector<1x2048xf32>
    %c1_144 = arith.constant 1 : index
    %c0_145 = arith.constant 0 : index
    %224 = vector.load %arg14[%c1_144, %c0_145] : memref<8x2048xf32, #tpu.memory_space<vmem>>, vector<1x2048xf32>
    tpu.vector_store %arg14[%c1_144, %c0_145], %223 {strides = array<i32>} : memref<8x2048xf32, #tpu.memory_space<vmem>>, vector<1x2048xf32>,
    %225 = vector.extract_strided_slice %204 {offsets = [0, 512], sizes = [1, 256], strides = [1, 1]} : vector<8x2048xf32> to vector<1x256xf32>
    %226 = vector.extract_strided_slice %204 {offsets = [1, 512], sizes = [1, 256], strides = [1, 1]} : vector<8x2048xf32> to vector<1x256xf32>
    %227 = vector.extract_strided_slice %204 {offsets = [2, 512], sizes = [1, 256], strides = [1, 1]} : vector<8x2048xf32> to vector<1x256xf32>
    %228 = vector.extract_strided_slice %204 {offsets = [3, 512], sizes = [1, 256], strides = [1, 1]} : vector<8x2048xf32> to vector<1x256xf32>
    %229 = vector.extract_strided_slice %204 {offsets = [4, 512], sizes = [1, 256], strides = [1, 1]} : vector<8x2048xf32> to vector<1x256xf32>
    %230 = vector.extract_strided_slice %204 {offsets = [5, 512], sizes = [1, 256], strides = [1, 1]} : vector<8x2048xf32> to vector<1x256xf32>
    %231 = vector.extract_strided_slice %204 {offsets = [6, 512], sizes = [1, 256], strides = [1, 1]} : vector<8x2048xf32> to vector<1x256xf32>
    %232 = vector.extract_strided_slice %204 {offsets = [7, 512], sizes = [1, 256], strides = [1, 1]} : vector<8x2048xf32> to vector<1x256xf32>
    %233 = tpu.concatenate %225, %226, %227, %228, %229, %230, %231, %232 in 1 : vector<1x256xf32>, vector<1x256xf32>, vector<1x256xf32>, vector<1x256xf32>, vector<1x256xf32>, vector<1x256xf32>, vector<1x256xf32>, vector<1x256xf32> -> vector<1x2048xf32>
    %c2_146 = arith.constant 2 : index
    %c0_147 = arith.constant 0 : index
    %234 = vector.load %arg14[%c2_146, %c0_147] : memref<8x2048xf32, #tpu.memory_space<vmem>>, vector<1x2048xf32>
    tpu.vector_store %arg14[%c2_146, %c0_147], %233 {strides = array<i32>} : memref<8x2048xf32, #tpu.memory_space<vmem>>, vector<1x2048xf32>,
    %235 = vector.extract_strided_slice %204 {offsets = [0, 768], sizes = [1, 256], strides = [1, 1]} : vector<8x2048xf32> to vector<1x256xf32>
    %236 = vector.extract_strided_slice %204 {offsets = [1, 768], sizes = [1, 256], strides = [1, 1]} : vector<8x2048xf32> to vector<1x256xf32>
    %237 = vector.extract_strided_slice %204 {offsets = [2, 768], sizes = [1, 256], strides = [1, 1]} : vector<8x2048xf32> to vector<1x256xf32>
    %238 = vector.extract_strided_slice %204 {offsets = [3, 768], sizes = [1, 256], strides = [1, 1]} : vector<8x2048xf32> to vector<1x256xf32>
    %239 = vector.extract_strided_slice %204 {offsets = [4, 768], sizes = [1, 256], strides = [1, 1]} : vector<8x2048xf32> to vector<1x256xf32>
    %240 = vector.extract_strided_slice %204 {offsets = [5, 768], sizes = [1, 256], strides = [1, 1]} : vector<8x2048xf32> to vector<1x256xf32>
    %241 = vector.extract_strided_slice %204 {offsets = [6, 768], sizes = [1, 256], strides = [1, 1]} : vector<8x2048xf32> to vector<1x256xf32>
    %242 = vector.extract_strided_slice %204 {offsets = [7, 768], sizes = [1, 256], strides = [1, 1]} : vector<8x2048xf32> to vector<1x256xf32>
    %243 = tpu.concatenate %235, %236, %237, %238, %239, %240, %241, %242 in 1 : vector<1x256xf32>, vector<1x256xf32>, vector<1x256xf32>, vector<1x256xf32>, vector<1x256xf32>, vector<1x256xf32>, vector<1x256xf32>, vector<1x256xf32> -> vector<1x2048xf32>
    %c3_148 = arith.constant 3 : index
    %c0_149 = arith.constant 0 : index
    %244 = vector.load %arg14[%c3_148, %c0_149] : memref<8x2048xf32, #tpu.memory_space<vmem>>, vector<1x2048xf32>
    tpu.vector_store %arg14[%c3_148, %c0_149], %243 {strides = array<i32>} : memref<8x2048xf32, #tpu.memory_space<vmem>>, vector<1x2048xf32>,
    %245 = vector.extract_strided_slice %204 {offsets = [0, 1024], sizes = [1, 256], strides = [1, 1]} : vector<8x2048xf32> to vector<1x256xf32>
    %246 = vector.extract_strided_slice %204 {offsets = [1, 1024], sizes = [1, 256], strides = [1, 1]} : vector<8x2048xf32> to vector<1x256xf32>
    %247 = vector.extract_strided_slice %204 {offsets = [2, 1024], sizes = [1, 256], strides = [1, 1]} : vector<8x2048xf32> to vector<1x256xf32>
    %248 = vector.extract_strided_slice %204 {offsets = [3, 1024], sizes = [1, 256], strides = [1, 1]} : vector<8x2048xf32> to vector<1x256xf32>
    %249 = vector.extract_strided_slice %204 {offsets = [4, 1024], sizes = [1, 256], strides = [1, 1]} : vector<8x2048xf32> to vector<1x256xf32>
    %250 = vector.extract_strided_slice %204 {offsets = [5, 1024], sizes = [1, 256], strides = [1, 1]} : vector<8x2048xf32> to vector<1x256xf32>
    %251 = vector.extract_strided_slice %204 {offsets = [6, 1024], sizes = [1, 256], strides = [1, 1]} : vector<8x2048xf32> to vector<1x256xf32>
    %252 = vector.extract_strided_slice %204 {offsets = [7, 1024], sizes = [1, 256], strides = [1, 1]} : vector<8x2048xf32> to vector<1x256xf32>
    %253 = tpu.concatenate %245, %246, %247, %248, %249, %250, %251, %252 in 1 : vector<1x256xf32>, vector<1x256xf32>, vector<1x256xf32>, vector<1x256xf32>, vector<1x256xf32>, vector<1x256xf32>, vector<1x256xf32>, vector<1x256xf32> -> vector<1x2048xf32>
    %c4_150 = arith.constant 4 : index
    %c0_151 = arith.constant 0 : index
    %254 = vector.load %arg14[%c4_150, %c0_151] : memref<8x2048xf32, #tpu.memory_space<vmem>>, vector<1x2048xf32>
    tpu.vector_store %arg14[%c4_150, %c0_151], %253 {strides = array<i32>} : memref<8x2048xf32, #tpu.memory_space<vmem>>, vector<1x2048xf32>,
    %255 = vector.extract_strided_slice %204 {offsets = [0, 1280], sizes = [1, 256], strides = [1, 1]} : vector<8x2048xf32> to vector<1x256xf32>
    %256 = vector.extract_strided_slice %204 {offsets = [1, 1280], sizes = [1, 256], strides = [1, 1]} : vector<8x2048xf32> to vector<1x256xf32>
    %257 = vector.extract_strided_slice %204 {offsets = [2, 1280], sizes = [1, 256], strides = [1, 1]} : vector<8x2048xf32> to vector<1x256xf32>
    %258 = vector.extract_strided_slice %204 {offsets = [3, 1280], sizes = [1, 256], strides = [1, 1]} : vector<8x2048xf32> to vector<1x256xf32>
    %259 = vector.extract_strided_slice %204 {offsets = [4, 1280], sizes = [1, 256], strides = [1, 1]} : vector<8x2048xf32> to vector<1x256xf32>
    %260 = vector.extract_strided_slice %204 {offsets = [5, 1280], sizes = [1, 256], strides = [1, 1]} : vector<8x2048xf32> to vector<1x256xf32>
    %261 = vector.extract_strided_slice %204 {offsets = [6, 1280], sizes = [1, 256], strides = [1, 1]} : vector<8x2048xf32> to vector<1x256xf32>
    %262 = vector.extract_strided_slice %204 {offsets = [7, 1280], sizes = [1, 256], strides = [1, 1]} : vector<8x2048xf32> to vector<1x256xf32>
    %263 = tpu.concatenate %255, %256, %257, %258, %259, %260, %261, %262 in 1 : vector<1x256xf32>, vector<1x256xf32>, vector<1x256xf32>, vector<1x256xf32>, vector<1x256xf32>, vector<1x256xf32>, vector<1x256xf32>, vector<1x256xf32> -> vector<1x2048xf32>
    %c5_152 = arith.constant 5 : index
    %c0_153 = arith.constant 0 : index
    %264 = vector.load %arg14[%c5_152, %c0_153] : memref<8x2048xf32, #tpu.memory_space<vmem>>, vector<1x2048xf32>
    tpu.vector_store %arg14[%c5_152, %c0_153], %263 {strides = array<i32>} : memref<8x2048xf32, #tpu.memory_space<vmem>>, vector<1x2048xf32>,
    %265 = vector.extract_strided_slice %204 {offsets = [0, 1536], sizes = [1, 256], strides = [1, 1]} : vector<8x2048xf32> to vector<1x256xf32>
    %266 = vector.extract_strided_slice %204 {offsets = [1, 1536], sizes = [1, 256], strides = [1, 1]} : vector<8x2048xf32> to vector<1x256xf32>
    %267 = vector.extract_strided_slice %204 {offsets = [2, 1536], sizes = [1, 256], strides = [1, 1]} : vector<8x2048xf32> to vector<1x256xf32>
    %268 = vector.extract_strided_slice %204 {offsets = [3, 1536], sizes = [1, 256], strides = [1, 1]} : vector<8x2048xf32> to vector<1x256xf32>
    %269 = vector.extract_strided_slice %204 {offsets = [4, 1536], sizes = [1, 256], strides = [1, 1]} : vector<8x2048xf32> to vector<1x256xf32>
    %270 = vector.extract_strided_slice %204 {offsets = [5, 1536], sizes = [1, 256], strides = [1, 1]} : vector<8x2048xf32> to vector<1x256xf32>
    %271 = vector.extract_strided_slice %204 {offsets = [6, 1536], sizes = [1, 256], strides = [1, 1]} : vector<8x2048xf32> to vector<1x256xf32>
    %272 = vector.extract_strided_slice %204 {offsets = [7, 1536], sizes = [1, 256], strides = [1, 1]} : vector<8x2048xf32> to vector<1x256xf32>
    %273 = tpu.concatenate %265, %266, %267, %268, %269, %270, %271, %272 in 1 : vector<1x256xf32>, vector<1x256xf32>, vector<1x256xf32>, vector<1x256xf32>, vector<1x256xf32>, vector<1x256xf32>, vector<1x256xf32>, vector<1x256xf32> -> vector<1x2048xf32>
    %c6_154 = arith.constant 6 : index
    %c0_155 = arith.constant 0 : index
    %274 = vector.load %arg14[%c6_154, %c0_155] : memref<8x2048xf32, #tpu.memory_space<vmem>>, vector<1x2048xf32>
    tpu.vector_store %arg14[%c6_154, %c0_155], %273 {strides = array<i32>} : memref<8x2048xf32, #tpu.memory_space<vmem>>, vector<1x2048xf32>,
    %275 = vector.extract_strided_slice %204 {offsets = [0, 1792], sizes = [1, 256], strides = [1, 1]} : vector<8x2048xf32> to vector<1x256xf32>
    %276 = vector.extract_strided_slice %204 {offsets = [1, 1792], sizes = [1, 256], strides = [1, 1]} : vector<8x2048xf32> to vector<1x256xf32>
    %277 = vector.extract_strided_slice %204 {offsets = [2, 1792], sizes = [1, 256], strides = [1, 1]} : vector<8x2048xf32> to vector<1x256xf32>
    %278 = vector.extract_strided_slice %204 {offsets = [3, 1792], sizes = [1, 256], strides = [1, 1]} : vector<8x2048xf32> to vector<1x256xf32>
    %279 = vector.extract_strided_slice %204 {offsets = [4, 1792], sizes = [1, 256], strides = [1, 1]} : vector<8x2048xf32> to vector<1x256xf32>
    %280 = vector.extract_strided_slice %204 {offsets = [5, 1792], sizes = [1, 256], strides = [1, 1]} : vector<8x2048xf32> to vector<1x256xf32>
    %281 = vector.extract_strided_slice %204 {offsets = [6, 1792], sizes = [1, 256], strides = [1, 1]} : vector<8x2048xf32> to vector<1x256xf32>
    %282 = vector.extract_strided_slice %204 {offsets = [7, 1792], sizes = [1, 256], strides = [1, 1]} : vector<8x2048xf32> to vector<1x256xf32>
    %283 = tpu.concatenate %275, %276, %277, %278, %279, %280, %281, %282 in 1 : vector<1x256xf32>, vector<1x256xf32>, vector<1x256xf32>, vector<1x256xf32>, vector<1x256xf32>, vector<1x256xf32>, vector<1x256xf32>, vector<1x256xf32> -> vector<1x2048xf32>
    %c7_156 = arith.constant 7 : index
    %c0_157 = arith.constant 0 : index
    %284 = vector.load %arg14[%c7_156, %c0_157] : memref<8x2048xf32, #tpu.memory_space<vmem>>, vector<1x2048xf32>
    tpu.vector_store %arg14[%c7_156, %c0_157], %283 {strides = array<i32>} : memref<8x2048xf32, #tpu.memory_space<vmem>>, vector<1x2048xf32>,
    %c0_158 = arith.constant 0 : index
    %c0_159 = arith.constant 0 : index
    %285 = vector.load %arg14[%c0_158, %c0_159] : memref<8x2048xf32, #tpu.memory_space<vmem>>, vector<8x2048xf32>
    %286 = arith.truncf %285 : vector<8x2048xf32> to vector<8x2048xbf16>
    %c0_160 = arith.constant 0 : index
    %c0_161 = arith.constant 0 : index
    %287 = vector.load %arg7[%c0_160, %c0_161] : memref<2048x256xbf16, #tpu.memory_space<vmem>>, vector<2048x256xbf16>
    %cst_162 = arith.constant dense<0.000000e+00> : vector<8x256xf32>
    %288 = tpu.matmul %286, %287, %cst_162 {dimension_numbers = #tpu.dot_dimension_numbers<[1], [0], [0], [1], [0, 0, 1, 1], [], []>} : vector<8x2048xbf16>, vector<2048x256xbf16>, vector<8x256xf32> -> vector<8x256xf32>
    %c0_163 = arith.constant 0 : index
    %c0_164 = arith.constant 0 : index
    %289 = vector.load %arg8[%c0_163, %c0_164] : memref<1x256xf32, #tpu.memory_space<vmem>>, vector<1x256xf32>
    %290 = vector.broadcast %289 : vector<1x256xf32> to vector<8x256xf32>
    %291 = arith.addf %288, %290 : vector<8x256xf32>
    %cst_165 = arith.constant 0.000000e+00 : f32
    %292 = vector.broadcast %cst_165 : f32 to vector<8x256xf32>
    %293 = arith.maximumf %291, %292 : vector<8x256xf32>
    %c0_166 = arith.constant 0 : index
    %c0_167 = arith.constant 0 : index
    %294 = vector.load %arg9[%c0_166, %c0_167] : memref<256x128xf32, #tpu.memory_space<vmem>>, vector<256x128xf32>
    %cst_168 = arith.constant dense<0.000000e+00> : vector<8x128xf32>
    %295 = tpu.matmul %293, %294, %cst_168 {dimension_numbers = #tpu.dot_dimension_numbers<[1], [0], [0], [1], [0, 0, 1, 1], [], []>} : vector<8x256xf32>, vector<256x128xf32>, vector<8x128xf32> -> vector<8x128xf32>
    %c0_169 = arith.constant 0 : index
    %c0_170 = arith.constant 0 : index
    %296 = vector.load %arg10[%c0_169, %c0_170] : memref<1x128xf32, #tpu.memory_space<vmem>>, vector<1x128xf32>
    %297 = vector.broadcast %296 : vector<1x128xf32> to vector<8x128xf32>
    %298 = arith.addf %295, %297 : vector<8x128xf32>
    %c0_171 = arith.constant 0 : index
    %c0_172 = arith.constant 0 : index
    %c0_173 = arith.constant 0 : index
    %299 = vector.load %arg11[%c0_171, %c0_172, %c0_173] : memref<1x8x128xf32, #tpu.memory_space<vmem>>, vector<1x8x128xf32>
    %300 = vector.shape_cast %299 : vector<1x8x128xf32> to vector<8x128xf32>
    %301 = vector.shape_cast %298 : vector<8x128xf32> to vector<1x8x128xf32>
    tpu.vector_store %arg11[%c0_171, %c0_172, %c0_173], %301 {strides = array<i32>} : memref<1x8x128xf32, #tpu.memory_space<vmem>>, vector<1x8x128xf32>,
    return
  }
  func.func @transform_0(%arg0: i32) -> (i32, i32, i32) {
    %c0_i32 = arith.constant 0 : i32
    %c0_i32_0 = arith.constant 0 : i32
    %c0_i32_1 = arith.constant 0 : i32
    return %arg0, %c0_i32, %c0_i32_0 : i32, i32, i32
  }
  func.func @transform_1(%arg0: i32) -> (i32, i32) {
    %c0_i32 = arith.constant 0 : i32
    %c0_i32_0 = arith.constant 0 : i32
    %c0_i32_1 = arith.constant 0 : i32
    return %c0_i32, %c0_i32_0 : i32, i32
  }
  func.func @transform_2(%arg0: i32) -> (i32, i32) {
    %c0_i32 = arith.constant 0 : i32
    %c0_i32_0 = arith.constant 0 : i32
    %c0_i32_1 = arith.constant 0 : i32
    return %c0_i32, %c0_i32_0 : i32, i32
  }
  func.func @transform_3(%arg0: i32) -> (i32, i32) {
    %c0_i32 = arith.constant 0 : i32
    %c0_i32_0 = arith.constant 0 : i32
    %c0_i32_1 = arith.constant 0 : i32
    return %c0_i32, %c0_i32_0 : i32, i32
  }
  func.func @transform_4(%arg0: i32) -> (i32, i32) {
    %c0_i32 = arith.constant 0 : i32
    %c0_i32_0 = arith.constant 0 : i32
    %c0_i32_1 = arith.constant 0 : i32
    return %c0_i32, %c0_i32_0 : i32, i32
  }
  func.func @transform_5(%arg0: i32) -> (i32, i32) {
    %c0_i32 = arith.constant 0 : i32
    %c0_i32_0 = arith.constant 0 : i32
    %c0_i32_1 = arith.constant 0 : i32
    return %c0_i32, %c0_i32_0 : i32, i32
  }
  func.func @transform_6(%arg0: i32) -> (i32, i32) {
    %c0_i32 = arith.constant 0 : i32
    %c0_i32_0 = arith.constant 0 : i32
    %c0_i32_1 = arith.constant 0 : i32
    return %c0_i32, %c0_i32_0 : i32, i32
  }
  func.func @transform_7(%arg0: i32) -> (i32, i32) {
    %c0_i32 = arith.constant 0 : i32
    %c0_i32_0 = arith.constant 0 : i32
    %c0_i32_1 = arith.constant 0 : i32
    return %c0_i32, %c0_i32_0 : i32, i32
  }
  func.func @transform_8(%arg0: i32) -> (i32, i32) {
    %c0_i32 = arith.constant 0 : i32
    %c0_i32_0 = arith.constant 0 : i32
    %c0_i32_1 = arith.constant 0 : i32
    return %c0_i32, %c0_i32_0 : i32, i32
  }
  func.func @transform_9(%arg0: i32) -> (i32, i32) {
    %c0_i32 = arith.constant 0 : i32
    %c0_i32_0 = arith.constant 0 : i32
    %c0_i32_1 = arith.constant 0 : i32
    return %c0_i32, %c0_i32_0 : i32, i32
  }
  func.func @transform_10(%arg0: i32) -> (i32, i32, i32) {
    %c0_i32 = arith.constant 0 : i32
    %c0_i32_0 = arith.constant 0 : i32
    %c0_i32_1 = arith.constant 0 : i32
    return %arg0, %c0_i32, %c0_i32_0 : i32, i32, i32
  }
}

</mosaic_0001>

<bundles_post_ra>
// kernel: forward.1
= control target key start
LH: loop header
LB: loop body
LE: loop exit
PB: predicated region body
PF: predicated region fallthrough
CT: control target
= control target key end

     0   :  { %15 = vsyncpa [#allocation6], 0  ;;  %s10681_s13 = smov 0   ;;  %s18336_s0 = inlined_call_operand.vmem [shape: f32[2,1,2304], index: 0, kind: input, shape index: {}]   ;;  %s18337_s1 = inlined_call_operand.vmem [shape: f32[9,2048], index: 1, kind: input, shape index: {}]   ;;  %s18338_s2 = inlined_call_operand.vmem [shape: f32[16,9], index: 2, kind: input, shape index: {}]   ;;  %s18339_s3 = inlined_call_operand.vmem [shape: f32[16,1], index: 3, kind: input, shape index: {}]   ;;  %s18340_s4 = inlined_call_operand.vmem [shape: bf16[8,144], index: 4, kind: input, shape index: {}]   ;;  %s18341_s5 = inlined_call_operand.vmem [shape: f32[8,1], index: 5, kind: input, shape index: {}]   ;;  %s18342_s6 = inlined_call_operand.hbm [shape: bf16[2048,256], index: 6, kind: input, shape index: {}]   ;;  %s18343_s7 = inlined_call_operand.vmem [shape: f32[1,256], index: 7, kind: input, shape index: {}]   ;;  %s18344_s8 = inlined_call_operand.vmem [shape: f32[256,128], index: 8, kind: input, shape index: {}]   ;;  %s18345_s9 = inlined_call_operand.vmem [shape: f32[1,128], index: 9, kind: input, shape index: {}]   ;;  %s18346_s10 = inlined_call_operand.vmem [shape: f32[2,8,128], index: 10, kind: output, shape index: {}]  }
   0x1 LB: > { %s293_s16 = sshll.u32 %s18342_s6, 4  ;;  %s8314_s17 = sadd.s32 4294967295, %s10604_s13   ;;  %s10604_s13 = sphi %s10681_s13, %s21_s13   ;;  %s294_s16 = int_to_ptr.hbm [resolvable:$true] %s293_s16 }
   0x2   : > { %p8316_p0 = scmp.ge.s32.totalorder %s10604_s13, 1  ;;  %p267_p1 = scmp.lt.s32.totalorder %s10604_s13, 3 }
   0x3   : > { %p10513_p2 = scmp.eq.s32.totalorder %s8314_s17, 0  ;;  %s10606_s18 = smov [#allocation5]  }
   0x4   : > { %p268_p3 = pnand %p8316_p0, %p267_p1  ;;  %s295_s19 = sshll.u32 %s10606_s18, 4  ;;  %s296_s19 = int_to_ptr.vmem [resolvable:$true] %s295_s19 }
   0x5   : > { %s10607_s20 = smov 128   ;;  %s10608_s21 = smov 8  }
   0x6   : > { %p10509_p4 = pneg %p268_p3  ;;  %327 = sbr.rel (%p268_p3) target bundleno = 1604 (0x644), region = 60 }
   0x8   : > { %p10510_p5 = pnand %p10513_p2, %p10509_p4 }
   0xa   : > { %10512 = dma.hbm_to_vmem [thread:$0]  (!%p10510_p5), %s294_s16, 32768, %s296_s19, [#allocation6], %s10607_s20, %s10607_s20, %s10608_s21  }
   0xb   : > { %10599 = dma.done.wait (%p10513_p2), [#allocation6], 32768  }
   0xc   : > { %10601 = vsyncadd (%p10513_p2), [#allocation6], 4294934528  ;;  %p364_p6 = scmp.lt.s32.totalorder %s8314_s17, 1  ;;  %v18367_v0 = vmov 0   ;;  %v10610_v1 = vmov 1   ;;  %s10611_s26 = smov 17  }
   0xd   : > { %10543 = vset.pattern.permute.xlu1 %v18367_v0  ;;  %10544 = vset.pattern.permute.xlu2 %v10610_v1  ;;  %s10612_s27 = smov 16   ;;  %v10712_v4 = vld [vmem:[%s18338_s2] sm:$0xff]  ;;  %s10613_s30 = smov 15   ;;  %v10724_v6 = vld [vmem:[%s18338_s2 + $0x8] sm:$0xff]  ;;  %v10616_v9 = vmov 2   ;;  %v10618_v10 = vmov 3  }
   0xe   : > { %s20133_s17 = smov (!%p364_p6, %s8314_s17), 1  ;;  %10545 = vset.pattern.permute.xlu0 %v10610_v1  ;;  %s10614_s11 = smov 1   ;;  %v10619_v11 = vmov 4   ;;  %v8382_v12 = vld [vmem:[%s18337_s1 + $0x7] ss:$8 sm:$0xf] }
   0xf   : > { %s10504_s22 = smul.u32 18, %s20133_s17  ;;  %s10615_s15 = smov 127   ;;  %v8383_v13 = vld [vmem:[%s18337_s1 + $0x7] ss:$8 sm:$0xf0]  ;;  %v10622_v14 = vmov 5  }
  0x10   : > { %s10617_s16 = smov 113   ;;  %s10620_s18 = smov 112   ;;  %v3810_v15 = vor.u32 %v8383_v13, %v8382_v12  ;;  %v8378_v16 = vld [vmem:[%s18337_s1 + $0x6] ss:$8 sm:$0xf]  ;;  %v10623_v22 = vmov 6  }
  0x11   : > { %s10699_s25 = scalar_lea.vmem %s18336_s0, %s10504_s22  ;;  %s10621_s23 = smov 111   ;;  %v8379_v17 = vld [vmem:[%s18337_s1 + $0x6] ss:$8 sm:$0xf0]  ;;  %v10624_v25 = vmov 8   ;;  %v10625_v38 = vmov 7  }
  0x12   : > { %v10702_v2 = vld [vmem:[%s10699_s25 + $0x10] sm:$0x1]  ;;  %v375_v3 = vld [vmem:[%s10699_s25] sm:$0xff]  ;;  %v376_v5 = vld [vmem:[%s10699_s25 + $0x8] sm:$0xff]  ;;  %vm3814_vm0 = vcmp.ne.f32.partialorder %v3810_v15, 0.0  ;;  %v3478_v19 = vor.u32 %v8379_v17, %v8378_v16  ;;  %s8321_s22 = sshll.u32 %s20133_s17, 3 }
  0x13   : > { %394 = vrot.lane.b32.xlu1 %v10702_v2, %s10611_s26  ;;  %529 = vrot.lane.b32.xlu2 %v375_v3, %s10612_s27  ;;  %v10730_v7 = vld [vmem:[%s10699_s25 + $0x1] sm:$0xff]  ;;  %v10733_v8 = vld [vmem:[%s10699_s25 + $0x9] sm:$0xff]  ;;  %v10769_v18 = vsel %vm3814_vm0, 1, %v18367_v0 }
  0x14   : > { %390 = vrot.lane.b32.xlu0 %v375_v3, %s10611_s26  ;;  %v3820_v20 = vperm.slane %v10769_v18, 2  ;;  %v3821_v21 = vperm.slane %v10769_v18, 3  ;;  %vm3482_vm1 = vcmp.ne.f32.partialorder %v3478_v19, 0.0  ;;  %v8374_v23 = vld [vmem:[%s18337_s1 + $0x5] ss:$8 sm:$0xf] }
  0x15   : > { %v8375_v24 = vld [vmem:[%s18337_s1 + $0x5] ss:$8 sm:$0xf0]  ;;  %v10784_v26 = vsel %vm3482_vm1, 1, %v18367_v0  ;;  %v3818_v50 = vperm.slane %v10769_v18, 0  ;;  %v3819_v51 = vperm.slane %v10769_v18, 1 }
  0x16   : > { %vm3836_vm2 = vcmp.eq.s32.totalorder %v3820_v20, 1  ;;  %vm3837_vm3 = vcmp.eq.s32.totalorder %v3821_v21, 1  ;;  %v3146_v27 = vor.u32 %v8375_v24, %v8374_v23  ;;  %v3488_v28 = vperm.slane %v10784_v26, 2  ;;  %v8386_v31 = vld [vmem:[%s18337_s1 + $0x80] ss:$8 sm:$0xf] }
  0x17   : > { %vm3851_vm4 = vmpackc.low %vm3837_vm3, %vm3836_vm2  ;;  %v3489_v29 = vperm.slane %v10784_v26, 3  ;;  %v8387_v32 = vld [vmem:[%s18337_s1 + $0x80] ss:$8 sm:$0xf0]  ;;  %v3822_v54 = vperm.slane %v10769_v18, 4  ;;  %v3823_v55 = vperm.slane %v10769_v18, 5 }
  0x18   : > { %v3859_v30 = vsel %vm3851_vm4, 65537, %v18367_v0  ;;  %vm3150_vm5 = vcmp.ne.f32.partialorder %v3146_v27, 0.0  ;;  %vm10797_vm6 = vcmp.eq.s32.totalorder %v3488_v28, 1  ;;  %v4142_v35 = vor.u32 %v8387_v32, %v8386_v31  ;;  %v8366_v44 = vld [vmem:[%s18337_s1 + $0x3] ss:$8 sm:$0xf] }
  0x19   : > { %vm3505_vm7 = vcmp.eq.s32.totalorder %v3489_v29, 1  ;;  %v10803_v34 = vsel %vm3150_vm5, 1, %v18367_v0  ;;  %v8367_v45 = vld [vmem:[%s18337_s1 + $0x3] ss:$8 sm:$0xf0]  ;;  %vm10853_vm1 = vcmp.eq.s32.totalorder %v3818_v50, 1 }
  0x1a   : > { %vm3519_vm8 = vmpackc.low %vm3505_vm7, %vm10797_vm6  ;;  %v3156_v36 = vperm.slane %v10803_v34, 2  ;;  %v3157_v37 = vperm.slane %v10803_v34, 3  ;;  %vm4146_vm9 = vcmp.ne.f32.partialorder %v4142_v35, 0.0  ;;  %v2714_v47 = vor.u32 %v8367_v45, %v8366_v44  ;;  %v1583_v53 = vld [vmem:[%s18339_s3] sm:$0xff]  ;;  %v1584_v58 = vld [vmem:[%s18339_s3 + $0x8] sm:$0xff] }
  0x1b   : > { %413 = vperm.xlu1 %10543, %v10712_v4   ;;  %531 = vrot.lane.b32.xlu2 %v376_v5, %s10612_s27  ;;  %v3527_v39 = vsel %vm3519_vm8, 65537, %v18367_v0  ;;  %v10814_v40 = vsel %vm4146_vm9, 1, %v18367_v0  ;;  %vm10857_vm2 = vcmp.eq.s32.totalorder %v3819_v51, 1  ;;  %vm10865_vm3 = vcmp.eq.s32.totalorder %v3822_v54, 1 }
  0x1c   : > { %392 = vrot.lane.b32.xlu0 %v376_v5, %s10611_s26  ;;  %vm3172_vm10 = vcmp.eq.s32.totalorder %v3156_v36, 1  ;;  %vm3173_vm11 = vcmp.eq.s32.totalorder %v3157_v37, 1  ;;  %v4150_v42 = vperm.slane %v10814_v40, 0  ;;  %v4151_v43 = vperm.slane %v10814_v40, 1  ;;  %vm3850_vm5 = vmpackc.low %vm10857_vm2, %vm10853_vm1 }
  0x1d   : > { %vm3187_vm12 = vmpackc.low %vm3173_vm11, %vm3172_vm10  ;;  %vm2718_vm0 = vcmp.ne.f32.partialorder %v2714_v47, 0.0  ;;  %vm10869_vm4 = vcmp.eq.s32.totalorder %v3823_v55, 1  ;;  %v8362_v63 = vld [vmem:[%s18337_s1 + $0x2] ss:$8 sm:$0xf]  ;;  %v3490_v12 = vperm.slane %v10784_v26, 4 }
  0x1e   : > { %v3195_v46 = vsel %vm3187_vm12, 65537, %v18367_v0  ;;  %vm10830_vm13 = vcmp.eq.s32.totalorder %v4150_v42, 1  ;;  %vm10834_vm14 = vcmp.eq.s32.totalorder %v4151_v43, 1  ;;  %v10874_v62 = vsel %vm2718_vm0, 1, %v18367_v0  ;;  %vm3852_vm6 = vmpackc.low %vm10869_vm4, %vm10865_vm3 }
  0x1f   : > { %vm4182_vm15 = vmpackc.low %vm10834_vm14, %vm10830_vm13  ;;  %v8363_v1 = vld [vmem:[%s18337_s1 + $0x2] ss:$8 sm:$0xf0]  ;;  %v3491_v13 = vperm.slane %v10784_v26, 5  ;;  %v3860_v16 = vsel %vm3852_vm6, 65537, %v18367_v0  ;;  %vm10928_vm13 = vcmp.eq.s32.totalorder %v3490_v12, 1 }
  0x20   : > { %v4190_v59 = vsel %vm4182_vm15, 65537, %v18367_v0  ;;  %v8324_v20 = vld [vmem:[%s18337_s1 + $0x1] ss:$8 sm:$0xf]  ;;  %v3155_v27 = vperm.slane %v10803_v34, 1  ;;  %vm399_vm0 = vcmask 1046528  }
  0x21   : > { %vm10932_vm14 = vcmp.eq.s32.totalorder %v3491_v13, 1  ;;  %v8325_v24 = vld [vmem:[%s18337_s1 + $0x1] ss:$8 sm:$0xf0]  ;;  %v3158_v37 = vperm.slane %v10803_v34, 4  ;;  %vm18543_vm4 = vcmask 130048  }
  0x22   : > { %vm3520_vm1 = vmpackc.low %vm10932_vm14, %vm10928_vm13  ;;  %v522_v35 = vor.u32 %v8325_v24, %v8324_v20  ;;  %v378_v36 = vld [vmem:[%s18337_s1] ss:$8 sm:$0xf]  ;;  %v8337_v42 = vld [vmem:[%s18337_s1 + $0x4] ss:$8 sm:$0xf0] }
  0x23   : > { %665 = vrot.lane.b32.xlu1 %v376_v5, %s10613_s30  ;;  %797 = vrot.lane.b32.xlu2 %v375_v3, %s10614_s11  ;;  %vm10975_vm3 = vcmp.eq.s32.totalorder %v3155_v27, 1  ;;  %v379_v49 = vld [vmem:[%s18337_s1] ss:$8 sm:$0xf0]  ;;  %v3528_v50 = vsel %vm3520_vm1, 65537, %v18367_v0  ;;  %v4152_v13 = vperm.slane %v10814_v40, 2 }
  0x24   : > { %663 = vrot.lane.b32.xlu0 %v375_v3, %s10613_s30  ;;  %v3486_v3 = vperm.slane %v10784_v26, 0  ;;  %v8358_v51 = vld [vmem:[%s18337_s1 + $0x1] ss:$8 sm:$0xf]  ;;  %v380_v60 = vor.u32 %v379_v49, %v378_v36  ;;  %v2723_v54 = vperm.slane %v10874_v62, 1 }
  0x26   : > { %vm10901_vm7 = vcmp.eq.s32.totalorder %v3486_v3, 1  ;;  %v8339_v3 = vld [vmem:[%s18337_s1 + $0x44] ss:$8 sm:$0xf0]  ;;  %vm385_vm14 = vcmp.ne.f32.partialorder %v380_v60, 0.0 }
  0x2b   : > { %418 = vperm.xlu1 %10543, %v10724_v6   ;;  %548 = vperm.xlu2 %10544, %v10712_v4  }
  0x2c   : > { %799 = vrot.lane.b32.xlu0 %v376_v5, %s10614_s11 }
  0x33   : > { %1057 = vrot.lane.b32.xlu1 %v10730_v7, %s10615_s15  ;;  %1059 = vrot.lane.b32.xlu2 %v10733_v8, %s10615_s15 }
  0x34   : > { %10546 = vset.pattern.permute.xlu1 %v10616_v9  ;;  %552 = vperm.xlu0 %10545, %v10724_v6  }
  0x35   : > { %10547 = vset.pattern.permute.xlu2 %v10616_v9  ;;  %v2726_v9 = vperm.slane %v10874_v62, 4 }
  0x37   : > { %vm10911_vm9 = vcmp.eq.s32.totalorder %v2726_v9, 1 }
  0x3b   : > { %682 = vperm.xlu1 %10546, %v10712_v4   ;;  %686 = vperm.xlu2 %10547, %v10724_v6  }
  0x3c   : > { %1191 = vrot.lane.b32.xlu0 %v10730_v7, %s10617_s16 }
  0x3d   : > { %10549 = vset.pattern.permute.xlu0 %v10618_v10 }
  0x43   : > { %1193 = vrot.lane.b32.xlu1 %v10733_v8, %s10617_s16  ;;  %10548 = vset.pattern.permute.xlu2 %v10618_v10  ;;  %v2727_v10 = vperm.slane %v10874_v62, 5 }
  0x44   : > { %10550 = vset.pattern.permute.xlu1 %v10619_v11  ;;  %820 = vperm.xlu0 %10549, %v10724_v6  }
  0x45   : > { %816 = vperm.xlu2 %10548, %v10712_v4   ;;  %vm10915_vm10 = vcmp.eq.s32.totalorder %v2727_v10, 1 }
  0x46   : > { %vm2756_vm15 = vmpackc.low %vm10915_vm10, %vm10911_vm9 }
  0x47   : > { %v2764_v48 = vsel %vm2756_vm15, 65537, %v18367_v0 }
  0x4b   : > { %1325 = vrot.lane.b32.xlu1 %v10730_v7, %s10620_s18 }
  0x4c   : > { %1459 = vrot.lane.b32.xlu0 %v10730_v7, %s10621_s23 }
  0x4d   : > { %1327 = vrot.lane.b32.xlu2 %v10733_v8, %s10620_s18  ;;  %10553 = vset.pattern.permute.xlu0 %v10622_v14 }
  0x4e   : > { %10551 = vset.pattern.permute.xlu2 %v10619_v11  ;;  %v2380_v11 = vor.u32 %v8363_v1, %v8362_v63 }
  0x50   : > { %vm2384_vm11 = vcmp.ne.f32.partialorder %v2380_v11, 0.0 }
  0x53   : > { %936 = vperm.xlu1 %10550, %v10712_v4  }
  0x54   : > { %1080 = vperm.xlu0 %10553, %v10724_v6  }
  0x55   : > { %940 = vperm.xlu2 %10551, %v10724_v6  }
  0x5b   : > { %1461 = vrot.lane.b32.xlu1 %v10733_v8, %s10621_s23 }
  0x5c   : > { %10554 = vset.pattern.permute.xlu1 %v10623_v22  ;;  %10558 = vset.pattern.permute.xlu0 %v10624_v25 }
  0x5d   : > { %10552 = vset.pattern.permute.xlu2 %v10622_v14  ;;  %1478 = vperm.xlu0 %10558, %v10712_v4   ;;  %v4153_v14 = vperm.slane %v10814_v40, 3 }
  0x5e   : > { %1076 = vperm.xlu2 %10552, %v10712_v4  }
  0x63   : > { %1210 = vperm.xlu1 %10554, %v10712_v4  }
  0x65   : > { %3868 = vrot.lane.b32.xlu0 %v3859_v30, %s10612_s27  ;;  %v10951_v30 = vsel %vm2384_vm11, 1, %v18367_v0  ;;  %vm18383_vm11 = vcmask 138240  }
  0x66   : > { %10555 = vset.pattern.permute.xlu2 %v10623_v22  ;;  %10562 = vset.pattern.permute.xlu0 %v18367_v0  ;;  %v2390_v45 = vperm.slane %v10951_v30, 2 }
  0x67   : > { %1214 = vperm.xlu2 %10555, %v10724_v6  }
  0x68   : > { %vm11030_vm9 = vcmp.eq.s32.totalorder %v2390_v45, 1  ;;  %v8323_v45 = vld [vmem:[%s18337_s1 + $0x40] ss:$8 sm:$0xf0] }
  0x6b   : > { %10556 = vset.pattern.permute.xlu1 %v10625_v38 }
  0x6c   : > { %1344 = vperm.xlu1 %10556, %v10712_v4   ;;  %v3487_v4 = vperm.slane %v10784_v26, 1 }
  0x6d   : > { %3536 = vrot.lane.b32.xlu0 %v3527_v39, %s10613_s30  ;;  %v10817_v41 = vpop.permute.xlu2 %529  ;;  %v8336_v39 = vld [vmem:[%s18337_s1 + $0x4] ss:$8 sm:$0xf] }
  0x6e   : > { %vm10905_vm8 = vcmp.eq.s32.totalorder %v3487_v4, 1  ;;  %v535_v28 = vrot.slane %v10817_v41, 1  ;;  %v926_v1 = vor.u32 %v8337_v42, %v8336_v39 }
  0x6f   : > { %10557 = vset.pattern.permute.xlu2 %v10625_v38  ;;  %vm3518_vm12 = vmpackc.low %vm10905_vm8, %vm10901_vm7  ;;  %v3159_v38 = vperm.slane %v10803_v34, 5  ;;  %vm11016_vm7 = vcmp.eq.s32.totalorder %v3158_v37, 1 }
  0x70   : > { %1348 = vperm.xlu2 %10557, %v10724_v6   ;;  %v3526_v33 = vsel %vm3518_vm12, 65537, %v18367_v0  ;;  %vm11067_vm15 = vcmp.ne.f32.partialorder %v926_v1, 0.0 }
  0x71   : > { %vm11020_vm8 = vcmp.eq.s32.totalorder %v3159_v38, 1 }
  0x72   : > { %vm3188_vm12 = vmpackc.low %vm11020_vm8, %vm11016_vm7 }
  0x73   : > { %v3196_v19 = vsel %vm3188_vm12, 65537, %v18367_v0  ;;  %vm11180_vm12 = vcmp.eq.s32.totalorder %v2723_v54, 1 }
  0x74   : > { %10559 = vset.pattern.permute.xlu1 %v10624_v25  ;;  %v3154_v25 = vperm.slane %v10803_v34, 0 }
  0x75   : > { %1482 = vperm.xlu1 %10559, %v10724_v6   ;;  %3204 = vrot.lane.b32.xlu0 %v3195_v46, %s10614_s11  ;;  %v10841_v52 = vpop.permute.xlu2 %531  ;;  %v3858_v6 = vsel %vm3850_vm5, 65537, %v18367_v0  ;;  %v2391_v46 = vperm.slane %v10951_v30, 3  ;;  %vm11006_vm5 = vcmp.ne.f32.partialorder %v522_v35, 0.0 }
  0x76   : > { %v18355_v29 = vrot.slane %v10841_v52, 1  ;;  %vm10971_vm2 = vcmp.eq.s32.totalorder %v3154_v25, 1  ;;  %v1709_v25 = vld [vmem:[%s18337_s1] ss:$8 sm:$0xf] }
  0x77   : > { %vm3186_vm6 = vmpackc.low %vm10975_vm3, %vm10971_vm2  ;;  %vm11034_vm10 = vcmp.eq.s32.totalorder %v2391_v46, 1  ;;  %vm11087_vm2 = vcmp.eq.s32.totalorder %v4152_v13, 1  ;;  %vm11091_vm3 = vcmp.eq.s32.totalorder %v4153_v14, 1  ;;  %v11116_v46 = vsel %vm11067_vm15, %v10730_v7, 0.0 }
  0x78   : > { %10560 = vset.pattern.permute.xlu2 %v18367_v0  ;;  %v538_v47 = vsel %vm399_vm0, %v535_v28, %v18355_v29  ;;  %v3194_v10 = vsel %vm3186_vm6, 65537, %v18367_v0  ;;  %vm2421_vm13 = vmpackc.low %vm11034_vm10, %vm11030_vm9  ;;  %18672 = vst [vmem:[#allocation13_spill] sm:$0xff] %v11116_v46 }
  0x79   : > { %1587 = vperm.xlu2 %10560, %v1583_v53   ;;  %v8359_v53 = vld [vmem:[%s18337_s1 + $0x1] ss:$8 sm:$0xf0]  ;;  %v2429_v24 = vsel %vm2421_vm13, 65537, %v18367_v0  ;;  %vm4183_vm6 = vmpackc.low %vm11091_vm3, %vm11087_vm2 }
  0x7a   : > { %v4191_v1 = vsel %vm4183_vm6, 65537, %v18367_v0 }
  0x7d   : > { %10561 = vset.pattern.permute.xlu1 %v18367_v0  ;;  %4198 = vrot.lane.b32.xlu0 %v4190_v59, %s10611_s26  ;;  %v10890_v5 = vpop.permute.xlu2 %797  ;;  %v540_v59 = vsel %vm18543_vm4, %v10817_v41, %v538_v47  ;;  %v2046_v41 = vor.u32 %v8359_v53, %v8358_v51  ;;  %v2722_v53 = vperm.slane %v10874_v62, 0 }
  0x7e   : > { %1592 = vperm.xlu1 %10561, %v1584_v58   ;;  %v8338_v58 = vld [vmem:[%s18337_s1 + $0x44] ss:$8 sm:$0xf]  ;;  %v11058_v11 = vsel %vm11006_vm5, %v540_v59, 0.0 }
  0x7f   : > { %18660 = vst [vmem:[#allocation9_spill] sm:$0xff] %v11058_v11  ;;  %v930_v15 = vor.u32 %v8339_v3, %v8338_v58  ;;  %vm2050_vm1 = vcmp.ne.f32.partialorder %v2046_v41, 0.0  ;;  %v18352_v20 = vperm.slane %v11058_v11, 0  ;;  %v18351_v22 = vperm.slane %v11058_v11, 1  ;;  %v11164_v41 = vld [vmem:[%s10699_s25 + $0x11] sm:$0x1] }
  0x80   : > { %v18349_v36 = vperm.slane %v11058_v11, 6  ;;  %v11103_v39 = vsel %vm2050_vm1, 1, %v18367_v0  ;;  %v18348_v42 = vperm.slane %v11058_v11, 7  ;;  %vm11176_vm10 = vcmp.eq.s32.totalorder %v2722_v53, 1 }
  0x81   : > { %3866 = vrot.lane.b32.xlu2 %v3858_v6, %s10612_s27  ;;  %18669 = vst [vmem:[#allocation12_spill] sm:$0xff] %v11103_v39  ;;  %vm11109_vm5 = vcmp.ne.f32.partialorder %v930_v15, 0.0  ;;  %v2058_v51 = vperm.slane %v11103_v39, 4  ;;  %v2059_v7 = vperm.slane %v11103_v39, 5  ;;  %vm2754_vm13 = vmpackc.low %vm11180_vm12, %vm11176_vm10  ;;  %v18358_v14 = vperm.slane %v11058_v11, 3 }
  0x82   : > { %v11160_v3 = vsel %vm11109_vm5, %v10733_v8, 0.0  ;;  %v2762_v13 = vsel %vm2754_vm13, 65537, %v18367_v0  ;;  %v8332_v15 = vld [vmem:[%s18337_s1 + $0x3] ss:$8 sm:$0xf] }
  0x83   : > { %18674 = vst [vmem:[#allocation15_spill] sm:$0xff] %v11160_v3  ;;  %vm11168_vm8 = vcmp.eq.s32.totalorder %v2058_v51, 1  ;;  %vm11172_vm9 = vcmp.eq.s32.totalorder %v2059_v7, 1  ;;  %v8333_v8 = vld [vmem:[%s18337_s1 + $0x3] ss:$8 sm:$0xf0] }
  0x85   : > { %v10922_v21 = vpop.permute.xlu1 %394  ;;  %801 = vrot.lane.b32.xlu0 %v10702_v2, %s10614_s11  ;;  %v10953_v32 = vpop.permute.xlu2 %548 }
  0x86   : > { %3870 = vrot.lane.b32.xlu1 %v3860_v16, %s10612_s27  ;;  %v391_v31 = vpop.permute.xlu0 %390  ;;  %v589_v47 = vmul.f32 %v18352_v20, %v10953_v32  ;;  %v590_v56 = vmul.f32 %v18351_v22, %v10953_v32  ;;  %v595_v57 = vmul.f32 %v18349_v36, %v10953_v32  ;;  %v596_v60 = vmul.f32 %v18348_v42, %v10953_v32 }
  0x87   : > { %v396_v4 = vrot.slane %v391_v31, 1  ;;  %v18356_v42 = vperm.slane %v11058_v11, 5  ;;  %v803_v36 = vrot.slane %v10890_v5, 1  ;;  %v11313_v20 = vmul.f32 %v18358_v14, %v10953_v32 }
  0x89   : > { %3534 = vrot.lane.b32.xlu2 %v3526_v33, %s10613_s30  ;;  %v11341_v29 = vmul.f32 %v18356_v42, %v10953_v32 }
  0x8d   : > { %v11010_v55 = vpop.permute.xlu1 %413  ;;  %2774 = vrot.lane.b32.xlu0 %v2764_v48, %s10615_s15  ;;  %v11044_v9 = vpop.permute.xlu2 %1059 }
  0x8e   : > { %3538 = vrot.lane.b32.xlu1 %v3528_v50, %s10613_s30  ;;  %v11042_v6 = vpop.permute.xlu0 %392  ;;  %18659 = vst [vmem:[#allocation8_spill] sm:$0xff] %v11044_v9 }
  0x8f   : > { %v397_v12 = vrot.slane %v11042_v6, 1 }
  0x91   : > { %v400_v17 = vsel %vm399_vm0, %v396_v4, %v397_v12  ;;  %3202 = vrot.lane.b32.xlu2 %v3194_v10, %s10614_s11 }
  0x92   : > { %v402_v23 = vsel %vm18383_vm11, %v391_v31, %v400_v17  ;;  %v1710_v31 = vld [vmem:[%s18337_s1] ss:$8 sm:$0xf0] }
  0x93   : > { %v11083_v27 = vsel %vm385_vm14, %v402_v23, 0.0  ;;  %v1711_v50 = vor.u32 %v1710_v31, %v1709_v25  ;;  %v2725_v23 = vperm.slane %v10874_v62, 3  ;;  %v8322_v31 = vld [vmem:[%s18337_s1 + $0x40] ss:$8 sm:$0xf]  ;;  %vm2088_vm14 = vmpackc.low %vm11172_vm9, %vm11168_vm8  ;;  %vm18384_vm9 = vcmask 7168  }
  0x94   : > { %18663 = vst [vmem:[#allocation10_spill] sm:$0xff] %v11083_v27  ;;  %v18354_v37 = vperm.slane %v11083_v27, 0  ;;  %v18353_v38 = vperm.slane %v11083_v27, 1  ;;  %v18350_v43 = vperm.slane %v11083_v27, 6  ;;  %v18347_v44 = vperm.slane %v11083_v27, 7 }
  0x95   : > { %v11085_v28 = vpop.permute.xlu1 %665  ;;  %2438 = vrot.lane.b32.xlu0 %v2429_v24, %s10617_s16  ;;  %v11123_v49 = vpop.permute.xlu2 %686  ;;  %vm1715_vm7 = vcmp.ne.f32.partialorder %v1711_v50, 0.0  ;;  %vm11227_vm1 = vcmp.eq.s32.totalorder %v2725_v23, 1  ;;  %v2096_v23 = vsel %vm2088_vm14, 65537, %v18367_v0  ;;  %v18361_v4 = vperm.slane %v11083_v27, 2 }
  0x96   : > { %18664 = vst [vmem:[#allocation11_spill] sm:$0xff] %v11085_v28  ;;  %3206 = vrot.lane.b32.xlu1 %v3196_v19, %s10614_s11  ;;  %v11121_v48 = vpop.permute.xlu0 %663  ;;  %v455_v58 = vmul.f32 %v18354_v37, %v11010_v55  ;;  %v456_v59 = vmul.f32 %v18353_v38, %v11010_v55  ;;  %v461_v61 = vmul.f32 %v18350_v43, %v11010_v55  ;;  %v2724_v19 = vperm.slane %v10874_v62, 2  ;;  %v8384_v50 = vld [vmem:[%s18337_s1 + $0x47] ss:$8 sm:$0xf] }
  0x97   : > { %18673 = vst [vmem:[#allocation14_spill] sm:$0xff] %v11123_v49  ;;  %v462_v63 = vmul.f32 %v18347_v44, %v11010_v55  ;;  %v11199_v35 = vsel %vm1715_vm7, 1, %v18367_v0  ;;  %v2389_v44 = vperm.slane %v10951_v30, 1  ;;  %vm18468_vm7 = vcmask 121856  }
  0x98   : > { %v11184_v16 = vadd.f32 %v589_v47, %v455_v58  ;;  %v11186_v17 = vadd.f32 %v590_v56, %v456_v59  ;;  %v11192_v25 = vadd.f32 %v595_v57, %v461_v61  ;;  %18686 = vst [vmem:[#allocation19_spill] sm:$0xff] %v11199_v35  ;;  %vm11223_vm15 = vcmp.eq.s32.totalorder %v2724_v19, 1 }
  0x99   : > { %533 = vrot.lane.b32.xlu2 %v10702_v2, %s10612_s27  ;;  %v11194_v33 = vadd.f32 %v596_v60, %v462_v63  ;;  %v1721_v58 = vperm.slane %v11199_v35, 2  ;;  %v1722_v59 = vperm.slane %v11199_v35, 3  ;;  %v18359_v60 = vperm.slane %v11058_v11, 2  ;;  %vm2755_vm2 = vmpackc.low %vm11227_vm1, %vm11223_vm15 }
  0x9a   : > { %18684 = vst [vmem:[#allocation17_spill] sm:$0xff] %v11192_v25  ;;  %v398_v61 = vrot.slane %v10922_v21, 1  ;;  %v384_v63 = vor.u32 %v8323_v45, %v8322_v31  ;;  %v18357_v19 = vperm.slane %v11058_v11, 4  ;;  %v8329_v21 = vld [vmem:[%s18337_s1 + $0x2] ss:$8 sm:$0xf0] }
  0x9b   : > { %18685 = vst [vmem:[#allocation18_spill] sm:$0xff] %v11194_v33  ;;  %vm11268_vm3 = vcmp.eq.s32.totalorder %v1721_v58, 1  ;;  %vm11272_vm5 = vcmp.eq.s32.totalorder %v1722_v59, 1  ;;  %v11288_v59 = vld [vmem:[%s18337_s1 + $0x5] ss:$8 sm:$0xf] }
  0x9c   : > { %vm11280_vm6 = vcmp.ne.f32.partialorder %v384_v63, 0.0  ;;  %v790_v63 = vor.u32 %v8333_v8, %v8332_v15  ;;  %vm1752_vm8 = vmpackc.low %vm11272_vm5, %vm11268_vm3  ;;  %v2392_v56 = vperm.slane %v10951_v30, 4  ;;  %v2393_v57 = vperm.slane %v10951_v30, 5 }
  0x9d   : > { %v11166_v10 = vpop.permute.xlu1 %418  ;;  %1329 = vrot.lane.b32.xlu0 %v11164_v41, %s10620_s18  ;;  %vm11332_vm12 = vcmp.eq.s32.totalorder %v2389_v44, 1  ;;  %v3492_v38 = vperm.slane %v10784_v26, 6  ;;  %v3493_v37 = vperm.slane %v10784_v26, 7  ;;  %v18362_v26 = vperm.slane %v11083_v27, 3 }
  0x9e   : > { %18675 = vst [vmem:[#allocation16_spill] sm:$0xff] %v11166_v10  ;;  %4200 = vrot.lane.b32.xlu1 %v4191_v1, %s10611_s26  ;;  %v11207_v47 = vpop.permute.xlu0 %799  ;;  %v8328_v1 = vld [vmem:[%s18337_s1 + $0x2] ss:$8 sm:$0xf]  ;;  %v18363_v53 = vperm.slane %v11083_v27, 4  ;;  %v18360_v43 = vrot.slane %v11085_v28, 1 }
  0x9f   : > { %v11217_v54 = vpop.permute.xlu2 %816  ;;  %v656_v58 = vor.u32 %v8329_v21, %v8328_v1  ;;  %v11300_v1 = vld [vmem:[%s18337_s1 + $0x5] ss:$8 sm:$0xf0]  ;;  %vm11366_vm14 = vcmp.ne.f32.partialorder %v790_v63, 0.0  ;;  %vm11376_vm1 = vcmp.eq.s32.totalorder %v2392_v56, 1  ;;  %v18364_v63 = vrot.slane %v11207_v47, 1 }
  0xa0   : > { %18687 = vst [vmem:[#allocation20_spill] sm:$0xff] %v11217_v54  ;;  %vm11388_vm3 = vcmp.eq.s32.totalorder %v3492_v38, 1  ;;  %vm11392_vm5 = vcmp.eq.s32.totalorder %v3493_v37, 1  ;;  %v2054_v15 = vperm.slane %v11103_v39, 0  ;;  %v2055_v8 = vperm.slane %v11103_v39, 1 }
  0xa1   : > { %667 = vrot.lane.b32.xlu2 %v10702_v2, %s10613_s30  ;;  %v403_v2 = vsel %vm399_vm0, %v397_v12, %v398_v61  ;;  %v2388_v61 = vperm.slane %v10951_v30, 0  ;;  %vm11361_vm13 = vcmp.ne.f32.partialorder %v656_v58, 0.0  ;;  %v18365_v58 = vperm.slane %v11083_v27, 5  ;;  %v8344_v56 = vld [vmem:[%s18337_s1 + $0x6] ss:$8 sm:$0xf] }
  0xa2   : > { %v404_v22 = vsel %vm18383_vm11, %v11042_v6, %v403_v2  ;;  %v11318_v6 = vmul.f32 %v18357_v19, %v10953_v32  ;;  %v1724_v28 = vperm.slane %v11199_v35, 5 }
  0xa3   : > { %vm11328_vm10 = vcmp.eq.s32.totalorder %v2388_v61, 1  ;;  %v11345_v24 = vsel %vm11280_vm6, %v404_v22, 0.0  ;;  %v1760_v22 = vsel %vm1752_vm8, 65537, %v18367_v0  ;;  %vm3521_vm8 = vmpackc.low %vm11392_vm5, %vm11388_vm3  ;;  %v457_v61 = vmul.f32 %v18361_v4, %v11010_v55 }
  0xa4   : > { %vm2420_vm15 = vmpackc.low %vm11332_vm12, %vm11328_vm10  ;;  %v11448_v4 = vmul.f32 %v18365_v58, %v11010_v55  ;;  %v18719_v58 = vperm.slane %v11345_v24, 2  ;;  %v3529_v45 = vsel %vm3521_vm8, 65537, %v18367_v0  ;;  %vm18382_vm10 = vcmask 1039360  }
  0xa5   : > { %v11261_v31 = vpop.permute.xlu1 %1057  ;;  %2106 = vrot.lane.b32.xlu0 %v2096_v23, %s10620_s18  ;;  %v2763_v23 = vsel %vm2755_vm2, 65537, %v18367_v0  ;;  %vm11380_vm2 = vcmp.eq.s32.totalorder %v2393_v57, 1  ;;  %v18366_v57 = vperm.slane %v11345_v24, 0  ;;  %vm11492_vm12 = vcmp.eq.s32.totalorder %v2054_v15, 1 }
  0xa6   : > { %2770 = vrot.lane.b32.xlu1 %v2762_v13, %s10615_s15  ;;  %v11293_v13 = vmul.f32 %v18359_v60, %v10953_v32  ;;  %v11302_v21 = vpop.permute.xlu0 %552  ;;  %v2428_v60 = vsel %vm2420_vm15, 65537, %v18367_v0  ;;  %vm2422_vm6 = vmpackc.low %vm11380_vm2, %vm11376_vm1  ;;  %vm11496_vm15 = vcmp.eq.s32.totalorder %v2055_v8, 1  ;;  %v18728_v14 = vperm.slane %v11345_v24, 4 }
  0xa7   : > { %18698 = vst [vmem:[#allocation21_spill] sm:$0xff] %v11302_v21  ;;  %v11320_v2 = vpop.permute.xlu2 %1327  ;;  %v2056_v15 = vperm.slane %v11103_v39, 2  ;;  %vm2086_vm3 = vmpackc.low %vm11496_vm15, %vm11492_vm12  ;;  %vm18392_vm5 = vcmask 924672  }
  0xa8   : > { %18699 = vst [vmem:[#allocation22_spill] sm:$0xff] %v11320_v2 }
  0xa9   : > { %2772 = vrot.lane.b32.xlu2 %v2763_v23, %s10615_s15  ;;  %v669_v23 = vrot.slane %v11121_v48, 1 }
  0xab   : > { %v672_v44 = vsel %vm399_vm0, %v669_v23, %v18360_v43  ;;  %v459_v23 = vmul.f32 %v18363_v53, %v11010_v55  ;;  %v806_v43 = vsel %vm399_vm0, %v803_v36, %v18364_v63  ;;  %v18718_v53 = vperm.slane %v11345_v24, 1  ;;  %v8385_v63 = vld [vmem:[%s18337_s1 + $0x47] ss:$8 sm:$0xf0] }
  0xac   : > { %v2430_v36 = vsel %vm2422_vm6, 65537, %v18367_v0  ;;  %v674_v12 = vsel %vm18468_vm7, %v11121_v48, %v672_v44  ;;  %v808_v33 = vsel %vm18384_vm9, %v10890_v5, %v806_v43  ;;  %v3813_v48 = vor.u32 %v8385_v63, %v8384_v50 }
  0xad   : > { %v11370_v19 = vpop.permute.xlu1 %682  ;;  %1769 = vrot.lane.b32.xlu0 %v1760_v22, %s10621_s23  ;;  %v458_v22 = vmul.f32 %v18362_v26, %v11010_v55  ;;  %v11453_v26 = vmul.f32 %v18366_v57, %v11010_v55  ;;  %v11458_v51 = vmul.f32 %v18718_v53, %v11010_v55  ;;  %v11473_v57 = vmul.f32 %v18719_v58, %v11010_v55 }
  0xae   : > { %18708 = vst [vmem:[#allocation23_spill] sm:$0xff] %v11370_v19  ;;  %1061 = vrot.lane.b32.xlu1 %v11164_v41, %s10615_s15  ;;  %v11404_v37 = vpop.permute.xlu0 %1191  ;;  %v18721_v53 = vperm.slane %v11345_v24, 3  ;;  %v11503_v44 = vmul.f32 %v18728_v14, %v11010_v55  ;;  %v18730_v5 = vperm.slane %v11345_v24, 5  ;;  %v2057_v50 = vperm.slane %v11103_v39, 3 }
  0xaf   : > { %v11420_v38 = vpop.permute.xlu2 %940  ;;  %18720 = vst [vmem:[#allocation25_spill] sm:$0xff] %v11473_v57  ;;  %v18732_v63 = vperm.slane %v11345_v24, 6  ;;  %v18734_v14 = vperm.slane %v11345_v24, 7  ;;  %v11527_v0 = vadd.f32 %v11293_v13, %v457_v61  ;;  %vm3815_vm1 = vcmp.ne.f32.partialorder %v3813_v48, 0.0 }
  0xb0   : > { %18717 = vst [vmem:[#allocation24_spill] sm:$0xff] %v11420_v38  ;;  %v11508_v43 = vmul.f32 %v18730_v5, %v11010_v55  ;;  %v11534_v3 = vadd.f32 %v11313_v20, %v458_v22  ;;  %v18738_v13 = vor.u32 %v11300_v1, %v11288_v59  ;;  %v18742_v20 = vmov 0  }
  0xb1   : > { %2436 = vrot.lane.b32.xlu2 %v2428_v60, %s10617_s16  ;;  %v11478_v60 = vmul.f32 %v18721_v53, %v11010_v55  ;;  %18729 = vst [vmem:[#allocation28_spill] sm:$0xff] %v11503_v44  ;;  %v11519_v8 = vmul.f32 %v18732_v63, %v11010_v55  ;;  %v11524_v5 = vmul.f32 %v18734_v14, %v11010_v55  ;;  %v11538_v63 = vsel %vm11361_vm13, %v674_v12, 0.0  ;;  %v8381_v12 = vld [vmem:[%s18337_s1 + $0x46] ss:$8 sm:$0xf0] }
  0xb2   : > { %18731 = vst [vmem:[#allocation29_spill] sm:$0xff] %v11508_v43  ;;  %v11542_v55 = vsel %vm11366_vm14, %v808_v33, 0.0  ;;  %vm11547_vm2 = vcmp.ne.f32.partialorder %v18738_v13, 0.0  ;;  %v11558_v42 = vsel %vm3815_vm1, 1, %v18742_v20  ;;  %v11564_v7 = vadd.f32 %v11318_v6, %v459_v23 }
  0xb3   : > { %18722 = vst [vmem:[#allocation26_spill] sm:$0xff] %v11478_v60  ;;  %v8380_v33 = vld [vmem:[%s18337_s1 + $0x46] ss:$8 sm:$0xf]  ;;  %v1063_v59 = vrot.slane %v11261_v31, 1  ;;  %v3826_v1 = vperm.slane %v11558_v42, 0 }
  0xb4   : > { %18733 = vst [vmem:[#allocation30_spill] sm:$0xff] %v11519_v8  ;;  %v3827_v22 = vperm.slane %v11558_v42, 1  ;;  %vm11574_vm13 = vcmp.eq.s32.totalorder %v2056_v15, 1  ;;  %vm11578_vm14 = vcmp.eq.s32.totalorder %v2057_v50, 1  ;;  %v3481_v23 = vor.u32 %v8381_v12, %v8380_v33 }
  0xb5   : > { %v11490_v58 = vpop.permute.xlu1 %1193  ;;  %18735 = vst [vmem:[#allocation31_spill] sm:$0xff] %v11524_v5  ;;  %3540 = vrot.lane.b32.xlu0 %v3529_v45, %s10613_s30  ;;  %v18749_v12 = vrot.slane %v11044_v9, 1  ;;  %vm2087_vm6 = vmpackc.low %vm11578_vm14, %vm11574_vm13  ;;  %vm3842_vm8 = vcmp.eq.s32.totalorder %v3826_v1, 1  ;;  %v1719_v53 = vperm.slane %v11199_v35, 0  ;;  %v1720_v33 = vperm.slane %v11199_v35, 1 }
  0xb6   : > { %18723 = vst [vmem:[#allocation27_spill] sm:$0xff] %v11490_v58  ;;  %2440 = vrot.lane.b32.xlu1 %v2430_v36, %s10617_s16  ;;  %v8345_v36 = vld [vmem:[%s18337_s1 + $0x6] ss:$8 sm:$0xf0]  ;;  %v11551_v45 = vpop.permute.xlu0 %820  ;;  %vm3843_vm12 = vcmp.eq.s32.totalorder %v3827_v22, 1  ;;  %vm3483_vm15 = vcmp.ne.f32.partialorder %v3481_v23, 0.0 }
  0xb7   : > { %18736 = vst [vmem:[#allocation32_spill] sm:$0xff] %v11538_v63  ;;  %v1184_v48 = vor.u32 %v8345_v36, %v8344_v56  ;;  %v2094_v56 = vsel %vm2086_vm3, 65537, %v18742_v20  ;;  %vm3854_vm1 = vmpackc.low %vm3843_vm12, %vm3842_vm8  ;;  %v1197_v25 = vrot.slane %v11404_v37, 1  ;;  %vm11654_vm13 = vcmp.eq.s32.totalorder %v1720_v33, 1 }
  0xb8   : > { %18737 = vst [vmem:[#allocation33_spill] sm:$0xff] %v11542_v55  ;;  %v11572_v14 = vpop.permute.xlu2 %1076  ;;  %v3862_v1 = vsel %vm3854_vm1, 65537, %v18742_v20  ;;  %v3161_v9 = vperm.slane %v10803_v34, 7  ;;  %v18385_v8 = vrot.slane %v11320_v2, 1  ;;  %vm11690_vm1 = vcmp.eq.s32.totalorder %v1724_v28, 1 }
  0xb9   : > { %18741 = vst [vmem:[#allocation34_spill] sm:$0xff] %v11551_v45  ;;  %1195 = vrot.lane.b32.xlu2 %v11164_v41, %s10617_s16  ;;  %vm11614_vm3 = vcmp.ne.f32.partialorder %v1184_v48, 0.0  ;;  %v8348_v48 = vld [vmem:[%s18337_s1 + $0x7] ss:$8 sm:$0xf]  ;;  %v4154_v6 = vperm.slane %v10814_v40, 4 }
  0xba   : > { %18743 = vst [vmem:[#allocation35_spill] sm:$0xff] %v11558_v42  ;;  %v1066_v42 = vsel %vm399_vm0, %v1063_v59, %v18749_v12  ;;  %v11611_v59 = vsel %vm3483_vm15, 1, %v18742_v20  ;;  %v8349_v12 = vld [vmem:[%s18337_s1 + $0x7] ss:$8 sm:$0xf0]  ;;  %vm11650_vm15 = vcmp.eq.s32.totalorder %v1719_v53, 1 }
  0xbb   : > { %18744 = vst [vmem:[#allocation36_spill] sm:$0xff] %v11572_v14  ;;  %v3494_v22 = vperm.slane %v11611_v59, 0  ;;  %v3495_v23 = vperm.slane %v11611_v59, 1  ;;  %v4155_v13 = vperm.slane %v10814_v40, 5 }
  0xbc   : > { %18750 = vst [vmem:[#allocation37_spill] sm:$0xff] %v11611_v59 }
  0xbd   : > { %v11600_v39 = vpop.permute.xlu1 %1325  ;;  %3874 = vrot.lane.b32.xlu0 %v3862_v1, %s10612_s27  ;;  %vm11642_vm8 = vcmp.eq.s32.totalorder %v3494_v22, 1  ;;  %vm11646_vm12 = vcmp.eq.s32.totalorder %v3495_v23, 1  ;;  %v3824_v1 = vperm.slane %v10769_v18, 6  ;;  %v3160_v23 = vperm.slane %v10803_v34, 6 }
  0xbe   : > { %2102 = vrot.lane.b32.xlu1 %v2094_v56, %s10620_s18  ;;  %v1068_v56 = vsel %vm18382_vm10, %v11261_v31, %v1066_v42  ;;  %v11631_v15 = vpop.permute.xlu0 %1459  ;;  %v2095_v31 = vsel %vm2087_vm6, 65537, %v18742_v20  ;;  %v1723_v42 = vperm.slane %v11199_v35, 4  ;;  %v3825_v35 = vperm.slane %v10769_v18, 7  ;;  %vm3522_vm14 = vmpackc.low %vm11646_vm12, %vm11642_vm8 }
  0xbf   : > { %v11667_v53 = vsel %vm11547_vm2, %v1068_v56, 0.0  ;;  %v18763_v22 = vrot.slane %v11490_v58, 1  ;;  %v1318_v56 = vor.u32 %v8349_v12, %v8348_v48  ;;  %vm1751_vm2 = vmpackc.low %vm11654_vm13, %vm11650_vm15  ;;  %vm18541_vm10 = vcmask 916480  }
  0xc0   : > { %18761 = vst [vmem:[#allocation38_spill] sm:$0xff] %v11667_v53  ;;  %vm11686_vm6 = vcmp.eq.s32.totalorder %v1723_v42, 1  ;;  %vm11703_vm11 = vcmp.eq.s32.totalorder %v3824_v1, 1  ;;  %vm11707_vm9 = vcmp.eq.s32.totalorder %v3825_v35, 1  ;;  %v1331_v50 = vrot.slane %v11600_v39, 1 }
  0xc1   : > { %2104 = vrot.lane.b32.xlu2 %v2095_v31, %s10620_s18  ;;  %v11670_v33 = vpop.permute.xlu2 %1214  ;;  %v1200_v61 = vsel %vm399_vm0, %v1197_v25, %v18763_v22  ;;  %v3530_v25 = vsel %vm3522_vm14, 65537, %v18742_v20  ;;  %v8352_v42 = vld [vmem:[%s18337_s1 + $0x80] ss:$8 sm:$0xf]  ;;  %vm11717_vm8 = vcmp.eq.s32.totalorder %v3160_v23, 1  ;;  %vm11721_vm12 = vcmp.eq.s32.totalorder %v3161_v9, 1  ;;  %vm1753_vm14 = vmpackc.low %vm11690_vm1, %vm11686_vm6 }
  0xc2   : > { %18762 = vst [vmem:[#allocation39_spill] sm:$0xff] %v11670_v33  ;;  %v1202_v59 = vsel %vm18392_vm5, %v11404_v37, %v1200_v61  ;;  %v11727_v35 = vadd.f32 %v11341_v29, %v11448_v4  ;;  %v1759_v9 = vsel %vm1751_vm2, 65537, %v18742_v20  ;;  %v8353_v23 = vld [vmem:[%s18337_s1 + $0x80] ss:$8 sm:$0xf0]  ;;  %vm3853_vm15 = vmpackc.low %vm11707_vm9, %vm11703_vm11  ;;  %vm11760_vm13 = vcmp.ne.f32.partialorder %v1318_v56, 0.0 }
  0xc3   : > { %v11758_v31 = vsel %vm11614_vm3, %v1202_v59, 0.0  ;;  %vm3189_vm2 = vmpackc.low %vm11721_vm12, %vm11717_vm8  ;;  %v18780_v48 = vperm.slane %v11345_v24, 0  ;;  %v1334_v36 = vsel %vm399_vm0, %v1331_v50, %v18385_v8  ;;  %v1452_v56 = vor.u32 %v8353_v23, %v8352_v42 }
  0xc4   : > { %18777 = vst [vmem:[#allocation41_spill] sm:$0xff] %v11758_v31  ;;  %v1761_v59 = vsel %vm1753_vm14, 65537, %v18742_v20  ;;  %v18782_v22 = vperm.slane %v11345_v24, 1  ;;  %v3861_v12 = vsel %vm3853_vm15, 65537, %v18742_v20  ;;  %v18787_v50 = vperm.slane %v11345_v24, 3 }
  0xc5   : > { %v11680_v43 = vpop.permute.xlu1 %936  ;;  %3542 = vrot.lane.b32.xlu0 %v3530_v25, %s10613_s30  ;;  %v11771_v28 = vmul.f32 %v18780_v48, %v11166_v10  ;;  %v18785_v48 = vperm.slane %v11345_v24, 2  ;;  %v3197_v4 = vsel %vm3189_vm2, 65537, %v18742_v20  ;;  %vm11805_vm11 = vcmp.eq.s32.totalorder %v4154_v6, 1 }
  0xc6   : > { %18764 = vst [vmem:[#allocation40_spill] sm:$0xff] %v11680_v43  ;;  %1463 = vrot.lane.b32.xlu1 %v11164_v41, %s10621_s23  ;;  %v11731_v61 = vpop.permute.xlu0 %1080  ;;  %v11781_v37 = vmul.f32 %v18782_v22, %v11166_v10  ;;  %v11794_v42 = vmul.f32 %v18787_v50, %v11166_v10  ;;  %vm11809_vm9 = vcmp.eq.s32.totalorder %v4155_v13, 1  ;;  %v1336_v22 = vsel %vm18541_vm10, %v11600_v39, %v1334_v36 }
  0xc7   : > { %18781 = vst [vmem:[#allocation42_spill] sm:$0xff] %v11771_v28  ;;  %v11789_v34 = vmul.f32 %v18785_v48, %v11166_v10  ;;  %vm18542_vm3 = vcmask 908288   ;;  %v2728_v29 = vperm.slane %v10874_v62, 6  ;;  %v2729_v13 = vperm.slane %v10874_v62, 7  ;;  %vm4184_vm6 = vmpackc.low %vm11809_vm9, %vm11805_vm11 }
  0xc8   : > { %18783 = vst [vmem:[#allocation43_spill] sm:$0xff] %v11781_v37  ;;  %v18796_v1 = vperm.slane %v11538_v63, 2  ;;  %v4156_v39 = vperm.slane %v10814_v40, 6  ;;  %v4157_v36 = vperm.slane %v10814_v40, 7  ;;  %v11837_v62 = vsel %vm11760_vm13, %v1336_v22, 0.0 }
  0xc9   : > { %1767 = vrot.lane.b32.xlu2 %v1759_v9, %s10621_s23  ;;  %18786 = vst [vmem:[#allocation45_spill] sm:$0xff] %v11789_v34  ;;  %v18789_v9 = vperm.slane %v11345_v24, 4  ;;  %vm11839_vm1 = vcmp.ne.f32.partialorder %v1452_v56, 0.0  ;;  %v2394_v48 = vperm.slane %v10951_v30, 6  ;;  %v2395_v18 = vperm.slane %v10951_v30, 7 }
  0xca   : > { %v11783_v41 = vpop.permute.xlu2 %1348  ;;  %18788 = vst [vmem:[#allocation46_spill] sm:$0xff] %v11794_v42  ;;  %v725_v50 = vmul.f32 %v18796_v1, %v11370_v19  ;;  %v18802_v40 = vperm.slane %v11345_v24, 5  ;;  %v18804_v56 = vperm.slane %v11345_v24, 6  ;;  %v18806_v58 = vperm.slane %v11345_v24, 7 }
  0xcb   : > { %18784 = vst [vmem:[#allocation44_spill] sm:$0xff] %v11783_v41  ;;  %v11799_v23 = vmul.f32 %v18789_v9, %v11166_v10  ;;  %v4192_v30 = vsel %vm4184_vm6, 65537, %v18742_v20  ;;  %vm11866_vm8 = vcmp.eq.s32.totalorder %v2728_v29, 1  ;;  %vm11870_vm12 = vcmp.eq.s32.totalorder %v2729_v13, 1 }
  0xcc   : > { %18798 = vst [vmem:[#allocation49_spill] sm:$0xff] %v11837_v62  ;;  %v11850_v9 = vmul.f32 %v18802_v40, %v11166_v10  ;;  %v11857_v22 = vmul.f32 %v18804_v56, %v11166_v10  ;;  %v11862_v2 = vmul.f32 %v18806_v58, %v11166_v10  ;;  %v757_v56 = vadd.f32 %v725_v50, %v11527_v0  ;;  %vm2757_vm9 = vmpackc.low %vm11870_vm12, %vm11866_vm8 }
  0xcd   : > { %18790 = vst [vmem:[#allocation47_spill] sm:$0xff] %v11799_v23  ;;  %v11802_v8 = vpop.permute.xlu1 %1461  ;;  %vm11876_vm14 = vcmp.eq.s32.totalorder %v4156_v39, 1  ;;  %vm11880_vm15 = vcmp.eq.s32.totalorder %v4157_v36, 1  ;;  %vm11889_vm13 = vcmp.eq.s32.totalorder %v2394_v48, 1  ;;  %vm11893_vm2 = vcmp.eq.s32.totalorder %v2395_v18, 1 }
  0xce   : > { %18791 = vst [vmem:[#allocation48_spill] sm:$0xff] %v11802_v8  ;;  %1771 = vrot.lane.b32.xlu1 %v1761_v59, %s10621_s23  ;;  %v18797_v59 = vperm.slane %v11538_v63, 3  ;;  %v18822_v50 = vperm.slane %v11542_v55, 2  ;;  %v18823_v36 = vperm.slane %v11116_v46, 2  ;;  %vm18546_vm11 = vcmask 1043456   ;;  %vm4185_vm6 = vmpackc.low %vm11880_vm15, %vm11876_vm14 }
  0xcf   : > { %v11843_v5 = vpop.permute.xlu0 %1478  ;;  %18803 = vst [vmem:[#allocation51_spill] sm:$0xff] %v11850_v9  ;;  %v18825_v18 = vperm.slane %v11542_v55, 3  ;;  %vm2423_vm5 = vmpackc.low %vm11893_vm2, %vm11889_vm13  ;;  %v18829_v9 = vperm.slane %v11058_v11, 3  ;;  %v18836_v58 = vperm.slane %v11758_v31, 2  ;;  %v18842_v34 = vperm.slane %v11116_v46, 2 }
  0xd0   : > { %v726_v6 = vmul.f32 %v18797_v59, %v11370_v19  ;;  %18801 = vst [vmem:[#allocation50_spill] sm:$0xff] %v11843_v5  ;;  %v1465_v59 = vrot.slane %v11631_v15, 1  ;;  %v859_v39 = vmul.f32 %v18822_v50, %v11217_v54  ;;  %v18826_v50 = vperm.slane %v11116_v46, 3 }
  0xd1   : > { %18805 = vst [vmem:[#allocation52_spill] sm:$0xff] %v11857_v22  ;;  %3872 = vrot.lane.b32.xlu2 %v3861_v12, %s10612_s27  ;;  %v860_v48 = vmul.f32 %v18825_v18, %v11217_v54  ;;  %v2431_v25 = vsel %vm2423_vm5, 65537, %v18742_v20  ;;  %v18851_v60 = vperm.slane %v11758_v31, 3  ;;  %vm18912_vm14 = vcmask 7168  }
  0xd2   : > { %18807 = vst [vmem:[#allocation53_spill] sm:$0xff] %v11862_v2  ;;  %v758_v12 = vadd.f32 %v726_v6, %v11534_v3  ;;  %v979_v3 = vmul.f32 %v18823_v36, %v11680_v43  ;;  %v18824_v6 = vrot.slane %v11802_v8, 1  ;;  %v980_v36 = vmul.f32 %v18826_v50, %v11680_v43 }
  0xd3   : > { %v11885_v29 = vpop.permute.xlu2 %1587  ;;  %v18827_v8 = vperm.slane %v11058_v11, 2  ;;  %v891_v18 = vadd.f32 %v859_v39, %v757_v56  ;;  %v18828_v50 = vperm.slane %v11083_v27, 2  ;;  %v2765_v2 = vsel %vm2757_vm9, 65537, %v18742_v20  ;;  %vm18930_vm9 = vmmov %vm18912_vm14 }
  0xd4   : > { %18816 = vst [vmem:[#allocation54_spill] sm:$0xff] %v11885_v29  ;;  %v1468_v22 = vsel %vm399_vm0, %v1465_v59, %v18824_v6  ;;  %v608_v6 = vmul.f32 %v18829_v9, %v11302_v21  ;;  %v18830_v39 = vperm.slane %v11667_v53, 2  ;;  %v18831_v9 = vperm.slane %v11083_v27, 3 }
  0xd5   : > { %v11887_v13 = vpop.permute.xlu1 %1210  ;;  %v607_v59 = vmul.f32 %v18827_v8, %v11302_v21  ;;  %v892_v8 = vadd.f32 %v860_v48, %v758_v12  ;;  %v1470_v56 = vsel %vm18542_vm3, %v11631_v15, %v1468_v22  ;;  %v1011_v12 = vadd.f32 %v979_v3, %v891_v18 }
  0xd6   : > { %18817 = vst [vmem:[#allocation55_spill] sm:$0xff] %v11887_v13  ;;  %3208 = vrot.lane.b32.xlu1 %v3197_v4, %s10614_s11  ;;  %v473_v4 = vmul.f32 %v18828_v50, %v11166_v10  ;;  %v1119_v48 = vmul.f32 %v18830_v39, %v11572_v14  ;;  %v474_v50 = vmul.f32 %v18831_v9, %v11166_v10  ;;  %v4193_v15 = vsel %vm4185_vm6, 65537, %v18742_v20 }
  0xd7   : > { %v1012_v0 = vadd.f32 %v980_v36, %v892_v8  ;;  %v11953_v23 = vpop.permute.xlu0 %3868  ;;  %v18833_v22 = vperm.slane %v11667_v53, 3  ;;  %v18834_v3 = vperm.slane %v11538_v63, 2  ;;  %v1253_v24 = vmul.f32 %v18836_v58, %v11887_v13 }
  0xd8   : > { %v639_v42 = vadd.f32 %v607_v59, %v473_v4  ;;  %18832 = vst [vmem:[#allocation56_spill] sm:$0xff] %v11953_v23  ;;  %v640_v59 = vadd.f32 %v608_v6, %v474_v50  ;;  %v18837_v4 = vperm.slane %v11538_v63, 3  ;;  %v1151_v9 = vadd.f32 %v1119_v48, %v1011_v12 }
  0xd9   : > { %4202 = vrot.lane.b32.xlu2 %v4192_v30, %s10611_s26  ;;  %v1120_v40 = vmul.f32 %v18833_v22, %v11572_v14  ;;  %v741_v36 = vmul.f32 %v18834_v3, %v11123_v49  ;;  %v11971_v30 = vsel %vm11839_vm1, %v1470_v56, 0.0  ;;  %v18838_v22 = vperm.slane %v11758_v31, 3 }
  0xda   : > { %18835 = vst [vmem:[#allocation57_spill] sm:$0xff] %v11971_v30  ;;  %v742_v18 = vmul.f32 %v18837_v4, %v11123_v49  ;;  %v18839_v56 = vperm.slane %v11542_v55, 2  ;;  %v18841_v8 = vperm.slane %v11542_v55, 3  ;;  %v18843_v58 = vperm.slane %v11116_v46, 3 }
  0xdb   : > { %v11980_v39 = vpop.permute.xlu2 %3866  ;;  %v1254_v1 = vmul.f32 %v18838_v22, %v11887_v13  ;;  %v1152_v50 = vadd.f32 %v1120_v40, %v1012_v0  ;;  %v773_v4 = vadd.f32 %v741_v36, %v639_v42  ;;  %v1285_v37 = vadd.f32 %v1253_v24, %v1151_v9 }
  0xdc   : > { %v875_v3 = vmul.f32 %v18839_v56, %v11551_v45  ;;  %v876_v12 = vmul.f32 %v18841_v8, %v11551_v45  ;;  %v995_v56 = vmul.f32 %v18842_v34, %v11420_v38  ;;  %v774_v28 = vadd.f32 %v742_v18, %v640_v59 }
  0xdd   : > { %v18844_v42 = vperm.slane %v11538_v63, 4  ;;  %v18845_v40 = vperm.slane %v11538_v63, 5  ;;  %v18846_v8 = vrot.slane %v11953_v23, 4  ;;  %v18847_v22 = vrot.slane %v11980_v39, 4 }
  0xde   : > { %2776 = vrot.lane.b32.xlu1 %v2765_v2, %s10615_s15  ;;  %v11990_v6 = vpop.permute.xlu1 %1344  ;;  %v996_v2 = vmul.f32 %v18843_v58, %v11420_v38  ;;  %v1286_v48 = vadd.f32 %v1254_v1, %v1152_v50  ;;  %v18848_v58 = vperm.slane %v11837_v62, 2  ;;  %v18849_v59 = vperm.slane %v11837_v62, 3 }
  0xdf   : > { %18840 = vst [vmem:[#allocation58_spill] sm:$0xff] %v11990_v6  ;;  %v727_v0 = vmul.f32 %v18844_v42, %v11370_v19  ;;  %v728_v36 = vmul.f32 %v18845_v40, %v11370_v19  ;;  %v3891_v34 = vsel %vm18546_vm11, %v18847_v22, %v18846_v8  ;;  %v907_v9 = vadd.f32 %v875_v3, %v773_v4 }
  0xe0   : > { %v1387_v24 = vmul.f32 %v18848_v58, %v11990_v6  ;;  %v1388_v18 = vmul.f32 %v18849_v59, %v11990_v6  ;;  %v908_v42 = vadd.f32 %v876_v12, %v774_v28  ;;  %v18850_v40 = vperm.slane %v11758_v31, 2 }
  0xe1   : > { %v1270_v57 = vmul.f32 %v18851_v60, %v11670_v33  ;;  %4204 = vrot.lane.b32.xlu2 %v4193_v15, %s10611_s26  ;;  %v18852_v22 = vperm.slane %v11971_v30, 2  ;;  %v18853_v3 = vperm.slane %v11971_v30, 3  ;;  %v12034_v4 = vunpack.c.l.b16 %v18742_v20  ;;  %v12042_v15 = vpop.permute.xlu0 %3536 }
  0xe2   : > { %v1269_v44 = vmul.f32 %v18850_v40, %v11670_v33  ;;  %v1419_v1 = vadd.f32 %v1387_v24, %v1285_v37  ;;  %v1420_v50 = vadd.f32 %v1388_v18, %v1286_v48  ;;  %v12037_v12 = vunpack.c.h.b16 %v18742_v20 }
  0xe3   : > { %v1521_v8 = vmul.f32 %v18852_v22, %v11843_v5  ;;  %v1522_v28 = vmul.f32 %v18853_v3, %v11843_v5  ;;  %18854 = vst [vmem:[#allocation59_spill] sm:$0xff] %v12034_v4  ;;  %v3892_v60 = vsel %vm18543_vm4, %v3891_v34, %v11953_v23  ;;  %v759_v37 = vadd.f32 %v727_v0, %v11564_v7  ;;  %v12044_v48 = vpop.permute.xlu2 %3534 }
  0xe4   : > { %18855 = vst [vmem:[#allocation60_spill] sm:$0xff] %v12037_v12  ;;  %v3912_v59 = vunpack.c.l.b16 %v3892_v60  ;;  %v3913_v18 = vunpack.c.h.b16 %v3892_v60  ;;  %v18856_v22 = vperm.slane %v11667_v53, 2  ;;  %v18857_v34 = vperm.slane %v11667_v53, 3 }
  0xe5   : > { %v1553_v58 = vadd.f32 %v1521_v8, %v1419_v1  ;;  %v1554_v24 = vadd.f32 %v1522_v28, %v1420_v50  ;;  %v760_v0 = vadd.f32 %v728_v36, %v11727_v35  ;;  %v12058_v1 = vld [vmem:[%s18337_s1 + $0x41] ss:$8 sm:$0xf]  ;;  %v18858_v28 = vmov 0 }
  0xe6   : > { %2442 = vrot.lane.b32.xlu1 %v2431_v25, %s10617_s16  ;;  %v1135_v3 = vmul.f32 %v18856_v22, %v11731_v61  ;;  %v1136_v7 = vmul.f32 %v18857_v34, %v11731_v61  ;;  %v12063_v50 = vld [vmem:[%s18337_s1 + $0x41] ss:$8 sm:$0xf0]  ;;  %vm12068_vm5 = vcmp.ne.s32.totalorder %v3912_v59, %v12034_v4  ;;  %vm12073_vm1 = vcmp.ne.s32.totalorder %v3913_v18, %v12037_v12 }
  0xe7   : > { %v1597_v25 = vadd.f32 %v11885_v29, %v1553_v58  ;;  %v1598_v8 = vadd.f32 %v11885_v29, %v1554_v24  ;;  %v18859_v28 = vsel %vm12068_vm5, 4294967295, %v18858_v28  ;;  %v18861_v35 = vmov 0  ;;  %vm3918_vm8 = vmpackc.low %vm12073_vm1, %vm12068_vm5 }
  0xe8   : > { %18860 = vst [vmem:[#allocation61_spill] sm:$0xff] %v18859_v28  ;;  %v18862_v35 = vsel %vm12073_vm1, 4294967295, %v18861_v35  ;;  %v1027_v34 = vadd.f32 %v995_v56, %v907_v9  ;;  %v1028_v24 = vadd.f32 %v996_v2, %v908_v42  ;;  %v18864_v59 = vperm.slane %v11538_v63, 0 }
  0xe9   : > { %18863 = vst [vmem:[#allocation62_spill] sm:$0xff] %v18862_v35  ;;  %v1629_v58 = vmax.f32 %v1597_v25, 0.0  ;;  %v1630_v40 = vmax.f32 %v1598_v8, 0.0  ;;  %v18865_v36 = vperm.slane %v11542_v55, 4  ;;  %v18866_v56 = vperm.slane %v11542_v55, 5  ;;  %v12133_v28 = vpop.permute.xlu0 %3204 }
  0xea   : > { %v723_v20 = vmul.f32 %v18864_v59, %v11370_v19  ;;  %v18867_v9 = vperm.slane %v11058_v11, 4  ;;  %v1167_v8 = vadd.f32 %v1135_v3, %v1027_v34  ;;  %v1168_v59 = vadd.f32 %v1136_v7, %v1028_v24  ;;  %18876 = vst [vmem:[#allocation64_spill] sm:$0xff] %v12133_v28 }
  0xeb   : > { %v861_v22 = vmul.f32 %v18865_v36, %v11217_v54  ;;  %v862_v2 = vmul.f32 %v18866_v56, %v11217_v54  ;;  %v12098_v25 = vpack.c.bf16 %v1630_v40, %v1629_v58  ;;  %v18869_v60 = vperm.slane %v11116_v46, 4  ;;  %v12115_v7 = vpop.permute.xlu2 %3202 }
  0xec   : > { %v609_v42 = vmul.f32 %v18867_v9, %v11302_v21  ;;  %v18870_v12 = vperm.slane %v11116_v46, 5  ;;  %v18871_v4 = vperm.slane %v11083_v27, 4  ;;  %v18872_v23 = vperm.slane %v11058_v11, 5 }
  0xed   : > { %18868 = vst [vmem:[#allocation63_spill] sm:$0xff] %v12098_v25  ;;  %v981_v18 = vmul.f32 %v18869_v60, %v11680_v43  ;;  %v18873_v40 = vperm.slane %v11538_v63, 1  ;;  %v894_v60 = vadd.f32 %v862_v2, %v760_v0  ;;  %v755_v34 = vadd.f32 %v723_v20, %v11184_v16 }
  0xee   : > { %v982_v36 = vmul.f32 %v18870_v12, %v11680_v43  ;;  %v475_v56 = vmul.f32 %v18871_v4, %v11166_v10  ;;  %v610_v9 = vmul.f32 %v18872_v23, %v11302_v21  ;;  %1676 = vst [vmem:[#allocation2 + $0xc] sm:$0xff] %v12098_v25  ;;  %v3969_v12 = vsel %vm3918_vm8, %v12098_v25, 0 }
  0xef   : > { %v724_v3 = vmul.f32 %v18873_v40, %v11370_v19  ;;  %v893_v4 = vadd.f32 %v861_v22, %v759_v37  ;;  %4006 = vrot.lane.b32.xlu2 %v3969_v12, %s10620_s18  ;;  %v18874_v23 = vperm.slane %v11083_v27, 5  ;;  %v18875_v35 = vperm.slane %v11542_v55, 0 }
  0xf0   : > { %v641_v24 = vadd.f32 %v609_v42, %v475_v56  ;;  %v1301_v25 = vadd.f32 %v1269_v44, %v1167_v8  ;;  %v1302_v37 = vadd.f32 %v1270_v57, %v1168_v59  ;;  %v18877_v16 = vperm.slane %v11667_v53, 4 }
  0xf1   : > { %v476_v58 = vmul.f32 %v18874_v23, %v11166_v10  ;;  %v756_v40 = vadd.f32 %v724_v3, %v11186_v17  ;;  %v857_v19 = vmul.f32 %v18875_v35, %v11217_v54  ;;  %v1013_v0 = vadd.f32 %v981_v18, %v893_v4  ;;  %v12141_v3 = vpop.permute.xlu1 %1482 }
  0xf2   : > { %v1121_v20 = vmul.f32 %v18877_v16, %v11572_v14  ;;  %v1014_v22 = vadd.f32 %v982_v36, %v894_v60  ;;  %v18878_v42 = vperm.slane %v11538_v63, 4  ;;  %18879 = vst [vmem:[#allocation65_spill] sm:$0xff] %v12141_v3  ;;  %v18880_v35 = vperm.slane %v11837_v62, 2 }
  0xf3   : > { %v642_v2 = vadd.f32 %v610_v9, %v476_v58  ;;  %v889_v17 = vadd.f32 %v857_v19, %v755_v34  ;;  %v18881_v57 = vperm.slane %v11837_v62, 3  ;;  %v18882_v18 = vperm.slane %v11542_v55, 4 }
  0xf4   : > { %v743_v56 = vmul.f32 %v18878_v42, %v11123_v49  ;;  %v1403_v12 = vmul.f32 %v18880_v35, %v11783_v41  ;;  %v18883_v59 = vperm.slane %v11542_v55, 1  ;;  %v18884_v19 = vperm.slane %v11667_v53, 5 }
  0xf5   : > { %v1404_v44 = vmul.f32 %v18881_v57, %v11783_v41  ;;  %v877_v8 = vmul.f32 %v18882_v18, %v11551_v45  ;;  %v18885_v4 = vperm.slane %v11538_v63, 5  ;;  %v18886_v23 = vperm.slane %v11542_v55, 5  ;;  %v534_v55 = vpop.permute.xlu2 %533 }
  0xf6   : > { %v858_v36 = vmul.f32 %v18883_v59, %v11217_v54  ;;  %v1122_v9 = vmul.f32 %v18884_v19, %v11572_v14  ;;  %v775_v34 = vadd.f32 %v743_v56, %v641_v24  ;;  %v18887_v16 = vperm.slane %v11758_v31, 4 }
  0xf7   : > { %v744_v60 = vmul.f32 %v18885_v4, %v11123_v49  ;;  %v878_v58 = vmul.f32 %v18886_v23, %v11551_v45  ;;  %v18888_v57 = vperm.slane %v11116_v46, 0  ;;  %v18889_v59 = vperm.slane %v11116_v46, 1 }
  0xf8   : > { %v1255_v42 = vmul.f32 %v18887_v16, %v11887_v13  ;;  %v890_v35 = vadd.f32 %v858_v36, %v756_v40  ;;  %v1153_v63 = vadd.f32 %v1121_v20, %v1013_v0  ;;  %v1154_v4 = vadd.f32 %v1122_v9, %v1014_v22 }
  0xf9   : > { %v977_v18 = vmul.f32 %v18888_v57, %v11680_v43  ;;  %v978_v19 = vmul.f32 %v18889_v59, %v11680_v43  ;;  %v776_v24 = vadd.f32 %v744_v60, %v642_v2  ;;  %v18890_v56 = vperm.slane %v11116_v46, 4 }
  0xfa   : > { %v18891_v16 = vperm.slane %v11837_v62, 4  ;;  %v909_v36 = vadd.f32 %v877_v8, %v775_v34  ;;  %v18892_v57 = vperm.slane %v11667_v53, 0  ;;  %v18893_v0 = vperm.slane %v11758_v31, 5 }
  0xfb   : > { %v997_v23 = vmul.f32 %v18890_v56, %v11420_v38  ;;  %v1009_v49 = vadd.f32 %v977_v18, %v889_v17  ;;  %v910_v22 = vadd.f32 %v878_v58, %v776_v24  ;;  %v18894_v2 = vperm.slane %v11116_v46, 5 }
  0xfc   : > { %v1389_v40 = vmul.f32 %v18891_v16, %v11990_v6  ;;  %v1117_v45 = vmul.f32 %v18892_v57, %v11572_v14  ;;  %v1256_v20 = vmul.f32 %v18893_v0, %v11887_v13  ;;  %v1010_v60 = vadd.f32 %v978_v19, %v890_v35  ;;  %v12208_v57 = vpop.permute.xlu0 %4198 }
  0xfd   : > { %v998_v9 = vmul.f32 %v18894_v2, %v11420_v38  ;;  %v1287_v59 = vadd.f32 %v1255_v42, %v1153_v63  ;;  %v18895_v56 = vperm.slane %v11667_v53, 4  ;;  %v18896_v17 = vperm.slane %v11667_v53, 1  ;;  %18900 = vst [vmem:[#allocation66_spill] sm:$0xff] %v12208_v57 }
  0xfe   : > { %v12194_v18 = vadd.f32 %v1117_v45, %v1009_v49  ;;  %v18897_v16 = vrot.slane %v11980_v39, 4  ;;  %v537_v24 = vrot.slane %v534_v55, 1  ;;  %v18898_v63 = vperm.slane %v11837_v62, 5 }
  0xff   : > { %v1137_v8 = vmul.f32 %v18895_v56, %v11731_v61  ;;  %v1118_v34 = vmul.f32 %v18896_v17, %v11572_v14  ;;  %v18899_v35 = vperm.slane %v11667_v53, 5  ;;  %v18901_v49 = vor.u32 %v12063_v50, %v12058_v1  ;;  %v12225_v14 = vpop.permute.xlu1 %1592 }
 0x100   : > { %v12200_v58 = vsel %vm18543_vm4, %v18897_v16, %v11980_v39  ;;  %v1390_v42 = vmul.f32 %v18898_v63, %v11990_v6  ;;  %v1421_v39 = vadd.f32 %v1389_v40, %v1287_v59  ;;  %v1029_v0 = vadd.f32 %v997_v23, %v909_v36  ;;  %18904 = vst [vmem:[#allocation67_spill] sm:$0xff] %v12225_v14 }
 0x101   : > { %v1138_v19 = vmul.f32 %v18899_v35, %v11731_v61  ;;  %vm12213_vm12 = vcmp.ne.f32.partialorder %v18901_v49, 0.0  ;;  %v12217_v55 = vadd.f32 %v1118_v34, %v1010_v60  ;;  %v12219_v2 = vadd.f32 %v1403_v12, %v1301_v25  ;;  %v8335_v34 = vld [vmem:[%s18337_s1 + $0x43] ss:$8 sm:$0xf0] }
 0x102   : > { %v12221_v56 = vadd.f32 %v1404_v44, %v1302_v37  ;;  %v1288_v17 = vadd.f32 %v1256_v20, %v1154_v4  ;;  %v1030_v16 = vadd.f32 %v998_v9, %v910_v22  ;;  %v3550_v35 = vrot.slane %v12044_v48, 4  ;;  %v8334_v20 = vld [vmem:[%s18337_s1 + $0x43] ss:$8 sm:$0xf] }
 0x103   : > { %v18905_v1 = vperm.slane %v11971_v30, 4  ;;  %v1169_v40 = vadd.f32 %v1137_v8, %v1029_v0  ;;  %v3218_v23 = vrot.slane %v12115_v7, 4  ;;  %v18906_v25 = vrot.slane %v10841_v52, 1 }
 0x104   : > { %v1422_v12 = vadd.f32 %v1390_v42, %v1288_v17  ;;  %v1170_v44 = vadd.f32 %v1138_v19, %v1030_v16  ;;  %v18416_v4 = vrot.slane %v12042_v15, 4  ;;  %v18414_v36 = vrot.slane %v12208_v57, 4  ;;  %v8330_v17 = vld [vmem:[%s18337_s1 + $0x42] ss:$8 sm:$0xf] }
 0x105   : > { %v1523_v50 = vmul.f32 %v18905_v1, %v11843_v5  ;;  %v541_v37 = vsel %vm399_vm0, %v18906_v25, %v537_v24  ;;  %v18907_v9 = vperm.slane %v11758_v31, 4  ;;  %v18415_v8 = vrot.slane %v12133_v28, 4  ;;  %v8331_v16 = vld [vmem:[%s18337_s1 + $0x42] ss:$8 sm:$0xf0] }
 0x106   : > { %v18908_v24 = vperm.slane %v11971_v30, 5  ;;  %v18909_v19 = vperm.slane %v11758_v31, 5  ;;  %v542_v0 = vsel %vm18543_vm4, %v10841_v52, %v541_v37  ;;  %v18914_v52 = vmov %v18898_v63  ;;  %v18967_v28 = vld [vmem:[#allocation34_spill] sm:$0xff] }
 0x107   : > { %v1555_v22 = vadd.f32 %v1523_v50, %v1421_v39  ;;  %v1271_v60 = vmul.f32 %v18907_v9, %v11670_v33  ;;  %v12255_v39 = vsel %vm18468_vm7, %v3550_v35, %v12044_v48  ;;  %v18911_v50 = vperm.slane %v11837_v62, 4 }
 0x108   : > { %v1524_v42 = vmul.f32 %v18908_v24, %v11843_v5  ;;  %v1272_v49 = vmul.f32 %v18909_v19, %v11670_v33  ;;  %18910 = vst [vmem:[#allocation68_spill] sm:$0xff] %v12255_v39  ;;  %v12270_v48 = vsel %vm18912_vm14, %v3218_v23, %v12115_v7  ;;  %v1406_v37 = vmul.f32 %v18914_v52, %v11783_v41 }
 0x109   : > { %v1303_v1 = vadd.f32 %v1271_v60, %v1169_v40  ;;  %v1405_v25 = vmul.f32 %v18911_v50, %v11783_v41  ;;  %18913 = vst [vmem:[#allocation69_spill] sm:$0xff] %v12270_v48  ;;  %v12278_v19 = vsel %vm18546_vm11, %v3550_v35, %v18416_v4  ;;  %vm18916_vm15 = vcmask 138240  }
 0x10a   : > { %v1556_v9 = vadd.f32 %v1524_v42, %v1422_v12  ;;  %v1304_v24 = vadd.f32 %v1272_v49, %v1170_v44  ;;  %18915 = vst [vmem:[#allocation70_spill] sm:$0xff] %v12278_v19  ;;  %v12284_v40 = vsel %vm18916_vm15, %v18414_v36, %v12208_v57  ;;  %v794_v60 = vor.u32 %v8335_v34, %v8334_v20  ;;  %v802_v20 = vpop.permute.xlu0 %801 }
 0x10b   : > { %18917 = vst [vmem:[#allocation71_spill] sm:$0xff] %v12284_v40  ;;  %v1599_v7 = vadd.f32 %v11885_v29, %v1555_v22  ;;  %v546_v42 = vsel %vm12213_vm12, %v542_v0, 0.0  ;;  %v660_v49 = vor.u32 %v8331_v16, %v8330_v17  ;;  %v12294_v35 = vsel %vm18546_vm11, %v3218_v23, %v18415_v8  ;;  %v12309_v23 = vpop.permute.xlu1 %3870 }
 0x10c   : > { %18918 = vst [vmem:[#allocation72_spill] sm:$0xff] %v12294_v35  ;;  %v12298_v34 = vadd.f32 %v1405_v25, %v1303_v1  ;;  %v1600_v45 = vadd.f32 %v11885_v29, %v1556_v9  ;;  %v12303_v0 = vadd.f32 %v1406_v37, %v1304_v24  ;;  %v565_v17 = vperm.slane %v546_v42, 0  ;;  %v668_v35 = vpop.permute.xlu2 %667 }
 0x10d   : > { %vm12305_vm13 = vcmp.ne.f32.partialorder %v794_v60, 0.0  ;;  %18921 = vst [vmem:[#allocation73_spill] sm:$0xff] %v12309_v23  ;;  %v18922_v52 = vperm.slane %v11971_v30, 2  ;;  %v18923_v25 = vperm.slane %v11971_v30, 3  ;;  %v1631_v44 = vmax.f32 %v1599_v7, 0.0 }
 0x10e   : > { %v566_v50 = vperm.slane %v546_v42, 1  ;;  %v567_v9 = vperm.slane %v546_v42, 2  ;;  %v568_v24 = vperm.slane %v546_v42, 3  ;;  %v805_v37 = vrot.slane %v802_v20, 1 }
 0x10f   : > { %v1537_v1 = vmul.f32 %v18922_v52, %v12141_v3  ;;  %v1538_v22 = vmul.f32 %v18923_v25, %v12141_v3  ;;  %v569_v12 = vperm.slane %v546_v42, 4  ;;  %v570_v60 = vperm.slane %v546_v42, 5 }
 0x110   : > { %v571_v36 = vperm.slane %v546_v42, 6  ;;  %v572_v8 = vperm.slane %v546_v42, 7  ;;  %v1632_v63 = vmax.f32 %v1600_v45, 0.0  ;;  %v18924_v4 = vperm.slane %v11083_v27, 0 }
 0x111   : > { %v18925_v25 = vperm.slane %v11083_v27, 1  ;;  %v597_v40 = vmul.f32 %v565_v17, %v10953_v32  ;;  %v1569_v20 = vadd.f32 %v1537_v1, %v12219_v2  ;;  %v12331_v48 = vadd.f32 %v1538_v22, %v12221_v56 }
 0x112   : > { %v12321_v52 = vmul.f32 %v18924_v4, %v11166_v10  ;;  %v18926_v42 = vperm.slane %v11058_v11, 0  ;;  %v598_v4 = vmul.f32 %v566_v50, %v10953_v32  ;;  %v599_v59 = vmul.f32 %v567_v9, %v10953_v32 }
 0x113   : > { %v12326_v7 = vmul.f32 %v18925_v25, %v11166_v10  ;;  %v600_v27 = vmul.f32 %v568_v24, %v10953_v32  ;;  %v18927_v25 = vrot.slane %v11207_v47, 1  ;;  %v601_v2 = vmul.f32 %v569_v12, %v10953_v32 }
 0x114   : > { %v12336_v45 = vmul.f32 %v18926_v42, %v11302_v21  ;;  %v602_v56 = vmul.f32 %v570_v60, %v10953_v32  ;;  %v603_v22 = vmul.f32 %v571_v36, %v10953_v32  ;;  %v604_v1 = vmul.f32 %v572_v8, %v10953_v32 }
 0x115   : > { %v809_v10 = vsel %vm399_vm0, %v18927_v25, %v805_v37  ;;  %v613_v42 = vmul.f32 %v565_v17, %v11302_v21  ;;  %v614_v43 = vmul.f32 %v566_v50, %v11302_v21  ;;  %v615_v39 = vmul.f32 %v567_v9, %v11302_v21 }
 0x116   : > { %v616_v57 = vmul.f32 %v568_v24, %v11302_v21  ;;  %vm12352_vm2 = vcmp.ne.f32.partialorder %v660_v49, 0.0  ;;  %v617_v37 = vmul.f32 %v569_v12, %v11302_v21  ;;  %v618_v25 = vmul.f32 %v570_v60, %v11302_v21  ;;  %v18931_v24 = vld [vmem:[#allocation25_spill] sm:$0xff]  ;;  %v18932_v12 = vld [vmem:[#allocation26_spill] sm:$0xff]  ;;  %v18933_v60 = vld [vmem:[#allocation28_spill] sm:$0xff] }
 0x117   : > { %v810_v19 = vsel %vm18930_vm9, %v11207_v47, %v809_v10  ;;  %v671_v32 = vrot.slane %v668_v35, 1  ;;  %v619_v17 = vmul.f32 %v571_v36, %v11302_v21  ;;  %v620_v50 = vmul.f32 %v572_v8, %v11302_v21  ;;  %v18935_v47 = vld [vmem:[#allocation29_spill] sm:$0xff]  ;;  %v18936_v8 = vld [vmem:[#allocation30_spill] sm:$0xff] }
 0x118   : > { %v12363_v9 = vadd.f32 %v597_v40, %v11453_v26  ;;  %v12366_v49 = vadd.f32 %v598_v4, %v11458_v51  ;;  %v12369_v41 = vadd.f32 %v599_v59, %v18931_v24  ;;  %v12372_v33 = vadd.f32 %v600_v27, %v18932_v12  ;;  %v18938_v40 = vld [vmem:[#allocation56_spill] sm:$0xff]  ;;  %v18940_v4 = vld [vmem:[#allocation31_spill] sm:$0xff] }
 0x119   : > { %v12375_v53 = vadd.f32 %v601_v2, %v18933_v60  ;;  %v12377_v10 = vpack.c.bf16 %v1632_v63, %v1631_v44  ;;  %v12380_v36 = vadd.f32 %v602_v56, %v18935_v47  ;;  %v12383_v26 = vadd.f32 %v603_v22, %v18936_v8  ;;  %v18941_v63 = vld [vmem:[#allocation42_spill] sm:$0xff]  ;;  %v18942_v56 = vld [vmem:[#allocation43_spill] sm:$0xff] }
 0x11a   : > { %v814_v51 = vsel %vm12305_vm13, %v810_v19, 0.0  ;;  %v18937_v59 = vrot.slane %v12309_v23, 4  ;;  %v18939_v35 = vrot.slane %v18938_v40, 4  ;;  %v12393_v2 = vadd.f32 %v604_v1, %v18940_v4  ;;  %v18943_v22 = vld [vmem:[#allocation11_spill] sm:$0xff]  ;;  %v18945_v19 = vld [vmem:[#allocation45_spill] sm:$0xff]  ;;  %v18947_v47 = vld [vmem:[#allocation46_spill] sm:$0xff] }
 0x11b   : > { %18934 = vst [vmem:[#allocation25_spill] sm:$0xff] %v12377_v10  ;;  %v12396_v44 = vadd.f32 %v613_v42, %v18941_v63  ;;  %v12399_v24 = vadd.f32 %v614_v43, %v18942_v56  ;;  %v18944_v12 = vrot.slane %v18943_v22, 1  ;;  %v12406_v60 = vadd.f32 %v615_v39, %v18945_v19  ;;  %v18949_v1 = vld [vmem:[#allocation47_spill] sm:$0xff]  ;;  %v12419_v63 = vpop.permute.xlu1 %3538  ;;  %v18954_v19 = vld [vmem:[#allocation52_spill] sm:$0xff] }
 0x11c   : > { %v3893_v27 = vsel %vm18546_vm11, %v18939_v35, %v18937_v59  ;;  %1677 = vst [vmem:[#allocation2 + $0x14] sm:$0xff] %v12377_v10  ;;  %v12409_v8 = vadd.f32 %v616_v57, %v18947_v47  ;;  %v12412_v59 = vadd.f32 %v617_v37, %v18949_v1  ;;  %v18951_v42 = vld [vmem:[#allocation51_spill] sm:$0xff]  ;;  %v833_v43 = vperm.slane %v814_v51, 0  ;;  %v18956_v47 = vld [vmem:[#allocation53_spill] sm:$0xff] }
 0x11d   : > { %v675_v16 = vsel %vm399_vm0, %v18944_v12, %v671_v32  ;;  %18946 = vst [vmem:[#allocation26_spill] sm:$0xff] %v12406_v60  ;;  %v12415_v40 = vadd.f32 %v618_v25, %v18951_v42  ;;  %v834_v35 = vperm.slane %v814_v51, 1  ;;  %v835_v4 = vperm.slane %v814_v51, 2 }
 0x11e   : > { %18948 = vst [vmem:[#allocation28_spill] sm:$0xff] %v12409_v8  ;;  %v3894_v32 = vsel %vm18543_vm4, %v3893_v27, %v12309_v23  ;;  %v836_v56 = vperm.slane %v814_v51, 3  ;;  %v837_v39 = vperm.slane %v814_v51, 4  ;;  %v838_v12 = vperm.slane %v814_v51, 5 }
 0x11f   : > { %18950 = vst [vmem:[#allocation29_spill] sm:$0xff] %v12412_v59  ;;  %v676_v57 = vsel %vm18468_vm7, %v18943_v22, %v675_v16  ;;  %v12424_v37 = vadd.f32 %v619_v17, %v18954_v19  ;;  %v12427_v25 = vadd.f32 %v620_v50, %v18956_v47  ;;  %v839_v1 = vperm.slane %v814_v51, 6 }
 0x120   : > { %18952 = vst [vmem:[#allocation30_spill] sm:$0xff] %v12415_v40  ;;  %v840_v42 = vperm.slane %v814_v51, 7  ;;  %v12429_v40 = vpop.permute.xlu0 %2774  ;;  %v3919_v59 = vunpack.c.l.b16 %v3894_v32  ;;  %v1613_v8 = vadd.f32 %v12225_v14, %v1569_v20  ;;  %v12435_v60 = vmul.f32 %v833_v43, %v11217_v54 }
 0x121   : > { %18953 = vst [vmem:[#allocation56_spill] sm:$0xff] %v12419_v63  ;;  %v12438_v17 = vmul.f32 %v834_v35, %v11217_v54  ;;  %v3920_v22 = vunpack.c.h.b16 %v3894_v32  ;;  %v12442_v50 = vsel %vm12352_vm2, %v676_v57, 0.0  ;;  %v12445_v51 = vmul.f32 %v835_v4, %v11217_v54 }
 0x122   : > { %18955 = vst [vmem:[#allocation31_spill] sm:$0xff] %v12424_v37  ;;  %v12448_v16 = vmul.f32 %v836_v56, %v11217_v54  ;;  %v12451_v19 = vmul.f32 %v837_v39, %v11217_v54  ;;  %v12454_v20 = vmul.f32 %v838_v12, %v11217_v54  ;;  %v12457_v47 = vmul.f32 %v839_v1, %v11217_v54 }
 0x123   : > { %18957 = vst [vmem:[#allocation42_spill] sm:$0xff] %v12427_v25  ;;  %v12460_v32 = vmul.f32 %v840_v42, %v11217_v54  ;;  %v12463_v57 = vmul.f32 %v833_v43, %v18967_v28  ;;  %v12466_v27 = vmul.f32 %v834_v35, %v18967_v28  ;;  %v12469_v23 = vmul.f32 %v835_v4, %v18967_v28 }
 0x124   : > { %18958 = vst [vmem:[#allocation43_spill] sm:$0xff] %v12429_v40  ;;  %v699_v40 = vperm.slane %v12442_v50, 0  ;;  %v1614_v54 = vadd.f32 %v12225_v14, %v12331_v48  ;;  %v12480_v43 = vmul.f32 %v836_v56, %v18967_v28  ;;  %v12483_v35 = vmul.f32 %v837_v39, %v18967_v28  ;;  %v19011_v39 = vld [vmem:[#allocation32_spill] sm:$0xff] }
 0x125   : > { %18959 = vst [vmem:[#allocation11_spill] sm:$0xff] %v12435_v60  ;;  %v12486_v4 = vmul.f32 %v838_v12, %v18967_v28  ;;  %v1645_v48 = vmax.f32 %v1613_v8, 0.0  ;;  %v702_v56 = vperm.slane %v12442_v50, 3  ;;  %v19001_v60 = vperm.slane %v11971_v30, 1 }
 0x126   : > { %18960 = vst [vmem:[#allocation45_spill] sm:$0xff] %v12438_v17  ;;  %v18999_v17 = vperm.slane %v11971_v30, 0  ;;  %v19012_v8 = vperm.slane %v19011_v39, 0 }
 0x127   : > { %18961 = vst [vmem:[#allocation46_spill] sm:$0xff] %v12445_v51  ;;  %v1520_v25 = vmul.f32 %v19001_v60, %v11843_v5 }
 0x128   : > { %18962 = vst [vmem:[#allocation47_spill] sm:$0xff] %v12448_v16 }
 0x129   : > { %18963 = vst [vmem:[#allocation51_spill] sm:$0xff] %v12451_v19  ;;  %v18971_v19 = vrot.slane %v12419_v63, 4 }
 0x12a   : > { %18964 = vst [vmem:[#allocation52_spill] sm:$0xff] %v12454_v20  ;;  %v18972_v20 = vrot.slane %v12042_v15, 4 }
 0x12b   : > { %18965 = vst [vmem:[#allocation53_spill] sm:$0xff] %v12457_v47 }
 0x12c   : > { %18966 = vst [vmem:[#allocation74_spill] sm:$0xff] %v12460_v32  ;;  %v3561_v47 = vsel %vm18546_vm11, %v18972_v20, %v18971_v19  ;;  %v700_v19 = vperm.slane %v12442_v50, 1  ;;  %v701_v20 = vperm.slane %v12442_v50, 2 }
 0x12d   : > { %18968 = vst [vmem:[#allocation75_spill] sm:$0xff] %v12463_v57  ;;  %v12501_v12 = vsel %vm18468_vm7, %v3561_v47, %v12419_v63  ;;  %v18986_v47 = vperm.slane %v11971_v30, 4 }
 0x12e   : > { %18969 = vst [vmem:[#allocation76_spill] sm:$0xff] %v12466_v27  ;;  %v12492_v27 = vmul.f32 %v840_v42, %v18967_v28  ;;  %v18987_v42 = vperm.slane %v11971_v30, 5 }
 0x12f   : > { %18970 = vst [vmem:[#allocation77_spill] sm:$0xff] %v12469_v23  ;;  %v12489_v23 = vmul.f32 %v839_v1, %v18967_v28  ;;  %v1539_v1 = vmul.f32 %v18986_v47, %v12141_v3 }
 0x130   : > { %18973 = vst [vmem:[#allocation78_spill] sm:$0xff] %v12480_v43  ;;  %v18983_v43 = vld [vmem:[#allocation60_spill] sm:$0xff]  ;;  %v1540_v63 = vmul.f32 %v18987_v42, %v12141_v3 }
 0x131   : > { %18974 = vst [vmem:[#allocation79_spill] sm:$0xff] %v12483_v35  ;;  %v18980_v35 = vld [vmem:[#allocation59_spill] sm:$0xff]  ;;  %vm12514_vm12 = vcmp.ne.s32.totalorder %v3920_v22, %v18983_v43  ;;  %v18989_v22 = vperm.slane %v11758_v31, 0  ;;  %v1571_v32 = vadd.f32 %v1539_v1, %v12298_v34  ;;  %v18994_v1 = vperm.slane %v12442_v50, 4 }
 0x132   : > { %18975 = vst [vmem:[#allocation80_spill] sm:$0xff] %v12486_v4  ;;  %v1646_v4 = vmax.f32 %v1614_v54, 0.0  ;;  %vm12509_vm6 = vcmp.ne.s32.totalorder %v3919_v59, %v18980_v35 }
 0x133   : > { %18976 = vst [vmem:[#allocation81_spill] sm:$0xff] %v12489_v23  ;;  %vm3925_vm14 = vmpackc.low %vm12514_vm12, %vm12509_vm6  ;;  %v1251_v47 = vmul.f32 %v18989_v22, %v11887_v13  ;;  %v1615_v22 = vadd.f32 %v12225_v14, %v1571_v32  ;;  %v8376_v32 = vld [vmem:[%s18337_s1 + $0x45] ss:$8 sm:$0xf] }
 0x134   : > { %18977 = vst [vmem:[#allocation82_spill] sm:$0xff] %v12492_v27  ;;  %v18979_v27 = vld [vmem:[#allocation23_spill] sm:$0xff]  ;;  %v12530_v57 = vpack.c.bf16 %v1646_v4, %v1645_v48  ;;  %v3970_v42 = vsel %vm3925_vm14, %v12377_v10, 0  ;;  %v1572_v4 = vadd.f32 %v1540_v63, %v12303_v0  ;;  %v18990_v48 = vperm.slane %v11758_v31, 1 }
 0x135   : > { %18978 = vst [vmem:[#allocation83_spill] sm:$0xff] %v12501_v12  ;;  %v12506_v23 = vmul.f32 %v699_v40, %v18979_v27  ;;  %v12525_v54 = vmul.f32 %v700_v19, %v18979_v27  ;;  %v12528_v59 = vmul.f32 %v701_v20, %v18979_v27  ;;  %v12551_v16 = vmul.f32 %v702_v56, %v18979_v27 }
 0x136   : > { %18988 = vst [vmem:[#allocation59_spill] sm:$0xff] %v12530_v57  ;;  %v1252_v12 = vmul.f32 %v18990_v48, %v11887_v13  ;;  %v3978_v10 = vsel %vm3918_vm8, %v12530_v57, 0  ;;  %4008 = vrot.lane.b32.xlu0 %v3970_v42, %s10620_s18  ;;  %v1283_v34 = vadd.f32 %v1251_v47, %v12194_v18  ;;  %v18993_v0 = vperm.slane %v11837_v62, 0 }
 0x137   : > { %1684 = vst [vmem:[#allocation2 + $0x54] sm:$0xff] %v12530_v57  ;;  %v12568_v48 = vmul.f32 %v18994_v1, %v18979_v27  ;;  %4024 = vrot.lane.b32.xlu1 %v3978_v10, %s10620_s18  ;;  %v1616_v51 = vadd.f32 %v12225_v14, %v1572_v4  ;;  %v18995_v18 = vperm.slane %v12442_v50, 5  ;;  %v18996_v42 = vperm.slane %v12442_v50, 6 }
 0x138   : > { %v1385_v63 = vmul.f32 %v18993_v0, %v11990_v6  ;;  %v1284_v57 = vadd.f32 %v1252_v12, %v12217_v55  ;;  %v18997_v1 = vperm.slane %v11837_v62, 1  ;;  %v8377_v55 = vld [vmem:[%s18337_s1 + $0x45] ss:$8 sm:$0xf0]  ;;  %v18998_v12 = vperm.slane %v12442_v50, 7 }
 0x139   : > { %v12577_v47 = vmul.f32 %v18995_v18, %v18979_v27  ;;  %v12582_v0 = vmul.f32 %v18996_v42, %v18979_v27  ;;  %v1647_v18 = vmax.f32 %v1615_v22, 0.0  ;;  %v1648_v42 = vmax.f32 %v1616_v51, 0.0 }
 0x13a   : > { %v1386_v10 = vmul.f32 %v18997_v1, %v11990_v6  ;;  %v1417_v13 = vadd.f32 %v1385_v63, %v1283_v34  ;;  %v12596_v4 = vmul.f32 %v18998_v12, %v18979_v27  ;;  %v1519_v1 = vmul.f32 %v18999_v17, %v11843_v5  ;;  %v19000_v34 = vld [vmem:[#allocation14_spill] sm:$0xff] }
 0x13b   : > { %v12602_v63 = vmul.f32 %v699_v40, %v19000_v34  ;;  %v12605_v6 = vmul.f32 %v700_v19, %v19000_v34  ;;  %v12610_v37 = vpack.c.bf16 %v1648_v42, %v1647_v18  ;;  %v3149_v22 = vor.u32 %v8377_v55, %v8376_v32  ;;  %v12653_v55 = vpop.permute.xlu0 %2438 }
 0x13c   : > { %v1418_v14 = vadd.f32 %v1386_v10, %v1284_v57  ;;  %v1551_v12 = vadd.f32 %v1519_v1, %v1417_v13  ;;  %v19003_v51 = vperm.slane %v11058_v11, 1  ;;  %v12616_v17 = vmul.f32 %v701_v20, %v19000_v34  ;;  %v12623_v10 = vpop.permute.xlu2 %2772  ;;  %19013 = vst [vmem:[#allocation61_spill] sm:$0xff] %v12653_v55 }
 0x13d   : > { %19002 = vst [vmem:[#allocation60_spill] sm:$0xff] %v12610_v37  ;;  %v12619_v40 = vmul.f32 %v702_v56, %v19000_v34  ;;  %v637_v57 = vadd.f32 %v12336_v45, %v12321_v52  ;;  %v3979_v13 = vsel %vm3925_vm14, %v12610_v37, 0  ;;  %v19005_v20 = vunpack.c.l.b16 %v12200_v58  ;;  %v19078_v45 = vld [vmem:[#allocation78_spill] sm:$0xff] }
 0x13e   : > { %v606_v27 = vmul.f32 %v19003_v51, %v11302_v21  ;;  %v1552_v19 = vadd.f32 %v1520_v25, %v1418_v14  ;;  %19004 = vst [vmem:[#allocation62_spill] sm:$0xff] %v12623_v10  ;;  %v1595_v60 = vadd.f32 %v11885_v29, %v1551_v12  ;;  %v19008_v52 = vunpack.c.h.b16 %v12200_v58  ;;  %4026 = vrot.lane.b32.xlu2 %v3979_v13, %s10620_s18  ;;  %v19017_v51 = vld [vmem:[#allocation33_spill] sm:$0xff] }
 0x13f   : > { %1685 = vst [vmem:[#allocation2 + $0x5c] sm:$0xff] %v12610_v37  ;;  %vm12636_vm5 = vcmp.ne.s32.totalorder %v19005_v20, %v18980_v35  ;;  %vm3151_vm8 = vcmp.ne.f32.partialorder %v3149_v22, 0.0  ;;  %v739_v32 = vmul.f32 %v19012_v8, %v19000_v34  ;;  %v19014_v42 = vmov 0  }
 0x140   : > { %vm12643_vm1 = vcmp.ne.s32.totalorder %v19008_v52, %v18983_v43  ;;  %v1596_v25 = vadd.f32 %v11885_v29, %v1552_v19  ;;  %v638_v56 = vadd.f32 %v606_v27, %v12326_v7  ;;  %v1627_v18 = vmax.f32 %v1595_v60, 0.0 }
 0x141   : > { %v12656_v58 = vsel %vm3151_vm8, 1, %v19014_v42  ;;  %v19016_v1 = vperm.slane %v19011_v39, 1  ;;  %v19018_v19 = vperm.slane %v19017_v51, 0  ;;  %v771_v20 = vadd.f32 %v739_v32, %v637_v57  ;;  %vm3911_vm15 = vmpackc.low %vm12643_vm1, %vm12636_vm5 }
 0x142   : > { %19015 = vst [vmem:[#allocation84_spill] sm:$0xff] %v12656_v58  ;;  %v1628_v13 = vmax.f32 %v1596_v25, 0.0  ;;  %v3162_v7 = vperm.slane %v12656_v58, 0  ;;  %v3163_v27 = vperm.slane %v12656_v58, 1  ;;  %v19019_v52 = vperm.slane %v19017_v51, 1 }
 0x143   : > { %v740_v12 = vmul.f32 %v19016_v1, %v19000_v34  ;;  %v873_v22 = vmul.f32 %v19018_v19, %v18967_v28  ;;  %v19020_v1 = vperm.slane %v11116_v46, 0  ;;  %v19021_v25 = vperm.slane %v11116_v46, 1 }
 0x144   : > { %v874_v8 = vmul.f32 %v19019_v52, %v18967_v28  ;;  %v12679_v21 = vpack.c.bf16 %v1628_v13, %v1627_v18  ;;  %vm3178_vm13 = vcmp.eq.s32.totalorder %v3162_v7, 1  ;;  %vm3179_vm2 = vcmp.eq.s32.totalorder %v3163_v27, 1  ;;  %v19024_v52 = vld [vmem:[#allocation38_spill] sm:$0xff] }
 0x145   : > { %v772_v60 = vadd.f32 %v740_v12, %v638_v56  ;;  %v993_v19 = vmul.f32 %v19020_v1, %v11420_v38  ;;  %v994_v11 = vmul.f32 %v19021_v25, %v11420_v38  ;;  %v905_v57 = vadd.f32 %v873_v22, %v771_v20  ;;  %vm3190_vm9 = vmpackc.low %vm3179_vm2, %vm3178_vm13  ;;  %v12720_v25 = vpop.permute.xlu2 %2436 }
 0x146   : > { %19022 = vst [vmem:[#allocation85_spill] sm:$0xff] %v12679_v21  ;;  %v19023_v56 = vperm.slane %v12442_v50, 4  ;;  %v19025_v28 = vperm.slane %v19024_v52, 0  ;;  %v19026_v1 = vperm.slane %v19024_v52, 1  ;;  %v19027_v18 = vperm.slane %v12442_v50, 5 }
 0x147   : > { %v906_v12 = vadd.f32 %v874_v8, %v772_v60  ;;  %1675 = vst [vmem:[#allocation2 + $0x4] sm:$0xff] %v12679_v21  ;;  %v3968_v22 = vsel %vm3911_vm15, %v12679_v21, 0  ;;  %v3198_v7 = vsel %vm3190_vm9, 65537, %v19014_v42  ;;  %v19028_v27 = vperm.slane %v12442_v50, 6 }
 0x148   : > { %v751_v32 = vmul.f32 %v19023_v56, %v19000_v34  ;;  %v1133_v58 = vmul.f32 %v19025_v28, %v11731_v61  ;;  %v1134_v51 = vmul.f32 %v19026_v1, %v11731_v61  ;;  %v752_v13 = vmul.f32 %v19027_v18, %v19000_v34  ;;  %4004 = vrot.lane.b32.xlu1 %v3968_v22, %s10620_s18 }
 0x149   : > { %v1025_v28 = vadd.f32 %v993_v19, %v905_v57  ;;  %v753_v20 = vmul.f32 %v19028_v27, %v19000_v34  ;;  %v19029_v60 = vperm.slane %v12442_v50, 7  ;;  %3210 = vrot.lane.b32.xlu0 %v3198_v7, %s10614_s11  ;;  %v1026_v56 = vadd.f32 %v994_v11, %v906_v12  ;;  %v19030_v19 = vld [vmem:[#allocation39_spill] sm:$0xff]  ;;  %v19032_v27 = vld [vmem:[#allocation44_spill] sm:$0xff]  ;;  %19034 = vst [vmem:[#allocation86_spill] sm:$0xff] %v12720_v25 }
 0x14a   : > { %v763_v1 = vadd.f32 %v12506_v23, %v12363_v9  ;;  %v19031_v57 = vperm.slane %v11758_v31, 0  ;;  %v19033_v39 = vperm.slane %v11837_v62, 0  ;;  %v19035_v11 = vperm.slane %v11758_v31, 1 }
 0x14b   : > { %v754_v8 = vmul.f32 %v19029_v60, %v19000_v34  ;;  %v1165_v18 = vadd.f32 %v1133_v58, %v1025_v28  ;;  %v764_v60 = vadd.f32 %v12525_v54, %v12366_v49  ;;  %v1166_v22 = vadd.f32 %v1134_v51, %v1026_v56 }
 0x14c   : > { %v1267_v52 = vmul.f32 %v19031_v57, %v19030_v19  ;;  %v1401_v50 = vmul.f32 %v19033_v39, %v19032_v27  ;;  %v1268_v12 = vmul.f32 %v19035_v11, %v19030_v19  ;;  %v19036_v23 = vperm.slane %v11837_v62, 1 }
 0x14d   : > { %v765_v58 = vadd.f32 %v12528_v59, %v12369_v41  ;;  %v766_v39 = vadd.f32 %v12551_v16, %v12372_v33  ;;  %v19037_v49 = vperm.slane %v11971_v30, 0  ;;  %v767_v51 = vadd.f32 %v12568_v48, %v12375_v53  ;;  %v1330_v41 = vpop.permute.xlu0 %1329  ;;  %v19040_v48 = vld [vmem:[#allocation26_spill] sm:$0xff] }
 0x14e   : > { %v1402_v9 = vmul.f32 %v19036_v23, %v19032_v27  ;;  %v1299_v7 = vadd.f32 %v1267_v52, %v1165_v18  ;;  %v768_v28 = vadd.f32 %v12577_v47, %v12380_v36  ;;  %v1300_v56 = vadd.f32 %v1268_v12, %v1166_v22  ;;  %v12748_v52 = vpop.permute.xlu1 %3206  ;;  %v19045_v23 = vld [vmem:[#allocation31_spill] sm:$0xff] }
 0x14f   : > { %v1535_v54 = vmul.f32 %v19037_v49, %v12141_v3  ;;  %v19038_v57 = vperm.slane %v11971_v30, 1  ;;  %v769_v33 = vadd.f32 %v12582_v0, %v12383_v26  ;;  %v770_v16 = vadd.f32 %v12596_v4, %v12393_v2  ;;  %19039 = vst [vmem:[#allocation87_spill] sm:$0xff] %v12748_v52  ;;  %v8350_v26 = vld [vmem:[%s18337_s1 + $0x47] ss:$8 sm:$0xf] }
 0x150   : > { %v779_v59 = vadd.f32 %v12602_v63, %v12396_v44  ;;  %v1433_v53 = vadd.f32 %v1401_v50, %v1299_v7  ;;  %v780_v36 = vadd.f32 %v12605_v6, %v12399_v24  ;;  %v781_v47 = vadd.f32 %v12616_v17, %v19040_v48  ;;  %v19041_v0 = vld [vmem:[#allocation70_spill] sm:$0xff]  ;;  %v19042_v4 = vld [vmem:[#allocation28_spill] sm:$0xff]  ;;  %v19043_v63 = vld [vmem:[#allocation29_spill] sm:$0xff] }
 0x151   : > { %v1536_v11 = vmul.f32 %v19038_v57, %v12141_v3  ;;  %v1434_v18 = vadd.f32 %v1402_v9, %v1300_v56  ;;  %v3560_v2 = vsel %vm18468_vm7, %v19041_v0, %v12042_v15  ;;  %v782_v44 = vadd.f32 %v12619_v40, %v19042_v4  ;;  %v8351_v6 = vld [vmem:[%s18337_s1 + $0x47] ss:$8 sm:$0xf0] }
 0x152   : > { %v783_v50 = vadd.f32 %v751_v32, %v19043_v63  ;;  %v1567_v22 = vadd.f32 %v1535_v54, %v1433_v53  ;;  %v1333_v24 = vrot.slane %v1330_v41, 1  ;;  %v19044_v17 = vld [vmem:[#allocation30_spill] sm:$0xff]  ;;  %v785_v9 = vadd.f32 %v753_v20, %v19045_v23  ;;  %v19047_v57 = vld [vmem:[#allocation11_spill] sm:$0xff]  ;;  %v19049_v54 = vld [vmem:[#allocation45_spill] sm:$0xff] }
 0x153   : > { %v784_v12 = vadd.f32 %v752_v13, %v19044_v17  ;;  %v19046_v7 = vld [vmem:[#allocation42_spill] sm:$0xff]  ;;  %v1568_v56 = vadd.f32 %v1536_v11, %v1434_v18  ;;  %v12770_v15 = vadd.f32 %v19047_v57, %v763_v1  ;;  %v19048_v48 = vld [vmem:[#allocation67_spill] sm:$0xff]  ;;  %v3580_v0 = vunpack.c.l.b16 %v3560_v2  ;;  %v19056_v57 = vld [vmem:[#allocation53_spill] sm:$0xff] }
 0x154   : > { %v786_v49 = vadd.f32 %v754_v8, %v19046_v7  ;;  %v1611_v40 = vadd.f32 %v19048_v48, %v1567_v22  ;;  %v3581_v32 = vunpack.c.h.b16 %v3560_v2  ;;  %v12774_v53 = vadd.f32 %v19049_v54, %v764_v60  ;;  %v19050_v63 = vld [vmem:[#allocation46_spill] sm:$0xff]  ;;  %v19051_v8 = vld [vmem:[#allocation47_spill] sm:$0xff]  ;;  %v19055_v60 = vld [vmem:[#allocation52_spill] sm:$0xff] }
 0x155   : > { %v18466_v4 = vrot.slane %v12748_v52, 4  ;;  %v1612_v41 = vadd.f32 %v19048_v48, %v1568_v56  ;;  %v1322_v13 = vor.u32 %v8351_v6, %v8350_v26  ;;  %v12779_v20 = vadd.f32 %v19050_v63, %v765_v58  ;;  %v19052_v18 = vld [vmem:[#allocation22_spill] sm:$0xff]  ;;  %v19054_v2 = vld [vmem:[#allocation51_spill] sm:$0xff]  ;;  %v1196_v58 = vpop.permute.xlu2 %1195 }
 0x156   : > { %v12782_v11 = vadd.f32 %v19051_v8, %v766_v39  ;;  %v1643_v1 = vmax.f32 %v1611_v40, 0.0  ;;  %v19053_v17 = vrot.slane %v19052_v18, 1  ;;  %v12788_v23 = vadd.f32 %v19054_v2, %v767_v51  ;;  %v19057_v6 = vld [vmem:[#allocation83_spill] sm:$0xff] }
 0x157   : > { %v12791_v7 = vadd.f32 %v19055_v60, %v768_v28  ;;  %v12794_v56 = vadd.f32 %v19056_v57, %v769_v33  ;;  %v1644_v26 = vmax.f32 %v1612_v41, 0.0  ;;  %v3587_v54 = vunpack.c.l.b16 %v19057_v6  ;;  %v8346_v28 = vld [vmem:[%s18337_s1 + $0x46] ss:$8 sm:$0xf] }
 0x158   : > { %v1337_v22 = vsel %vm399_vm0, %v19053_v17, %v1333_v24  ;;  %v3588_v39 = vunpack.c.h.b16 %v19057_v6  ;;  %vm12799_vm6 = vcmp.ne.s32.totalorder %v3580_v0, %v18980_v35  ;;  %vm12804_vm12 = vcmp.ne.s32.totalorder %v3581_v32, %v18983_v43  ;;  %v19062_v33 = vld [vmem:[#allocation64_spill] sm:$0xff]  ;;  %v12831_v17 = vpop.permute.xlu1 %4200  ;;  %v19070_v57 = vld [vmem:[#allocation74_spill] sm:$0xff]  ;;  %v19071_v6 = vld [vmem:[#allocation75_spill] sm:$0xff] }
 0x159   : > { %v19063_v24 = vrot.slane %v19062_v33, 4  ;;  %v12816_v63 = vpack.c.bf16 %v1644_v26, %v1643_v1  ;;  %vm12818_vm14 = vcmp.ne.f32.partialorder %v1322_v13, 0.0  ;;  %v1338_v32 = vsel %vm18541_vm10, %v19052_v18, %v1337_v22  ;;  %vm3586_vm8 = vmpackc.low %vm12804_vm12, %vm12799_vm6  ;;  %v8347_v8 = vld [vmem:[%s18337_s1 + $0x46] ss:$8 sm:$0xf0]  ;;  %19067 = vst [vmem:[#allocation70_spill] sm:$0xff] %v12831_v17 }
 0x15a   : > { %v19068_v1 = vld [vmem:[#allocation63_spill] sm:$0xff]  ;;  %v1199_v2 = vrot.slane %v1196_v58, 1  ;;  %v19069_v18 = vld [vmem:[#allocation12_spill] sm:$0xff]  ;;  %v12842_v26 = vadd.f32 %v19070_v57, %v770_v16  ;;  %vm12867_vm13 = vcmp.ne.s32.totalorder %v3587_v54, %v18980_v35  ;;  %vm12872_vm2 = vcmp.ne.s32.totalorder %v3588_v39, %v18983_v43 }
 0x15b   : > { %v3229_v41 = vsel %vm18546_vm11, %v19063_v24, %v18466_v4  ;;  %19064 = vst [vmem:[#allocation26_spill] sm:$0xff] %v12816_v63  ;;  %v3637_v13 = vsel %vm3586_vm8, %v19068_v1, 0  ;;  %v2060_v22 = vperm.slane %v19069_v18, 6  ;;  %v2061_v60 = vperm.slane %v19069_v18, 7  ;;  %v19072_v4 = vld [vmem:[#allocation76_spill] sm:$0xff]  ;;  %v19073_v1 = vld [vmem:[#allocation77_spill] sm:$0xff]  ;;  %vm3593_vm9 = vmpackc.low %vm12872_vm2, %vm12867_vm13 }
 0x15c   : > { %v12845_v24 = vadd.f32 %v19071_v6, %v779_v59  ;;  %v12848_v34 = vadd.f32 %v19072_v4, %v780_v36  ;;  %1683 = vst [vmem:[#allocation2 + $0x4c] sm:$0xff] %v12816_v63  ;;  %v3977_v58 = vsel %vm3911_vm15, %v12816_v63, 0  ;;  %3674 = vrot.lane.b32.xlu1 %v3637_v13, %s10617_s16  ;;  %v12859_v16 = vadd.f32 %v19073_v1, %v781_v47  ;;  %v19079_v47 = vld [vmem:[#allocation79_spill] sm:$0xff]  ;;  %v19081_v54 = vld [vmem:[#allocation80_spill] sm:$0xff] }
 0x15d   : > { %4022 = vrot.lane.b32.xlu2 %v3977_v58, %s10620_s18  ;;  %v12864_v59 = vsel %vm12818_vm14, %v1338_v32, 0.0  ;;  %v12877_v4 = vadd.f32 %v19078_v45, %v782_v44  ;;  %v12880_v13 = vadd.f32 %v19079_v47, %v783_v50  ;;  %vm19080_vm5 = vcmask 7168   ;;  %v19082_v57 = vld [vmem:[#allocation27_spill] sm:$0xff]  ;;  %v19088_v50 = vld [vmem:[#allocation81_spill] sm:$0xff]  ;;  %v19094_v58 = vld [vmem:[#allocation66_spill] sm:$0xff] }
 0x15e   : > { %v12884_v0 = vsel %vm19080_vm5, %v3229_v41, %v12748_v52  ;;  %v1188_v32 = vor.u32 %v8347_v8, %v8346_v28  ;;  %v12887_v18 = vadd.f32 %v19081_v54, %v784_v12  ;;  %v19083_v6 = vrot.slane %v19082_v57, 1  ;;  %v19089_v8 = vld [vmem:[#allocation82_spill] sm:$0xff] }
 0x15f   : > { %vm12892_vm1 = vcmp.eq.s32.totalorder %v2060_v22, 1  ;;  %vm12896_vm15 = vcmp.eq.s32.totalorder %v2061_v60, 1  ;;  %v12901_v1 = vadd.f32 %v19088_v50, %v785_v9  ;;  %v1361_v28 = vperm.slane %v12864_v59, 0  ;;  %v8342_v40 = vld [vmem:[%s18337_s1 + $0x45] ss:$8 sm:$0xf] }
 0x160   : > { %v1203_v39 = vsel %vm399_vm0, %v19083_v6, %v1199_v2  ;;  %v1362_v12 = vperm.slane %v12864_v59, 1  ;;  %v18474_v41 = vrot.slane %v12831_v17, 4  ;;  %v12911_v2 = vadd.f32 %v19089_v8, %v786_v49  ;;  %vm2089_vm7 = vmpackc.low %vm12896_vm15, %vm12892_vm1  ;;  %v19091_v8 = vld [vmem:[#allocation58_spill] sm:$0xff] }
 0x161   : > { %v1363_v60 = vperm.slane %v12864_v59, 2  ;;  %v1364_v9 = vperm.slane %v12864_v59, 3  ;;  %v1365_v45 = vperm.slane %v12864_v59, 4  ;;  %v1366_v47 = vperm.slane %v12864_v59, 5 }
 0x162   : > { %vm1190_vm14 = vcmp.ne.f32.partialorder %v1188_v32, 0.0  ;;  %vm19090_vm5 = vcmask 924672   ;;  %v1367_v6 = vperm.slane %v12864_v59, 6  ;;  %v1368_v50 = vperm.slane %v12864_v59, 7  ;;  %v19096_v59 = vld [vmem:[#allocation25_spill] sm:$0xff] }
 0x163   : > { %v1204_v54 = vsel %vm19090_vm5, %v19082_v57, %v1203_v39  ;;  %v3647_v32 = vsel %vm3593_vm9, %v12610_v37, 0  ;;  %v12934_v57 = vmul.f32 %v1361_v28, %v19091_v8  ;;  %v12937_v39 = vmul.f32 %v1362_v12, %v19091_v8 }
 0x164   : > { %v19095_v44 = vrot.slane %v19094_v58, 4  ;;  %v3638_v22 = vsel %vm3593_vm9, %v19096_v59, 0  ;;  %3694 = vrot.lane.b32.xlu1 %v3647_v32, %s10617_s16  ;;  %v12952_v52 = vmul.f32 %v1363_v60, %v19091_v8  ;;  %v12955_v30 = vmul.f32 %v1364_v9, %v19091_v8  ;;  %v19102_v32 = vld [vmem:[#allocation68_spill] sm:$0xff] }
 0x165   : > { %19092 = vst [vmem:[#allocation28_spill] sm:$0xff] %v12934_v57  ;;  %v12957_v62 = vsel %vm1190_vm14, %v1204_v54, 0.0  ;;  %v2097_v58 = vsel %vm2089_vm7, 65537, %v19014_v42  ;;  %3676 = vrot.lane.b32.xlu2 %v3638_v22, %s10617_s16  ;;  %v12964_v36 = vmul.f32 %v1365_v45, %v19091_v8  ;;  %v12967_v14 = vmul.f32 %v1366_v47, %v19091_v8 }
 0x166   : > { %19093 = vst [vmem:[#allocation29_spill] sm:$0xff] %v12937_v39  ;;  %v4223_v49 = vsel %vm18546_vm11, %v19095_v44, %v18474_v41  ;;  %v12961_v44 = vpop.permute.xlu1 %2770  ;;  %2108 = vrot.lane.b32.xlu0 %v2097_v58, %s10620_s18  ;;  %v19103_v41 = vunpack.c.l.b16 %v19102_v32  ;;  %v19106_v22 = vunpack.c.h.b16 %v19102_v32  ;;  %v12985_v46 = vmul.f32 %v1367_v6, %v19091_v8 }
 0x167   : > { %19097 = vst [vmem:[#allocation30_spill] sm:$0xff] %v12952_v52  ;;  %v12988_v25 = vmul.f32 %v1368_v50, %v19091_v8  ;;  %v12991_v58 = vmul.f32 %v1361_v28, %v19032_v27  ;;  %v12997_v55 = vmul.f32 %v1363_v60, %v19032_v27  ;;  %vm19114_vm2 = vcmask 138240  }
 0x168   : > { %19098 = vst [vmem:[#allocation31_spill] sm:$0xff] %v12955_v30  ;;  %vm12973_vm13 = vcmp.ne.s32.totalorder %v19103_v41, %v18980_v35  ;;  %vm12980_vm7 = vcmp.ne.s32.totalorder %v19106_v22, %v18983_v43  ;;  %v12994_v41 = vmul.f32 %v1362_v12, %v19032_v27  ;;  %v13001_v32 = vsel %vm19114_vm2, %v4223_v49, %v12831_v17 }
 0x169   : > { %19099 = vst [vmem:[#allocation42_spill] sm:$0xff] %v12961_v44  ;;  %v1227_v22 = vperm.slane %v12957_v62, 0  ;;  %v1228_v44 = vperm.slane %v12957_v62, 1  ;;  %v13006_v8 = vmul.f32 %v1364_v9, %v19032_v27  ;;  %v1229_v28 = vperm.slane %v12957_v62, 2  ;;  %vm3579_vm1 = vmpackc.low %vm12980_vm7, %vm12973_vm13 }
 0x16a   : > { %19100 = vst [vmem:[#allocation11_spill] sm:$0xff] %v12964_v36  ;;  %v1230_v10 = vperm.slane %v12957_v62, 3  ;;  %v1231_v12 = vperm.slane %v12957_v62, 4  ;;  %v13016_v60 = vmul.f32 %v1365_v45, %v19032_v27  ;;  %v1232_v49 = vperm.slane %v12957_v62, 5  ;;  %v19122_v45 = vld [vmem:[#allocation59_spill] sm:$0xff] }
 0x16b   : > { %19101 = vst [vmem:[#allocation45_spill] sm:$0xff] %v12967_v14  ;;  %v1233_v17 = vperm.slane %v12957_v62, 6  ;;  %v1234_v9 = vperm.slane %v12957_v62, 7  ;;  %v13022_v48 = vmul.f32 %v1366_v47, %v19032_v27  ;;  %v13025_v29 = vmul.f32 %v1367_v6, %v19032_v27 }
 0x16c   : > { %19109 = vst [vmem:[#allocation46_spill] sm:$0xff] %v12985_v46  ;;  %v13028_v3 = vmul.f32 %v1368_v50, %v19032_v27  ;;  %v3636_v62 = vsel %vm3579_vm1, %v12679_v21, 0  ;;  %v3646_v5 = vsel %vm3586_vm8, %v19122_v45, 0  ;;  %v13077_v51 = vmul.f32 %v1228_v44, %v19030_v19 }
 0x16d   : > { %19110 = vst [vmem:[#allocation47_spill] sm:$0xff] %v12988_v25  ;;  %3672 = vrot.lane.b32.xlu2 %v3636_v62, %s10617_s16  ;;  %v19123_v62 = vld [vmem:[#allocation15_spill] sm:$0xff]  ;;  %v13092_v14 = vmul.f32 %v1230_v10, %v19030_v19  ;;  %v13095_v36 = vmul.f32 %v1231_v12, %v19030_v19  ;;  %v13100_v21 = vmul.f32 %v1232_v49, %v19030_v19  ;;  %vm19134_vm12 = vcmask 1039360  }
 0x16e   : > { %19111 = vst [vmem:[#allocation22_spill] sm:$0xff] %v12991_v58  ;;  %3692 = vrot.lane.b32.xlu0 %v3646_v5, %s10617_s16  ;;  %v955_v58 = vperm.slane %v19123_v62, 2  ;;  %v13086_v5 = vmul.f32 %v1229_v28, %v19030_v19  ;;  %v956_v25 = vperm.slane %v19123_v62, 3  ;;  %v957_v46 = vperm.slane %v19123_v62, 4 }
 0x16f   : > { %19112 = vst [vmem:[#allocation51_spill] sm:$0xff] %v12994_v41  ;;  %v954_v41 = vperm.slane %v19123_v62, 1  ;;  %v959_v30 = vperm.slane %v19123_v62, 6  ;;  %v960_v52 = vperm.slane %v19123_v62, 7  ;;  %v13106_v37 = vmul.f32 %v1234_v9, %v19030_v19 }
 0x170   : > { %19113 = vst [vmem:[#allocation52_spill] sm:$0xff] %v12997_v55  ;;  %v1005_v31 = vmul.f32 %v957_v46, %v11420_v38  ;;  %vm19137_vm8 = vcmask 7168  }
 0x171   : > { %19115 = vst [vmem:[#allocation53_spill] sm:$0xff] %v13001_v32  ;;  %v13070_v32 = vmul.f32 %v1227_v22, %v19030_v19 }
 0x172   : > { %19116 = vst [vmem:[#allocation83_spill] sm:$0xff] %v13006_v8 }
 0x173   : > { %19117 = vst [vmem:[#allocation64_spill] sm:$0xff] %v13016_v60  ;;  %v19121_v60 = vld [vmem:[#allocation55_spill] sm:$0xff] }
 0x174   : > { %19118 = vst [vmem:[#allocation63_spill] sm:$0xff] %v13022_v48  ;;  %v13033_v8 = vmul.f32 %v1227_v22, %v19121_v60  ;;  %v13036_v55 = vmul.f32 %v1228_v44, %v19121_v60  ;;  %v13045_v47 = vmul.f32 %v1229_v28, %v19121_v60  ;;  %v13048_v6 = vmul.f32 %v1230_v10, %v19121_v60  ;;  %v8343_v22 = vld [vmem:[%s18337_s1 + $0x45] ss:$8 sm:$0xf0] }
 0x175   : > { %19119 = vst [vmem:[#allocation12_spill] sm:$0xff] %v13025_v29  ;;  %v13051_v50 = vmul.f32 %v1231_v12, %v19121_v60  ;;  %v13061_v27 = vmul.f32 %v1232_v49, %v19121_v60  ;;  %v13067_v29 = vmul.f32 %v1234_v9, %v19121_v60  ;;  %v953_v48 = vperm.slane %v19123_v62, 0  ;;  %v19129_v10 = vld [vmem:[#allocation40_spill] sm:$0xff] }
 0x176   : > { %19120 = vst [vmem:[#allocation74_spill] sm:$0xff] %v13028_v3  ;;  %v13064_v3 = vmul.f32 %v1233_v17, %v19121_v60  ;;  %v1062_v60 = vpop.permute.xlu1 %1061  ;;  %v958_v44 = vperm.slane %v19123_v62, 5  ;;  %v13103_v28 = vmul.f32 %v1233_v17, %v19030_v19  ;;  %v1051_v39 = vor.u32 %v8343_v22, %v8342_v40 }
 0x177   : > { %19124 = vst [vmem:[#allocation75_spill] sm:$0xff] %v13092_v14  ;;  %v1065_v57 = vrot.slane %v1062_v60, 1  ;;  %v985_v14 = vmul.f32 %v953_v48, %v19129_v10  ;;  %v986_v12 = vmul.f32 %v954_v41, %v19129_v10  ;;  %v988_v45 = vmul.f32 %v956_v25, %v19129_v10 }
 0x178   : > { %19125 = vst [vmem:[#allocation76_spill] sm:$0xff] %v13095_v36  ;;  %v987_v36 = vmul.f32 %v955_v58, %v19129_v10  ;;  %v989_v62 = vmul.f32 %v957_v46, %v19129_v10  ;;  %v990_v49 = vmul.f32 %v958_v44, %v19129_v10  ;;  %v991_v60 = vmul.f32 %v959_v30, %v19129_v10 }
 0x179   : > { %19126 = vst [vmem:[#allocation77_spill] sm:$0xff] %v13100_v21  ;;  %v19130_v21 = vld [vmem:[#allocation8_spill] sm:$0xff]  ;;  %v992_v9 = vmul.f32 %v960_v52, %v19129_v10  ;;  %v1001_v22 = vmul.f32 %v953_v48, %v11420_v38  ;;  %v3645_v19 = vsel %vm3579_vm1, %v12816_v63, 0  ;;  %vm13126_vm6 = vcmp.ne.f32.partialorder %v1051_v39, 0.0  ;;  %v13139_v10 = vpop.permute.xlu2 %2104 }
 0x17a   : > { %19127 = vst [vmem:[#allocation78_spill] sm:$0xff] %v13103_v28  ;;  %v19131_v17 = vrot.slane %v19130_v21, 1  ;;  %v1002_v28 = vmul.f32 %v954_v41, %v11420_v38  ;;  %3690 = vrot.lane.b32.xlu0 %v3645_v19, %s10617_s16  ;;  %v1004_v48 = vmul.f32 %v956_v25, %v11420_v38  ;;  %v1006_v54 = vmul.f32 %v958_v44, %v11420_v38  ;;  %v19136_v44 = vld [vmem:[#allocation72_spill] sm:$0xff] }
 0x17b   : > { %19128 = vst [vmem:[#allocation79_spill] sm:$0xff] %v13106_v37  ;;  %v1007_v39 = vmul.f32 %v959_v30, %v11420_v38  ;;  %v1008_v63 = vmul.f32 %v960_v52, %v11420_v38  ;;  %v1017_v41 = vadd.f32 %v985_v14, %v12770_v15  ;;  %v1020_v19 = vadd.f32 %v988_v45, %v12782_v11 }
 0x17c   : > { %v1069_v40 = vsel %vm399_vm0, %v19131_v17, %v1065_v57  ;;  %v1003_v57 = vmul.f32 %v955_v58, %v11420_v38  ;;  %19135 = vst [vmem:[#allocation80_spill] sm:$0xff] %v13139_v10  ;;  %v1018_v58 = vadd.f32 %v986_v12, %v12774_v53  ;;  %v1021_v25 = vadd.f32 %v989_v62, %v12788_v23  ;;  %v19138_v23 = vld [vmem:[#allocation19_spill] sm:$0xff] }
 0x17d   : > { %v1070_v17 = vsel %vm19134_vm12, %v19130_v21, %v1069_v40  ;;  %v1019_v21 = vadd.f32 %v987_v36, %v12779_v20  ;;  %v3228_v30 = vsel %vm19137_vm8, %v19136_v44, %v19062_v33  ;;  %v1022_v40 = vadd.f32 %v990_v49, %v12791_v7 }
 0x17e   : > { %v1074_v46 = vsel %vm13126_vm6, %v1070_v17, 0.0  ;;  %v1023_v52 = vadd.f32 %v991_v60, %v12794_v56  ;;  %v1024_v15 = vadd.f32 %v992_v9, %v12842_v26  ;;  %v1033_v53 = vadd.f32 %v1001_v22, %v12845_v24  ;;  %v13161_v7 = vpop.permute.xlu1 %2440 }
 0x17f   : > { %v1034_v20 = vadd.f32 %v1002_v28, %v12848_v34  ;;  %v1035_v11 = vadd.f32 %v1003_v57, %v12859_v16  ;;  %v1725_v36 = vperm.slane %v19138_v23, 6  ;;  %v1726_v37 = vperm.slane %v19138_v23, 7  ;;  %19139 = vst [vmem:[#allocation27_spill] sm:$0xff] %v13161_v7  ;;  %v19144_v57 = vld [vmem:[#allocation36_spill] sm:$0xff] }
 0x180   : > { %v1036_v14 = vadd.f32 %v1004_v48, %v12877_v4  ;;  %v1093_v45 = vperm.slane %v1074_v46, 0  ;;  %v1094_v33 = vperm.slane %v1074_v46, 1  ;;  %v3248_v12 = vunpack.c.l.b16 %v3228_v30  ;;  %v13202_v4 = vld [vmem:[#allocation2 + $0xc] sm:$0xff] }
 0x181   : > { %v1095_v56 = vperm.slane %v1074_v46, 2  ;;  %v1096_v62 = vperm.slane %v1074_v46, 3  ;;  %v1097_v26 = vperm.slane %v1074_v46, 4  ;;  %v1098_v49 = vperm.slane %v1074_v46, 5 }
 0x182   : > { %v1037_v24 = vadd.f32 %v1005_v31, %v12880_v13  ;;  %v1038_v34 = vadd.f32 %v1006_v54, %v12887_v18  ;;  %v1099_v16 = vperm.slane %v1074_v46, 6  ;;  %v1100_v28 = vperm.slane %v1074_v46, 7  ;;  %v19168_v18 = vld [vmem:[#allocation79_spill] sm:$0xff] }
 0x183   : > { %v1039_v60 = vadd.f32 %v1007_v39, %v12901_v1  ;;  %v1040_v9 = vadd.f32 %v1008_v63, %v12911_v2  ;;  %vm13167_vm15 = vcmp.eq.s32.totalorder %v1725_v36, 1  ;;  %vm13171_vm9 = vcmp.eq.s32.totalorder %v1726_v37, 1 }
 0x184   : > { %v1125_v17 = vmul.f32 %v1093_v45, %v19144_v57  ;;  %v1126_v13 = vmul.f32 %v1094_v33, %v19144_v57  ;;  %v3249_v48 = vunpack.c.h.b16 %v3228_v30  ;;  %vm13178_vm14 = vcmp.ne.s32.totalorder %v3248_v12, %v18980_v35  ;;  %vm1754_vm5 = vmpackc.low %vm13171_vm9, %vm13167_vm15  ;;  %v13194_v30 = vpop.permute.xlu2 %1767 }
 0x185   : > { %v1127_v63 = vmul.f32 %v1095_v56, %v19144_v57  ;;  %v1128_v1 = vmul.f32 %v1096_v62, %v19144_v57  ;;  %v1129_v2 = vmul.f32 %v1097_v26, %v19144_v57  ;;  %v1130_v31 = vmul.f32 %v1098_v49, %v19144_v57  ;;  %19147 = vst [vmem:[#allocation81_spill] sm:$0xff] %v13194_v30 }
 0x186   : > { %v1131_v54 = vmul.f32 %v1099_v16, %v19144_v57  ;;  %v1132_v39 = vmul.f32 %v1100_v28, %v19144_v57  ;;  %v1141_v46 = vmul.f32 %v1093_v45, %v11731_v61  ;;  %v1142_v44 = vmul.f32 %v1094_v33, %v11731_v61 }
 0x187   : > { %v1143_v23 = vmul.f32 %v1095_v56, %v11731_v61  ;;  %v1144_v36 = vmul.f32 %v1096_v62, %v11731_v61  ;;  %v1145_v37 = vmul.f32 %v1097_v26, %v11731_v61  ;;  %v1146_v12 = vmul.f32 %v1098_v49, %v11731_v61 }
 0x188   : > { %v1147_v38 = vmul.f32 %v1099_v16, %v11731_v61  ;;  %v1148_v45 = vmul.f32 %v1100_v28, %v11731_v61  ;;  %v1157_v33 = vadd.f32 %v1125_v17, %v1017_v41  ;;  %v1158_v57 = vadd.f32 %v1126_v13, %v1018_v58 }
 0x189   : > { %v1159_v22 = vadd.f32 %v1127_v63, %v1019_v21  ;;  %v1160_v10 = vadd.f32 %v1128_v1, %v1020_v19  ;;  %v1762_v30 = vsel %vm1754_vm5, 65537, %v19014_v42  ;;  %vm13206_vm13 = vcmp.ne.s32.totalorder %v3249_v48, %v18983_v43  ;;  %v19172_v19 = vld [vmem:[#allocation85_spill] sm:$0xff] }
 0x18a   : > { %v1161_v62 = vadd.f32 %v1129_v2, %v1021_v25  ;;  %v1162_v26 = vadd.f32 %v1130_v31, %v1022_v40  ;;  %1773 = vrot.lane.b32.xlu1 %v1762_v30, %s10621_s23  ;;  %vm3254_vm7 = vmpackc.low %vm13206_vm13, %vm13178_vm14  ;;  %v19150_v41 = vunpack.c.l.b16 %v12884_v0  ;;  %v19153_v21 = vunpack.c.h.b16 %v12884_v0  ;;  %v13229_v25 = vpop.permute.xlu1 %2102  ;;  %v19163_v31 = vld [vmem:[#allocation59_spill] sm:$0xff]  ;;  %v19165_v30 = vld [vmem:[#allocation76_spill] sm:$0xff] }
 0x18b   : > { %v1163_v40 = vadd.f32 %v1131_v54, %v1023_v52  ;;  %v1164_v49 = vadd.f32 %v1132_v39, %v1024_v15  ;;  %v1173_v16 = vadd.f32 %v1141_v46, %v1033_v53  ;;  %v3305_v28 = vsel %vm3254_vm7, %v13202_v4, 0  ;;  %v19164_v46 = vld [vmem:[#allocation75_spill] sm:$0xff] }
 0x18c   : > { %vm13218_vm2 = vcmp.ne.s32.totalorder %v19150_v41, %v18980_v35  ;;  %vm13225_vm1 = vcmp.ne.s32.totalorder %v19153_v21, %v18983_v43  ;;  %v1174_v0 = vadd.f32 %v1142_v44, %v1034_v20  ;;  %v1175_v17 = vadd.f32 %v1143_v23, %v1035_v11  ;;  %3342 = vrot.lane.b32.xlu2 %v3305_v28, %s10615_s15  ;;  %v8368_v20 = vld [vmem:[%s18337_s1 + $0x43] ss:$8 sm:$0xf] }
 0x18d   : > { %vm3261_vm6 = vmpackc.low %vm13225_vm1, %vm13218_vm2  ;;  %v1176_v13 = vadd.f32 %v1144_v36, %v1036_v14  ;;  %v1177_v15 = vadd.f32 %v1145_v37, %v1037_v24  ;;  %v1178_v53 = vadd.f32 %v1146_v12, %v1038_v34  ;;  %v1179_v48 = vadd.f32 %v1147_v38, %v1039_v60  ;;  %v8369_v11 = vld [vmem:[%s18337_s1 + $0x43] ss:$8 sm:$0xf0]  ;;  %v8354_v38 = vld [vmem:[%s18337_s1 + $0xc0] ss:$8 sm:$0xf] }
 0x18e   : > { %v3306_v52 = vsel %vm3261_vm6, %v19096_v59, 0  ;;  %v1180_v63 = vadd.f32 %v1148_v45, %v1040_v9  ;;  %v1291_v14 = vadd.f32 %v13033_v8, %v1157_v33  ;;  %v1292_v1 = vadd.f32 %v13036_v55, %v1158_v57  ;;  %v8355_v34 = vld [vmem:[%s18337_s1 + $0xc0] ss:$8 sm:$0xf0]  ;;  %v13270_v57 = vpop.permute.xlu2 %3872 }
 0x18f   : > { %3344 = vrot.lane.b32.xlu0 %v3306_v52, %s10615_s15  ;;  %v1293_v59 = vadd.f32 %v13045_v47, %v1159_v22  ;;  %v1294_v24 = vadd.f32 %v13048_v6, %v1160_v10  ;;  %v1295_v60 = vadd.f32 %v13051_v50, %v1161_v62  ;;  %v1296_v9 = vadd.f32 %v13061_v27, %v1162_v26  ;;  %v19156_v6 = vld [vmem:[#allocation69_spill] sm:$0xff]  ;;  %v19169_v45 = vld [vmem:[#allocation60_spill] sm:$0xff]  ;;  %v19177_v52 = vld [vmem:[#allocation31_spill] sm:$0xff] }
 0x190   : > { %v1297_v8 = vadd.f32 %v13064_v3, %v1163_v40  ;;  %v1298_v55 = vadd.f32 %v13067_v29, %v1164_v49  ;;  %v1307_v47 = vadd.f32 %v13070_v32, %v1173_v16  ;;  %v19157_v10 = vunpack.c.l.b16 %v19156_v6  ;;  %v19166_v36 = vld [vmem:[#allocation77_spill] sm:$0xff]  ;;  %v19170_v41 = vld [vmem:[#allocation28_spill] sm:$0xff]  ;;  %v19173_v16 = vld [vmem:[#allocation26_spill] sm:$0xff] }
 0x191   : > { %v19160_v50 = vunpack.c.h.b16 %v19156_v6  ;;  %v2717_v3 = vor.u32 %v8369_v11, %v8368_v20  ;;  %v1308_v29 = vadd.f32 %v13077_v51, %v1174_v0  ;;  %v1309_v32 = vadd.f32 %v13086_v5, %v1175_v17  ;;  %v19167_v51 = vld [vmem:[#allocation78_spill] sm:$0xff]  ;;  %v19171_v40 = vld [vmem:[#allocation29_spill] sm:$0xff]  ;;  %v19186_v27 = vld [vmem:[#allocation64_spill] sm:$0xff] }
 0x192   : > { %vm13275_vm12 = vcmp.ne.s32.totalorder %v19157_v10, %v18980_v35  ;;  %v3314_v54 = vsel %vm3254_vm7, %v19163_v31, 0  ;;  %v1456_v39 = vor.u32 %v8355_v34, %v8354_v38  ;;  %v1310_v44 = vadd.f32 %v19164_v46, %v1176_v13  ;;  %v1464_v26 = vpop.permute.xlu1 %1463  ;;  %v19176_v17 = vld [vmem:[#allocation30_spill] sm:$0xff] }
 0x193   : > { %vm13282_vm8 = vcmp.ne.s32.totalorder %v19160_v50, %v18983_v43  ;;  %v1311_v23 = vadd.f32 %v19165_v30, %v1177_v15  ;;  %v1312_v37 = vadd.f32 %v19166_v36, %v1178_v53  ;;  %3360 = vrot.lane.b32.xlu1 %v3314_v54, %s10615_s15  ;;  %vm2719_vm9 = vcmp.ne.f32.partialorder %v2717_v3, 0.0  ;;  %v19178_v53 = vld [vmem:[#allocation11_spill] sm:$0xff]  ;;  %v19180_v11 = vld [vmem:[#allocation46_spill] sm:$0xff]  ;;  %v19198_v36 = vld [vmem:[#allocation53_spill] sm:$0xff] }
 0x194   : > { %vm3247_vm15 = vmpackc.low %vm13282_vm8, %vm13275_vm12  ;;  %v1313_v5 = vadd.f32 %v19167_v51, %v1179_v48  ;;  %v1314_v12 = vadd.f32 %v19168_v18, %v1180_v63  ;;  %v3315_v33 = vsel %vm3261_vm6, %v19169_v45, 0  ;;  %v13311_v22 = vsel %vm2719_vm9, 1, %v19014_v42  ;;  %v19179_v63 = vld [vmem:[#allocation45_spill] sm:$0xff]  ;;  %v19235_v31 = vld [vmem:[#allocation86_spill] sm:$0xff] }
 0x195   : > { %3362 = vrot.lane.b32.xlu2 %v3315_v33, %s10615_s15  ;;  %v2730_v56 = vperm.slane %v13311_v22, 0  ;;  %v2731_v62 = vperm.slane %v13311_v22, 1  ;;  %v13317_v21 = vadd.f32 %v19170_v41, %v1291_v14  ;;  %v13320_v49 = vadd.f32 %v19171_v40, %v1292_v1  ;;  %v19181_v1 = vld [vmem:[#allocation47_spill] sm:$0xff]  ;;  %v19205_v33 = vld [vmem:[#allocation12_spill] sm:$0xff] }
 0x196   : > { %v3304_v58 = vsel %vm3247_vm15, %v19172_v19, 0  ;;  %v3313_v28 = vsel %vm3247_vm15, %v19173_v16, 0  ;;  %vm13324_vm14 = vcmp.ne.f32.partialorder %v1456_v39, 0.0  ;;  %v13329_v13 = vadd.f32 %v19176_v17, %v1293_v59  ;;  %v19182_v59 = vld [vmem:[#allocation22_spill] sm:$0xff]  ;;  %v13378_v54 = vpop.permute.xlu2 %4202  ;;  %v19195_v39 = vld [vmem:[#allocation63_spill] sm:$0xff] }
 0x197   : > { %vm2746_vm5 = vcmp.eq.s32.totalorder %v2730_v56, 1  ;;  %vm2747_vm13 = vcmp.eq.s32.totalorder %v2731_v62, 1  ;;  %v13332_v15 = vadd.f32 %v19177_v52, %v1294_v24  ;;  %v13335_v48 = vadd.f32 %v19178_v53, %v1295_v60  ;;  %v19183_v24 = vld [vmem:[#allocation51_spill] sm:$0xff]  ;;  %v19184_v60 = vld [vmem:[#allocation52_spill] sm:$0xff]  ;;  %19194 = vst [vmem:[#allocation82_spill] sm:$0xff] %v13378_v54  ;;  %v19206_v62 = vld [vmem:[#allocation74_spill] sm:$0xff] }
 0x198   : > { %vm2758_vm7 = vmpackc.low %vm2747_vm13, %vm2746_vm5  ;;  %v13338_v20 = vadd.f32 %v19179_v63, %v1296_v9  ;;  %v13341_v14 = vadd.f32 %v19180_v11, %v1297_v8  ;;  %v13344_v38 = vadd.f32 %v19181_v1, %v1298_v55  ;;  %v13347_v34 = vadd.f32 %v19182_v59, %v1307_v47  ;;  %v19185_v9 = vld [vmem:[#allocation83_spill] sm:$0xff] }
 0x199   : > { %v2766_v6 = vsel %vm2758_vm7, 65537, %v19014_v42  ;;  %v13351_v10 = vadd.f32 %v19183_v24, %v1308_v29  ;;  %v13354_v2 = vadd.f32 %v19184_v60, %v1309_v32  ;;  %v1467_v50 = vrot.slane %v1464_v26, 1  ;;  %v19187_v47 = vld [vmem:[#allocation71_spill] sm:$0xff]  ;;  %v19210_v60 = vld [vmem:[#allocation50_spill] sm:$0xff]  ;;  %v13561_v32 = vld [vmem:[#allocation2 + $0x10] sm:$0xff] }
 0x19a   : > { %2778 = vrot.lane.b32.xlu0 %v2766_v6, %s10615_s15  ;;  %v13358_v8 = vadd.f32 %v19185_v9, %v1310_v44  ;;  %v13361_v55 = vadd.f32 %v19186_v27, %v1311_v23  ;;  %v19188_v3 = vunpack.c.l.b16 %v19187_v47  ;;  %v19191_v29 = vunpack.c.h.b16 %v19187_v47  ;;  %v19196_v44 = vld [vmem:[#allocation48_spill] sm:$0xff]  ;;  %v19207_v40 = vld [vmem:[#allocation35_spill] sm:$0xff] }
 0x19b   : > { %3340 = vrot.lane.b32.xlu1 %v3304_v58, %s10615_s15  ;;  %v1446_v46 = vadd.f32 %v19195_v39, %v1312_v37  ;;  %v19197_v30 = vrot.slane %v19196_v44, 1  ;;  %v19199_v51 = vunpack.c.l.b16 %v19198_v36  ;;  %v19202_v45 = vunpack.c.h.b16 %v19198_v36 }
 0x19c   : > { %vm13366_vm2 = vcmp.ne.s32.totalorder %v19188_v3, %v18980_v35  ;;  %vm13373_vm1 = vcmp.ne.s32.totalorder %v19191_v29, %v18983_v43  ;;  %v1447_v56 = vadd.f32 %v19205_v33, %v1313_v5  ;;  %v1448_v26 = vadd.f32 %v19206_v62, %v1314_v12 }
 0x19d   : > { %v1471_v23 = vsel %vm399_vm0, %v19197_v30, %v1467_v50  ;;  %vm4243_vm6 = vmpackc.low %vm13373_vm1, %vm13366_vm2  ;;  %vm13391_vm12 = vcmp.ne.s32.totalorder %v19199_v51, %v18980_v35  ;;  %vm13398_vm8 = vcmp.ne.s32.totalorder %v19202_v45, %v18983_v43  ;;  %v3828_v58 = vperm.slane %v19207_v40, 2  ;;  %3358 = vrot.lane.b32.xlu2 %v3313_v28, %s10615_s15  ;;  %v13427_v28 = vpop.permute.xlu0 %2106 }
 0x19e   : > { %v1472_v41 = vsel %vm18542_vm3, %v19196_v44, %v1471_v23  ;;  %vm4250_vm0 = vmpackc.low %vm13398_vm8, %vm13391_vm12  ;;  %v4300_v5 = vsel %vm4243_vm6, %v19172_v19, 0  ;;  %v3829_v12 = vperm.slane %v19207_v40, 3  ;;  %19208 = vst [vmem:[#allocation66_spill] sm:$0xff] %v13427_v28  ;;  %v13429_v19 = vpop.permute.xlu1 %1771  ;;  %v19211_v44 = vld [vmem:[#allocation65_spill] sm:$0xff]  ;;  %vm19225_vm5 = vcmask 1039360  }
 0x19f   : > { %v1476_v17 = vsel %vm13324_vm14, %v1472_v41, 0.0  ;;  %v4301_v52 = vsel %vm4250_vm0, %v13202_v4, 0  ;;  %19209 = vst [vmem:[#allocation25_spill] sm:$0xff] %v13429_v19  ;;  %vm13452_vm15 = vcmp.eq.s32.totalorder %v3828_v58, 1  ;;  %vm19234_vm1 = vmmov %vm19225_vm5 }
 0x1a0   : > { %v1495_v0 = vperm.slane %v1476_v17, 0  ;;  %v1496_v53 = vperm.slane %v1476_v17, 1  ;;  %v1497_v63 = vperm.slane %v1476_v17, 2  ;;  %v1498_v11 = vperm.slane %v1476_v17, 3 }
 0x1a1   : > { %v1499_v1 = vperm.slane %v1476_v17, 4  ;;  %v1500_v59 = vperm.slane %v1476_v17, 5  ;;  %v1501_v6 = vperm.slane %v1476_v17, 6  ;;  %v1502_v24 = vperm.slane %v1476_v17, 7 }
 0x1a2   : > { %v1527_v50 = vmul.f32 %v1495_v0, %v19210_v60  ;;  %v1528_v9 = vmul.f32 %v1496_v53, %v19210_v60  ;;  %v1529_v27 = vmul.f32 %v1497_v63, %v19210_v60  ;;  %v1530_v4 = vmul.f32 %v1498_v11, %v19210_v60 }
 0x1a3   : > { %v1531_v47 = vmul.f32 %v1499_v1, %v19210_v60  ;;  %v1532_v3 = vmul.f32 %v1500_v59, %v19210_v60  ;;  %v1533_v29 = vmul.f32 %v1501_v6, %v19210_v60  ;;  %v1534_v39 = vmul.f32 %v1502_v24, %v19210_v60  ;;  %4336 = vrot.lane.b32.xlu1 %v4300_v5, %s10621_s23 }
 0x1a4   : > { %v1543_v30 = vmul.f32 %v1495_v0, %v19211_v44  ;;  %v1544_v23 = vmul.f32 %v1496_v53, %v19211_v44  ;;  %v1545_v36 = vmul.f32 %v1497_v63, %v19211_v44  ;;  %v1546_v51 = vmul.f32 %v1498_v11, %v19211_v44 }
 0x1a5   : > { %v1547_v45 = vmul.f32 %v1499_v1, %v19211_v44  ;;  %v1548_v33 = vmul.f32 %v1500_v59, %v19211_v44  ;;  %v1549_v62 = vmul.f32 %v1501_v6, %v19211_v44  ;;  %v1550_v41 = vmul.f32 %v1502_v24, %v19211_v44  ;;  %v13464_v6 = vpop.permute.xlu2 %4204  ;;  %4338 = vrot.lane.b32.xlu2 %v4301_v52, %s10621_s23 }
 0x1a6   : > { %v1559_v17 = vadd.f32 %v1527_v50, %v13317_v21  ;;  %v1560_v0 = vadd.f32 %v1528_v9, %v13320_v49  ;;  %v1561_v53 = vadd.f32 %v1529_v27, %v13329_v13  ;;  %v1562_v63 = vadd.f32 %v1530_v4, %v13332_v15  ;;  %19216 = vst [vmem:[#allocation68_spill] sm:$0xff] %v13464_v6 }
 0x1a7   : > { %vm13456_vm9 = vcmp.eq.s32.totalorder %v3829_v12, 1  ;;  %v1563_v59 = vadd.f32 %v1531_v47, %v13335_v48  ;;  %v1564_v5 = vadd.f32 %v1532_v3, %v13338_v20  ;;  %v1565_v21 = vadd.f32 %v1533_v29, %v13341_v14  ;;  %v13472_v14 = vpop.permute.xlu0 %1769 }
 0x1a8   : > { %v1566_v49 = vadd.f32 %v1534_v39, %v13344_v38  ;;  %v1575_v13 = vadd.f32 %v1543_v30, %v13347_v34  ;;  %v1576_v15 = vadd.f32 %v1544_v23, %v13351_v10  ;;  %v1577_v58 = vadd.f32 %v1545_v36, %v13354_v2  ;;  %v19217_v38 = vld [vmem:[#allocation54_spill] sm:$0xff]  ;;  %vm3855_vm14 = vmpackc.low %vm13456_vm9, %vm13452_vm15 }
 0x1a9   : > { %v1578_v12 = vadd.f32 %v1546_v51, %v13358_v8  ;;  %v1579_v48 = vadd.f32 %v1547_v45, %v13361_v55  ;;  %v1580_v24 = vadd.f32 %v1548_v33, %v1446_v46  ;;  %v1581_v20 = vadd.f32 %v1549_v62, %v1447_v56  ;;  %v13482_v46 = vpop.permute.xlu1 %3208  ;;  %v19218_v56 = vld [vmem:[#allocation67_spill] sm:$0xff] }
 0x1aa   : > { %v1582_v50 = vadd.f32 %v1550_v41, %v1448_v26  ;;  %v1603_v9 = vadd.f32 %v19217_v38, %v1559_v17  ;;  %v1604_v27 = vadd.f32 %v19217_v38, %v1560_v0  ;;  %v1605_v52 = vadd.f32 %v19217_v38, %v1561_v53 }
 0x1ab   : > { %v1606_v34 = vadd.f32 %v19217_v38, %v1562_v63  ;;  %v1607_v10 = vadd.f32 %v19217_v38, %v1563_v59  ;;  %v1608_v2 = vadd.f32 %v19217_v38, %v1564_v5  ;;  %v1609_v8 = vadd.f32 %v19217_v38, %v1565_v21 }
 0x1ac   : > { %v1610_v55 = vadd.f32 %v19217_v38, %v1566_v49  ;;  %v1619_v26 = vadd.f32 %v19218_v56, %v1575_v13  ;;  %v1620_v4 = vadd.f32 %v19218_v56, %v1576_v15  ;;  %v1621_v47 = vadd.f32 %v19218_v56, %v1577_v58  ;;  %v8364_v13 = vld [vmem:[%s18337_s1 + $0x42] ss:$8 sm:$0xf] }
 0x1ad   : > { %v1622_v3 = vadd.f32 %v19218_v56, %v1578_v12  ;;  %v1623_v29 = vadd.f32 %v19218_v56, %v1579_v48  ;;  %v1624_v39 = vadd.f32 %v19218_v56, %v1580_v24  ;;  %v1625_v30 = vadd.f32 %v19218_v56, %v1581_v20  ;;  %v13492_v53 = vpop.permute.xlu2 %4006  ;;  %v8365_v24 = vld [vmem:[%s18337_s1 + $0x42] ss:$8 sm:$0xf0] }
 0x1ae   : > { %v1626_v23 = vadd.f32 %v19218_v56, %v1582_v50  ;;  %v1635_v36 = vmax.f32 %v1603_v9, 0.0  ;;  %v1636_v51 = vmax.f32 %v1604_v27, 0.0  ;;  %v1637_v45 = vmax.f32 %v1605_v52, 0.0  ;;  %v19219_v20 = vld [vmem:[#allocation43_spill] sm:$0xff]  ;;  %v19221_v9 = vld [vmem:[#allocation62_spill] sm:$0xff] }
 0x1af   : > { %v1638_v33 = vmax.f32 %v1606_v34, 0.0  ;;  %v1639_v62 = vmax.f32 %v1607_v10, 0.0  ;;  %v1640_v41 = vmax.f32 %v1608_v2, 0.0  ;;  %v1641_v17 = vmax.f32 %v1609_v8, 0.0  ;;  %v13509_v10 = vpop.permute.xlu0 %3540 }
 0x1b0   : > { %v1642_v0 = vmax.f32 %v1610_v55, 0.0  ;;  %v1651_v63 = vmax.f32 %v1619_v26, 0.0  ;;  %v1652_v59 = vmax.f32 %v1620_v4, 0.0  ;;  %v1653_v5 = vmax.f32 %v1621_v47, 0.0  ;;  %v4132_v55 = vld [vmem:[#allocation2 + $0x54] sm:$0xff] }
 0x1b1   : > { %v1654_v21 = vmax.f32 %v1622_v3, 0.0  ;;  %v1655_v49 = vmax.f32 %v1623_v29, 0.0  ;;  %v1656_v15 = vmax.f32 %v1624_v39, 0.0  ;;  %v1663_v58 = vpack.c.bf16 %v1636_v51, %v1635_v36  ;;  %v13518_v3 = vpop.permute.xlu1 %2776  ;;  %v19224_v29 = vld [vmem:[#allocation42_spill] sm:$0xff] }
 0x1b2   : > { %v1664_v12 = vpack.c.bf16 %v1638_v33, %v1637_v45  ;;  %v1665_v48 = vpack.c.bf16 %v1640_v41, %v1639_v62  ;;  %v19220_v50 = vrot.slane %v19219_v20, 4  ;;  %v19222_v27 = vrot.slane %v19221_v9, 4  ;;  %19223 = vst [vmem:[#allocation15_spill] sm:$0xff] %v13518_v3 }
 0x1b3   : > { %v1657_v1 = vmax.f32 %v1625_v30, 0.0  ;;  %v1658_v52 = vmax.f32 %v1626_v23, 0.0  ;;  %v1666_v34 = vpack.c.bf16 %v1642_v0, %v1641_v17  ;;  %v1671_v2 = vpack.c.bf16 %v1652_v59, %v1651_v63  ;;  %1679 = vst [vmem:[#allocation2 + $0x24] sm:$0xff] %v1663_v58  ;;  %v8360_v63 = vld [vmem:[%s18337_s1 + $0x41] ss:$8 sm:$0xf] }
 0x1b4   : > { %v2798_v11 = vsel %vm18546_vm11, %v19222_v27, %v19220_v50  ;;  %v3863_v8 = vsel %vm3855_vm14, 65537, %v19014_v42  ;;  %v1672_v26 = vpack.c.bf16 %v1654_v21, %v1653_v5  ;;  %1680 = vst [vmem:[#allocation2 + $0x2c] sm:$0xff] %v1664_v12  ;;  %v4310_v4 = vsel %vm4250_vm0, %v4132_v55, 0 }
 0x1b5   : > { %3876 = vrot.lane.b32.xlu0 %v3863_v8, %s10612_s27  ;;  %v2383_v47 = vor.u32 %v8365_v24, %v8364_v13  ;;  %v2786_v39 = vrot.slane %v19224_v29, 4  ;;  %v1673_v30 = vpack.c.bf16 %v1656_v15, %v1655_v49  ;;  %1681 = vst [vmem:[#allocation2 + $0x34] sm:$0xff] %v1665_v48  ;;  %4356 = vrot.lane.b32.xlu1 %v4310_v4, %s10621_s23  ;;  %v13524_v51 = vpop.permute.xlu2 %4026  ;;  %v19227_v62 = vmov %v19222_v27  ;;  %v8361_v49 = vld [vmem:[%s18337_s1 + $0x41] ss:$8 sm:$0xf0] }
 0x1b6   : > { %v2799_v23 = vsel %vm19225_vm5, %v2798_v11, %v19219_v20  ;;  %v1674_v36 = vpack.c.bf16 %v1658_v52, %v1657_v1  ;;  %1682 = vst [vmem:[#allocation2 + $0x3c] sm:$0xff] %v1666_v34  ;;  %v4309_v5 = vsel %vm4243_vm6, %v19173_v16, 0  ;;  %v19233_v13 = vld [vmem:[#allocation61_spill] sm:$0xff]  ;;  %v2452_v12 = vrot.slane %v19235_v31, 4  ;;  %vm19238_vm6 = vmmov %vm19234_vm1 }
 0x1b7   : > { %vm2385_vm13 = vcmp.ne.f32.partialorder %v2383_v47, 0.0  ;;  %v2824_v37 = vunpack.c.l.b16 %v2799_v23  ;;  %19226 = vst [vmem:[#allocation8_spill] sm:$0xff] %v13524_v51  ;;  %v2796_v41 = vsel %vm18546_vm11, %v2786_v39, %v19227_v62  ;;  %v2825_v17 = vunpack.c.h.b16 %v2799_v23  ;;  %v13542_v59 = vpop.permute.xlu0 %3874  ;;  %v19236_v27 = vld [vmem:[#allocation37_spill] sm:$0xff] }
 0x1b8   : > { %1687 = vst [vmem:[#allocation2 + $0x6c] sm:$0xff] %v1671_v2  ;;  %v13527_v18 = vsel %vm2385_vm13, 1, %v19014_v42  ;;  %v2453_v15 = vrot.slane %v19233_v13, 4  ;;  %v2797_v16 = vsel %vm19234_vm1, %v2796_v41, %v19221_v9  ;;  %v3496_v11 = vperm.slane %v19236_v27, 2 }
 0x1b9   : > { %1688 = vst [vmem:[#allocation2 + $0x74] sm:$0xff] %v1672_v26  ;;  %v2396_v45 = vperm.slane %v13527_v18, 0  ;;  %v2397_v33 = vperm.slane %v13527_v18, 1  ;;  %vm13535_vm7 = vcmp.ne.s32.totalorder %v2824_v37, %v18980_v35  ;;  %vm13551_vm15 = vcmp.ne.s32.totalorder %v2825_v17, %v18983_v43  ;;  %v13580_v52 = vpop.permute.xlu1 %2442  ;;  %v8356_v23 = vld [vmem:[%s18337_s1 + $0x40] ss:$8 sm:$0xf] }
 0x1ba   : > { %1689 = vst [vmem:[#allocation2 + $0x7c] sm:$0xff] %v1673_v30  ;;  %vm2830_vm2 = vmpackc.low %vm13551_vm15, %vm13535_vm7  ;;  %v2817_v24 = vunpack.c.l.b16 %v2797_v16  ;;  %v2818_v50 = vunpack.c.h.b16 %v2797_v16  ;;  %v3497_v1 = vperm.slane %v19236_v27, 3  ;;  %v2049_v9 = vor.u32 %v8361_v49, %v8360_v63  ;;  %v8357_v17 = vld [vmem:[%s18337_s1 + $0x40] ss:$8 sm:$0xf0] }
 0x1bb   : > { %1690 = vst [vmem:[#allocation2 + $0x84] sm:$0xff] %v1674_v36  ;;  %vm2412_vm12 = vcmp.eq.s32.totalorder %v2396_v45, 1  ;;  %vm2413_vm8 = vcmp.eq.s32.totalorder %v2397_v33, 1  ;;  %v2875_v48 = vsel %vm2830_vm2, %v13561_v32, 0  ;;  %v2795_v34 = vsel %vm19238_vm6, %v2786_v39, %v19224_v29  ;;  %v13604_v39 = vld [vmem:[#allocation2 + $0x8] sm:$0xff]  ;;  %v13612_v36 = vld [vmem:[#allocation2 + $0x50] sm:$0xff] }
 0x1bc   : > { %19230 = vst [vmem:[#allocation72_spill] sm:$0xff] %v13542_v59  ;;  %vm2424_vm0 = vmpackc.low %vm2413_vm8, %vm2412_vm12  ;;  %vm13585_vm9 = vcmp.ne.s32.totalorder %v2817_v24, %v18980_v35  ;;  %vm13590_vm14 = vcmp.ne.s32.totalorder %v2818_v50, %v18983_v43  ;;  %vm3512_vm13 = vcmp.eq.s32.totalorder %v3496_v11, 1  ;;  %vm3513_vm12 = vcmp.eq.s32.totalorder %v3497_v1, 1  ;;  %v19244_v63 = vld [vmem:[#allocation13_spill] sm:$0xff]  ;;  %v19250_v24 = vld [vmem:[#allocation32_spill] sm:$0xff] }
 0x1bd   : > { %v2432_v58 = vsel %vm2424_vm0, 65537, %v19014_v42  ;;  %4354 = vrot.lane.b32.xlu0 %v4309_v5, %s10621_s23  ;;  %2913 = vrot.lane.b32.xlu1 %v2875_v48, %s10614_s11  ;;  %19237 = vst [vmem:[#allocation19_spill] sm:$0xff] %v13580_v52  ;;  %vm2823_vm5 = vmpackc.low %vm13590_vm14, %vm13585_vm9  ;;  %vm2051_vm8 = vcmp.ne.f32.partialorder %v2049_v9, 0.0  ;;  %v13598_v55 = vpop.permute.xlu2 %4022  ;;  %v2462_v26 = vsel %vm18546_vm11, %v2452_v12, %v2453_v15  ;;  %v2810_v4 = vunpack.c.l.b16 %v2795_v34  ;;  %v19251_v1 = vld [vmem:[#allocation33_spill] sm:$0xff]  ;;  %v19264_v49 = vld [vmem:[#allocation80_spill] sm:$0xff] }
 0x1be   : > { %2444 = vrot.lane.b32.xlu2 %v2432_v58, %s10617_s16  ;;  %vm3523_vm0 = vmpackc.low %vm3513_vm12, %vm3512_vm13  ;;  %v2811_v47 = vunpack.c.h.b16 %v2795_v34  ;;  %v18509_v29 = vrot.slane %v13161_v7, 4  ;;  %v13607_v30 = vsel %vm2051_vm8, 1, %v19014_v42  ;;  %v2874_v37 = vsel %vm2823_vm5, %v13604_v39, 0 }
 0x1bf   : > { %19243 = vst [vmem:[#allocation69_spill] sm:$0xff] %v13607_v30  ;;  %v3531_v45 = vsel %vm3523_vm0, 65537, %v19014_v42  ;;  %v2062_v33 = vperm.slane %v13607_v30, 0  ;;  %v2063_v62 = vperm.slane %v13607_v30, 1  ;;  %v2883_v41 = vsel %vm2823_vm5, %v13612_v36, 0  ;;  %v13635_v58 = vpop.permute.xlu0 %3542 }
 0x1c0   : > { %19245 = vst [vmem:[#allocation59_spill] sm:$0xff] %v13635_v58  ;;  %vm19252_vm9 = vcmask 924672   ;;  %v2464_v8 = vsel %vm18546_vm11, %v2453_v15, %v18509_v29  ;;  %vm13660_vm5 = vcmp.ne.s32.totalorder %v2810_v4, %v18980_v35  ;;  %vm13665_vm13 = vcmp.ne.s32.totalorder %v2811_v47, %v18983_v43  ;;  %v19259_v4 = vld [vmem:[#allocation49_spill] sm:$0xff]  ;;  %v19278_v58 = vld [vmem:[#allocation84_spill] sm:$0xff] }
 0x1c1   : > { %vm13638_vm1 = vcmp.eq.s32.totalorder %v2062_v33, 1  ;;  %vm13642_vm6 = vcmp.eq.s32.totalorder %v2063_v62, 1  ;;  %v2463_v34 = vsel %vm19252_vm9, %v2462_v26, %v19233_v13  ;;  %v4025_v2 = vpop.permute.xlu1 %4024  ;;  %v1714_v13 = vor.u32 %v8357_v17, %v8356_v23  ;;  %v19257_v33 = vld [vmem:[#allocation38_spill] sm:$0xff]  ;;  %v19260_v47 = vld [vmem:[#allocation57_spill] sm:$0xff]  ;;  %vm19261_vm12 = vmmov %vm19252_vm9 }
 0x1c2   : > { %vm2090_vm14 = vmpackc.low %vm13642_vm6, %vm13638_vm1  ;;  %v2483_v5 = vunpack.c.l.b16 %v2463_v34  ;;  %v2465_v23 = vsel %vm19261_vm12, %v2464_v8, %v13161_v7  ;;  %v13680_v26 = vld [vmem:[#allocation2 + $0x58] sm:$0xff]  ;;  %v2484_v48 = vunpack.c.h.b16 %v2463_v34  ;;  %v2119_v8 = vrot.slane %v19264_v49, 4  ;;  %v13703_v62 = vld [vmem:[#allocation2 + $0x48] sm:$0xff] }
 0x1c3   : > { %v2098_v17 = vsel %vm2090_vm14, 65537, %v19014_v42  ;;  %vm2816_vm8 = vmpackc.low %vm13665_vm13, %vm13660_vm5  ;;  %v2884_v29 = vsel %vm2830_vm2, %v13680_v26, 0  ;;  %vm1716_vm1 = vcmp.ne.f32.partialorder %v1714_v13, 0.0  ;;  %v18516_v15 = vrot.slane %v13524_v51, 4 }
 0x1c4   : > { %vm19263_vm0 = vmmov %vm19252_vm9  ;;  %v2490_v11 = vunpack.c.l.b16 %v2465_v23  ;;  %v2491_v50 = vunpack.c.h.b16 %v2465_v23  ;;  %v2882_v0 = vsel %vm2816_vm8, %v13703_v62, 0  ;;  %vm13715_vm7 = vcmp.ne.s32.totalorder %v2483_v5, %v18980_v35 }
 0x1c5   : > { %2911 = vrot.lane.b32.xlu0 %v2874_v37, %s10614_s11  ;;  %3544 = vrot.lane.b32.xlu1 %v3531_v45, %s10613_s30  ;;  %v13686_v16 = vpop.permute.xlu2 %3676  ;;  %v13692_v9 = vsel %vm19263_vm0, %v2452_v12, %v19235_v31  ;;  %v4049_v31 = vrot.slane %v13598_v55, 4  ;;  %v4050_v12 = vrot.slane %v4025_v2, 4  ;;  %vm13723_vm15 = vcmp.ne.s32.totalorder %v2484_v48, %v18983_v43 }
 0x1c6   : > { %2929 = vrot.lane.b32.xlu2 %v2883_v41, %s10614_s11  ;;  %v19258_v41 = vld [vmem:[#allocation41_spill] sm:$0xff]  ;;  %19262 = vst [vmem:[#allocation75_spill] sm:$0xff] %v13686_v16  ;;  %v13728_v23 = vsel %vm1716_vm1, 1, %v19014_v42  ;;  %v19271_v6 = vrot.slane %v13229_v25, 4  ;;  %vm2489_vm2 = vmpackc.low %vm13723_vm15, %vm13715_vm7  ;;  %vm13761_vm6 = vcmp.ne.s32.totalorder %v2490_v11, %v18980_v35  ;;  %vm13766_vm9 = vcmp.ne.s32.totalorder %v2491_v50, %v18983_v43 }
 0x1c7   : > { %19270 = vst [vmem:[#allocation77_spill] sm:$0xff] %v13728_v23  ;;  %v4076_v5 = vsel %vm18546_vm11, %v4050_v12, %v18516_v15  ;;  %v13745_v15 = vld [vmem:[#allocation2] sm:$0xff]  ;;  %v19277_v52 = vperm.slane %v19250_v24, 6  ;;  %v3164_v45 = vperm.slane %v19278_v58, 2  ;;  %v3165_v37 = vperm.slane %v19278_v58, 3  ;;  %vm2496_vm13 = vmpackc.low %vm13766_vm9, %vm13761_vm6 }
 0x1c8   : > { %v2540_v50 = vsel %vm2489_vm2, %v13604_v39, 0  ;;  %v19279_v3 = vrot.slane %v13427_v28, 4  ;;  %v19288_v59 = vrot.slane %v13229_v25, 4  ;;  %vm19295_vm7 = vcmask 924672  }
 0x1c9   : > { %v4005_v34 = vpop.permute.xlu1 %4004  ;;  %vm13848_vm0 = vcmp.eq.s32.totalorder %v3165_v37, 1  ;;  %vm19296_vm15 = vmmov %vm19295_vm7  ;;  %v19304_v7 = vperm.slane %v19251_v1, 7 }
 0x1ca   : > { %v2130_v13 = vsel %vm18546_vm11, %v2119_v8, %v19279_v3 }
 0x1cd   : > { %2931 = vrot.lane.b32.xlu0 %v2884_v29, %s10614_s11  ;;  %v13719_v29 = vpop.permute.xlu0 %4008  ;;  %2927 = vrot.lane.b32.xlu1 %v2882_v0, %s10614_s11  ;;  %v4077_v0 = vsel %vm18541_vm10, %v4025_v2, %v4076_v5  ;;  %v1728_v2 = vperm.slane %v13728_v23, 1  ;;  %v2873_v5 = vsel %vm2816_vm8, %v13745_v15, 0  ;;  %vm13844_vm8 = vcmp.eq.s32.totalorder %v3164_v45, 1 }
 0x1ce   : > { %2110 = vrot.lane.b32.xlu2 %v2098_v17, %s10620_s18  ;;  %19267 = vst [vmem:[#allocation76_spill] sm:$0xff] %v13719_v29  ;;  %v4074_v17 = vsel %vm18546_vm11, %v4049_v31, %v4050_v12  ;;  %v2128_v31 = vsel %vm18546_vm11, %v19271_v6, %v2119_v8  ;;  %v4041_v12 = vrot.slane %v13492_v53, 4  ;;  %v4040_v6 = vrot.slane %v4005_v34, 4 }
 0x1cf   : > { %v4075_v48 = vsel %vm18541_vm10, %v13598_v55, %v4074_v17  ;;  %v1727_v55 = vperm.slane %v13728_v23, 0  ;;  %4115 = vst [vmem:[#allocation3 + $0x3c8] sm:$0xff] %v4077_v0  ;;  %v18520_v17 = vrot.slane %v13719_v29, 4  ;;  %v19276_v0 = vld [vmem:[#allocation23_spill] sm:$0xff]  ;;  %v3673_v29 = vpop.permute.xlu2 %3672  ;;  %vm13807_vm5 = vcmp.eq.s32.totalorder %v1728_v2, 1 }
 0x1d0   : > { %4114 = vst [vmem:[#allocation3 + $0x3c0] sm:$0xff] %v4075_v48  ;;  %v729_v51 = vmul.f32 %v19277_v52, %v19276_v0  ;;  %v4058_v20 = vsel %vm18546_vm11, %v4040_v6, %v4041_v12  ;;  %v2549_v52 = vsel %vm2489_vm2, %v13612_v36, 0  ;;  %v2541_v45 = vsel %vm2496_vm13, %v13561_v32, 0  ;;  %vm3191_vm2 = vmpackc.low %vm13848_vm0, %vm13844_vm8 }
 0x1d1   : > { %v4060_v11 = vsel %vm18546_vm11, %v4041_v12, %v18520_v17  ;;  %v4059_v6 = vsel %vm18541_vm10, %v4005_v34, %v4058_v20  ;;  %v2477_v17 = vunpack.c.h.b16 %v13692_v9  ;;  %vm13803_vm14 = vcmp.eq.s32.totalorder %v1727_v55, 1  ;;  %v8389_v20 = vld [vmem:[%s18337_s1 + $0xc0] ss:$8 sm:$0xf0]  ;;  %v3675_v8 = vpop.permute.xlu1 %3674 }
 0x1d2   : > { %v4061_v12 = vsel %vm18541_vm10, %v13492_v53, %v4060_v11  ;;  %v1784_v11 = vrot.slane %v13472_v14, 4  ;;  %4106 = vst [vmem:[#allocation3 + $0x380] sm:$0xff] %v4059_v6  ;;  %v19285_v55 = vperm.slane %v19250_v24, 7  ;;  %v3709_v6 = vrot.slane %v3675_v8, 4  ;;  %vm1755_vm12 = vmpackc.low %vm13807_vm5, %vm13803_vm14 }
 0x1d3   : > { %4107 = vst [vmem:[#allocation3 + $0x388] sm:$0xff] %v4061_v12  ;;  %v18526_v12 = vrot.slane %v13686_v16, 4  ;;  %v1763_v37 = vsel %vm1755_vm12, 65537, %v19014_v42  ;;  %vm13887_vm5 = vcmp.ne.s32.totalorder %v2477_v17, %v18983_v43 }
 0x1d4   : > { %v730_v2 = vmul.f32 %v19285_v55, %v19276_v0  ;;  %v13834_v0 = vsel %vm18541_vm10, %v19288_v59, %v13229_v25 }
 0x1d5   : > { %2909 = vrot.lane.b32.xlu0 %v2873_v5, %s10614_s11  ;;  %v8388_v5 = vld [vmem:[%s18337_s1 + $0xc0] ss:$8 sm:$0xf]  ;;  %v13814_v34 = vpop.permute.xlu0 %3210  ;;  %2595 = vrot.lane.b32.xlu1 %v2549_v52, %s10613_s30  ;;  %v3708_v52 = vrot.slane %v3673_v29, 4  ;;  %v3728_v59 = vsel %vm18546_vm11, %v3709_v6, %v18526_v12 }
 0x1d6   : > { %2577 = vrot.lane.b32.xlu2 %v2540_v50, %s10613_s30  ;;  %19284 = vst [vmem:[#allocation78_spill] sm:$0xff] %v13814_v34  ;;  %v4145_v3 = vor.u32 %v8389_v20, %v8388_v5  ;;  %v19286_v50 = vld [vmem:[#allocation17_spill] sm:$0xff]  ;;  %v2129_v34 = vsel %vm18541_vm10, %v2128_v31, %v19264_v49  ;;  %v19290_v49 = vld [vmem:[#allocation18_spill] sm:$0xff] }
 0x1d7   : > { %v761_v23 = vadd.f32 %v729_v51, %v19286_v50  ;;  %v19287_v5 = vld [vmem:[#allocation81_spill] sm:$0xff]  ;;  %v19289_v51 = vrot.slane %v13429_v19, 4  ;;  %v762_v31 = vadd.f32 %v730_v2, %v19290_v49  ;;  %v3726_v25 = vsel %vm18546_vm11, %v3708_v52, %v3709_v6 }
 0x1d8   : > { %v2149_v21 = vunpack.c.l.b16 %v2129_v34  ;;  %v2150_v53 = vunpack.c.h.b16 %v2129_v34  ;;  %vm4147_vm1 = vcmp.ne.f32.partialorder %v4145_v3, 0.0  ;;  %v3727_v2 = vsel %vm19295_vm7, %v3673_v29, %v3726_v25 }
 0x1d9   : > { %v1796_v55 = vsel %vm18546_vm11, %v1784_v11, %v19289_v51  ;;  %v3729_v52 = vsel %vm19296_vm15, %v3675_v8, %v3728_v59  ;;  %v19297_v51 = vld [vmem:[#allocation20_spill] sm:$0xff]  ;;  %v19298_v49 = vperm.slane %v19251_v1, 6  ;;  %v2550_v34 = vsel %vm2496_vm13, %v13680_v26, 0  ;;  %3774 = vst [vmem:[#allocation3 + $0x300] sm:$0xff] %v3727_v2 }
 0x1da   : > { %v19299_v29 = vunpack.c.l.b16 %v13692_v9  ;;  %v864_v48 = vmul.f32 %v19304_v7, %v19297_v51  ;;  %v19305_v25 = vrot.slane %v19287_v5, 4  ;;  %v2131_v9 = vsel %vm18541_vm10, %v2130_v13, %v13427_v28  ;;  %3775 = vst [vmem:[#allocation3 + $0x308] sm:$0xff] %v3729_v52  ;;  %v19312_v52 = vld [vmem:[#allocation40_spill] sm:$0xff] }
 0x1db   : > { %v863_v6 = vmul.f32 %v19298_v49, %v19297_v51  ;;  %v13903_v17 = vsel %vm4147_vm1, 1, %v19014_v42  ;;  %v2142_v2 = vunpack.c.l.b16 %v13834_v0  ;;  %vm13908_vm6 = vcmp.ne.s32.totalorder %v2149_v21, %v18980_v35  ;;  %v8840_v49 = vld [vmem:[#allocation3 + $0x380] sm:$0xf] }
 0x1dc   : > { %vm13882_vm14 = vcmp.ne.s32.totalorder %v19299_v29, %v18980_v35  ;;  %v13897_v59 = vsel %vm18546_vm11, %v19305_v25, %v1784_v11  ;;  %19306 = vst [vmem:[#allocation79_spill] sm:$0xff] %v13903_v17  ;;  %vm13913_vm9 = vcmp.ne.s32.totalorder %v2150_v53, %v18983_v43  ;;  %v3199_v21 = vsel %vm3191_vm2, 65537, %v19014_v42  ;;  %v10224_v53 = vld [vmem:[#allocation3 + $0x3bc] sm:$0xf0]  ;;  %v8842_v25 = vld [vmem:[#allocation3 + $0x3c0] sm:$0xf0] }
 0x1dd   : > { %2579 = vrot.lane.b32.xlu0 %v2541_v45, %s10613_s30  ;;  %v895_v45 = vadd.f32 %v863_v6, %v761_v23  ;;  %1775 = vrot.lane.b32.xlu1 %v1763_v37, %s10621_s23  ;;  %v13917_v13 = vpop.permute.xlu0 %2108  ;;  %v13921_v23 = vsel %vm18542_vm3, %v1796_v55, %v13429_v19  ;;  %vm2482_vm13 = vmpackc.low %vm13887_vm5, %vm13882_vm14  ;;  %v10216_v37 = vld [vmem:[#allocation3 + $0x384] sm:$0xf]  ;;  %v19314_v55 = vperm.slane %v19244_v63, 7  ;;  %v2156_v20 = vunpack.c.l.b16 %v2131_v9 }
 0x1de   : > { %2597 = vrot.lane.b32.xlu2 %v2550_v34, %s10613_s30  ;;  %19311 = vst [vmem:[#allocation60_spill] sm:$0xff] %v13917_v13  ;;  %v896_v34 = vadd.f32 %v864_v48, %v762_v31  ;;  %v19313_v31 = vperm.slane %v19244_v63, 6  ;;  %v2157_v7 = vunpack.c.h.b16 %v2131_v9  ;;  %v4158_v50 = vperm.slane %v13903_v17, 0  ;;  %vm2155_vm12 = vmpackc.low %vm13913_vm9, %vm13908_vm6  ;;  %v19315_v28 = vld [vmem:[#allocation36_spill] sm:$0xff] }
 0x1df   : > { %v984_v29 = vmul.f32 %v19314_v55, %v19312_v52  ;;  %v8841_v48 = vor.u32 %v10224_v53, %v8840_v49  ;;  %v8845_v12 = vor.u32 %v10216_v37, %v8842_v25  ;;  %v2539_v49 = vsel %vm2482_vm13, %v13745_v15, 0  ;;  %v19321_v25 = vld [vmem:[#allocation21_spill] sm:$0xff] }
 0x1e0   : > { %v983_v6 = vmul.f32 %v19313_v31, %v19312_v52  ;;  %v19316_v31 = vperm.slane %v19257_v33, 6  ;;  %v2143_v52 = vunpack.c.h.b16 %v13834_v0  ;;  %v4159_v53 = vperm.slane %v13903_v17, 1  ;;  %v19319_v0 = vld [vmem:[#allocation10_spill] sm:$0xff] }
 0x1e1   : > { %v1016_v19 = vadd.f32 %v984_v29, %v896_v34  ;;  %5334 = vmatpush.bf16.msra.mxu0 %v8841_v48  ;;  %5360 = vmatpush.bf16.msra.mxu2 %v8845_v12  ;;  %v19320_v55 = vperm.slane %v19319_v0, 6  ;;  %vm13979_vm8 = vcmp.ne.s32.totalorder %v2156_v20, %v18980_v35  ;;  %vm13987_vm0 = vcmp.ne.s32.totalorder %v2157_v7, %v18983_v43 }
 0x1e2   : > { %v1015_v16 = vadd.f32 %v983_v6, %v895_v45  ;;  %v1123_v13 = vmul.f32 %v19316_v31, %v19315_v28  ;;  %v19317_v45 = vperm.slane %v19257_v33, 7  ;;  %v19318_v6 = vld [vmem:[#allocation16_spill] sm:$0xff]  ;;  %v19322_v31 = vld [vmem:[#allocation9_spill] sm:$0xff]  ;;  %vm13991_vm1 = vcmp.eq.s32.totalorder %v4158_v50, 1  ;;  %v19335_v50 = vld [vmem:[#allocation58_spill] sm:$0xff] }
 0x1e3   : > { %v477_v29 = vmul.f32 %v19320_v55, %v19318_v6  ;;  %v19323_v9 = vperm.slane %v19322_v31, 6  ;;  %v19331_v3 = vperm.slane %v19322_v31, 7  ;;  %v19334_v7 = vperm.slane %v19258_v41, 7  ;;  %vm2162_vm2 = vmpackc.low %vm13987_vm0, %vm13979_vm8 }
 0x1e4   : > { %v1124_v34 = vmul.f32 %v19317_v45, %v19315_v28  ;;  %v1155_v37 = vadd.f32 %v1123_v13, %v1015_v16  ;;  %v2206_v28 = vsel %vm2155_vm12, %v13604_v39, 0  ;;  %v2548_v16 = vsel %vm2482_vm13, %v13703_v62, 0  ;;  %v13983_v13 = vpop.permute.xlu1 %3694 }
 0x1e5   : > { %v611_v30 = vmul.f32 %v19323_v9, %v19321_v25  ;;  %3212 = vrot.lane.b32.xlu0 %v3199_v21, %s10614_s11  ;;  %19326 = vst [vmem:[#allocation28_spill] sm:$0xff] %v13983_v13  ;;  %v612_v20 = vmul.f32 %v19331_v3, %v19321_v25  ;;  %2243 = vrot.lane.b32.xlu1 %v2206_v28, %s10612_s27  ;;  %v3693_v45 = vpop.permute.xlu0 %3692  ;;  %v19336_v17 = vperm.slane %v19259_v4, 6  ;;  %v19337_v31 = vperm.slane %v19259_v4, 7 }
 0x1e6   : > { %v1156_v21 = vadd.f32 %v1124_v34, %v1016_v19  ;;  %2575 = vrot.lane.b32.xlu2 %v2539_v49, %s10613_s30  ;;  %v19332_v19 = vld [vmem:[#allocation55_spill] sm:$0xff]  ;;  %v19333_v49 = vperm.slane %v19258_v41, 6  ;;  %vm14011_vm7 = vcmp.eq.s32.totalorder %v4159_v53, 1  ;;  %vm14016_vm15 = vcmp.ne.s32.totalorder %v2142_v2, %v18980_v35 }
 0x1e7   : > { %v643_v9 = vadd.f32 %v611_v30, %v477_v29  ;;  %v1258_v55 = vmul.f32 %v19334_v7, %v19332_v19  ;;  %v1391_v54 = vmul.f32 %v19336_v17, %v19335_v50  ;;  %v1392_v25 = vmul.f32 %v19337_v31, %v19335_v50  ;;  %v19343_v7 = vld [vmem:[#allocation14_spill] sm:$0xff]  ;;  %vm4186_vm5 = vmpackc.low %vm14011_vm7, %vm13991_vm1 }
 0x1e8   : > { %v1257_v34 = vmul.f32 %v19333_v49, %v19332_v19  ;;  %v3718_v3 = vrot.slane %v3693_v45, 4  ;;  %v19342_v19 = vperm.slane %v19319_v0, 7  ;;  %v19344_v2 = vperm.slane %v19250_v24, 6 }
 0x1e9   : > { %v1290_v49 = vadd.f32 %v1258_v55, %v1156_v21  ;;  %v19345_v31 = vperm.slane %v19250_v24, 7  ;;  %v19346_v58 = vrot.slane %v13983_v13, 4  ;;  %v19350_v55 = vperm.slane %v19251_v1, 6  ;;  %v19353_v13 = vld [vmem:[#allocation24_spill] sm:$0xff] }
 0x1ea   : > { %v478_v17 = vmul.f32 %v19342_v19, %v19318_v6  ;;  %v1289_v53 = vadd.f32 %v1257_v34, %v1155_v37  ;;  %v745_v50 = vmul.f32 %v19344_v2, %v19343_v7  ;;  %v19347_v6 = vperm.slane %v19260_v47, 6  ;;  %v19349_v34 = vld [vmem:[#allocation34_spill] sm:$0xff] }
 0x1eb   : > { %v746_v28 = vmul.f32 %v19345_v31, %v19343_v7  ;;  %v3744_v0 = vsel %vm18546_vm11, %v3718_v3, %v19346_v58  ;;  %v19348_v37 = vperm.slane %v19260_v47, 7  ;;  %v879_v2 = vmul.f32 %v19350_v55, %v19349_v34 }
 0x1ec   : > { %v1525_v19 = vmul.f32 %v19347_v6, %v19210_v60  ;;  %vm19351_vm14 = vcmask 924672   ;;  %v1423_v24 = vadd.f32 %v1391_v54, %v1289_v53  ;;  %v1424_v7 = vadd.f32 %v1392_v25, %v1290_v49 }
 0x1ed   : > { %v1526_v21 = vmul.f32 %v19348_v37, %v19210_v60  ;;  %v3745_v27 = vsel %vm19351_vm14, %v3693_v45, %v3744_v0  ;;  %v644_v31 = vadd.f32 %v612_v20, %v478_v17  ;;  %v2207_v58 = vsel %vm2162_vm2, %v13561_v32, 0  ;;  %2593 = vrot.lane.b32.xlu0 %v2548_v16, %s10613_s30  ;;  %v3691_v53 = vpop.permute.xlu0 %3690  ;;  %vm19363_vm0 = vmmov %vm19351_vm14 }
 0x1ee   : > { %3783 = vst [vmem:[#allocation3 + $0x348] sm:$0xff] %v3745_v27  ;;  %v777_v6 = vadd.f32 %v745_v50, %v643_v9  ;;  %v19352_v60 = vperm.slane %v19251_v1, 7  ;;  %v19354_v55 = vperm.slane %v19244_v63, 6  ;;  %v1557_v54 = vadd.f32 %v1525_v19, %v1423_v24  ;;  %2245 = vrot.lane.b32.xlu2 %v2207_v58, %s10612_s27  ;;  %v14092_v50 = vpop.permute.xlu2 %3342  ;;  %v19360_v58 = vld [vmem:[#allocation39_spill] sm:$0xff] }
 0x1ef   : > { %v1558_v20 = vadd.f32 %v1526_v21, %v1424_v7  ;;  %v778_v25 = vadd.f32 %v746_v28, %v644_v31  ;;  %v19355_v27 = vperm.slane %v19244_v63, 7  ;;  %v2216_v1 = vsel %vm2162_vm2, %v13680_v26, 0 }
 0x1f0   : > { %v880_v37 = vmul.f32 %v19352_v60, %v19349_v34  ;;  %v999_v45 = vmul.f32 %v19354_v55, %v19353_v13  ;;  %vm14075_vm13 = vcmp.ne.s32.totalorder %v2143_v52, %v18983_v43  ;;  %v3830_v28 = vperm.slane %v19207_v40, 4  ;;  %2263 = vrot.lane.b32.xlu1 %v2216_v1, %s10612_s27 }
 0x1f1   : > { %v1000_v9 = vmul.f32 %v19355_v27, %v19353_v13  ;;  %v911_v17 = vadd.f32 %v879_v2, %v777_v6  ;;  %v1601_v63 = vadd.f32 %v19217_v38, %v1557_v54  ;;  %v1602_v13 = vadd.f32 %v19217_v38, %v1558_v20  ;;  %vm2148_vm8 = vmpackc.low %vm14075_vm13, %vm14016_vm15 }
 0x1f2   : > { %v912_v48 = vadd.f32 %v880_v37, %v778_v25  ;;  %v19358_v12 = vperm.slane %v19257_v33, 6  ;;  %v4194_v52 = vsel %vm4186_vm5, 65537, %v19014_v42  ;;  %v3831_v0 = vperm.slane %v19207_v40, 5 }
 0x1f3   : > { %v3717_v19 = vrot.slane %v3691_v53, 4  ;;  %v1031_v21 = vadd.f32 %v999_v45, %v911_v17  ;;  %v1633_v38 = vmax.f32 %v1601_v63, 0.0  ;;  %v1634_v34 = vmax.f32 %v1602_v13, 0.0 }
 0x1f4   : > { %v1139_v49 = vmul.f32 %v19358_v12, %v11731_v61  ;;  %v1032_v2 = vadd.f32 %v1000_v9, %v912_v48  ;;  %v19359_v24 = vperm.slane %v19257_v33, 7  ;;  %v19361_v8 = vperm.slane %v19258_v41, 6 }
 0x1f5   : > { %v3742_v31 = vsel %vm18546_vm11, %v3717_v19, %v3718_v3  ;;  %v19362_v60 = vperm.slane %v19258_v41, 7  ;;  %v14109_v55 = vpack.c.bf16 %v1634_v34, %v1633_v38  ;;  %v19364_v3 = vld [vmem:[#allocation44_spill] sm:$0xff]  ;;  %v19365_v45 = vperm.slane %v19259_v4, 6 }
 0x1f6   : > { %v1140_v7 = vmul.f32 %v19359_v24, %v11731_v61  ;;  %v1171_v30 = vadd.f32 %v1139_v49, %v1031_v21  ;;  %v1273_v6 = vmul.f32 %v19361_v8, %v19360_v58  ;;  %v3743_v61 = vsel %vm19363_vm0, %v3691_v53, %v3742_v31  ;;  %4206 = vrot.lane.b32.xlu2 %v4194_v52, %s10611_s26  ;;  %v14169_v21 = vpop.permute.xlu2 %3362 }
 0x1f7   : > { %v1274_v37 = vmul.f32 %v19362_v60, %v19360_v58  ;;  %v1407_v54 = vmul.f32 %v19365_v45, %v19364_v3  ;;  %v1823_v20 = vunpack.c.h.b16 %v13921_v23  ;;  %v2215_v41 = vsel %vm2155_vm12, %v13612_v36, 0  ;;  %3782 = vst [vmem:[#allocation3 + $0x340] sm:$0xff] %v3743_v61 }
 0x1f8   : > { %v1172_v33 = vadd.f32 %v1140_v7, %v1032_v2  ;;  %v1305_v25 = vadd.f32 %v1273_v6, %v1171_v30  ;;  %v19366_v27 = vperm.slane %v19259_v4, 7  ;;  %2261 = vrot.lane.b32.xlu0 %v2215_v41, %s10612_s27  ;;  %vm14126_vm1 = vcmp.eq.s32.totalorder %v3830_v28, 1  ;;  %1678 = vst [vmem:[#allocation2 + $0x1c] sm:$0xff] %v14109_v55  ;;  %v19378_v7 = vld [vmem:[#allocation73_spill] sm:$0xff] }
 0x1f9   : > { %vm14130_vm7 = vcmp.eq.s32.totalorder %v3831_v0, 1  ;;  %v1795_v51 = vsel %vm18542_vm3, %v13897_v59, %v13472_v14  ;;  %v2214_v4 = vsel %vm2148_vm8, %v13703_v62, 0  ;;  %v19371_v63 = vperm.slane %v19260_v47, 6 }
 0x1fa   : > { %v1408_v9 = vmul.f32 %v19366_v27, %v19364_v3  ;;  %v1306_v11 = vadd.f32 %v1274_v37, %v1172_v33  ;;  %v1439_v28 = vadd.f32 %v1407_v54, %v1305_v25  ;;  %v19372_v14 = vperm.slane %v19260_v47, 7  ;;  %2259 = vrot.lane.b32.xlu1 %v2214_v4, %s10612_s27  ;;  %vm3856_vm6 = vmpackc.low %vm14130_vm7, %vm14126_vm1  ;;  %v8776_v54 = vld [vmem:[#allocation3 + $0x300] sm:$0xf]  ;;  %v10200_v25 = vld [vmem:[#allocation3 + $0x304] sm:$0xf] }
 0x1fb   : > { %v1541_v13 = vmul.f32 %v19371_v63, %v19211_v44  ;;  %v3885_v48 = vrot.slane %v13270_v57, 4  ;;  %v19373_v12 = vunpack.c.l.b16 %v13921_v23  ;;  %vm14165_vm12 = vcmp.ne.s32.totalorder %v1823_v20, %v18983_v43 }
 0x1fc   : > { %v1542_v59 = vmul.f32 %v19372_v14, %v19211_v44  ;;  %v1440_v53 = vadd.f32 %v1408_v9, %v1306_v11  ;;  %v1815_v52 = vunpack.c.l.b16 %v1795_v51  ;;  %v1816_v0 = vunpack.c.h.b16 %v1795_v51  ;;  %v14220_v3 = vpop.permute.xlu1 %1773 }
 0x1fd   : > { %vm14160_vm9 = vcmp.ne.s32.totalorder %v19373_v12, %v18980_v35  ;;  %v1573_v47 = vadd.f32 %v1541_v13, %v1439_v28  ;;  %v2732_v38 = vperm.slane %v13311_v22, 2  ;;  %v2733_v34 = vperm.slane %v13311_v22, 3 }
 0x1fe   : > { %v1574_v19 = vadd.f32 %v1542_v59, %v1440_v53  ;;  %v3864_v2 = vsel %vm3856_vm6, 65537, %v19014_v42  ;;  %vm1828_vm2 = vmpackc.low %vm14165_vm12, %vm14160_vm9  ;;  %v19379_v31 = vrot.slane %v19378_v7, 4  ;;  %v2205_v58 = vsel %vm2148_vm8, %v13745_v15, 0  ;;  %v10208_v61 = vld [vmem:[#allocation3 + $0x33c] sm:$0xf0]  ;;  %v3359_v13 = vpop.permute.xlu2 %3358 }
 0x1ff   : > { %v1617_v23 = vadd.f32 %v19218_v56, %v1573_v47  ;;  %vm14193_vm14 = vcmp.ne.s32.totalorder %v1815_v52, %v18980_v35  ;;  %vm14198_vm5 = vcmp.ne.s32.totalorder %v1816_v0, %v18983_v43  ;;  %3878 = vrot.lane.b32.xlu2 %v3864_v2, %s10612_s27  ;;  %v1873_v29 = vsel %vm1828_vm2, %v13561_v32, 0  ;;  %v8778_v27 = vld [vmem:[#allocation3 + $0x340] sm:$0xf0]  ;;  %v19423_v52 = vld [vmem:[#allocation70_spill] sm:$0xff] }
 0x200   : > { %v1618_v24 = vadd.f32 %v19218_v56, %v1574_v19  ;;  %v3895_v30 = vsel %vm18546_vm11, %v19379_v31, %v3885_v48  ;;  %2241 = vrot.lane.b32.xlu0 %v2205_v58, %s10612_s27  ;;  %vm14209_vm15 = vcmp.eq.s32.totalorder %v2732_v38, 1  ;;  %vm14213_vm13 = vcmp.eq.s32.totalorder %v2733_v34, 1  ;;  %vm1821_vm8 = vmpackc.low %vm14198_vm5, %vm14193_vm14 }
 0x201   : > { %v1649_v8 = vmax.f32 %v1617_v23, 0.0  ;;  %v3896_v33 = vsel %vm18543_vm4, %v3895_v30, %v13270_v57  ;;  %v19388_v32 = vrot.slane %v19287_v5, 4  ;;  %v8777_v41 = vor.u32 %v10208_v61, %v8776_v54  ;;  %vm2759_vm0 = vmpackc.low %vm14213_vm13, %vm14209_vm15  ;;  %v14237_v51 = vpop.permute.xlu0 %3344  ;;  %v19407_v61 = vld [vmem:[#allocation37_spill] sm:$0xff] }
 0x202   : > { %v1650_v60 = vmax.f32 %v1618_v24, 0.0  ;;  %1911 = vrot.lane.b32.xlu1 %v1873_v29, %s10611_s26  ;;  %v8781_v9 = vor.u32 %v10200_v25, %v8778_v27  ;;  %v3926_v1 = vunpack.c.l.b16 %v3896_v33  ;;  %v3927_v17 = vunpack.c.h.b16 %v3896_v33 }
 0x203   : > { %v1792_v20 = vsel %vm18542_vm3, %v19388_v32, %v19287_v5  ;;  %5335 = vmatpush.bf16.msra.mxu0 %v8777_v41  ;;  %v3377_v4 = vrot.slane %v14092_v50, 4  ;;  %v18552_v28 = vrot.slane %v14237_v51, 4  ;;  %v1872_v63 = vsel %vm1821_vm8, %v13604_v39, 0  ;;  %v19408_v32 = vld [vmem:[#allocation84_spill] sm:$0xff]  ;;  %v19422_v39 = vld [vmem:[#allocation69_spill] sm:$0xff] }
 0x204   : > { %v14222_v45 = vpack.c.bf16 %v1650_v60, %v1649_v8  ;;  %v1808_v5 = vunpack.c.l.b16 %v1792_v20  ;;  %v1809_v11 = vunpack.c.h.b16 %v1792_v20  ;;  %5361 = vmatpush.bf16.msra.mxu2 %v8781_v9  ;;  %v2767_v14 = vsel %vm2759_vm0, 65537, %v19014_v42  ;;  %v19409_v9 = vld [vmem:[#allocation87_spill] sm:$0xff] }
 0x205   : > { %v3553_v59 = vrot.slane %v13509_v10, 4  ;;  %v1881_v53 = vsel %vm1821_vm8, %v13612_v36, 0  ;;  %v3396_v12 = vsel %vm18546_vm11, %v3377_v4, %v18552_v28  ;;  %vm14261_vm1 = vcmp.ne.s32.totalorder %v3926_v1, %v18980_v35  ;;  %v3361_v19 = vpop.permute.xlu1 %3360  ;;  %v10225_v28 = vld [vmem:[#allocation3 + $0x3c4] sm:$0xf0] }
 0x206   : > { %1686 = vst [vmem:[#allocation2 + $0x64] sm:$0xff] %v14222_v45  ;;  %vm14266_vm7 = vcmp.ne.s32.totalorder %v3927_v17, %v18983_v43  ;;  %vm19393_vm6 = vcmask 1039360   ;;  %vm14274_vm14 = vcmp.ne.s32.totalorder %v1808_v5, %v18980_v35  ;;  %vm14279_vm5 = vcmp.ne.s32.totalorder %v1809_v11, %v18983_v43  ;;  %v14328_v49 = vpop.permute.xlu2 %4338 }
 0x207   : > { %1927 = vrot.lane.b32.xlu2 %v1881_v53, %s10611_s26  ;;  %v3397_v36 = vsel %vm19393_vm6, %v14092_v50, %v3396_v12  ;;  %v18553_v38 = vrot.slane %v14169_v21, 4  ;;  %v3385_v34 = vrot.slane %v3359_v13, 4  ;;  %v3386_v23 = vrot.slane %v3361_v19, 4  ;;  %v19398_v50 = vld [vmem:[#allocation56_spill] sm:$0xff]  ;;  %vm3932_vm15 = vmpackc.low %vm14266_vm7, %vm14261_vm1 }
 0x208   : > { %1909 = vrot.lane.b32.xlu0 %v1872_v63, %s10611_s26  ;;  %3443 = vst [vmem:[#allocation3 + $0x288] sm:$0xff] %v3397_v36  ;;  %v19399_v2 = vrot.slane %v19398_v50, 4  ;;  %vm1814_vm13 = vmpackc.low %vm14279_vm5, %vm14274_vm14  ;;  %v2398_v30 = vperm.slane %v13527_v18, 2  ;;  %v2399_v58 = vperm.slane %v13527_v18, 3  ;;  %v1882_v56 = vsel %vm1828_vm2, %v13680_v26, 0 }
 0x209   : > { %v3410_v7 = vsel %vm18546_vm11, %v3385_v34, %v3386_v23  ;;  %v3412_v31 = vsel %vm18546_vm11, %v3386_v23, %v18553_v38  ;;  %vm19400_vm8 = vmmov %vm19393_vm6  ;;  %v18558_v29 = vrot.slane %v13482_v46, 4  ;;  %v3971_v16 = vsel %vm3932_vm15, %v14109_v55, 0  ;;  %v19560_v38 = vld [vmem:[#allocation25_spill] sm:$0xff] }
 0x20a   : > { %2780 = vrot.lane.b32.xlu1 %v2767_v14, %s10615_s15  ;;  %v3563_v24 = vsel %vm18546_vm11, %v19399_v2, %v3553_v59  ;;  %v3411_v8 = vsel %vm19400_vm8, %v3359_v13, %v3410_v7  ;;  %vm19401_vm0 = vmmov %vm19393_vm6  ;;  %vm19402_vm6 = vcmask 121856   ;;  %v1871_v26 = vsel %vm1814_vm13, %v13745_v15, 0  ;;  %v19415_v14 = vld [vmem:[#allocation82_spill] sm:$0xff] }
 0x20b   : > { %v3413_v6 = vsel %vm19401_vm0, %v3361_v19, %v3412_v31  ;;  %3450 = vst [vmem:[#allocation3 + $0x2c0] sm:$0xff] %v3411_v8  ;;  %v3564_v60 = vsel %vm19402_vm6, %v3563_v24, %v13509_v10  ;;  %vm14330_vm9 = vcmp.eq.s32.totalorder %v2398_v30, 1  ;;  %vm14334_vm12 = vcmp.eq.s32.totalorder %v2399_v58, 1  ;;  %v8371_v24 = vld [vmem:[%s18337_s1 + $0x4] ss:$8 sm:$0xf0] }
 0x20c   : > { %3451 = vst [vmem:[#allocation3 + $0x2c8] sm:$0xff] %v3413_v6  ;;  %v3498_v33 = vperm.slane %v19407_v61, 4  ;;  %v3499_v54 = vperm.slane %v19407_v61, 5  ;;  %v3166_v20 = vperm.slane %v19408_v32, 4  ;;  %v3167_v41 = vperm.slane %v19408_v32, 5  ;;  %vm2425_vm2 = vmpackc.low %vm14334_vm12, %vm14330_vm9  ;;  %v3028_v19 = vld [vmem:[#allocation2 + $0x4] sm:$0xff] }
 0x20d   : > { %v3341_v15 = vpop.permute.xlu1 %3340  ;;  %v3594_v27 = vunpack.c.l.b16 %v3564_v60  ;;  %v19410_v1 = vrot.slane %v19409_v9, 4  ;;  %v3595_v5 = vunpack.c.h.b16 %v3564_v60  ;;  %v4216_v53 = vrot.slane %v19415_v14, 4 }
 0x20e   : > { %v3376_v25 = vrot.slane %v3341_v15, 4  ;;  %vm14353_vm8 = vcmp.eq.s32.totalorder %v3498_v33, 1  ;;  %vm14357_vm0 = vcmp.eq.s32.totalorder %v3499_v54, 1  ;;  %vm19416_vm6 = vcmask 1039360  }
 0x20f   : > { %4010 = vrot.lane.b32.xlu2 %v3971_v16, %s10620_s18  ;;  %v3231_v17 = vsel %vm18546_vm11, %v19410_v1, %v18558_v29  ;;  %vm14363_vm10 = vcmp.eq.s32.totalorder %v3166_v20, 1  ;;  %vm14367_vm9 = vcmp.eq.s32.totalorder %v3167_v41, 1  ;;  %vm19421_vm12 = vcmask 7168   ;;  %v8720_v29 = vld [vmem:[#allocation3 + $0x288] sm:$0xf] }
 0x210   : > { %1929 = vrot.lane.b32.xlu0 %v1882_v56, %s10611_s26  ;;  %v3394_v11 = vsel %vm18546_vm11, %v3376_v25, %v3377_v4  ;;  %v8370_v4 = vld [vmem:[%s18337_s1 + $0x4] ss:$8 sm:$0xf]  ;;  %v14376_v34 = vsel %vm19421_vm12, %v3231_v17, %v13482_v46  ;;  %v3980_v23 = vsel %vm3932_vm15, %v14222_v45, 0  ;;  %v2433_v50 = vsel %vm2425_vm2, 65537, %v19014_v42  ;;  %vm3192_vm1 = vmpackc.low %vm14367_vm9, %vm14363_vm10 }
 0x211   : > { %v3395_v12 = vsel %vm19416_vm6, %v3341_v15, %v3394_v11  ;;  %v1880_v2 = vsel %vm1814_vm13, %v13703_v62, 0  ;;  %vm3524_vm6 = vmpackc.low %vm14357_vm0, %vm14353_vm8  ;;  %v2064_v47 = vperm.slane %v19422_v39, 2  ;;  %v3046_v62 = vor.u32 %v8371_v24, %v8370_v4  ;;  %v3036_v4 = vld [vmem:[#allocation2 + $0x4c] sm:$0xff]  ;;  %v14467_v24 = vpop.permute.xlu0 %2778 }
 0x212   : > { %1907 = vrot.lane.b32.xlu1 %v1871_v26, %s10611_s26  ;;  %3442 = vst [vmem:[#allocation3 + $0x280] sm:$0xff] %v3395_v12  ;;  %v19424_v0 = vrot.slane %v19423_v52, 4  ;;  %v3262_v31 = vunpack.c.l.b16 %v14376_v34  ;;  %vm14413_vm7 = vcmp.ne.s32.totalorder %v3594_v27, %v18980_v35  ;;  %vm14418_vm14 = vcmp.ne.s32.totalorder %v3595_v5, %v18983_v43  ;;  %v10192_v33 = vld [vmem:[#allocation3 + $0x2bc] sm:$0xf0]  ;;  %v8714_v20 = vld [vmem:[#allocation3 + $0x2c0] sm:$0xf0] }
 0x213   : > { %v18550_v6 = vrot.slane %v14328_v49, 4  ;;  %v2065_v16 = vperm.slane %v19422_v39, 3  ;;  %vm3050_vm10 = vcmp.ne.f32.partialorder %v3046_v62, 0.0  ;;  %v3532_v26 = vsel %vm3524_vm6, 65537, %v19014_v42  ;;  %vm3600_vm15 = vmpackc.low %vm14418_vm14, %vm14413_vm7  ;;  %v3029_v52 = vld [vmem:[#allocation2 + $0xc] sm:$0xff] }
 0x214   : > { %v4225_v7 = vsel %vm18546_vm11, %v19424_v0, %v4216_v53  ;;  %v3200_v44 = vsel %vm3192_vm1, 65537, %v19014_v42  ;;  %vm14433_vm5 = vcmp.eq.s32.totalorder %v2064_v47, 1  ;;  %v3052_v54 = vsel %vm3050_vm10, 1, %v19014_v42  ;;  %v4133_v0 = vld [vmem:[#allocation2 + $0x5c] sm:$0xff] }
 0x215   : > { %v4337_v8 = vpop.permute.xlu1 %4336  ;;  %v3054_v41 = vperm.slane %v3052_v54, 0  ;;  %v3055_v25 = vperm.slane %v3052_v54, 1  ;;  %v3056_v27 = vperm.slane %v3052_v54, 2  ;;  %v3263_v9 = vunpack.c.h.b16 %v14376_v34 }
 0x216   : > { %v4372_v60 = vrot.slane %v4337_v8, 4  ;;  %v3057_v11 = vperm.slane %v3052_v54, 3  ;;  %v3058_v63 = vperm.slane %v3052_v54, 4  ;;  %vm14447_vm13 = vcmp.eq.s32.totalorder %v2065_v16, 1  ;;  %v3030_v16 = vld [vmem:[#allocation2 + $0x14] sm:$0xff] }
 0x217   : > { %1925 = vrot.lane.b32.xlu2 %v1880_v2, %s10611_s26  ;;  %vm14451_vm2 = vcmp.eq.s32.totalorder %v3054_v41, 1  ;;  %vm19435_vm8 = vcmask 138240   ;;  %v3639_v47 = vsel %vm3600_vm15, %v14109_v55, 0  ;;  %vm3071_vm0 = vcmp.eq.s32.totalorder %v3055_v25, 1  ;;  %vm2091_vm10 = vmpackc.low %vm14447_vm13, %vm14433_vm5 }
 0x218   : > { %4028 = vrot.lane.b32.xlu0 %v3980_v23, %s10620_s18  ;;  %v14423_v56 = vpop.permute.xlu2 %2444  ;;  %v4390_v15 = vsel %vm18546_vm11, %v4372_v60, %v18550_v6  ;;  %v14457_v34 = vsel %vm19435_vm8, %v4225_v7, %v19415_v14  ;;  %vm14471_vm9 = vcmp.ne.s32.totalorder %v3262_v31, %v18980_v35  ;;  %vm3086_vm12 = vmpackc.low %vm3071_vm0, %vm14451_vm2  ;;  %vm14477_vm6 = vcmp.eq.s32.totalorder %v3056_v27, 1  ;;  %v19473_v27 = vld [vmem:[#allocation43_spill] sm:$0xff] }
 0x219   : > { %v4391_v1 = vsel %vm18542_vm3, %v4337_v8, %v4390_v15  ;;  %v8712_v17 = vld [vmem:[#allocation3 + $0x280] sm:$0xf]  ;;  %v10184_v5 = vld [vmem:[#allocation3 + $0x284] sm:$0xf]  ;;  %vm14481_vm1 = vcmp.eq.s32.totalorder %v3057_v11, 1  ;;  %v3059_v8 = vperm.slane %v3052_v54, 5  ;;  %vm14497_vm8 = vcmp.ne.s32.totalorder %v3263_v9, %v18983_v43 }
 0x21a   : > { %2446 = vrot.lane.b32.xlu1 %v2433_v50, %s10617_s16  ;;  %4438 = vst [vmem:[#allocation3 + $0x400] sm:$0xff] %v4391_v1  ;;  %v8713_v12 = vor.u32 %v10192_v33, %v8712_v17  ;;  %v8717_v36 = vor.u32 %v10184_v5, %v8714_v20  ;;  %v19436_v50 = vld [vmem:[#allocation72_spill] sm:$0xff]  ;;  %v3094_v31 = vsel %vm3086_vm12, %v3028_v19, 0  ;;  %v3102_v60 = vsel %vm3086_vm12, %v3036_v4, 0  ;;  %vm18545_vm0 = vmpackc.low %vm14481_vm1, %vm14477_vm6  ;;  %v3031_v4 = vld [vmem:[#allocation2 + $0x1c] sm:$0xff] }
 0x21b   : > { %v18556_v2 = vrot.slane %v19436_v50, 4  ;;  %vm14490_vm2 = vcmp.eq.s32.totalorder %v3058_v63, 1  ;;  %v3060_v33 = vperm.slane %v3052_v54, 6  ;;  %3110 = vst [vmem:[#allocation3 + $0x200] sm:$0xff] %v3094_v31  ;;  %vm14507_vm12 = vcmp.eq.s32.totalorder %v3059_v8, 1 }
 0x21c   : > { %5336 = vmatpush.bf16.msra.mxu0 %v8713_v12  ;;  %5362 = vmatpush.bf16.msra.mxu2 %v8717_v36  ;;  %3118 = vst [vmem:[#allocation3 + $0x240] sm:$0xff] %v3102_v60  ;;  %v3095_v9 = vsel %vm18545_vm0, %v3029_v52, 0  ;;  %vm18544_vm3 = vmpackc.low %vm14507_vm12, %vm14490_vm2  ;;  %v3061_v1 = vperm.slane %v3052_v54, 7  ;;  %v4251_v11 = vunpack.c.l.b16 %v14457_v34  ;;  %v4252_v63 = vunpack.c.h.b16 %v14457_v34  ;;  %v14784_v12 = vld [vmem:[#allocation2 + $0x60] sm:$0xff] }
 0x21d   : > { %3111 = vst [vmem:[#allocation3 + $0x208] sm:$0xff] %v3095_v9  ;;  %v3096_v17 = vsel %vm18544_vm3, %v3030_v16, 0  ;;  %vm14525_vm4 = vcmp.eq.s32.totalorder %v3060_v33, 1  ;;  %v2099_v54 = vsel %vm2091_vm10, 65537, %v19014_v42  ;;  %vm18548_vm3 = vmpackc.low %vm14497_vm8, %vm14471_vm9  ;;  %v3897_v13 = vsel %vm18546_vm11, %v3885_v48, %v18556_v2 }
 0x21e   : > { %3112 = vst [vmem:[#allocation3 + $0x210] sm:$0xff] %v3096_v17  ;;  %vm14541_vm0 = vcmp.eq.s32.totalorder %v3061_v1, 1  ;;  %v3648_v37 = vsel %vm3600_vm15, %v14222_v45, 0  ;;  %v3316_v57 = vsel %vm18548_vm3, %v14222_v45, 0  ;;  %vm19458_vm7 = vcmask 130048   ;;  %vm19466_vm3 = vmpackc.low %vm14507_vm12, %vm14490_vm2 }
 0x21f   : > { %3678 = vrot.lane.b32.xlu2 %v3639_v47, %s10617_s16  ;;  %vm18547_vm10 = vmpackc.low %vm14541_vm0, %vm14525_vm4  ;;  %v3898_v48 = vsel %vm19458_vm7, %v3897_v13, %v19436_v50  ;;  %vm14595_vm15 = vcmp.ne.s32.totalorder %v4251_v11, %v18980_v35  ;;  %vm14600_vm7 = vcmp.ne.s32.totalorder %v4252_v63, %v18983_v43  ;;  %v3037_v13 = vld [vmem:[#allocation2 + $0x54] sm:$0xff]  ;;  %v19464_v11 = vld [vmem:[#allocation15_spill] sm:$0xff] }
 0x220   : > { %3546 = vrot.lane.b32.xlu0 %v3532_v26, %s10613_s30  ;;  %v14494_v15 = vpop.permute.xlu2 %2929  ;;  %v3097_v23 = vsel %vm18547_vm10, %v3031_v4, 0  ;;  %v3933_v17 = vunpack.c.l.b16 %v3898_v48  ;;  %v18557_v4 = vrot.slane %v19464_v11, 4  ;;  %vm4257_vm11 = vmpackc.low %vm14600_vm7, %vm14595_vm15  ;;  %vm19489_vm15 = vcmask 138240  }
 0x221   : > { %3113 = vst [vmem:[#allocation3 + $0x218] sm:$0xff] %v3097_v23  ;;  %vm19465_vm10 = vmpackc.low %vm14481_vm1, %vm14477_vm6  ;;  %v4311_v62 = vsel %vm4257_vm11, %v4133_v0, 0  ;;  %v8848_v0 = vld [vmem:[#allocation3 + $0x388] sm:$0xf] }
 0x222   : > { %3214 = vrot.lane.b32.xlu1 %v3200_v44, %s10614_s11  ;;  %v19447_v44 = vld [vmem:[#allocation79_spill] sm:$0xff]  ;;  %v8648_v58 = vld [vmem:[#allocation3 + $0x200] sm:$0xf]  ;;  %v10168_v8 = vld [vmem:[#allocation3 + $0x204] sm:$0xf]  ;;  %vm14660_vm2 = vcmp.ne.s32.totalorder %v3933_v17, %v18980_v35 }
 0x223   : > { %v4160_v41 = vperm.slane %v19447_v44, 2  ;;  %v4161_v25 = vperm.slane %v19447_v44, 3  ;;  %v10176_v52 = vld [vmem:[#allocation3 + $0x23c] sm:$0xf0]  ;;  %v8650_v31 = vld [vmem:[#allocation3 + $0x240] sm:$0xf0] }
 0x224   : > { %v8649_v33 = vor.u32 %v10176_v52, %v8648_v58  ;;  %v19474_v58 = vrot.slane %v19473_v27, 4 }
 0x225   : > { %vm14556_vm5 = vcmp.eq.s32.totalorder %v4160_v41, 1  ;;  %vm14560_vm13 = vcmp.eq.s32.totalorder %v4161_v25, 1  ;;  %v8653_v41 = vor.u32 %v10168_v8, %v8650_v31  ;;  %v19463_v25 = vld [vmem:[#allocation77_spill] sm:$0xff] }
 0x226   : > { %vm4187_vm14 = vmpackc.low %vm14560_vm13, %vm14556_vm5  ;;  %v1729_v9 = vperm.slane %v19463_v25, 2  ;;  %v1730_v1 = vperm.slane %v19463_v25, 3  ;;  %5337 = vmatpush.bf16.msra.mxu0 %v8649_v33  ;;  %vm19483_vm13 = vcmask 908288  }
 0x227   : > { %2112 = vrot.lane.b32.xlu2 %v2099_v54, %s10620_s18  ;;  %v14578_v30 = vpop.permute.xlu0 %3876  ;;  %v14592_v47 = vpop.permute.xlu1 %4356  ;;  %v3934_v54 = vunpack.c.h.b16 %v3898_v48  ;;  %v4195_v63 = vsel %vm4187_vm14, 65537, %v19014_v42  ;;  %5363 = vmatpush.bf16.msra.mxu2 %v8653_v41  ;;  %vm19467_vm5 = vmpackc.low %vm14497_vm8, %vm14471_vm9  ;;  %v3039_v48 = vld [vmem:[#allocation2 + $0x64] sm:$0xff]  ;;  %vm19475_vm9 = vcmask 1043456   ;;  %v2734_v41 = vperm.slane %v13311_v22, 4 }
 0x228   : > { %3696 = vrot.lane.b32.xlu0 %v3648_v37, %s10617_s16  ;;  %v14590_v34 = vpop.permute.xlu2 %2110  ;;  %v3038_v37 = vld [vmem:[#allocation2 + $0x5c] sm:$0xff]  ;;  %v3307_v19 = vsel %vm19467_vm5, %v14109_v55, 0  ;;  %vm14634_vm6 = vcmp.eq.s32.totalorder %v1729_v9, 1  ;;  %vm14638_vm1 = vcmp.eq.s32.totalorder %v1730_v1, 1  ;;  %v2800_v23 = vsel %vm19475_vm9, %v19474_v58, %v18557_v4  ;;  %v19480_v1 = vld [vmem:[#allocation68_spill] sm:$0xff]  ;;  %vm19482_vm12 = vmmov %vm19475_vm9 }
 0x229   : > { %v3104_v36 = vsel %vm19466_vm3, %v3038_v37, 0  ;;  %vm19472_vm3 = vmpackc.low %vm14541_vm0, %vm14525_vm4  ;;  %vm14665_vm8 = vcmp.ne.s32.totalorder %v3934_v54, %v18983_v43  ;;  %v18551_v5 = vrot.slane %v14592_v47, 4  ;;  %v2735_v9 = vperm.slane %v13311_v22, 5  ;;  %v14824_v4 = vld [vmem:[#allocation2 + $0x18] sm:$0xff] }
 0x22a   : > { %3364 = vrot.lane.b32.xlu1 %v3316_v57, %s10615_s15  ;;  %v3103_v57 = vsel %vm19465_vm10, %v3037_v13, 0  ;;  %3120 = vst [vmem:[#allocation3 + $0x250] sm:$0xff] %v3104_v36  ;;  %v3105_v20 = vsel %vm19472_vm3, %v3039_v48, 0  ;;  %vm1756_vm4 = vmpackc.low %vm14638_vm1, %vm14634_vm6  ;;  %v18554_v17 = vrot.slane %v19480_v1, 4  ;;  %vm19481_vm0 = vcmask 1039360  }
 0x22b   : > { %3119 = vst [vmem:[#allocation3 + $0x248] sm:$0xff] %v3103_v57  ;;  %v2801_v13 = vsel %vm19481_vm0, %v2800_v23, %v19464_v11  ;;  %v4124_v57 = vld [vmem:[#allocation2 + $0x14] sm:$0xff]  ;;  %v1764_v36 = vsel %vm1756_vm4, 65537, %v19014_v42  ;;  %vm3939_vm10 = vmpackc.low %vm14665_vm8, %vm14660_vm2  ;;  %vm14699_vm14 = vcmp.eq.s32.totalorder %v2734_v41, 1  ;;  %vm14703_vm5 = vcmp.eq.s32.totalorder %v2735_v9, 1 }
 0x22c   : > { %3121 = vst [vmem:[#allocation3 + $0x258] sm:$0xff] %v3105_v20  ;;  %v4302_v48 = vsel %vm4257_vm11, %v4124_v57, 0  ;;  %vm19488_vm6 = vmmov %vm19475_vm9  ;;  %v2832_v16 = vunpack.c.h.b16 %v2801_v13  ;;  %vm19497_vm9 = vcmask 7168   ;;  %vm19504_vm2 = vcmask 121856  }
 0x22d   : > { %v4227_v26 = vsel %vm19488_vm6, %v4216_v53, %v18554_v17  ;;  %vm2760_vm11 = vmpackc.low %vm14703_vm5, %vm14699_vm14  ;;  %v19490_v53 = vld [vmem:[#allocation59_spill] sm:$0xff] }
 0x22e   : > { %v4228_v14 = vsel %vm19489_vm15, %v4227_v26, %v19480_v1  ;;  %v18555_v27 = vrot.slane %v19490_v53, 4  ;;  %vm14742_vm1 = vcmp.ne.s32.totalorder %v2832_v16, %v18983_v43  ;;  %vm19496_vm3 = vmmov %vm19488_vm6  ;;  %v2768_v57 = vsel %vm2760_vm11, 65537, %v19014_v42  ;;  %v10232_v16 = vld [vmem:[#allocation3 + $0x404] sm:$0xf] }
 0x22f   : > { %4208 = vrot.lane.b32.xlu2 %v4195_v63, %s10611_s26  ;;  %v4355_v52 = vpop.permute.xlu0 %4354  ;;  %v14679_v54 = vpop.permute.xlu1 %2913  ;;  %v4258_v7 = vunpack.c.l.b16 %v4228_v14  ;;  %vm19498_vm4 = vmmov %vm19496_vm3 }
 0x230   : > { %3346 = vrot.lane.b32.xlu0 %v3307_v19, %s10615_s15  ;;  %v14670_v31 = vpop.permute.xlu2 %2577  ;;  %v4381_v33 = vrot.slane %v4355_v52, 4  ;;  %v14688_v19 = vld [vmem:[#allocation2 + $0x24] sm:$0xff]  ;;  %v18549_v58 = vrot.slane %v14679_v54, 4  ;;  %vm19511_vm5 = vmmov %vm19496_vm3 }
 0x231   : > { %v3972_v60 = vsel %vm3939_vm10, %v14688_v19, 0  ;;  %vm19512_vm6 = vmmov %vm19496_vm3 }
 0x232   : > { %4358 = vrot.lane.b32.xlu1 %v4311_v62, %s10621_s23  ;;  %v4406_v37 = vsel %vm19482_vm12, %v4381_v33, %v18551_v5  ;;  %v2831_v62 = vunpack.c.l.b16 %v2801_v13  ;;  %v3832_v13 = vperm.slane %v19207_v40, 6  ;;  %vm19513_vm11 = vmmov %vm19496_vm3 }
 0x233   : > { %v4407_v63 = vsel %vm19483_vm13, %v4355_v52, %v4406_v37  ;;  %v3833_v37 = vperm.slane %v19207_v40, 7  ;;  %v4259_v40 = vunpack.c.h.b16 %v4228_v14  ;;  %v8849_v14 = vor.u32 %v10225_v28, %v8848_v0  ;;  %vm19514_vm15 = vmmov %vm19497_vm9 }
 0x234   : > { %4446 = vst [vmem:[#allocation3 + $0x440] sm:$0xff] %v4407_v63  ;;  %vm14737_vm7 = vcmp.ne.s32.totalorder %v2831_v62, %v18980_v35  ;;  %vm14774_vm12 = vcmp.eq.s32.totalorder %v3832_v13, 1  ;;  %v2955_v28 = vrot.slane %v14494_v15, 4 }
 0x235   : > { %vm2837_vm0 = vmpackc.low %vm14742_vm1, %vm14737_vm7  ;;  %vm14778_vm13 = vcmp.eq.s32.totalorder %v3833_v37, 1  ;;  %vm14812_vm14 = vcmp.ne.s32.totalorder %v4259_v40, %v18983_v43 }
 0x236   : > { %v2885_v37 = vsel %vm2837_vm0, %v14784_v12, 0  ;;  %vm3857_vm8 = vmpackc.low %vm14778_vm13, %vm14774_vm12 }
 0x237   : > { %1777 = vrot.lane.b32.xlu2 %v1764_v36, %s10621_s23  ;;  %v14720_v20 = vpop.permute.xlu0 %2911  ;;  %v14734_v33 = vpop.permute.xlu1 %3544  ;;  %v14754_v36 = vld [vmem:[#allocation2 + $0x6c] sm:$0xff]  ;;  %vm19522_vm12 = vmmov %vm19514_vm15 }
 0x238   : > { %4340 = vrot.lane.b32.xlu0 %v4302_v48, %s10621_s23  ;;  %v14731_v23 = vpop.permute.xlu2 %2597  ;;  %v18559_v52 = vrot.slane %v14720_v20, 4  ;;  %v8904_v48 = vld [vmem:[#allocation3 + $0x400] sm:$0xf]  ;;  %v3981_v10 = vsel %vm3939_vm10, %v14754_v36, 0  ;;  %vm14807_vm10 = vcmp.ne.s32.totalorder %v4258_v7, %v18980_v35 }
 0x239   : > { %19491 = vst [vmem:[#allocation29_spill] sm:$0xff] %v14731_v23 }
 0x23a   : > { %4012 = vrot.lane.b32.xlu1 %v3972_v60, %s10620_s18  ;;  %v2966_v63 = vsel %vm19496_vm3, %v18559_v52, %v18549_v58  ;;  %v3565_v58 = vsel %vm19498_vm4, %v3553_v59, %v18555_v27  ;;  %v10209_v59 = vld [vmem:[#allocation3 + $0x344] sm:$0xf0]  ;;  %vm19515_vm3 = vmmov %vm19504_vm2 }
 0x23b   : > { %v2967_v26 = vsel %vm19497_vm9, %v14720_v20, %v2966_v63  ;;  %v10240_v62 = vld [vmem:[#allocation3 + $0x43c] sm:$0xf0]  ;;  %v8906_v60 = vld [vmem:[#allocation3 + $0x440] sm:$0xf0]  ;;  %v3566_v8 = vsel %vm19504_vm2, %v3565_v58, %v19490_v53  ;;  %vm19516_vm9 = vmmov %vm19498_vm4 }
 0x23c   : > { %3013 = vst [vmem:[#allocation3 + $0x188] sm:$0xff] %v2967_v26  ;;  %v8905_v6 = vor.u32 %v10240_v62, %v8904_v48  ;;  %v8909_v5 = vor.u32 %v10232_v16, %v8906_v60  ;;  %v19503_v26 = vld [vmem:[#allocation19_spill] sm:$0xff]  ;;  %v2401_v16 = vperm.slane %v13527_v18, 5  ;;  %v2612_v60 = vrot.slane %v14670_v31, 4  ;;  %vm4264_vm4 = vmpackc.low %vm14812_vm14, %vm14807_vm10 }
 0x23d   : > { %v18569_v62 = vrot.slane %v19503_v26, 4  ;;  %v3602_v63 = vunpack.c.h.b16 %v3566_v8 }
 0x23e   : > { %5354 = vmatpush.bf16.msra.mxu1 %v8905_v6  ;;  %5380 = vmatpush.bf16.msra.mxu3 %v8909_v5  ;;  %v2400_v5 = vperm.slane %v13527_v18, 4  ;;  %vm14853_vm1 = vcmp.eq.s32.totalorder %v2401_v16, 1 }
 0x23f   : > { %4030 = vrot.lane.b32.xlu2 %v3981_v10, %s10620_s18  ;;  %v14789_v13 = vpop.permute.xlu0 %2931 }
 0x240   : > { %2782 = vrot.lane.b32.xlu0 %v2768_v57, %s10615_s15  ;;  %v8784_v57 = vld [vmem:[#allocation3 + $0x308] sm:$0xf]  ;;  %v2576_v6 = vpop.permute.xlu2 %2575  ;;  %v18561_v0 = vrot.slane %v14789_v13, 4  ;;  %vm14849_vm7 = vcmp.eq.s32.totalorder %v2400_v5, 1 }
 0x241   : > { %v8785_v58 = vor.u32 %v10209_v59, %v8784_v57  ;;  %v2611_v10 = vrot.slane %v2576_v6, 4  ;;  %v19509_v57 = vld [vmem:[#allocation27_spill] sm:$0xff]  ;;  %vm2426_vm13 = vmpackc.low %vm14853_vm1, %vm14849_vm7 }
 0x242   : > { %5386 = vmatpush.bf16.msrb.mxu1 %v8849_v14  ;;  %2933 = vrot.lane.b32.xlu1 %v2885_v37, %s10614_s11  ;;  %v2928_v14 = vpop.permute.xlu1 %2927  ;;  %v3601_v37 = vunpack.c.l.b16 %v3566_v8  ;;  %v19510_v17 = vrot.slane %v19509_v57, 4  ;;  %v2982_v2 = vsel %vm19512_vm6, %v2955_v28, %v18561_v0  ;;  %v3865_v57 = vsel %vm3857_vm8, 65537, %v19014_v42  ;;  %vm19529_vm6 = vmmov %vm19522_vm12 }
 0x243   : > { %v2954_v7 = vrot.slane %v2928_v14, 4  ;;  %v2629_v40 = vsel %vm19513_vm11, %v2611_v10, %v2612_v60  ;;  %v2983_v52 = vsel %vm19514_vm15, %v14494_v15, %v2982_v2  ;;  %v10193_v15 = vld [vmem:[#allocation3 + $0x2c4] sm:$0xf0]  ;;  %v4312_v8 = vsel %vm4264_vm4, %v14222_v45, 0  ;;  %vm19530_vm11 = vmmov %vm19511_vm5 }
 0x244   : > { %v2466_v27 = vsel %vm19511_vm5, %v19510_v17, %v18569_v62  ;;  %v2876_v17 = vsel %vm2837_vm0, %v14824_v4, 0  ;;  %v2631_v10 = vsel %vm19515_vm3, %v2576_v6, %v2629_v40  ;;  %3021 = vst [vmem:[#allocation3 + $0x1c8] sm:$0xff] %v2983_v52  ;;  %vm19521_vm0 = vcmask 924672   ;;  %v10177_v6 = vld [vmem:[#allocation3 + $0x244] sm:$0xf0]  ;;  %vm19532_vm3 = vmmov %vm19511_vm5 }
 0x245   : > { %v2980_v2 = vsel %vm19516_vm9, %v2954_v7, %v2955_v28  ;;  %v2467_v52 = vsel %vm19521_vm0, %v2466_v27, %v19503_v26  ;;  %2678 = vst [vmem:[#allocation3 + $0x100] sm:$0xff] %v2631_v10  ;;  %v8721_v28 = vor.u32 %v10193_v15, %v8720_v29  ;;  %v19523_v7 = vld [vmem:[#allocation78_spill] sm:$0xff]  ;;  %vm14879_vm2 = vcmp.ne.s32.totalorder %v3601_v37, %v18980_v35  ;;  %vm19543_vm1 = vmmov %vm19529_vm6 }
 0x246   : > { %5387 = vmatpush.bf16.msrb.mxu1 %v8785_v58  ;;  %v2981_v48 = vsel %vm19522_vm12, %v2928_v14, %v2980_v2  ;;  %v2497_v27 = vunpack.c.l.b16 %v2467_v52  ;;  %v2498_v29 = vunpack.c.h.b16 %v2467_v52  ;;  %v8656_v14 = vld [vmem:[#allocation3 + $0x208] sm:$0xf]  ;;  %v18566_v40 = vrot.slane %v19523_v7, 4  ;;  %vm19544_vm12 = vmmov %vm19532_vm3 }
 0x247   : > { %3020 = vst [vmem:[#allocation3 + $0x1c0] sm:$0xff] %v2981_v48  ;;  %3880 = vrot.lane.b32.xlu2 %v3865_v57, %s10612_s27  ;;  %v2910_v58 = vpop.permute.xlu0 %2909  ;;  %vm14884_vm8 = vcmp.ne.s32.totalorder %v3602_v63, %v18983_v43  ;;  %v18560_v2 = vrot.slane %v14731_v23, 4  ;;  %v19528_v15 = vrot.slane %v14720_v20, 4  ;;  %v2434_v52 = vsel %vm2426_vm13, 65537, %v19014_v42  ;;  %v8592_v48 = vld [vmem:[#allocation3 + $0x188] sm:$0xf] }
 0x248   : > { %2915 = vrot.lane.b32.xlu0 %v2876_v17, %s10614_s11  ;;  %v14872_v5 = vpop.permute.xlu2 %2245  ;;  %v2945_v16 = vrot.slane %v2910_v58, 4  ;;  %v8657_v17 = vor.u32 %v10177_v6, %v8656_v14  ;;  %v3500_v63 = vperm.slane %v19407_v61, 6  ;;  %v3501_v6 = vperm.slane %v19407_v61, 7  ;;  %vm3607_vm15 = vmpackc.low %vm14884_vm8, %vm14879_vm2 }
 0x249   : > { %v19531_v61 = vrot.slane %v13482_v46, 4  ;;  %vm19533_vm9 = vcmask 121856   ;;  %vm14922_vm10 = vcmp.ne.s32.totalorder %v2497_v27, %v18980_v35  ;;  %vm14927_vm14 = vcmp.ne.s32.totalorder %v2498_v29, %v18983_v43  ;;  %v19538_v46 = vld [vmem:[#allocation60_spill] sm:$0xff] }
 0x24a   : > { %5388 = vmatpush.bf16.msrb.mxu1 %v8721_v28  ;;  %4360 = vrot.lane.b32.xlu1 %v4312_v8, %s10621_s23  ;;  %v14876_v57 = vpop.permute.xlu1 %2595  ;;  %v2963_v41 = vsel %vm19511_vm5, %v2945_v16, %v19528_v15  ;;  %v18567_v59 = vrot.slane %v19538_v46, 4  ;;  %v3649_v27 = vsel %vm3607_vm15, %v14754_v36, 0  ;;  %vm14944_vm7 = vcmp.eq.s32.totalorder %v3501_v6, 1  ;;  %vm2503_vm0 = vmpackc.low %vm14927_vm14, %vm14922_vm10 }
 0x24b   : > { %v2621_v9 = vrot.slane %v14876_v57, 4  ;;  %v2965_v37 = vsel %vm19529_vm6, %v2910_v58, %v2963_v41  ;;  %v10161_v28 = vld [vmem:[#allocation3 + $0x1c4] sm:$0xf0]  ;;  %v4303_v58 = vsel %vm4264_vm4, %v14109_v55, 0  ;;  %v3233_v16 = vsel %vm19532_vm3, %v19531_v61, %v18566_v40  ;;  %vm19547_vm5 = vmmov %vm19532_vm3 }
 0x24c   : > { %3012 = vst [vmem:[#allocation3 + $0x180] sm:$0xff] %v2965_v37  ;;  %v8593_v8 = vor.u32 %v10161_v28, %v8592_v48  ;;  %vm14940_vm4 = vcmp.eq.s32.totalorder %v3500_v63, 1  ;;  %v3234_v41 = vsel %vm19543_vm1, %v3233_v16, %v19523_v7  ;;  %v2066_v28 = vperm.slane %v19422_v39, 4  ;;  %vm19548_vm6 = vmmov %vm19533_vm9  ;;  %v8520_v40 = vld [vmem:[#allocation3 + $0x100] sm:$0xf] }
 0x24d   : > { %v2648_v20 = vsel %vm19530_vm11, %v2621_v9, %v18560_v2  ;;  %v2067_v63 = vperm.slane %v19422_v39, 5  ;;  %vm3525_vm13 = vmpackc.low %vm14944_vm7, %vm14940_vm4  ;;  %v3640_v15 = vsel %vm3607_vm15, %v14688_v19, 0  ;;  %vm19553_vm2 = vcmask 916480  }
 0x24e   : > { %5389 = vmatpush.bf16.msrb.mxu1 %v8657_v17  ;;  %v2649_v14 = vsel %vm19533_vm9, %v14876_v57, %v2648_v20  ;;  %v10160_v20 = vld [vmem:[#allocation3 + $0x1bc] sm:$0xf0]  ;;  %v8586_v0 = vld [vmem:[#allocation3 + $0x1c0] sm:$0xf0]  ;;  %vm14992_vm11 = vcmp.eq.s32.totalorder %v2066_v28, 1  ;;  %vm19558_vm4 = vmmov %vm19547_vm5  ;;  %vm19559_vm1 = vcmask 130048  }
 0x24f   : > { %2687 = vst [vmem:[#allocation3 + $0x148] sm:$0xff] %v2649_v14  ;;  %2448 = vrot.lane.b32.xlu2 %v2434_v52, %s10617_s16  ;;  %v14932_v17 = vpop.permute.xlu0 %2579  ;;  %vm14996_vm3 = vcmp.eq.s32.totalorder %v2067_v63, 1  ;;  %v19561_v55 = vrot.slane %v19560_v38, 4  ;;  %vm19562_vm10 = vmmov %vm19558_vm4  ;;  %v1732_v38 = vperm.slane %v19463_v25, 5 }
 0x250   : > { %4342 = vrot.lane.b32.xlu0 %v4303_v58, %s10621_s23  ;;  %v14950_v52 = vpop.permute.xlu2 %4206  ;;  %v18562_v37 = vrot.slane %v14932_v17, 4  ;;  %v3269_v58 = vunpack.c.l.b16 %v3234_v41  ;;  %vm2092_vm8 = vmpackc.low %vm14996_vm3, %vm14992_vm11 }
 0x251   : > { %vm19574_vm3 = vmmov %vm19558_vm4 }
 0x252   : > { %5390 = vmatpush.bf16.msrb.mxu1 %v8593_v8  ;;  %3698 = vrot.lane.b32.xlu1 %v3649_v27, %s10617_s16  ;;  %v14954_v48 = vpop.permute.xlu1 %1775  ;;  %v2632_v6 = vsel %vm19544_vm12, %v2612_v60, %v18562_v37  ;;  %v19545_v8 = vld [vmem:[#allocation66_spill] sm:$0xff]  ;;  %v3270_v60 = vunpack.c.h.b16 %v3234_v41  ;;  %v3533_v41 = vsel %vm3525_vm13, 65537, %v19014_v42  ;;  %vm15015_vm15 = vcmp.ne.s32.totalorder %v3269_v58, %v18980_v35 }
 0x253   : > { %v19546_v61 = vrot.slane %v19545_v8, 4  ;;  %v2633_v14 = vsel %vm19548_vm6, %v14670_v31, %v2632_v6  ;;  %v8584_v27 = vld [vmem:[#allocation3 + $0x180] sm:$0xf]  ;;  %v10152_v2 = vld [vmem:[#allocation3 + $0x184] sm:$0xf]  ;;  %v2542_v31 = vsel %vm2503_vm0, %v14824_v4, 0  ;;  %vm19573_vm6 = vmmov %vm19558_vm4 }
 0x254   : > { %2679 = vst [vmem:[#allocation3 + $0x108] sm:$0xff] %v2633_v14  ;;  %v8585_v29 = vor.u32 %v10160_v20, %v8584_v27  ;;  %v8589_v37 = vor.u32 %v10152_v2, %v8586_v0  ;;  %vm15020_vm9 = vcmp.ne.s32.totalorder %v3270_v60, %v18983_v43  ;;  %v2100_v27 = vsel %vm2092_vm8, 65537, %v19014_v42 }
 0x255   : > { %v2132_v16 = vsel %vm19547_vm5, %v19546_v61, %v18567_v59  ;;  %v18565_v61 = vrot.slane %v14220_v3, 4  ;;  %v3168_v58 = vperm.slane %v19408_v32, 6  ;;  %vm3275_vm7 = vmpackc.low %vm15020_vm9, %vm15015_vm15  ;;  %vm19571_vm5 = vcmask 908288   ;;  %v10136_v59 = vld [vmem:[#allocation3 + $0x104] sm:$0xf] }
 0x256   : > { %v2133_v0 = vsel %vm19553_vm2, %v2132_v16, %v19538_v46  ;;  %5338 = vmatpush.bf16.msra.mxu0 %v8585_v29  ;;  %5364 = vmatpush.bf16.msra.mxu2 %v8589_v37  ;;  %v18563_v16 = vrot.slane %v14872_v5, 4  ;;  %v3169_v29 = vperm.slane %v19408_v32, 7  ;;  %v18564_v32 = vrot.slane %v14467_v24, 4 }
 0x257   : > { %2581 = vrot.lane.b32.xlu2 %v2542_v31, %s10613_s30  ;;  %v15003_v10 = vpop.permute.xlu0 %3212  ;;  %v2163_v28 = vunpack.c.l.b16 %v2133_v0  ;;  %v2164_v8 = vunpack.c.h.b16 %v2133_v0  ;;  %v2551_v31 = vsel %vm2503_vm0, %v14784_v12, 0  ;;  %v1798_v0 = vsel %vm19562_vm10, %v19561_v55, %v18565_v61 }
 0x258   : > { %3680 = vrot.lane.b32.xlu0 %v3640_v15, %s10617_s16  ;;  %vm15071_vm12 = vcmp.eq.s32.totalorder %v3168_v58, 1  ;;  %vm15075_vm13 = vcmp.eq.s32.totalorder %v3169_v29, 1  ;;  %v1731_v29 = vperm.slane %v19463_v25, 4  ;;  %vm19575_vm8 = vcmask 121856  }
 0x259   : > { %v15005_v2 = vpop.permute.xlu2 %3878  ;;  %vm15056_vm14 = vcmp.ne.s32.totalorder %v2163_v28, %v18980_v35  ;;  %vm15061_vm0 = vcmp.ne.s32.totalorder %v2164_v8, %v18983_v43  ;;  %vm3193_vm2 = vmpackc.low %vm15075_vm13, %vm15071_vm12  ;;  %v3308_v57 = vsel %vm3275_vm7, %v14688_v19, 0  ;;  %vm15127_vm10 = vcmp.eq.s32.totalorder %v1732_v38, 1 }
 0x25a   : > { %3548 = vrot.lane.b32.xlu1 %v3533_v41, %s10613_s30  ;;  %v15012_v63 = vpop.permute.xlu1 %2243  ;;  %v10145_v41 = vld [vmem:[#allocation3 + $0x144] sm:$0xf0]  ;;  %vm2169_vm11 = vmpackc.low %vm15061_vm0, %vm15056_vm14  ;;  %v18573_v19 = vrot.slane %v14578_v30, 4  ;;  %v19600_v37 = vrot.slane %v19503_v26, 4 }
 0x25b   : > { %v18568_v14 = vrot.slane %v15012_v63, 4  ;;  %v8528_v15 = vld [vmem:[#allocation3 + $0x108] sm:$0xf]  ;;  %vm19586_vm12 = vmmov %vm19574_vm3 }
 0x25c   : > { %v8529_v45 = vor.u32 %v10145_v41, %v8528_v15  ;;  %vm19587_vm13 = vmmov %vm19574_vm3 }
 0x25d   : > { %v2298_v60 = vsel %vm19558_vm4, %v18568_v14, %v18563_v16  ;;  %vm19576_vm4 = vcmask 1039360   ;;  %v19588_v14 = vld [vmem:[#allocation76_spill] sm:$0xff] }
 0x25e   : > { %v2299_v6 = vsel %vm19559_vm1, %v15012_v63, %v2298_v60  ;;  %5391 = vmatpush.bf16.msrb.mxu1 %v8529_v45  ;;  %vm15123_vm1 = vcmp.eq.s32.totalorder %v1731_v29, 1  ;;  %v19589_v62 = vrot.slane %v19588_v14, 4 }
 0x25f   : > { %2345 = vst [vmem:[#allocation3 + $0x88] sm:$0xff] %v2299_v6  ;;  %2114 = vrot.lane.b32.xlu2 %v2100_v27, %s10620_s18  ;;  %v2594_v15 = vpop.permute.xlu0 %2593  ;;  %v1799_v6 = vsel %vm19571_vm5, %v1798_v0, %v14220_v3  ;;  %vm1757_vm15 = vmpackc.low %vm15127_vm10, %vm15123_vm1 }
 0x260   : > { %2599 = vrot.lane.b32.xlu0 %v2551_v31, %s10613_s30  ;;  %v3317_v31 = vsel %vm3275_vm7, %v14754_v36, 0  ;;  %v2620_v41 = vrot.slane %v2594_v15, 4  ;;  %v19572_v36 = vrot.slane %v19464_v11, 4  ;;  %v1829_v0 = vunpack.c.l.b16 %v1799_v6  ;;  %vm19590_vm5 = vmmov %vm19574_vm3 }
 0x261   : > { %v15079_v8 = vpop.permute.xlu2 %1927 }
 0x262   : > { %3366 = vrot.lane.b32.xlu1 %v3317_v31, %s10615_s15  ;;  %v2802_v58 = vsel %vm19573_vm6, %v19572_v36, %v18564_v32  ;;  %v15089_v45 = vpop.permute.xlu1 %2263  ;;  %v2646_v55 = vsel %vm19574_vm3, %v2620_v41, %v2621_v9  ;;  %v1830_v31 = vunpack.c.h.b16 %v1799_v6  ;;  %v2208_v9 = vsel %vm2169_vm11, %v14824_v4, 0 }
 0x263   : > { %v2647_v11 = vsel %vm19575_vm8, %v2594_v15, %v2646_v55  ;;  %v15107_v36 = vsel %vm19576_vm4, %v2802_v58, %v14467_v24  ;;  %v3201_v15 = vsel %vm3193_vm2, 65537, %v19014_v42  ;;  %v18572_v6 = vrot.slane %v15089_v45, 4  ;;  %vm19593_vm2 = vmmov %vm19590_vm5 }
 0x264   : > { %2686 = vst [vmem:[#allocation3 + $0x140] sm:$0xff] %v2647_v11  ;;  %v2838_v20 = vunpack.c.l.b16 %v15107_v36  ;;  %v2839_v41 = vunpack.c.h.b16 %v15107_v36  ;;  %vm15144_vm9 = vcmp.ne.s32.totalorder %v1829_v0, %v18980_v35  ;;  %vm15150_vm7 = vcmp.ne.s32.totalorder %v1830_v31, %v18983_v43  ;;  %vm19601_vm4 = vmmov %vm19593_vm2 }
 0x265   : > { %v19585_v0 = vrot.slane %v19436_v50, 4  ;;  %vm19591_vm6 = vcmask 130048   ;;  %v2217_v50 = vsel %vm2169_vm11, %v14784_v12, 0  ;;  %vm19592_vm3 = vcmask 916480   ;;  %vm1835_vm14 = vmpackc.low %vm15150_vm7, %vm15144_vm9 }
 0x266   : > { %vm19594_vm0 = vmmov %vm19591_vm6  ;;  %v18575_v36 = vrot.slane %v14734_v33, 4 }
 0x267   : > { %2247 = vrot.lane.b32.xlu2 %v2208_v9, %s10612_s27  ;;  %v4163_v9 = vperm.slane %v19447_v44, 5  ;;  %v3899_v32 = vsel %vm19586_vm12, %v19585_v0, %v18573_v19  ;;  %v1765_v0 = vsel %vm1757_vm15, 65537, %v19014_v42  ;;  %vm19602_vm1 = vmmov %vm19594_vm0  ;;  %vm15223_vm15 = vcmp.ne.s32.totalorder %v2838_v20, %v18980_v35 }
 0x268   : > { %3348 = vrot.lane.b32.xlu0 %v3308_v57, %s10615_s15  ;;  %v4162_v57 = vperm.slane %v19447_v44, 4  ;;  %vm15231_vm12 = vcmp.ne.s32.totalorder %v2839_v41, %v18983_v43  ;;  %v8372_v41 = vld [vmem:[%s18337_s1 + $0x44] ss:$8 sm:$0xf]  ;;  %vm19616_vm7 = vmmov %vm19593_vm2 }
 0x269   : > { %v15136_v58 = vpop.permute.xlu2 %4010  ;;  %vm15196_vm8 = vcmp.eq.s32.totalorder %v4163_v9, 1 }
 0x26a   : > { %v2262_v28 = vpop.permute.xlu0 %2261  ;;  %3216 = vrot.lane.b32.xlu1 %v3201_v15, %s10614_s11  ;;  %v18574_v55 = vrot.slane %v15136_v58, 4  ;;  %vm15192_vm11 = vcmp.eq.s32.totalorder %v4162_v57, 1 }
 0x26b   : > { %v2287_v29 = vrot.slane %v2262_v28, 4  ;;  %v8522_v19 = vld [vmem:[#allocation3 + $0x140] sm:$0xf0]  ;;  %vm4188_vm10 = vmpackc.low %vm15196_vm8, %vm15192_vm11  ;;  %vm19614_vm11 = vcmask 138240  }
 0x26c   : > { %v2260_v11 = vpop.permute.xlu1 %2259  ;;  %v4062_v23 = vsel %vm19590_vm5, %v19589_v62, %v18574_v55  ;;  %vm19609_vm5 = vcmask 924672   ;;  %vm2844_vm8 = vmpackc.low %vm15231_vm12, %vm15223_vm15 }
 0x26d   : > { %v2314_v61 = vsel %vm19587_vm13, %v2287_v29, %v18572_v6  ;;  %v2286_v31 = vrot.slane %v2260_v11, 4  ;;  %v10144_v6 = vld [vmem:[#allocation3 + $0x13c] sm:$0xf0]  ;;  %v4063_v62 = vsel %vm19592_vm3, %v19588_v14, %v4062_v23  ;;  %v19599_v14 = vrot.slane %v14423_v56, 4  ;;  %vm19623_vm15 = vmmov %vm19593_vm2 }
 0x26e   : > { %v2315_v15 = vsel %vm19591_vm6, %v2262_v28, %v2314_v61  ;;  %v8521_v60 = vor.u32 %v10144_v6, %v8520_v40  ;;  %v8525_v28 = vor.u32 %v10136_v59, %v8522_v19  ;;  %4108 = vst [vmem:[#allocation3 + $0x390] sm:$0xff] %v4063_v62  ;;  %v2736_v40 = vperm.slane %v13311_v22, 6  ;;  %vm19611_vm6 = vmmov %vm19593_vm2 }
 0x26f   : > { %2353 = vst [vmem:[#allocation3 + $0xc8] sm:$0xff] %v2315_v15  ;;  %v2312_v61 = vsel %vm19593_vm2, %v2286_v31, %v2287_v29  ;;  %1779 = vrot.lane.b32.xlu2 %v1765_v0, %s10621_s23  ;;  %v2737_v59 = vperm.slane %v13311_v22, 7  ;;  %v2468_v19 = vsel %vm19601_vm4, %v19600_v37, %v19599_v14  ;;  %v1883_v29 = vsel %vm1835_vm14, %v14784_v12, 0  ;;  %vm19626_vm12 = vmmov %vm19593_vm2 }
 0x270   : > { %v2313_v16 = vsel %vm19594_vm0, %v2260_v11, %v2312_v61  ;;  %2265 = vrot.lane.b32.xlu0 %v2217_v50, %s10612_s27  ;;  %5339 = vmatpush.bf16.msra.mxu0 %v8521_v60  ;;  %v18578_v11 = vrot.slane %v14590_v34, 4  ;;  %v3900_v22 = vsel %vm19602_vm1, %v3899_v32, %v14578_v30  ;;  %v1953_v12 = vrot.slane %v15079_v8, 4  ;;  %v8464_v61 = vld [vmem:[#allocation3 + $0x88] sm:$0xf] }
 0x271   : > { %2352 = vst [vmem:[#allocation3 + $0xc0] sm:$0xff] %v2313_v16  ;;  %5365 = vmatpush.bf16.msra.mxu2 %v8525_v28  ;;  %v1926_v57 = vpop.permute.xlu2 %1925  ;;  %vm15235_vm13 = vcmp.eq.s32.totalorder %v2736_v40, 1  ;;  %v15241_v20 = vsel %vm19609_vm5, %v2468_v19, %v14423_v56  ;;  %v19610_v0 = vrot.slane %v15012_v63, 4  ;;  %vm15246_vm3 = vcmp.eq.s32.totalorder %v2737_v59, 1 }
 0x272   : > { %v2242_v6 = vpop.permute.xlu0 %2241  ;;  %1931 = vrot.lane.b32.xlu1 %v1883_v29, %s10611_s26  ;;  %v1952_v15 = vrot.slane %v1926_v57, 4  ;;  %v3940_v28 = vunpack.c.l.b16 %v3900_v22  ;;  %v4196_v63 = vsel %vm4188_vm10, 65537, %v19014_v42  ;;  %v8373_v40 = vld [vmem:[%s18337_s1 + $0x44] ss:$8 sm:$0xf0]  ;;  %v1874_v14 = vsel %vm1835_vm14, %v14824_v4, 0  ;;  %vm2761_vm4 = vmpackc.low %vm15246_vm3, %vm15235_vm13 }
 0x273   : > { %v2277_v9 = vrot.slane %v2242_v6, 4  ;;  %v3049_v19 = vor.u32 %v8373_v40, %v8372_v41  ;;  %v2504_v38 = vunpack.c.l.b16 %v15241_v20  ;;  %v2505_v4 = vunpack.c.h.b16 %v15241_v20  ;;  %v15281_v29 = vld [vmem:[#allocation2 + $0x68] sm:$0xff]  ;;  %vm19622_vm10 = vmmov %vm19593_vm2 }
 0x274   : > { %v15228_v31 = vpop.permute.xlu1 %1911  ;;  %v1978_v16 = vsel %vm19593_vm2, %v1952_v15, %v1953_v12  ;;  %v2886_v20 = vsel %vm2844_vm8, %v15281_v29, 0  ;;  %v2769_v26 = vsel %vm2761_vm4, 65537, %v19014_v42  ;;  %vm15319_vm14 = vcmp.ne.s32.totalorder %v3940_v28, %v18980_v35  ;;  %vm19627_vm13 = vmmov %vm19614_vm11 }
 0x275   : > { %v2295_v62 = vsel %vm19611_vm6, %v2277_v9, %v19610_v0  ;;  %v1979_v59 = vsel %vm19614_vm11, %v1926_v57, %v1978_v16  ;;  %vm3051_vm9 = vcmp.ne.f32.partialorder %v3049_v19, 0.0  ;;  %v19615_v57 = vrot.slane %v19538_v46, 4 }
 0x276   : > { %v2297_v27 = vsel %vm19594_vm0, %v2242_v6, %v2295_v62  ;;  %v10129_v23 = vld [vmem:[#allocation3 + $0xc4] sm:$0xf0]  ;;  %v3941_v6 = vunpack.c.h.b16 %v3900_v22  ;;  %2018 = vst [vmem:[#allocation3 + $0x40] sm:$0xff] %v1979_v59  ;;  %v15283_v22 = vld [vmem:[#allocation2 + $0x20] sm:$0xff]  ;;  %v15305_v46 = vsel %vm3051_vm9, 1, %v19014_v42  ;;  %v18576_v62 = vrot.slane %v15228_v31, 4 }
 0x277   : > { %2344 = vst [vmem:[#allocation3 + $0x80] sm:$0xff] %v2297_v27  ;;  %v8465_v37 = vor.u32 %v10129_v23, %v8464_v61  ;;  %4210 = vrot.lane.b32.xlu2 %v4196_v63, %s10611_s26  ;;  %v2134_v9 = vsel %vm19616_vm7, %v19615_v57, %v18578_v11  ;;  %v2877_v0 = vsel %vm2844_vm8, %v15283_v22, 0  ;;  %v3062_v60 = vperm.slane %v15305_v46, 0 }
 0x278   : > { %1913 = vrot.lane.b32.xlu0 %v1874_v14, %s10611_s26  ;;  %vm15327_vm1 = vcmp.ne.s32.totalorder %v3941_v6, %v18983_v43  ;;  %v3063_v50 = vperm.slane %v15305_v46, 1  ;;  %v19621_v28 = vrot.slane %v19490_v53, 4  ;;  %v10128_v59 = vld [vmem:[#allocation3 + $0xbc] sm:$0xf0]  ;;  %v8458_v14 = vld [vmem:[#allocation3 + $0xc0] sm:$0xf0]  ;;  %vm15370_vm0 = vcmp.ne.s32.totalorder %v2504_v38, %v18980_v35 }
 0x279   : > { %5392 = vmatpush.bf16.msrb.mxu1 %v8465_v37  ;;  %v15308_v61 = vpop.permute.xlu2 %3678  ;;  %v2402_v37 = vperm.slane %v13527_v18, 6  ;;  %v2403_v19 = vperm.slane %v13527_v18, 7  ;;  %v19624_v6 = vld [vmem:[#allocation75_spill] sm:$0xff]  ;;  %vm3946_vm6 = vmpackc.low %vm15327_vm1, %vm15319_vm14  ;;  %vm15360_vm3 = vcmp.eq.s32.totalorder %v3062_v60, 1  ;;  %vm19630_vm2 = vcmask 916480   ;;  %v3034_v38 = vld [vmem:[#allocation2 + $0x34] sm:$0xff] }
 0x27a   : > { %v15290_v15 = vpop.permute.xlu0 %1909  ;;  %2935 = vrot.lane.b32.xlu1 %v2886_v20, %s10614_s11  ;;  %v18581_v16 = vrot.slane %v15308_v61, 4  ;;  %v3567_v23 = vsel %vm19622_vm10, %v19621_v28, %v18575_v36  ;;  %v19625_v57 = vrot.slane %v19624_v6, 4  ;;  %v3064_v36 = vperm.slane %v15305_v46, 2 }
 0x27b   : > { %v18577_v41 = vrot.slane %v15290_v15, 4  ;;  %vm15375_vm11 = vcmp.ne.s32.totalorder %v2505_v4, %v18983_v43  ;;  %vm15379_vm8 = vcmp.eq.s32.totalorder %v3063_v50, 1  ;;  %vm15386_vm4 = vcmp.eq.s32.totalorder %v2402_v37, 1 }
 0x27c   : > { %v15324_v27 = vpop.permute.xlu1 %2780  ;;  %v3730_v53 = vsel %vm19626_vm12, %v19625_v57, %v18581_v16  ;;  %vm15390_vm9 = vcmp.eq.s32.totalorder %v2403_v19, 1  ;;  %vm19641_vm7 = vcmask 121856   ;;  %vm3090_vm10 = vmpackc.low %vm15379_vm8, %vm15360_vm3  ;;  %v3040_v19 = vld [vmem:[#allocation2 + $0x6c] sm:$0xff]  ;;  %vm19646_vm3 = vcmask 1043456   ;;  %v3041_v16 = vld [vmem:[#allocation2 + $0x74] sm:$0xff] }
 0x27d   : > { %v1964_v40 = vsel %vm19623_vm15, %v18577_v41, %v18576_v62  ;;  %v3065_v62 = vperm.slane %v15305_v46, 3  ;;  %v3731_v41 = vsel %vm19609_vm5, %v19624_v6, %v3730_v53  ;;  %v3568_v4 = vsel %vm19641_vm7, %v3567_v23, %v14734_v33  ;;  %vm2427_vm5 = vmpackc.low %vm15390_vm9, %vm15386_vm4 }
 0x27e   : > { %v1965_v20 = vsel %vm19627_vm13, %v15290_v15, %v1964_v40  ;;  %v8456_v28 = vld [vmem:[#allocation3 + $0x80] sm:$0xf]  ;;  %v10120_v55 = vld [vmem:[#allocation3 + $0x84] sm:$0xf]  ;;  %v15366_v40 = vsel %vm19630_vm2, %v2134_v9, %v14590_v34  ;;  %3776 = vst [vmem:[#allocation3 + $0x310] sm:$0xff] %v3731_v41  ;;  %vm15408_vm15 = vcmp.eq.s32.totalorder %v3064_v36, 1  ;;  %vm2510_vm13 = vmpackc.low %vm15375_vm11, %vm15370_vm0  ;;  %v3609_v57 = vunpack.c.h.b16 %v3568_v4 }
 0x27f   : > { %2011 = vst [vmem:[#allocation3 + $0x8] sm:$0xff] %v1965_v20  ;;  %v8457_v18 = vor.u32 %v10128_v59, %v8456_v28  ;;  %v8461_v11 = vor.u32 %v10120_v55, %v8458_v14  ;;  %2784 = vrot.lane.b32.xlu2 %v2769_v26, %s10615_s15  ;;  %v15384_v9 = vld [vmem:[#allocation2 + $0x74] sm:$0xff]  ;;  %vm15412_vm12 = vcmp.eq.s32.totalorder %v3065_v62, 1  ;;  %v2170_v23 = vunpack.c.l.b16 %v15366_v40  ;;  %v3032_v36 = vld [vmem:[#allocation2 + $0x24] sm:$0xff]  ;;  %vm19648_vm8 = vmmov %vm19646_vm3 }
 0x280   : > { %2917 = vrot.lane.b32.xlu0 %v2877_v0, %s10614_s11  ;;  %v3982_v26 = vsel %vm3946_vm6, %v15384_v9, 0  ;;  %v2171_v62 = vunpack.c.h.b16 %v15366_v40  ;;  %v3098_v20 = vsel %vm3090_vm10, %v3032_v36, 0  ;;  %v3106_v28 = vsel %vm3090_vm10, %v3040_v19, 0  ;;  %v15436_v40 = vld [vmem:[#allocation2 + $0x2c] sm:$0xff]  ;;  %vm3091_vm2 = vmpackc.low %vm15412_vm12, %vm15408_vm15 }
 0x281   : > { %5340 = vmatpush.bf16.msra.mxu0 %v8457_v18  ;;  %5366 = vmatpush.bf16.msra.mxu2 %v8461_v11  ;;  %v15417_v14 = vpop.permute.xlu2 %2112  ;;  %v3608_v18 = vunpack.c.l.b16 %v3568_v4  ;;  %3114 = vst [vmem:[#allocation3 + $0x220] sm:$0xff] %v3098_v20  ;;  %v18584_v36 = vrot.slane %v15003_v10, 4  ;;  %v19647_v4 = vrot.slane %v14590_v34, 4  ;;  %vm19649_vm7 = vcmask 138240   ;;  %vm19662_vm9 = vmmov %vm19646_vm3 }
 0x282   : > { %v15396_v41 = vpop.permute.xlu0 %1929  ;;  %4032 = vrot.lane.b32.xlu1 %v3982_v26, %s10620_s18  ;;  %v18580_v6 = vrot.slane %v15417_v14, 4  ;;  %v3973_v20 = vsel %vm3946_vm6, %v15436_v40, 0  ;;  %3122 = vst [vmem:[#allocation3 + $0x260] sm:$0xff] %v3106_v28  ;;  %vm19650_vm10 = vcmask 916480   ;;  %v19651_v34 = vrot.slane %v15290_v15, 4 }
 0x283   : > { %v18579_v37 = vrot.slane %v15396_v41, 4  ;;  %v3067_v63 = vperm.slane %v15305_v46, 5  ;;  %v2543_v28 = vsel %vm2510_vm13, %v15283_v22, 0  ;;  %v2435_v15 = vsel %vm2427_vm5, 65537, %v19014_v42 }
 0x284   : > { %v1908_v53 = vpop.permute.xlu1 %1907  ;;  %v2136_v19 = vsel %vm19648_vm8, %v19647_v4, %v18580_v6  ;;  %v3033_v6 = vld [vmem:[#allocation2 + $0x2c] sm:$0xff]  ;;  %vm19652_vm8 = vmmov %vm19649_vm7  ;;  %vm15499_vm6 = vcmp.ne.s32.totalorder %v3608_v18, %v18980_v35  ;;  %vm15504_vm4 = vcmp.ne.s32.totalorder %v3609_v57, %v18983_v43  ;;  %vm15516_vm15 = vcmp.ne.s32.totalorder %v2170_v23, %v18980_v35 }
 0x285   : > { %v1980_v60 = vsel %vm19646_vm3, %v1953_v12, %v18579_v37  ;;  %v1943_v26 = vrot.slane %v1908_v53, 4  ;;  %v15458_v37 = vsel %vm19650_vm10, %v2136_v19, %v15417_v14  ;;  %vm15494_vm1 = vcmp.eq.s32.totalorder %v3067_v63, 1  ;;  %vm3614_vm10 = vmpackc.low %vm15504_vm4, %vm15499_vm6 }
 0x286   : > { %v1981_v12 = vsel %vm19649_vm7, %v15079_v8, %v1980_v60  ;;  %v3066_v8 = vperm.slane %v15305_v46, 4  ;;  %v3107_v60 = vsel %vm3091_vm2, %v3041_v16, 0  ;;  %v19661_v16 = vrot.slane %v19523_v7, 4  ;;  %vm19670_vm7 = vmmov %vm19646_vm3  ;;  %v8400_v0 = vld [vmem:[#allocation3 + $0x8] sm:$0xf] }
 0x287   : > { %2019 = vst [vmem:[#allocation3 + $0x48] sm:$0xff] %v1981_v12  ;;  %v1961_v4 = vsel %vm19646_vm3, %v1943_v26, %v19651_v34  ;;  %2583 = vrot.lane.b32.xlu2 %v2543_v28, %s10613_s30  ;;  %v3042_v12 = vld [vmem:[#allocation2 + $0x7c] sm:$0xff]  ;;  %vm15521_vm12 = vcmp.ne.s32.totalorder %v2171_v62, %v18983_v43  ;;  %v4218_v23 = vrot.slane %v14950_v52, 4  ;;  %v18583_v34 = vrot.slane %v14954_v48, 4 }
 0x288   : > { %v1963_v32 = vsel %vm19652_vm8, %v1908_v53, %v1961_v4  ;;  %4014 = vrot.lane.b32.xlu0 %v3973_v20, %s10620_s18  ;;  %v3099_v53 = vsel %vm3091_vm2, %v3033_v6, 0  ;;  %vm15490_vm14 = vcmp.eq.s32.totalorder %v3066_v8, 1  ;;  %v3235_v50 = vsel %vm19662_vm9, %v19661_v16, %v18584_v36  ;;  %3123 = vst [vmem:[#allocation3 + $0x268] sm:$0xff] %v3107_v60  ;;  %vm19674_vm9 = vmmov %vm19646_vm3 }
 0x289   : > { %2010 = vst [vmem:[#allocation3] sm:$0xff] %v1963_v32  ;;  %v15525_v20 = vpop.permute.xlu2 %4208  ;;  %vm3092_vm5 = vmpackc.low %vm15494_vm1, %vm15490_vm14  ;;  %vm19667_vm2 = vcmask 7168   ;;  %v19668_v32 = vld [vmem:[#allocation8_spill] sm:$0xff]  ;;  %vm19671_vm8 = vcmask 916480   ;;  %vm19672_vm14 = vcmask 138240   ;;  %v3641_v59 = vsel %vm3614_vm10, %v15436_v40, 0 }
 0x28a   : > { %v15513_v19 = vpop.permute.xlu0 %4028  ;;  %3115 = vst [vmem:[#allocation3 + $0x228] sm:$0xff] %v3099_v53  ;;  %2450 = vrot.lane.b32.xlu1 %v2435_v15, %s10617_s16  ;;  %v18582_v62 = vrot.slane %v15525_v20, 4  ;;  %v3100_v8 = vsel %vm3092_vm5, %v3034_v38, 0  ;;  %v3236_v63 = vsel %vm19667_vm2, %v3235_v50, %v15003_v10  ;;  %v19669_v28 = vrot.slane %v19668_v32, 4  ;;  %vm2176_vm1 = vmpackc.low %vm15521_vm12, %vm15516_vm15 }
 0x28b   : > { %v18585_v7 = vrot.slane %v15513_v19, 4  ;;  %v3108_v53 = vsel %vm3092_vm5, %v3042_v12, 0  ;;  %3116 = vst [vmem:[#allocation3 + $0x230] sm:$0xff] %v3100_v8  ;;  %v2552_v50 = vsel %vm2510_vm13, %v15281_v29, 0  ;;  %v8394_v8 = vld [vmem:[#allocation3 + $0x40] sm:$0xf0]  ;;  %v3277_v55 = vunpack.c.h.b16 %v3236_v63 }
 0x28c   : > { %v15536_v4 = vpop.permute.xlu1 %2446  ;;  %v4231_v60 = vsel %vm19646_vm3, %v4218_v23, %v18582_v62  ;;  %3124 = vst [vmem:[#allocation3 + $0x270] sm:$0xff] %v3108_v53  ;;  %v2068_v62 = vperm.slane %v19422_v39, 6  ;;  %vm19675_vm0 = vcmask 908288   ;;  %v19688_v11 = vrot.slane %v19480_v1, 4  ;;  %v4454_v1 = vld [vmem:[%s18340_s4] sm:$0xff] }
 0x28d   : > { %v4078_v15 = vsel %vm19670_vm7, %v19669_v28, %v18585_v7  ;;  %v15556_v16 = vsel %vm19672_vm14, %v4231_v60, %v15525_v20  ;;  %v19673_v28 = vrot.slane %v14220_v3, 4  ;;  %v3276_v60 = vunpack.c.l.b16 %v3236_v63  ;;  %vm19689_vm14 = vmmov %vm19674_vm9 }
 0x28e   : > { %v4079_v38 = vsel %vm19671_vm8, %v19668_v32, %v4078_v15  ;;  %v10113_v26 = vld [vmem:[#allocation3 + $0x44] sm:$0xf0]  ;;  %v10112_v32 = vld [vmem:[#allocation3 + $0x3c] sm:$0xf0]  ;;  %v2209_v63 = vsel %vm2176_vm1, %v15283_v22, 0  ;;  %vm15604_vm13 = vcmp.ne.s32.totalorder %v3277_v55, %v18983_v43  ;;  %vm15610_vm5 = vcmp.eq.s32.totalorder %v2068_v62, 1 }
 0x28f   : > { %4116 = vst [vmem:[#allocation3 + $0x3d0] sm:$0xff] %v4079_v38  ;;  %v8401_v12 = vor.u32 %v10113_v26, %v8400_v0  ;;  %v1800_v15 = vsel %vm19674_vm9, %v19673_v28, %v18583_v34  ;;  %3682 = vrot.lane.b32.xlu2 %v3641_v59, %s10617_s16  ;;  %vm15599_vm11 = vcmp.ne.s32.totalorder %v3276_v60, %v18980_v35  ;;  %v3650_v55 = vsel %vm3614_vm10, %v15384_v9, 0 }
 0x290   : > { %2601 = vrot.lane.b32.xlu0 %v2552_v50, %s10613_s30  ;;  %v8392_v38 = vld [vmem:[#allocation3] sm:$0xf]  ;;  %v10104_v0 = vld [vmem:[#allocation3 + $0x4] sm:$0xf]  ;;  %v2069_v50 = vperm.slane %v19422_v39, 7  ;;  %v1801_v53 = vsel %vm19675_vm0, %v1800_v15, %v14954_v48  ;;  %vm3282_vm7 = vmpackc.low %vm15604_vm13, %vm15599_vm11  ;;  %v4229_v6 = vsel %vm19689_vm14, %v19688_v11, %v4218_v23  ;;  %v4607_v23 = vunpack.c.h.b16 %v4454_v1 }
 0x291   : > { %5393 = vmatpush.bf16.msrb.mxu1 %v8401_v12  ;;  %v8393_v3 = vor.u32 %v10112_v32, %v8392_v38  ;;  %v8397_v26 = vor.u32 %v10104_v0, %v8394_v8  ;;  %v15593_v59 = vpop.permute.xlu2 %1777  ;;  %v3068_v12 = vperm.slane %v15305_v46, 6  ;;  %v3069_v32 = vperm.slane %v15305_v46, 7 }
 0x292   : > { %v15581_v28 = vpop.permute.xlu0 %3546  ;;  %2249 = vrot.lane.b32.xlu1 %v2209_v63, %s10612_s27  ;;  %v1836_v38 = vunpack.c.l.b16 %v1801_v53  ;;  %vm15614_vm2 = vcmp.eq.s32.totalorder %v2069_v50, 1  ;;  %v1837_v60 = vunpack.c.h.b16 %v1801_v53  ;;  %v2218_v50 = vsel %vm2176_vm1, %v15281_v29, 0  ;;  %vm19698_vm1 = vmmov %vm19674_vm9 }
 0x293   : > { %5341 = vmatpush.bf16.msra.mxu0 %v8393_v3  ;;  %5367 = vmatpush.bf16.msra.mxu2 %v8397_v26  ;;  %v8856_v26 = vld [vmem:[#allocation3 + $0x390] sm:$0xf]  ;;  %vm15628_vm3 = vcmp.eq.s32.totalorder %v3068_v12, 1  ;;  %vm15632_vm8 = vcmp.eq.s32.totalorder %v3069_v32, 1  ;;  %vm2093_vm6 = vmpackc.low %vm15614_vm2, %vm15610_vm5  ;;  %v3309_v18 = vsel %vm3282_vm7, %v15436_v40, 0  ;;  %vm19690_vm15 = vcmask 138240  }
 0x294   : > { %v15608_v15 = vpop.permute.xlu1 %3214  ;;  %v3035_v12 = vld [vmem:[#allocation2 + $0x3c] sm:$0xff]  ;;  %vm3093_vm4 = vmpackc.low %vm15632_vm8, %vm15628_vm3  ;;  %v4230_v32 = vsel %vm19690_vm15, %v4229_v6, %v14950_v52  ;;  %vm15669_vm12 = vcmp.ne.s32.totalorder %v1836_v38, %v18980_v35  ;;  %vm15674_vm10 = vcmp.ne.s32.totalorder %v1837_v60, %v18983_v43  ;;  %v4164_v52 = vperm.slane %v19447_v44, 6  ;;  %v19696_v60 = vld [vmem:[#allocation28_spill] sm:$0xff] }
 0x295   : > { %v4165_v38 = vperm.slane %v19447_v44, 7  ;;  %v15687_v6 = vpack.c.b16 %v4607_v23, %v4607_v23  ;;  %v19697_v34 = vrot.slane %v19696_v60, 4  ;;  %v3101_v44 = vsel %vm3093_vm4, %v3035_v12, 0  ;;  %vm19700_vm9 = vmmov %vm19698_vm1  ;;  %v3043_v3 = vld [vmem:[#allocation2 + $0x84] sm:$0xff] }
 0x296   : > { %v10226_v0 = vld [vmem:[#allocation3 + $0x3cc] sm:$0xf0]  ;;  %vm19701_vm0 = vcmask 924672   ;;  %vm19702_vm5 = vcmask 130048   ;;  %3117 = vst [vmem:[#allocation3 + $0x238] sm:$0xff] %v3101_v44  ;;  %v4265_v12 = vunpack.c.l.b16 %v4230_v32  ;;  %v4266_v7 = vunpack.c.h.b16 %v4230_v32  ;;  %vm1842_vm15 = vmpackc.low %vm15674_vm10, %vm15669_vm12 }
 0x297   : > { %v8857_v53 = vor.u32 %v10226_v0, %v8856_v26  ;;  %2267 = vrot.lane.b32.xlu2 %v2218_v50, %s10612_s27  ;;  %8966 = vmatmul.msk.bf16.vlgmr.msra.gmra.mxu1 %vm19702_vm5, %v15687_v6  ;;  %vm19703_vm2 = vmmov %vm19702_vm5  ;;  %vm19704_vm14 = vcmask 916480   ;;  %v19713_v8 = vrot.slane %v15005_v2, 4  ;;  %v19714_v39 = vrot.slane %v14578_v30, 4 }
 0x298   : > { %3700 = vrot.lane.b32.xlu0 %v3650_v55, %s10617_s16  ;;  %8967 = vmatmul.msk.bf16.vlgmr.msra.gmra.mxu3 %vm19703_vm2, %v15687_v6  ;;  %v4606_v63 = vunpack.c.l.b16 %v4454_v1  ;;  %v1733_v30 = vperm.slane %v19463_v25, 6  ;;  %vm15782_vm3 = vcmp.ne.s32.totalorder %v4266_v7, %v18983_v43  ;;  %vm19720_vm8 = vmmov %vm19703_vm2  ;;  %v19723_v7 = vrot.slane %v14237_v51, 4 }
 0x299   : > { %5438 = vmatpush.bf16.msrb.mxu2 %v8857_v53  ;;  %v15678_v26 = vpop.permute.xlu2 %4030 }
 0x29a   : > { %v15654_v57 = vpop.permute.xlu0 %3696  ;;  %19695 = vst [vmem:[#allocation85_spill] sm:$0xff] %v15678_v26  ;;  %3350 = vrot.lane.b32.xlu1 %v3309_v18, %s10615_s15  ;;  %v18590_v50 = vrot.slane %v15678_v26, 4  ;;  %v2101_v18 = vsel %vm2093_vm6, 65537, %v19014_v42  ;;  %vm19707_vm6 = vmmov %vm19698_vm1  ;;  %vm15829_vm10 = vcmp.eq.s32.totalorder %v1733_v30, 1  ;;  %v4126_v30 = vld [vmem:[#allocation2 + $0x24] sm:$0xff] }
 0x29b   : > { %v18586_v11 = vrot.slane %v15654_v57, 4  ;;  %vm19715_vm11 = vmmov %vm19707_vm6 }
 0x29c   : > { %v15683_v53 = vpop.permute.xlu1 %3364 }
 0x29d   : > { %v3746_v36 = vsel %vm19698_vm1, %v19697_v34, %v18586_v11  ;;  %v19699_v34 = vrot.slane %v15513_v19, 4  ;;  %v19705_v26 = vrot.slane %v15683_v53, 4  ;;  %vm19708_vm1 = vcmask 1039360  }
 0x29e   : > { %v3747_v46 = vsel %vm19701_vm0, %v19696_v60, %v3746_v36  ;;  %vm15742_vm0 = vcmp.eq.s32.totalorder %v4165_v38, 1  ;;  %vm19725_vm2 = vmmov %vm19708_vm1 }
 0x29f   : > { %v4080_v11 = vsel %vm19700_vm9, %v19699_v34, %v18590_v50  ;;  %3784 = vst [vmem:[#allocation3 + $0x350] sm:$0xff] %v3747_v46  ;;  %v19706_v34 = vrot.slane %v14169_v21, 4  ;;  %vm15738_vm9 = vcmp.eq.s32.totalorder %v4164_v52, 1  ;;  %v3901_v52 = vsel %vm19715_vm11, %v19714_v39, %v19713_v8  ;;  %v15962_v50 = vld [vmem:[#allocation2 + $0x28] sm:$0xff] }
 0x2a0   : > { %v4081_v23 = vsel %vm19704_vm14, %v15513_v19, %v4080_v11  ;;  %2116 = vrot.lane.b32.xlu0 %v2101_v18, %s10620_s18  ;;  %v3318_v19 = vsel %vm3282_vm7, %v15384_v9, 0  ;;  %v18595_v11 = vrot.slane %v15324_v27, 4  ;;  %v1884_v18 = vsel %vm1842_vm15, %v15281_v29, 0  ;;  %vm4189_vm13 = vmpackc.low %vm15742_vm0, %vm15738_vm9  ;;  %v8664_v29 = vld [vmem:[#allocation3 + $0x210] sm:$0xf] }
 0x2a1   : > { %v3414_v36 = vsel %vm19707_vm6, %v19706_v34, %v19705_v26  ;;  %4117 = vst [vmem:[#allocation3 + $0x3d8] sm:$0xff] %v4081_v23  ;;  %3368 = vrot.lane.b32.xlu2 %v3318_v19, %s10615_s15  ;;  %v15766_v44 = vpop.permute.xlu2 %3880  ;;  %v1734_v23 = vperm.slane %v19463_v25, 7  ;;  %vm15777_vm7 = vcmp.ne.s32.totalorder %v4265_v12, %v18980_v35  ;;  %v3902_v34 = vsel %vm19720_vm8, %v3901_v52, %v15005_v2  ;;  %v8792_v19 = vld [vmem:[#allocation3 + $0x310] sm:$0xf] }
 0x2a2   : > { %v3415_v60 = vsel %vm19708_vm1, %v14169_v21, %v3414_v36  ;;  %v3109_v21 = vsel %vm3093_vm4, %v3043_v3, 0  ;;  %v15758_v38 = vpop.permute.xlu0 %3346  ;;  %1933 = vrot.lane.b32.xlu1 %v1884_v18, %s10611_s26  ;;  %v15788_v3 = vpack.c.b16 %v4606_v63, %v4606_v63  ;;  %v19721_v25 = vrot.slane %v14467_v24, 4  ;;  %vm19722_vm4 = vmmov %vm19707_vm6 }
 0x2a3   : > { %3452 = vst [vmem:[#allocation3 + $0x2d0] sm:$0xff] %v3415_v60  ;;  %v18591_v62 = vrot.slane %v15758_v38, 4  ;;  %vm19724_vm5 = vmmov %vm19722_vm4  ;;  %v1875_v24 = vsel %vm1842_vm15, %v15283_v22, 0  ;;  %v4197_v39 = vsel %vm4189_vm13, 65537, %v19014_v42  ;;  %vm15833_vm6 = vcmp.eq.s32.totalorder %v1734_v23, 1 }
 0x2a4   : > { %v15786_v1 = vpop.permute.xlu1 %4358  ;;  %3125 = vst [vmem:[#allocation3 + $0x278] sm:$0xff] %v3109_v21  ;;  %v2804_v12 = vsel %vm19722_vm4, %v19721_v25, %v18595_v11  ;;  %v18592_v21 = vrot.slane %v15581_v28, 4  ;;  %5342 = vmatmul.bf16.vlgmr.msra.gmra.mxu0 %v15788_v3  ;;  %5368 = vmatmul.bf16.vlgmr.msra.gmra.mxu2 %v15788_v3  ;;  %vm19727_vm14 = vmmov %vm19722_vm4  ;;  %v3947_v26 = vunpack.c.l.b16 %v3902_v34  ;;  %v3948_v18 = vunpack.c.h.b16 %v3902_v34 }
 0x2a5   : > { %v3398_v36 = vsel %vm19724_vm5, %v19723_v7, %v18591_v62  ;;  %v4383_v60 = vrot.slane %v15786_v1, 4  ;;  %vm4271_vm12 = vmpackc.low %vm15782_vm3, %vm15777_vm7  ;;  %vm19732_vm15 = vcmask 908288   ;;  %v2805_v25 = vsel %vm19708_vm1, %v2804_v12, %v15324_v27 }
 0x2a6   : > { %v3399_v8 = vsel %vm19725_vm2, %v14237_v51, %v3398_v36  ;;  %v10210_v52 = vld [vmem:[#allocation3 + $0x34c] sm:$0xf0]  ;;  %v19726_v51 = vrot.slane %v14592_v47, 4  ;;  %v19733_v23 = vrot.slane %v14734_v33, 4  ;;  %vm19734_vm9 = vmmov %vm19722_vm4  ;;  %v18593_v12 = vrot.slane %v15536_v4, 4 }
 0x2a7   : > { %3444 = vst [vmem:[#allocation3 + $0x290] sm:$0xff] %v3399_v8  ;;  %v8793_v22 = vor.u32 %v10210_v52, %v8792_v19  ;;  %vm1758_vm0 = vmpackc.low %vm15833_vm6, %vm15829_vm10  ;;  %vm15865_vm11 = vcmp.ne.s32.totalorder %v3947_v26, %v18980_v35  ;;  %vm15870_vm13 = vcmp.ne.s32.totalorder %v3948_v18, %v18983_v43  ;;  %vm19739_vm8 = vcmask 121856   ;;  %5394 = vmatmul.bf16.vlgmr.msrb.gmra.mxu1 %v15788_v3 }
 0x2a8   : > { %v4408_v0 = vsel %vm19727_vm14, %v19726_v51, %v4383_v60  ;;  %1915 = vrot.lane.b32.xlu0 %v1875_v24, %s10611_s26  ;;  %v3569_v7 = vsel %vm19734_vm9, %v19733_v23, %v18592_v21  ;;  %v2845_v24 = vunpack.c.l.b16 %v2805_v25  ;;  %v1766_v32 = vsel %vm1758_vm0, 65537, %v19014_v42  ;;  %vm19741_vm5 = vmmov %vm19732_vm15 }
 0x2a9   : > { %v4409_v63 = vsel %vm19732_vm15, %v14592_v47, %v4408_v0  ;;  %4212 = vrot.lane.b32.xlu2 %v4197_v39, %s10611_s26  ;;  %5439 = vmatpush.bf16.msrb.mxu2 %v8793_v22  ;;  %v4304_v47 = vsel %vm4271_vm12, %v4126_v30, 0  ;;  %v15860_v36 = vpop.permute.xlu2 %2448  ;;  %v2846_v39 = vunpack.c.h.b16 %v2805_v25  ;;  %v3570_v51 = vsel %vm19739_vm8, %v3569_v7, %v15581_v28  ;;  %vm19743_vm2 = vmmov %vm19722_vm4  ;;  %v4135_v7 = vld [vmem:[#allocation2 + $0x6c] sm:$0xff] }
 0x2aa   : > { %4447 = vst [vmem:[#allocation3 + $0x448] sm:$0xff] %v4409_v63  ;;  %v15848_v34 = vpop.permute.xlu0 %4340  ;;  %4344 = vrot.lane.b32.xlu1 %v4304_v47, %s10621_s23  ;;  %v19740_v0 = vrot.slane %v14328_v49, 4  ;;  %v10194_v63 = vld [vmem:[#allocation3 + $0x2cc] sm:$0xf0]  ;;  %v19742_v25 = vrot.slane %v14423_v56, 4  ;;  %v19744_v23 = vrot.slane %v15136_v58, 4  ;;  %vm19745_vm14 = vmmov %vm19743_vm2  ;;  %vm15911_vm15 = vcmp.ne.s32.totalorder %v2845_v24, %v18980_v35 }
 0x2ab   : > { %v18596_v33 = vrot.slane %v15848_v34, 4  ;;  %vm3953_vm10 = vmpackc.low %vm15870_vm13, %vm15865_vm11  ;;  %vm19746_vm6 = vcmask 916480   ;;  %vm15916_vm1 = vcmp.ne.s32.totalorder %v2846_v39, %v18983_v43  ;;  %vm19751_vm7 = vcmask 924672  }
 0x2ac   : > { %v15874_v52 = vpop.permute.xlu1 %4012  ;;  %v2470_v30 = vsel %vm19743_vm2, %v19742_v25, %v18593_v12  ;;  %vm2851_vm9 = vmpackc.low %vm15916_vm1, %vm15911_vm15  ;;  %vm19763_vm11 = vcmask 7168  }
 0x2ad   : > { %v4392_v22 = vsel %vm19722_vm4, %v19740_v0, %v18596_v33  ;;  %v18589_v55 = vrot.slane %v15874_v52, 4  ;;  %v3616_v0 = vunpack.c.h.b16 %v3570_v51  ;;  %v2471_v39 = vsel %vm19751_vm7, %v2470_v30, %v15536_v4  ;;  %v15948_v30 = vld [vmem:[#allocation2 + $0x34] sm:$0xff]  ;;  %vm19757_vm0 = vmmov %vm19743_vm2  ;;  %v8850_v33 = vld [vmem:[#allocation3 + $0x3c8] sm:$0xf0] }
 0x2ae   : > { %v4393_v26 = vsel %vm19741_vm5, %v14328_v49, %v4392_v22  ;;  %v8728_v18 = vld [vmem:[#allocation3 + $0x290] sm:$0xf]  ;;  %v3615_v49 = vunpack.c.l.b16 %v3570_v51  ;;  %v4313_v22 = vsel %vm4271_vm12, %v4135_v7, 0  ;;  %vm19759_vm8 = vmmov %vm19757_vm0  ;;  %vm19760_vm4 = vcmask 121856  }
 0x2af   : > { %4439 = vst [vmem:[#allocation3 + $0x408] sm:$0xff] %v4393_v26  ;;  %v4064_v42 = vsel %vm19745_vm14, %v19744_v23, %v18589_v55  ;;  %v8729_v47 = vor.u32 %v10194_v63, %v8728_v18  ;;  %v10178_v26 = vld [vmem:[#allocation3 + $0x24c] sm:$0xf0]  ;;  %vm15943_vm12 = vcmp.ne.s32.totalorder %v3616_v0, %v18983_v43  ;;  %v2512_v0 = vunpack.c.h.b16 %v2471_v39  ;;  %vm19762_vm2 = vmmov %vm19757_vm0 }
 0x2b0   : > { %v4065_v56 = vsel %vm19746_vm6, %v15136_v58, %v4064_v42  ;;  %1781 = vrot.lane.b32.xlu0 %v1766_v32, %s10621_s23  ;;  %v15921_v58 = vld [vmem:[#allocation2 + $0x7c] sm:$0xff]  ;;  %v18600_v32 = vrot.slane %v15608_v15, 4  ;;  %v8665_v25 = vor.u32 %v10178_v26, %v8664_v29  ;;  %vm15938_vm3 = vcmp.ne.s32.totalorder %v3615_v49, %v18980_v35  ;;  %vm19764_vm13 = vmmov %vm19763_vm11 }
 0x2b1   : > { %4109 = vst [vmem:[#allocation3 + $0x398] sm:$0xff] %v4065_v56  ;;  %4362 = vrot.lane.b32.xlu2 %v4313_v22, %s10621_s23  ;;  %5440 = vmatpush.bf16.msrb.mxu2 %v8729_v47  ;;  %v3983_v24 = vsel %vm3953_vm10, %v15921_v58, 0  ;;  %v15934_v63 = vpop.permute.xlu2 %2581  ;;  %v10241_v49 = vld [vmem:[#allocation3 + $0x444] sm:$0xf0]  ;;  %v10217_v56 = vld [vmem:[#allocation3 + $0x38c] sm:$0xf]  ;;  %v2511_v26 = vunpack.c.l.b16 %v2471_v39  ;;  %vm3621_vm5 = vmpackc.low %vm15943_vm12, %vm15938_vm3 }
 0x2b2   : > { %v15923_v46 = vpop.permute.xlu0 %2782  ;;  %4034 = vrot.lane.b32.xlu1 %v3983_v24, %s10620_s18  ;;  %v18594_v7 = vrot.slane %v15934_v63, 4  ;;  %v8858_v22 = vld [vmem:[#allocation3 + $0x3d0] sm:$0xf0]  ;;  %v19756_v29 = vrot.slane %v14932_v17, 4  ;;  %v8914_v11 = vld [vmem:[#allocation3 + $0x448] sm:$0xf0]  ;;  %v8853_v8 = vor.u32 %v10217_v56, %v8850_v33  ;;  %vm19771_vm7 = vmmov %vm19757_vm0 }
 0x2b3   : > { %vm16011_vm14 = vcmp.ne.s32.totalorder %v2511_v26, %v18980_v35  ;;  %vm19769_vm6 = vcmask 130048   ;;  %v3651_v18 = vsel %vm3621_vm5, %v15921_v58, 0 }
 0x2b4   : > { %v15954_v47 = vpop.permute.xlu1 %2933  ;;  %v2634_v24 = vsel %vm19757_vm0, %v19756_v29, %v18594_v7  ;;  %v3974_v29 = vsel %vm3953_vm10, %v15948_v30, 0  ;;  %vm16016_vm10 = vcmp.ne.s32.totalorder %v2512_v0, %v18983_v43  ;;  %v10185_v0 = vld [vmem:[#allocation3 + $0x28c] sm:$0xf]  ;;  %vm19772_vm0 = vmmov %vm19769_vm6 }
 0x2b5   : > { %5441 = vmatpush.bf16.msrb.mxu2 %v8665_v25  ;;  %v18599_v55 = vrot.slane %v15954_v47, 4  ;;  %v19758_v25 = vrot.slane %v15003_v10, 4  ;;  %v2635_v39 = vsel %vm19760_vm4, %v14932_v17, %v2634_v24  ;;  %v19761_v17 = vrot.slane %v14789_v13, 4  ;;  %vm2517_vm4 = vmpackc.low %vm16016_vm10, %vm16011_vm14 }
 0x2b6   : > { %v8912_v62 = vld [vmem:[#allocation3 + $0x408] sm:$0xf]  ;;  %v10233_v21 = vld [vmem:[#allocation3 + $0x40c] sm:$0xf]  ;;  %2680 = vst [vmem:[#allocation3 + $0x110] sm:$0xff] %v2635_v39  ;;  %vm19792_vm14 = vmmov %vm19762_vm2  ;;  %vm19793_vm10 = vcmask 924672  }
 0x2b7   : > { %v3237_v12 = vsel %vm19759_vm8, %v19758_v25, %v18600_v32  ;;  %v8913_v7 = vor.u32 %v10241_v49, %v8912_v62  ;;  %v2984_v10 = vsel %vm19762_vm2, %v19761_v17, %v18599_v55  ;;  %v2878_v62 = vsel %vm2851_vm9, %v15962_v50, 0  ;;  %v10218_v49 = vld [vmem:[#allocation3 + $0x394] sm:$0xf]  ;;  %v8786_v39 = vld [vmem:[#allocation3 + $0x348] sm:$0xf0]  ;;  %vm19773_vm8 = vmmov %vm19763_vm11 }
 0x2b8   : > { %4016 = vrot.lane.b32.xlu0 %v3974_v29, %s10620_s18  ;;  %v8917_v19 = vor.u32 %v10233_v21, %v8914_v11  ;;  %v2985_v24 = vsel %vm19763_vm11, %v14789_v13, %v2984_v10  ;;  %v8861_v25 = vor.u32 %v10218_v49, %v8858_v22  ;;  %v3238_v29 = vsel %vm19764_vm13, %v3237_v12, %v15608_v15  ;;  %v8794_v11 = vld [vmem:[#allocation3 + $0x350] sm:$0xf0]  ;;  %v10201_v12 = vld [vmem:[#allocation3 + $0x30c] sm:$0xf]  ;;  %vm19784_vm11 = vmmov %vm19762_vm2 }
 0x2b9   : > { %2919 = vrot.lane.b32.xlu2 %v2878_v62, %s10614_s11  ;;  %5406 = vmatpush.bf16.msrb.mxu3 %v8913_v7  ;;  %3022 = vst [vmem:[#allocation3 + $0x1d0] sm:$0xff] %v2985_v24  ;;  %v3642_v13 = vsel %vm3621_vm5, %v15948_v30, 0  ;;  %v16006_v21 = vpop.permute.xlu2 %2114  ;;  %v8789_v22 = vor.u32 %v10201_v12, %v8786_v39  ;;  %v10202_v10 = vld [vmem:[#allocation3 + $0x314] sm:$0xf]  ;;  %v3283_v62 = vunpack.c.l.b16 %v3238_v29  ;;  %v2177_v12 = vunpack.c.l.b16 %v15458_v37  ;;  %vm19786_vm13 = vmmov %vm19762_vm2 }
 0x2ba   : > { %5432 = vmatpush.bf16.msrb.mxu0 %v8917_v19  ;;  %v15998_v17 = vpop.permute.xlu0 %2915  ;;  %3684 = vrot.lane.b32.xlu1 %v3642_v13, %s10617_s16  ;;  %v3284_v19 = vunpack.c.h.b16 %v3238_v29  ;;  %v8797_v49 = vor.u32 %v10202_v10, %v8794_v11  ;;  %v16034_v29 = vld [vmem:[#allocation2 + $0x70] sm:$0xff]  ;;  %v10186_v13 = vld [vmem:[#allocation3 + $0x294] sm:$0xf]  ;;  %v8722_v10 = vld [vmem:[#allocation3 + $0x2c8] sm:$0xf0]  ;;  %v19785_v55 = vrot.slane %v14872_v5, 4 }
 0x2bb   : > { %v18598_v33 = vrot.slane %v15998_v17, 4  ;;  %v2887_v11 = vsel %vm2851_vm9, %v16034_v29, 0  ;;  %v8725_v51 = vor.u32 %v10185_v0, %v8722_v10  ;;  %vm16061_vm15 = vcmp.ne.s32.totalorder %v3283_v62, %v18980_v35  ;;  %v8666_v0 = vld [vmem:[#allocation3 + $0x250] sm:$0xf0]  ;;  %v8866_v10 = vld [vmem:[#allocation3 + $0x3d8] sm:$0xf0] }
 0x2bc   : > { %8968 = vmatmul.msk.bf16.vlgmr.msrb.gmra.mxu3 %vm19769_vm6, %v15687_v6  ;;  %v16027_v24 = vpop.permute.xlu1 %4360  ;;  %vm16066_vm1 = vcmp.ne.s32.totalorder %v3284_v19, %v18983_v43  ;;  %vm19778_vm9 = vcmask 908288   ;;  %v2553_v62 = vsel %vm2517_vm4, %v16034_v29, 0  ;;  %v10169_v19 = vld [vmem:[#allocation3 + $0x20c] sm:$0xf]  ;;  %vm16086_vm3 = vcmp.ne.s32.totalorder %v2177_v12, %v18980_v35 }
 0x2bd   : > { %5412 = vmatpush.bf16.msra.mxu3 %v8853_v8  ;;  %v19770_v8 = vrot.slane %v14679_v54, 4  ;;  %8969 = vmatmul.msk.bf16.vlgmr.msrb.gmra.mxu0 %vm19772_vm0, %v15687_v6  ;;  %v18597_v39 = vrot.slane %v16027_v24, 4  ;;  %vm3289_vm5 = vmpackc.low %vm16066_vm1, %vm16061_vm15  ;;  %v4272_v12 = vunpack.c.l.b16 %v15556_v16  ;;  %v19791_v7 = vrot.slane %v15654_v57, 4 }
 0x2be   : > { %5464 = vmatpush.bf16.msra.mxu0 %v8861_v25  ;;  %vm19787_vm6 = vmmov %vm19778_vm9 }
 0x2bf   : > { %v2968_v26 = vsel %vm19771_vm7, %v19770_v8, %v18598_v33  ;;  %v8730_v8 = vld [vmem:[#allocation3 + $0x2d0] sm:$0xf0]  ;;  %vm19788_vm7 = vmmov %vm19772_vm0  ;;  %v10153_v33 = vld [vmem:[#allocation3 + $0x18c] sm:$0xf] }
 0x2c0   : > { %v2969_v25 = vsel %vm19773_vm8, %v14679_v54, %v2968_v26  ;;  %v2178_v54 = vunpack.c.h.b16 %v15458_v37  ;;  %2937 = vrot.lane.b32.xlu0 %v2887_v11, %s10614_s11  ;;  %v8658_v26 = vld [vmem:[#allocation3 + $0x248] sm:$0xf0]  ;;  %v8733_v23 = vor.u32 %v10186_v13, %v8730_v8  ;;  %v4273_v8 = vunpack.c.h.b16 %v15556_v16  ;;  %vm19790_vm8 = vmmov %vm19762_vm2 }
 0x2c1   : > { %5413 = vmatpush.bf16.msra.mxu3 %v8789_v22  ;;  %3014 = vst [vmem:[#allocation3 + $0x190] sm:$0xff] %v2969_v25  ;;  %v4410_v22 = vsel %vm19762_vm2, %v4383_v60, %v18597_v39  ;;  %3702 = vrot.lane.b32.xlu2 %v3651_v18, %s10617_s16  ;;  %v16081_v25 = vpop.permute.xlu2 %2247  ;;  %v8661_v13 = vor.u32 %v10169_v19, %v8658_v26  ;;  %v8594_v19 = vld [vmem:[#allocation3 + $0x1c8] sm:$0xf0]  ;;  %v8602_v39 = vld [vmem:[#allocation3 + $0x1d0] sm:$0xf0] }
 0x2c2   : > { %5465 = vmatpush.bf16.msra.mxu0 %v8797_v49  ;;  %v4411_v42 = vsel %vm19778_vm9, %v15786_v1, %v4410_v22  ;;  %v16073_v49 = vpop.permute.xlu0 %4342  ;;  %2603 = vrot.lane.b32.xlu1 %v2553_v62, %s10613_s30  ;;  %vm16091_vm12 = vcmp.ne.s32.totalorder %v2178_v54, %v18983_v43  ;;  %v1788_v22 = vrot.slane %v15593_v59, 4  ;;  %v18602_v18 = vrot.slane %v16081_v25, 4  ;;  %v10162_v62 = vld [vmem:[#allocation3 + $0x1cc] sm:$0xf0] }
 0x2c3   : > { %4448 = vst [vmem:[#allocation3 + $0x450] sm:$0xff] %v4411_v42  ;;  %v18601_v1 = vrot.slane %v16073_v49, 4  ;;  %v19783_v54 = vrot.slane %v15848_v34, 4  ;;  %vm2183_vm0 = vmpackc.low %vm16091_vm12, %vm16086_vm3  ;;  %vm16174_vm9 = vcmp.ne.s32.totalorder %v4272_v12, %v18980_v35  ;;  %vm19812_vm3 = vcmask 130048  }
 0x2c4   : > { %v2300_v16 = vsel %vm19786_vm13, %v19785_v55, %v18602_v18  ;;  %v2544_v55 = vsel %vm2517_vm4, %v15962_v50, 0  ;;  %vm19796_vm4 = vmmov %vm19762_vm2  ;;  %vm19802_vm13 = vcmask 1039360   ;;  %v2219_v37 = vsel %vm2183_vm0, %v16034_v29, 0 }
 0x2c5   : > { %5414 = vmatpush.bf16.msra.mxu3 %v8725_v51  ;;  %v10170_v51 = vld [vmem:[#allocation3 + $0x214] sm:$0xf]  ;;  %v4394_v26 = vsel %vm19784_vm11, %v19783_v54, %v18601_v1  ;;  %v2301_v1 = vsel %vm19788_vm7, %v14872_v5, %v2300_v16  ;;  %v19789_v5 = vrot.slane %v14954_v48, 4  ;;  %vm19797_vm2 = vmmov %vm19787_vm6  ;;  %vm16179_vm11 = vcmp.ne.s32.totalorder %v4273_v8, %v18983_v43 }
 0x2c6   : > { %5466 = vmatpush.bf16.msra.mxu0 %v8733_v23  ;;  %v8669_v42 = vor.u32 %v10170_v51, %v8666_v0  ;;  %v16108_v23 = vpop.permute.xlu1 %3698  ;;  %v4395_v32 = vsel %vm19787_vm6, %v15848_v34, %v4394_v26  ;;  %2346 = vst [vmem:[#allocation3 + $0x90] sm:$0xff] %v2301_v1  ;;  %v10137_v1 = vld [vmem:[#allocation3 + $0x10c] sm:$0xf]  ;;  %v19794_v26 = vrot.slane %v15923_v46, 4  ;;  %vm19804_vm6 = vmmov %vm19796_vm4 }
 0x2c7   : > { %v18605_v54 = vrot.slane %v16108_v23, 4  ;;  %4440 = vst [vmem:[#allocation3 + $0x410] sm:$0xff] %v4395_v32  ;;  %v1802_v32 = vsel %vm19790_vm8, %v19789_v5, %v1788_v22  ;;  %vm19805_vm7 = vmmov %vm19793_vm10 }
 0x2c8   : > { %v8600_v0 = vld [vmem:[#allocation3 + $0x190] sm:$0xf]  ;;  %v10154_v51 = vld [vmem:[#allocation3 + $0x194] sm:$0xf]  ;;  %2585 = vrot.lane.b32.xlu0 %v2544_v55, %s10613_s30  ;;  %vm19807_vm8 = vmmov %vm19796_vm4  ;;  %v19823_v55 = vrot.slane %v15683_v53, 4 }
 0x2c9   : > { %5415 = vmatpush.bf16.msra.mxu3 %v8661_v13  ;;  %v8601_v18 = vor.u32 %v10162_v62, %v8600_v0  ;;  %v8605_v34 = vor.u32 %v10154_v51, %v8602_v39  ;;  %v3748_v56 = vsel %vm19792_vm14, %v19791_v7, %v18605_v54  ;;  %v3310_v39 = vsel %vm3289_vm5, %v15948_v30, 0  ;;  %v8530_v0 = vld [vmem:[#allocation3 + $0x148] sm:$0xf0]  ;;  %vm4278_vm14 = vmpackc.low %vm16179_vm11, %vm16174_vm9 }
 0x2ca   : > { %5467 = vmatpush.bf16.msra.mxu0 %v8669_v42  ;;  %v8597_v13 = vor.u32 %v10153_v33, %v8594_v19  ;;  %v3749_v48 = vsel %vm19793_vm10, %v15654_v57, %v3748_v56  ;;  %3352 = vrot.lane.b32.xlu2 %v3310_v39, %s10615_s15  ;;  %v19795_v42 = vrot.slane %v15324_v27, 4  ;;  %v16156_v16 = vpop.permute.xlu0 %3680  ;;  %v2210_v57 = vsel %vm2183_vm0, %v15962_v50, 0  ;;  %v16169_v27 = vpop.permute.xlu2 %1779  ;;  %v10242_v12 = vld [vmem:[#allocation3 + $0x44c] sm:$0xf0]  ;;  %v8466_v39 = vld [vmem:[#allocation3 + $0xc8] sm:$0xf0]  ;;  %vm19817_vm0 = vmmov %vm19812_vm3 }
 0x2cb   : > { %5442 = vmatpush.bf16.msrb.mxu2 %v8601_v18  ;;  %3785 = vst [vmem:[#allocation3 + $0x358] sm:$0xff] %v3749_v48  ;;  %v1803_v33 = vsel %vm19797_vm2, %v1802_v32, %v15593_v59  ;;  %v16167_v18 = vrot.slane %v15766_v44, 4  ;;  %v18610_v19 = vrot.slane %v16156_v16, 4  ;;  %2251 = vrot.lane.b32.xlu1 %v2210_v57, %s10612_s27  ;;  %v8533_v5 = vor.u32 %v10137_v1, %v8530_v0  ;;  %vm19820_vm10 = vmmov %vm19796_vm4 }
 0x2cc   : > { %v2806_v62 = vsel %vm19796_vm4, %v19795_v42, %v19794_v26  ;;  %v1844_v48 = vunpack.c.h.b16 %v1803_v33  ;;  %v8922_v42 = vld [vmem:[#allocation3 + $0x450] sm:$0xf0]  ;;  %vm19821_vm2 = vcmask 121856   ;;  %vm19825_vm9 = vcmask 1039360   ;;  %vm19827_vm11 = vmmov %vm19804_vm6 }
 0x2cd   : > { %5416 = vmatpush.bf16.msra.mxu3 %v8597_v13  ;;  %v2807_v32 = vsel %vm19802_vm13, %v2806_v62, %v15923_v46  ;;  %v1843_v13 = vunpack.c.l.b16 %v1803_v33  ;;  %v19806_v62 = vrot.slane %v15005_v2, 4  ;;  %v3319_v33 = vsel %vm3289_vm5, %v15921_v58, 0 }
 0x2ce   : > { %5468 = vmatpush.bf16.msra.mxu0 %v8605_v34  ;;  %v19803_v34 = vrot.slane %v15308_v61, 4  ;;  %v16190_v56 = vpop.permute.xlu1 %3548  ;;  %v8920_v1 = vld [vmem:[#allocation3 + $0x410] sm:$0xf]  ;;  %v10234_v26 = vld [vmem:[#allocation3 + $0x414] sm:$0xf]  ;;  %v2853_v2 = vunpack.c.h.b16 %v2807_v32  ;;  %vm16222_vm1 = vcmp.ne.s32.totalorder %v1844_v48, %v18983_v43 }
 0x2cf   : > { %v3903_v57 = vsel %vm19807_vm8, %v19806_v62, %v16167_v18  ;;  %v8921_v0 = vor.u32 %v10242_v12, %v8920_v1  ;;  %v8402_v12 = vld [vmem:[#allocation3 + $0x48] sm:$0xf0]  ;;  %vm16217_vm15 = vcmp.ne.s32.totalorder %v1843_v13, %v18980_v35  ;;  %v8864_v13 = vld [vmem:[#allocation3 + $0x398] sm:$0xf]  ;;  %vm19828_vm8 = vcmask 924672  }
 0x2d0   : > { %v3732_v7 = vsel %vm19804_vm6, %v19803_v34, %v18610_v19  ;;  %v10121_v34 = vld [vmem:[#allocation3 + $0x8c] sm:$0xf]  ;;  %3370 = vrot.lane.b32.xlu0 %v3319_v33, %s10615_s15  ;;  %v3904_v1 = vsel %vm19812_vm3, %v3903_v57, %v15766_v44  ;;  %v18606_v33 = vrot.slane %v15860_v36, 4  ;;  %vm16247_vm5 = vcmp.ne.s32.totalorder %v2853_v2, %v18983_v43  ;;  %v10227_v57 = vld [vmem:[#allocation3 + $0x3d4] sm:$0xf0]  ;;  %vm1849_vm4 = vmpackc.low %vm16222_vm1, %vm16217_vm15 }
 0x2d1   : > { %v3733_v8 = vsel %vm19805_vm7, %v15308_v61, %v3732_v7  ;;  %5417 = vmatpush.bf16.msra.mxu3 %v8533_v5  ;;  %v8925_v61 = vor.u32 %v10234_v26, %v8922_v42  ;;  %v2852_v5 = vunpack.c.l.b16 %v2807_v32  ;;  %v8469_v60 = vor.u32 %v10121_v34, %v8466_v39  ;;  %v10219_v7 = vld [vmem:[#allocation3 + $0x39c] sm:$0xf]  ;;  %5458 = vmatpush.bf16.msra.mxu1 %v8921_v0  ;;  %v10105_v62 = vld [vmem:[#allocation3 + $0xc] sm:$0xf]  ;;  %vm19824_vm7 = vmmov %vm19804_vm6 }
 0x2d2   : > { %3777 = vst [vmem:[#allocation3 + $0x318] sm:$0xff] %v3733_v8  ;;  %2269 = vrot.lane.b32.xlu2 %v2219_v37, %s10612_s27  ;;  %v16226_v11 = vpop.permute.xlu0 %2599  ;;  %v4314_v39 = vsel %vm4278_vm14, %v15384_v9, 0  ;;  %v16236_v48 = vpop.permute.xlu2 %4210  ;;  %v8869_v42 = vor.u32 %v10219_v7, %v8866_v10  ;;  %v8405_v44 = vor.u32 %v10105_v62, %v8402_v12  ;;  %v19818_v34 = vld [vmem:[#allocation29_spill] sm:$0xff]  ;;  %v8802_v2 = vld [vmem:[#allocation3 + $0x358] sm:$0xf0]  ;;  %v16265_v7 = vrot.slane %v16190_v56, 4 }
 0x2d3   : > { %v18607_v26 = vrot.slane %v16226_v11, 4  ;;  %4364 = vrot.lane.b32.xlu1 %v4314_v39, %s10621_s23  ;;  %vm16242_vm12 = vcmp.ne.s32.totalorder %v2852_v5, %v18980_v35  ;;  %v8865_v5 = vor.u32 %v10227_v57, %v8864_v13  ;;  %v3954_v13 = vunpack.c.l.b16 %v3904_v1  ;;  %v16363_v8 = vld [vmem:[#allocation2 + $0x84] sm:$0xff] }
 0x2d4   : > { %8970 = vmatmul.msk.bf16.vlgmr.msra.gmra.mxu1 %vm19817_vm0, %v15687_v6  ;;  %v4305_v62 = vsel %vm4278_vm14, %v15436_v40, 0  ;;  %vm2858_vm13 = vmpackc.low %vm16247_vm5, %vm16242_vm12  ;;  %v1876_v40 = vsel %vm1849_vm4, %v15962_v50, 0  ;;  %v19841_v0 = vrot.slane %v15417_v14, 4 }
 0x2d5   : > { %5418 = vmatpush.bf16.msra.mxu3 %v8469_v60  ;;  %5484 = vmatpush.bf16.msrb.mxu1 %v8925_v61  ;;  %v19819_v61 = vrot.slane %v19818_v34, 4  ;;  %vm16322_vm14 = vcmp.ne.s32.totalorder %v3954_v13, %v18980_v35  ;;  %vm19833_vm0 = vmmov %vm19821_vm2 }
 0x2d6   : > { %v16258_v60 = vpop.permute.xlu1 %3366  ;;  %vm19842_vm12 = vmmov %vm19824_vm7 }
 0x2d7   : > { %v2650_v37 = vsel %vm19820_vm10, %v19819_v61, %v18607_v26  ;;  %v18608_v10 = vrot.slane %v16258_v60, 4  ;;  %vm19835_vm10 = vmmov %vm19804_vm6 }
 0x2d8   : > { %v2651_v12 = vsel %vm19821_vm2, %v19818_v34, %v2650_v37  ;;  %v19822_v34 = vrot.slane %v15536_v4, 4  ;;  %4346 = vrot.lane.b32.xlu0 %v4305_v62, %s10621_s23  ;;  %vm19836_vm2 = vmmov %vm19825_vm9 }
 0x2d9   : > { %5516 = vmatpush.bf16.msra.mxu1 %v8869_v42  ;;  %5419 = vmatpush.bf16.msra.mxu3 %v8405_v44  ;;  %v10203_v39 = vld [vmem:[#allocation3 + $0x31c] sm:$0xf]  ;;  %v8800_v42 = vld [vmem:[#allocation3 + $0x318] sm:$0xf]  ;;  %2688 = vst [vmem:[#allocation3 + $0x150] sm:$0xff] %v2651_v12  ;;  %v3955_v44 = vunpack.c.h.b16 %v3904_v1  ;;  %v3416_v51 = vsel %vm19824_vm7, %v19823_v55, %v18608_v10  ;;  %v19834_v55 = vrot.slane %v15758_v38, 4 }
 0x2da   : > { %v8805_v57 = vor.u32 %v10203_v39, %v8802_v2  ;;  %v2472_v61 = vsel %vm19804_vm6, %v19822_v34, %v18606_v33  ;;  %v10211_v1 = vld [vmem:[#allocation3 + $0x354] sm:$0xf0]  ;;  %v3417_v4 = vsel %vm19825_vm9, %v15683_v53, %v3416_v51  ;;  %1917 = vrot.lane.b32.xlu2 %v1876_v40, %s10611_s26  ;;  %v19826_v2 = vrot.slane %v15581_v28, 4  ;;  %v16306_v39 = vpop.permute.xlu0 %3348  ;;  %v8536_v40 = vld [vmem:[#allocation3 + $0x110] sm:$0xf]  ;;  %vm19850_vm9 = vmmov %vm19835_vm10 }
 0x2db   : > { %v8801_v37 = vor.u32 %v10211_v1, %v8800_v42  ;;  %3453 = vst [vmem:[#allocation3 + $0x2d8] sm:$0xff] %v3417_v4  ;;  %v2473_v53 = vsel %vm19828_vm8, %v2472_v61, %v15860_v36  ;;  %v16317_v42 = vpop.permute.xlu2 %2784  ;;  %v18603_v28 = vrot.slane %v16306_v39, 4  ;;  %vm16327_vm3 = vcmp.ne.s32.totalorder %v3955_v44, %v18983_v43  ;;  %vm19852_vm8 = vmmov %vm19850_vm9 }
 0x2dc   : > { %v3571_v12 = vsel %vm19827_vm11, %v19826_v2, %v16265_v7  ;;  %5420 = vmatmul.bf16.vlgmr.msra.gmra.mxu3 %v15788_v3  ;;  %v18604_v34 = vrot.slane %v16006_v21, 4  ;;  %v2518_v1 = vunpack.c.l.b16 %v2473_v53  ;;  %v2519_v4 = vunpack.c.h.b16 %v2473_v53  ;;  %v10138_v2 = vld [vmem:[#allocation3 + $0x114] sm:$0xf]  ;;  %vm3960_vm6 = vmpackc.low %vm16327_vm3, %vm16322_vm14 }
 0x2dd   : > { %5490 = vmatpush.bf16.msrb.mxu3 %v8865_v5  ;;  %5517 = vmatpush.bf16.msra.mxu1 %v8805_v57  ;;  %v16300_v5 = vld [vmem:[#allocation2 + $0x30] sm:$0xff]  ;;  %v3572_v61 = vsel %vm19833_vm0, %v3571_v12, %v16190_v56  ;;  %v3400_v51 = vsel %vm19835_vm10, %v19834_v55, %v18603_v28  ;;  %v1885_v56 = vsel %vm1849_vm4, %v16034_v29, 0  ;;  %v16349_v12 = vld [vmem:[#allocation2 + $0x78] sm:$0xff]  ;;  %vm19848_vm7 = vcmask 916480   ;;  %vm19855_vm14 = vmmov %vm19852_vm8 }
 0x2de   : > { %v2879_v50 = vsel %vm2858_vm13, %v16300_v5, 0  ;;  %v16339_v13 = vpop.permute.xlu1 %3216  ;;  %v3401_v44 = vsel %vm19836_vm2, %v15758_v38, %v3400_v51  ;;  %v3622_v38 = vunpack.c.l.b16 %v3572_v61  ;;  %v3623_v53 = vunpack.c.h.b16 %v3572_v61  ;;  %vm19858_vm2 = vmmov %vm19852_vm8 }
 0x2df   : > { %2921 = vrot.lane.b32.xlu1 %v2879_v50, %s10614_s11  ;;  %3445 = vst [vmem:[#allocation3 + $0x298] sm:$0xff] %v3401_v44  ;;  %v2888_v29 = vsel %vm2858_vm13, %v16349_v12, 0  ;;  %vm16366_vm15 = vcmp.ne.s32.totalorder %v2518_v1, %v18980_v35  ;;  %vm16371_vm1 = vcmp.ne.s32.totalorder %v2519_v4, %v18983_v43  ;;  %v2138_v9 = vsel %vm19842_vm12, %v19841_v0, %v18604_v34  ;;  %vm19860_vm12 = vmmov %vm19858_vm2 }
 0x2e0   : > { %v8538_v50 = vld [vmem:[#allocation3 + $0x150] sm:$0xf0]  ;;  %1935 = vrot.lane.b32.xlu0 %v1885_v56, %s10611_s26  ;;  %v16389_v1 = vrot.slane %v16339_v13, 4  ;;  %vm16396_vm5 = vcmp.ne.s32.totalorder %v3622_v38, %v18980_v35  ;;  %vm16401_vm4 = vcmp.ne.s32.totalorder %v3623_v53, %v18983_v43  ;;  %vm19847_vm13 = vcmask 130048   ;;  %vm2524_vm11 = vmpackc.low %vm16371_vm1, %vm16366_vm15 }
 0x2e1   : > { %5491 = vmatpush.bf16.msrb.mxu3 %v8801_v37  ;;  %v10146_v37 = vld [vmem:[#allocation3 + $0x14c] sm:$0xf0]  ;;  %v8541_v28 = vor.u32 %v10138_v2, %v8538_v50  ;;  %v2139_v50 = vsel %vm19848_vm7, %v2138_v9, %v16006_v21  ;;  %v19849_v56 = vrot.slane %v15089_v45, 4  ;;  %v1789_v9 = vrot.slane %v16169_v27, 4  ;;  %vm19853_vm0 = vmmov %vm19847_vm13 }
 0x2e2   : > { %v8537_v55 = vor.u32 %v10146_v37, %v8536_v40  ;;  %2939 = vrot.lane.b32.xlu2 %v2888_v29, %s10614_s11  ;;  %v16380_v51 = vpop.permute.xlu0 %2265  ;;  %v3984_v40 = vsel %vm3960_vm6, %v16363_v8, 0  ;;  %v16406_v2 = vld [vmem:[#allocation2 + $0x3c] sm:$0xff]  ;;  %v10195_v29 = vld [vmem:[#allocation3 + $0x2d4] sm:$0xf0]  ;;  %v8738_v0 = vld [vmem:[#allocation3 + $0x2d8] sm:$0xf0] }
 0x2e3   : > { %5469 = vmatpush.bf16.msra.mxu0 %v8541_v28  ;;  %v16391_v4 = vpop.permute.xlu2 %2583  ;;  %v18609_v44 = vrot.slane %v16380_v51, 4  ;;  %v3975_v53 = vsel %vm3960_vm6, %v16406_v2, 0  ;;  %v19854_v33 = vrot.slane %v15608_v15, 4  ;;  %vm19856_vm3 = vcmask 121856   ;;  %vm3628_vm10 = vmpackc.low %vm16401_vm4, %vm16396_vm5 }
 0x2e4   : > { %5443 = vmatpush.bf16.msrb.mxu2 %v8537_v55  ;;  %v18611_v37 = vrot.slane %v16391_v4, 4  ;;  %8971 = vmatmul.msk.bf16.vlgmr.msrb.gmra.mxu1 %vm19847_vm13, %v15687_v6  ;;  %v19857_v15 = vrot.slane %v15396_v41, 4  ;;  %vm19859_vm6 = vcmask 138240   ;;  %vm19861_vm13 = vcmask 7168  }
 0x2e5   : > { %v2316_v55 = vsel %vm19850_vm9, %v19849_v56, %v18609_v44  ;;  %v3239_v26 = vsel %vm19855_vm14, %v19854_v33, %v16389_v1  ;;  %v3652_v32 = vsel %vm3628_vm10, %v16363_v8, 0  ;;  %vm19875_vm15 = vmmov %vm19861_vm13 }
 0x2e6   : > { %v16417_v38 = vpop.permute.xlu1 %1931  ;;  %v2317_v62 = vsel %vm19853_vm0, %v15089_v45, %v2316_v55  ;;  %v8736_v34 = vld [vmem:[#allocation3 + $0x298] sm:$0xf]  ;;  %v10187_v54 = vld [vmem:[#allocation3 + $0x29c] sm:$0xf]  ;;  %v2184_v45 = vunpack.c.l.b16 %v2139_v50  ;;  %v2185_v55 = vunpack.c.h.b16 %v2139_v50  ;;  %v1804_v50 = vsel %vm19860_vm12, %v1788_v22, %v1789_v9  ;;  %vm19868_vm0 = vmmov %vm19858_vm2 }
 0x2e7   : > { %4036 = vrot.lane.b32.xlu1 %v3984_v40, %s10620_s18  ;;  %v19851_v40 = vrot.slane %v15934_v63, 4  ;;  %v1955_v57 = vrot.slane %v16417_v38, 4  ;;  %2354 = vst [vmem:[#allocation3 + $0xd0] sm:$0xff] %v2317_v62  ;;  %v8737_v44 = vor.u32 %v10195_v29, %v8736_v34  ;;  %v8741_v19 = vor.u32 %v10187_v54, %v8738_v0  ;;  %v10179_v54 = vld [vmem:[#allocation3 + $0x254] sm:$0xf0]  ;;  %vm19870_vm14 = vmmov %vm19868_vm0 }
 0x2e8   : > { %4018 = vrot.lane.b32.xlu0 %v3975_v53, %s10620_s18  ;;  %v3240_v53 = vsel %vm19861_vm13, %v3239_v26, %v16339_v13  ;;  %v8672_v0 = vld [vmem:[#allocation3 + $0x218] sm:$0xf]  ;;  %vm16483_vm7 = vcmp.ne.s32.totalorder %v2184_v45, %v18980_v35  ;;  %vm16488_vm9 = vcmp.ne.s32.totalorder %v2185_v55, %v18983_v43  ;;  %v19867_v45 = vrot.slane %v15228_v31, 4  ;;  %vm19874_vm12 = vmmov %vm19868_vm0 }
 0x2e9   : > { %v2636_v56 = vsel %vm19852_vm8, %v19851_v40, %v18611_v37  ;;  %v1982_v33 = vsel %vm19858_vm2, %v19857_v15, %v1955_v57  ;;  %5492 = vmatpush.bf16.msrb.mxu3 %v8737_v44  ;;  %5518 = vmatpush.bf16.msra.mxu1 %v8741_v19  ;;  %v8673_v22 = vor.u32 %v10179_v54, %v8672_v0  ;;  %v10171_v40 = vld [vmem:[#allocation3 + $0x21c] sm:$0xf]  ;;  %vm19866_vm8 = vcmask 908288   ;;  %v8472_v54 = vld [vmem:[#allocation3 + $0x90] sm:$0xf]  ;;  %vm19877_vm1 = vmmov %vm19868_vm0 }
 0x2ea   : > { %v2637_v10 = vsel %vm19856_vm3, %v15934_v63, %v2636_v56  ;;  %v2545_v63 = vsel %vm2524_vm11, %v16300_v5, 0  ;;  %v1983_v34 = vsel %vm19859_vm6, %v15396_v41, %v1982_v33  ;;  %v16470_v29 = vpop.permute.xlu0 %1913  ;;  %v3643_v41 = vsel %vm3628_vm10, %v16406_v2, 0  ;;  %vm19871_vm3 = vmmov %vm19859_vm6 }
 0x2eb   : > { %2681 = vst [vmem:[#allocation3 + $0x118] sm:$0xff] %v2637_v10  ;;  %2587 = vrot.lane.b32.xlu2 %v2545_v63, %s10613_s30  ;;  %v8674_v10 = vld [vmem:[#allocation3 + $0x258] sm:$0xf0]  ;;  %v16478_v44 = vpop.permute.xlu2 %3682  ;;  %v1946_v59 = vrot.slane %v16470_v29, 4  ;;  %v1805_v62 = vsel %vm19866_vm8, %v1804_v50, %v16169_v27  ;;  %v4220_v15 = vrot.slane %v16236_v48, 4  ;;  %v3290_v33 = vunpack.c.l.b16 %v3240_v53  ;;  %vm2190_vm6 = vmpackc.low %vm16488_vm9, %vm16483_vm7 }
 0x2ec   : > { %2020 = vst [vmem:[#allocation3 + $0x50] sm:$0xff] %v1983_v34  ;;  %v18612_v13 = vrot.slane %v16478_v44, 4  ;;  %v8677_v56 = vor.u32 %v10171_v40, %v8674_v10  ;;  %v10122_v34 = vld [vmem:[#allocation3 + $0x94] sm:$0xf]  ;;  %v3291_v0 = vunpack.c.h.b16 %v3240_v53  ;;  %v19869_v10 = vrot.slane %v16156_v16, 4  ;;  %vm19886_vm13 = vmmov %vm19871_vm3 }
 0x2ed   : > { %v1966_v63 = vsel %vm19868_vm0, %v19867_v45, %v1946_v59  ;;  %5493 = vmatpush.bf16.msrb.mxu3 %v8673_v22  ;;  %vm19872_vm2 = vcmask 924672   ;;  %v2554_v53 = vsel %vm2524_vm11, %v16349_v12, 0  ;;  %vm16544_vm11 = vcmp.ne.s32.totalorder %v3290_v33, %v18980_v35  ;;  %vm19888_vm8 = vmmov %vm19868_vm0 }
 0x2ee   : > { %v16501_v55 = vpop.permute.xlu1 %2935  ;;  %v3734_v50 = vsel %vm19870_vm14, %v19869_v10, %v18612_v13  ;;  %5519 = vmatpush.bf16.msra.mxu1 %v8677_v56  ;;  %v10130_v37 = vld [vmem:[#allocation3 + $0xcc] sm:$0xf0]  ;;  %v8474_v45 = vld [vmem:[#allocation3 + $0xd0] sm:$0xf0]  ;;  %v1851_v56 = vunpack.c.h.b16 %v1805_v62  ;;  %vm16549_vm5 = vcmp.ne.s32.totalorder %v3291_v0, %v18983_v43  ;;  %vm19890_vm14 = vmmov %vm19877_vm1  ;;  %vm19896_vm7 = vcmask 916480  }
 0x2ef   : > { %3686 = vrot.lane.b32.xlu1 %v3643_v41, %s10617_s16  ;;  %v1967_v41 = vsel %vm19871_vm3, %v15228_v31, %v1966_v63  ;;  %v18613_v40 = vrot.slane %v16501_v55, 4  ;;  %v3735_v22 = vsel %vm19872_vm2, %v16156_v16, %v3734_v50  ;;  %v8473_v10 = vor.u32 %v10130_v37, %v8472_v54  ;;  %vm3296_vm0 = vmpackc.low %vm16549_vm5, %vm16544_vm11 }
 0x2f0   : > { %2012 = vst [vmem:[#allocation3 + $0x10] sm:$0xff] %v1967_v41  ;;  %v8477_v13 = vor.u32 %v10122_v34, %v8474_v45  ;;  %v1850_v31 = vunpack.c.l.b16 %v1805_v62  ;;  %v19873_v16 = vrot.slane %v15954_v47, 4  ;;  %2605 = vrot.lane.b32.xlu0 %v2554_v53, %s10613_s30  ;;  %v19876_v62 = vrot.slane %v15525_v20, 4  ;;  %vm19891_vm3 = vmmov %vm19875_vm15 }
 0x2f1   : > { %3778 = vst [vmem:[#allocation3 + $0x320] sm:$0xff] %v3735_v22  ;;  %5444 = vmatpush.bf16.msrb.mxu2 %v8473_v10  ;;  %v2220_v20 = vsel %vm2190_vm6, %v16349_v12, 0  ;;  %vm16571_vm10 = vcmp.ne.s32.totalorder %v1851_v56, %v18983_v43  ;;  %v19887_v41 = vrot.slane %v15998_v17, 4  ;;  %v19889_v56 = vrot.slane %v16380_v51, 4  ;;  %vm19898_vm9 = vmmov %vm19877_vm1 }
 0x2f2   : > { %v2986_v61 = vsel %vm19874_vm12, %v19873_v16, %v18613_v40  ;;  %v4233_v63 = vsel %vm19877_vm1, %v19876_v62, %v4220_v15  ;;  %5470 = vmatpush.bf16.msra.mxu0 %v8477_v13  ;;  %vm16566_vm4 = vcmp.ne.s32.totalorder %v1850_v31, %v18980_v35  ;;  %v16590_v31 = vrot.slane %v16317_v42, 4 }
 0x2f3   : > { %v2987_v37 = vsel %vm19875_vm15, %v15954_v47, %v2986_v61  ;;  %3704 = vrot.lane.b32.xlu2 %v3652_v32, %s10617_s16  ;;  %v16553_v47 = vpop.permute.xlu0 %2917  ;;  %v16561_v28 = vpop.permute.xlu2 %2267  ;;  %v4234_v50 = vsel %vm19886_vm13, %v4233_v63, %v16236_v48  ;;  %v10114_v53 = vld [vmem:[#allocation3 + $0x4c] sm:$0xf0]  ;;  %v8410_v10 = vld [vmem:[#allocation3 + $0x50] sm:$0xf0]  ;;  %vm19892_vm2 = vcmask 130048   ;;  %vm1856_vm12 = vmpackc.low %vm16571_vm10, %vm16566_vm4  ;;  %v3311_v19 = vsel %vm3296_vm0, %v16406_v2, 0 }
 0x2f4   : > { %3023 = vst [vmem:[#allocation3 + $0x1d8] sm:$0xff] %v2987_v37  ;;  %v2949_v33 = vrot.slane %v16553_v47, 4  ;;  %v18614_v0 = vrot.slane %v16561_v28, 4  ;;  %vm19895_vm15 = vmmov %vm19877_vm1  ;;  %vm19903_vm13 = vcmask 1039360   ;;  %v19936_v13 = vrot.slane %v16306_v39, 4 }
 0x2f6   : > { %v2970_v45 = vsel %vm19888_vm8, %v19887_v41, %v2949_v33  ;;  %v16583_v22 = vpop.permute.xlu1 %4032  ;;  %v2318_v16 = vsel %vm19890_vm14, %v19889_v56, %v18614_v0  ;;  %vm19906_vm14 = vmmov %vm19888_vm8 }
 0x2f7   : > { %2271 = vrot.lane.b32.xlu1 %v2220_v20, %s10612_s27  ;;  %v2971_v61 = vsel %vm19891_vm3, %v15998_v17, %v2970_v45  ;;  %v4054_v32 = vrot.slane %v16583_v22, 4  ;;  %v8408_v37 = vld [vmem:[#allocation3 + $0x10] sm:$0xf]  ;;  %v10106_v62 = vld [vmem:[#allocation3 + $0x14] sm:$0xf]  ;;  %v2319_v63 = vsel %vm19892_vm2, %v16380_v51, %v2318_v16  ;;  %v2211_v20 = vsel %vm2190_vm6, %v16300_v5, 0  ;;  %vm19907_vm3 = vmmov %vm19896_vm7 }
 0x2f8   : > { %3015 = vst [vmem:[#allocation3 + $0x198] sm:$0xff] %v2971_v61  ;;  %v8409_v41 = vor.u32 %v10114_v53, %v8408_v37  ;;  %v8413_v56 = vor.u32 %v10106_v62, %v8410_v10  ;;  %v4279_v17 = vunpack.c.l.b16 %v4234_v50  ;;  %v4280_v45 = vunpack.c.h.b16 %v4234_v50  ;;  %v19893_v51 = vld [vmem:[#allocation85_spill] sm:$0xff]  ;;  %2253 = vrot.lane.b32.xlu0 %v2211_v20, %s10612_s27  ;;  %vm19908_vm2 = vmmov %vm19903_vm13 }
 0x2f9   : > { %2355 = vst [vmem:[#allocation3 + $0xd8] sm:$0xff] %v2319_v63  ;;  %v19894_v16 = vrot.slane %v19893_v51, 4  ;;  %v19897_v50 = vrot.slane %v15923_v46, 4  ;;  %v1877_v37 = vsel %vm1856_vm12, %v16300_v5, 0 }
 0x2fa   : > { %5445 = vmatpush.bf16.msrb.mxu2 %v8409_v41  ;;  %5471 = vmatpush.bf16.msra.mxu0 %v8413_v56  ;;  %vm16644_vm6 = vcmp.ne.s32.totalorder %v4279_v17, %v18980_v35  ;;  %vm16649_vm1 = vcmp.ne.s32.totalorder %v4280_v45, %v18983_v43  ;;  %v19904_v56 = vrot.slane %v15874_v52, 4  ;;  %v3961_v45 = vunpack.c.l.b16 %v16167_v18 }
 0x2fb   : > { %v4082_v26 = vsel %vm19895_vm15, %v19894_v16, %v4054_v32  ;;  %3354 = vrot.lane.b32.xlu2 %v3311_v19, %s10615_s15  ;;  %v2808_v10 = vsel %vm19898_vm9, %v19897_v50, %v16590_v31  ;;  %v16631_v61 = vpop.permute.xlu0 %4014  ;;  %v16639_v62 = vpop.permute.xlu2 %3368  ;;  %v10163_v16 = vld [vmem:[#allocation3 + $0x1d4] sm:$0xf0]  ;;  %v19905_v19 = vrot.slane %v16258_v60, 4  ;;  %vm4285_vm15 = vmpackc.low %vm16649_vm1, %vm16644_vm6  ;;  %vm19924_vm1 = vcmask 924672  }
 0x2fc   : > { %v4083_v53 = vsel %vm19896_vm7, %v19893_v51, %v4082_v26  ;;  %v4045_v63 = vrot.slane %v16631_v61, 4  ;;  %v18615_v41 = vrot.slane %v16639_v62, 4  ;;  %v2809_v5 = vsel %vm19903_vm13, %v2808_v10, %v16317_v42 }
 0x2fd   : > { %4118 = vst [vmem:[#allocation3 + $0x3e0] sm:$0xff] %v4083_v53  ;;  %5446 = vmatmul.bf16.vlgmr.msrb.gmra.mxu2 %v15788_v3  ;;  %5472 = vmatmul.bf16.vlgmr.msra.gmra.mxu0 %v15788_v3  ;;  %v3962_v26 = vunpack.c.h.b16 %v16167_v18  ;;  %v3320_v18 = vsel %vm3296_vm0, %v16363_v8, 0  ;;  %v4315_v14 = vsel %vm4285_vm15, %v15921_v58, 0  ;;  %vm16701_vm11 = vcmp.ne.s32.totalorder %v3961_v45, %v18980_v35  ;;  %vm19918_vm0 = vmmov %vm19888_vm8 }
 0x2fe   : > { %v4066_v17 = vsel %vm19888_vm8, %v19904_v56, %v4045_v63  ;;  %v2451_v51 = vpop.permute.xlu1 %2450  ;;  %v3418_v42 = vsel %vm19906_vm14, %v19905_v19, %v18615_v41  ;;  %v3798_v19 = vld [vmem:[#allocation2 + $0x44] sm:$0xf]  ;;  %vm19919_vm7 = vcmask 121856   ;;  %vm19921_vm9 = vmmov %vm19918_vm0  ;;  %vm19925_vm8 = vcmask 130048  }
 0x2ff   : > { %1919 = vrot.lane.b32.xlu1 %v1877_v37, %s10611_s26  ;;  %v4067_v53 = vsel %vm19907_vm3, %v15874_v52, %v4066_v17  ;;  %v8608_v50 = vld [vmem:[#allocation3 + $0x198] sm:$0xf]  ;;  %v10155_v10 = vld [vmem:[#allocation3 + $0x19c] sm:$0xf]  ;;  %v3419_v56 = vsel %vm19908_vm2, %v16258_v60, %v3418_v42  ;;  %v2859_v52 = vunpack.c.l.b16 %v2809_v5  ;;  %v2860_v17 = vunpack.c.h.b16 %v2809_v5  ;;  %vm19923_vm6 = vmmov %vm19918_vm0 }
 0x300   : > { %v8610_v37 = vld [vmem:[#allocation3 + $0x1d8] sm:$0xf0]  ;;  %4110 = vst [vmem:[#allocation3 + $0x3a0] sm:$0xff] %v4067_v53  ;;  %v8609_v40 = vor.u32 %v10163_v16, %v8608_v50  ;;  %3372 = vrot.lane.b32.xlu0 %v3320_v18, %s10615_s15  ;;  %v1886_v60 = vsel %vm1856_vm12, %v16349_v12, 0  ;;  %vm16706_vm5 = vcmp.ne.s32.totalorder %v3962_v26, %v18983_v43  ;;  %v19917_v16 = vrot.slane %v16226_v11, 4  ;;  %vm19931_vm2 = vmmov %vm19918_vm0 }
 0x301   : > { %v8613_v0 = vor.u32 %v10155_v10, %v8610_v37  ;;  %3454 = vst [vmem:[#allocation3 + $0x2e0] sm:$0xff] %v3419_v56  ;;  %vm16717_vm4 = vcmp.ne.s32.totalorder %v2859_v52, %v18980_v35  ;;  %vm16722_vm10 = vcmp.ne.s32.totalorder %v2860_v17, %v18983_v43  ;;  %vm3967_vm12 = vmpackc.low %vm16706_vm5, %vm16701_vm11  ;;  %v19920_v53 = vrot.slane %v15860_v36, 4  ;;  %v16768_v56 = vld [vmem:[#allocation2 + $0x38] sm:$0xff] }
 0x302   : > { %5494 = vmatpush.bf16.msrb.mxu3 %v8609_v40  ;;  %v16710_v40 = vrot.slane %v2451_v51, 4  ;;  %v4306_v37 = vsel %vm4285_vm15, %v15948_v30, 0  ;;  %vm2865_vm13 = vmpackc.low %vm16722_vm10, %vm16717_vm4  ;;  %v3630_v36 = vunpack.c.h.b16 %v16265_v7  ;;  %v3976_v20 = vsel %vm3967_vm12, %v3798_v19, 0 }
 0x303   : > { %1937 = vrot.lane.b32.xlu2 %v1886_v60, %s10611_s26  ;;  %5520 = vmatpush.bf16.msra.mxu1 %v8613_v0  ;;  %v16692_v54 = vpop.permute.xlu0 %2601  ;;  %v16712_v34 = vpop.permute.xlu2 %4212  ;;  %v19922_v30 = vrot.slane %v16081_v25, 4  ;;  %v2880_v17 = vsel %vm2865_vm13, %v16768_v56, 0  ;;  %vm19933_vm15 = vmmov %vm19918_vm0  ;;  %vm19938_vm5 = vcmask 1039360  }
 0x304   : > { %v18618_v0 = vrot.slane %v16692_v54, 4  ;;  %v2474_v50 = vsel %vm19921_vm9, %v19920_v53, %v16710_v40  ;;  %vm16792_vm3 = vcmp.ne.s32.totalorder %v3630_v36, %v18983_v43  ;;  %vm19937_vm11 = vmmov %vm19931_vm2 }
 0x306   : > { %v2652_v45 = vsel %vm19918_vm0, %v19917_v16, %v18618_v0  ;;  %v16731_v26 = vpop.permute.xlu1 %2249  ;;  %v3807_v16 = vld [vmem:[#allocation2 + $0x8c] sm:$0xf]  ;;  %vm19934_vm0 = vmmov %vm19924_vm1 }
 0x307   : > { %4366 = vrot.lane.b32.xlu1 %v4315_v14, %s10621_s23  ;;  %v2653_v42 = vsel %vm19919_vm7, %v16226_v11, %v2652_v45  ;;  %v18616_v10 = vrot.slane %v16731_v26, 4  ;;  %v3629_v11 = vunpack.c.l.b16 %v16265_v7  ;;  %v2475_v7 = vsel %vm19924_vm1, %v2474_v50, %v2451_v51  ;;  %v3475_v0 = vld [vmem:[#allocation2 + $0x8c] sm:$0xf] }
 0x308   : > { %2689 = vst [vmem:[#allocation3 + $0x158] sm:$0xff] %v2653_v42  ;;  %4348 = vrot.lane.b32.xlu0 %v4306_v37, %s10621_s23  ;;  %v2525_v19 = vunpack.c.l.b16 %v2475_v7  ;;  %v19930_v42 = vrot.slane %v16108_v23, 4  ;;  %v8544_v37 = vld [vmem:[#allocation3 + $0x118] sm:$0xf]  ;;  %vm19935_vm7 = vcmask 908288  }
 0x309   : > { %v2302_v46 = vsel %vm19923_vm6, %v19922_v30, %v18616_v10  ;;  %vm16787_vm14 = vcmp.ne.s32.totalorder %v3629_v11, %v18980_v35  ;;  %v2526_v11 = vunpack.c.h.b16 %v2475_v7  ;;  %v19932_v30 = vrot.slane %v16027_v24, 4  ;;  %v16818_v10 = vld [vmem:[#allocation2 + $0x80] sm:$0xff] }
 0x30a   : > { %v2303_v18 = vsel %vm19925_vm8, %v16081_v25, %v2302_v46  ;;  %v3985_v7 = vsel %vm3967_vm12, %v3807_v16, 0  ;;  %vm3635_vm9 = vmpackc.low %vm16792_vm3, %vm16787_vm14  ;;  %vm16842_vm12 = vcmp.ne.s32.totalorder %v2525_v19, %v18980_v35  ;;  %v16857_v19 = vrot.slane %v16712_v34, 4 }
 0x30b   : > { %4020 = vrot.lane.b32.xlu2 %v3976_v20, %s10620_s18  ;;  %v16773_v52 = vpop.permute.xlu0 %3700  ;;  %2347 = vst [vmem:[#allocation3 + $0x98] sm:$0xff] %v2303_v18  ;;  %v16781_v60 = vpop.permute.xlu2 %4362  ;;  %v10139_v20 = vld [vmem:[#allocation3 + $0x11c] sm:$0xf]  ;;  %vm16847_vm6 = vcmp.ne.s32.totalorder %v2526_v11, %v18983_v43  ;;  %vm19949_vm8 = vmmov %vm19931_vm2  ;;  %vm19954_vm14 = vcmask 138240  }
 0x30c   : > { %v3722_v14 = vrot.slane %v16773_v52, 4  ;;  %v18617_v51 = vrot.slane %v16781_v60, 4  ;;  %vm2531_vm1 = vmpackc.low %vm16847_vm6, %vm16842_vm12  ;;  %vm19965_vm12 = vcmask 908288  }
 0x30d   : > { %vm19955_vm3 = vmmov %vm19954_vm14 }
 0x30e   : > { %v3750_v53 = vsel %vm19931_vm2, %v19930_v42, %v3722_v14  ;;  %v16801_v50 = vpop.permute.xlu1 %3350  ;;  %v4412_v36 = vsel %vm19933_vm15, %v19932_v30, %v18617_v51  ;;  %vm19951_vm15 = vmmov %vm19949_vm8 }
 0x30f   : > { %2923 = vrot.lane.b32.xlu1 %v2880_v17, %s10614_s11  ;;  %v3751_v46 = vsel %vm19934_vm0, %v16108_v23, %v3750_v53  ;;  %v3381_v18 = vrot.slane %v16801_v50, 4  ;;  %v10147_v17 = vld [vmem:[#allocation3 + $0x154] sm:$0xf0]  ;;  %v8546_v41 = vld [vmem:[#allocation3 + $0x158] sm:$0xf0]  ;;  %v4413_v42 = vsel %vm19935_vm7, %v16027_v24, %v4412_v36  ;;  %v3297_v23 = vunpack.c.l.b16 %v16389_v1 }
 0x310   : > { %3786 = vst [vmem:[#allocation3 + $0x360] sm:$0xff] %v3751_v46  ;;  %v8545_v30 = vor.u32 %v10147_v17, %v8544_v37  ;;  %v8549_v51 = vor.u32 %v10139_v20, %v8546_v41  ;;  %v3298_v24 = vunpack.c.h.b16 %v16389_v1  ;;  %4038 = vrot.lane.b32.xlu0 %v3985_v7, %s10620_s18  ;;  %v2889_v41 = vsel %vm2865_vm13, %v16818_v10, 0  ;;  %v10131_v1 = vld [vmem:[#allocation3 + $0xd4] sm:$0xf0]  ;;  %v3466_v7 = vld [vmem:[#allocation2 + $0x44] sm:$0xf]  ;;  %vm19948_vm13 = vmmov %vm19931_vm2 }
 0x311   : > { %4449 = vst [vmem:[#allocation3 + $0x458] sm:$0xff] %v4413_v42  ;;  %v3402_v12 = vsel %vm19937_vm11, %v19936_v13, %v3381_v18  ;;  %vm16866_vm4 = vcmp.ne.s32.totalorder %v3297_v23, %v18980_v35  ;;  %v19947_v13 = vrot.slane %v16006_v21, 4  ;;  %vm19950_vm2 = vcmask 916480   ;;  %vm19953_vm11 = vmmov %vm19949_vm8 }
 0x312   : > { %v3403_v16 = vsel %vm19938_vm5, %v16306_v39, %v3402_v12  ;;  %5495 = vmatpush.bf16.msrb.mxu3 %v8545_v30  ;;  %5521 = vmatpush.bf16.msra.mxu1 %v8549_v51  ;;  %v3653_v39 = vsel %vm3635_vm9, %v3475_v0, 0  ;;  %v8480_v5 = vld [vmem:[#allocation3 + $0x98] sm:$0xf]  ;;  %v10123_v20 = vld [vmem:[#allocation3 + $0x9c] sm:$0xf]  ;;  %vm16871_vm10 = vcmp.ne.s32.totalorder %v3298_v24, %v18983_v43  ;;  %vm19952_vm0 = vcmask 7168  }
 0x313   : > { %2941 = vrot.lane.b32.xlu2 %v2889_v41, %s10614_s11  ;;  %3446 = vst [vmem:[#allocation3 + $0x2a0] sm:$0xff] %v3403_v16  ;;  %v2117_v58 = vpop.permute.xlu0 %2116  ;;  %v16859_v36 = vpop.permute.xlu2 %2919  ;;  %v8481_v46 = vor.u32 %v10131_v1, %v8480_v5  ;;  %v8482_v51 = vld [vmem:[#allocation3 + $0xd8] sm:$0xf0]  ;;  %v4235_v16 = vsel %vm19951_vm15, %v4220_v15, %v16857_v19  ;;  %vm3303_vm7 = vmpackc.low %vm16871_vm10, %vm16866_vm4  ;;  %vm19962_vm15 = vcmask 924672  }
 0x314   : > { %v16861_v11 = vrot.slane %v2117_v58, 4  ;;  %v2950_v17 = vrot.slane %v16859_v36, 4  ;;  %v8485_v42 = vor.u32 %v10123_v20, %v8482_v51  ;;  %v4236_v45 = vsel %vm19955_vm3, %v4235_v16, %v16712_v34  ;;  %vm19970_vm4 = vmmov %vm19949_vm8 }
 0x316   : > { %v2140_v12 = vsel %vm19948_vm13, %v19947_v13, %v16861_v11  ;;  %5496 = vmatpush.bf16.msrb.mxu3 %v8481_v46  ;;  %v16879_v41 = vpop.permute.xlu1 %1933  ;;  %v2972_v23 = vsel %vm19949_vm8, %v2949_v33, %v2950_v17  ;;  %5522 = vmatpush.bf16.msra.mxu1 %v8485_v42  ;;  %v3134_v33 = vld [vmem:[#allocation2 + $0x44] sm:$0xf]  ;;  %v4286_v42 = vunpack.c.l.b16 %v4236_v45  ;;  %vm19960_vm13 = vmmov %vm19949_vm8 }
 0x317   : > { %3706 = vrot.lane.b32.xlu1 %v3653_v39, %s10617_s16  ;;  %v2141_v24 = vsel %vm19950_vm2, %v2140_v12, %v2117_v58  ;;  %v1956_v21 = vrot.slane %v16879_v41, 4  ;;  %v2973_v1 = vsel %vm19952_vm0, %v16553_v47, %v2972_v23  ;;  %v3644_v39 = vsel %vm3635_vm9, %v3466_v7, 0  ;;  %v3143_v12 = vld [vmem:[#allocation2 + $0x8c] sm:$0xf]  ;;  %vm19961_vm2 = vmmov %vm19955_vm3 }
 0x318   : > { %3016 = vst [vmem:[#allocation3 + $0x1a0] sm:$0xff] %v2973_v1  ;;  %v2191_v58 = vunpack.c.l.b16 %v2141_v24  ;;  %v2192_v48 = vunpack.c.h.b16 %v2141_v24  ;;  %3688 = vrot.lane.b32.xlu0 %v3644_v39, %s10617_s16  ;;  %v2546_v47 = vsel %vm2531_vm1, %v16768_v56, 0  ;;  %v4287_v23 = vunpack.c.h.b16 %v4236_v45 }
 0x319   : > { %v1984_v15 = vsel %vm19953_vm11, %v1955_v57, %v1956_v21  ;;  %v3312_v57 = vsel %vm3303_vm7, %v3134_v33, 0  ;;  %vm19964_vm11 = vmmov %vm19949_vm8  ;;  %vm16988_vm6 = vcmp.ne.s32.totalorder %v4286_v42, %v18980_v35  ;;  %vm19973_vm3 = vcmask 1039360  }
 0x31a   : > { %v1985_v25 = vsel %vm19954_vm14, %v16417_v38, %v1984_v15  ;;  %vm16936_vm9 = vcmp.ne.s32.totalorder %v2191_v58, %v18980_v35  ;;  %vm16941_vm5 = vcmp.ne.s32.totalorder %v2192_v48, %v18983_v43  ;;  %vm19972_vm14 = vmmov %vm19965_vm12  ;;  %v8744_v33 = vld [vmem:[#allocation3 + $0x2a0] sm:$0xf] }
 0x31b   : > { %2589 = vrot.lane.b32.xlu2 %v2546_v47, %s10613_s30  ;;  %2021 = vst [vmem:[#allocation3 + $0x58] sm:$0xff] %v1985_v25  ;;  %v16924_v5 = vpop.permute.xlu0 %1915  ;;  %v16931_v20 = vpop.permute.xlu2 %3702  ;;  %vm2197_vm0 = vmpackc.low %vm16941_vm5, %vm16936_vm9 }
 0x31c   : > { %v1947_v46 = vrot.slane %v16924_v5, 4  ;;  %v3723_v51 = vrot.slane %v16931_v20, 4 }
 0x31e   : > { %v1968_v7 = vsel %vm19960_vm13, %v1946_v59, %v1947_v46  ;;  %v16951_v13 = vpop.permute.xlu1 %4344  ;;  %v3752_v24 = vsel %vm19949_vm8, %v3722_v14, %v3723_v51  ;;  %v2555_v59 = vsel %vm2531_vm1, %v16818_v10, 0  ;;  %v3321_v14 = vsel %vm3303_vm7, %v3143_v12, 0  ;;  %vm19971_vm7 = vmmov %vm19970_vm4 }
 0x31f   : > { %3356 = vrot.lane.b32.xlu1 %v3312_v57, %s10615_s15  ;;  %v1969_v16 = vsel %vm19961_vm2, %v16470_v29, %v1968_v7  ;;  %v4376_v1 = vrot.slane %v16951_v13, 4  ;;  %v3753_v39 = vsel %vm19962_vm15, %v16773_v52, %v3752_v24  ;;  %v19963_v29 = vrot.slane %v16073_v49, 4  ;;  %vm19974_vm13 = vmmov %vm19970_vm4 }
 0x320   : > { %2013 = vst [vmem:[#allocation3 + $0x18] sm:$0xff] %v1969_v16  ;;  %2607 = vrot.lane.b32.xlu0 %v2555_v59, %s10613_s30  ;;  %vm16993_vm1 = vcmp.ne.s32.totalorder %v4287_v23, %v18983_v43  ;;  %v2866_v59 = vunpack.c.l.b16 %v16590_v31  ;;  %vm19979_vm8 = vcmask 916480   ;;  %vm19980_vm15 = vmmov %vm19970_vm4 }
 0x321   : > { %3787 = vst [vmem:[#allocation3 + $0x368] sm:$0xff] %v3753_v39  ;;  %v4396_v52 = vsel %vm19964_vm11, %v19963_v29, %v4376_v1  ;;  %vm4292_vm10 = vmpackc.low %vm16993_vm1, %vm16988_vm6  ;;  %v8872_v39 = vld [vmem:[#allocation3 + $0x3a0] sm:$0xf]  ;;  %v10243_v29 = vld [vmem:[#allocation3 + $0x454] sm:$0xf0] }
 0x322   : > { %v4397_v53 = vsel %vm19965_vm12, %v16073_v49, %v4396_v52  ;;  %v2221_v49 = vsel %vm2197_vm0, %v16818_v10, 0  ;;  %v10115_v25 = vld [vmem:[#allocation3 + $0x54] sm:$0xf0]  ;;  %v10220_v52 = vld [vmem:[#allocation3 + $0x3a4] sm:$0xf]  ;;  %vm19986_vm12 = vmmov %vm19970_vm4 }
 0x323   : > { %3374 = vrot.lane.b32.xlu2 %v3321_v14, %s10615_s15  ;;  %4441 = vst [vmem:[#allocation3 + $0x418] sm:$0xff] %v4397_v53  ;;  %v1782_v30 = vpop.permute.xlu0 %1781  ;;  %v2867_v14 = vunpack.c.h.b16 %v16590_v31 }
 0x324   : > { %v17003_v0 = vpop.permute.xlu2 %3352  ;;  %v17005_v58 = vrot.slane %v1782_v30, 4 }
 0x325   : > { %v3382_v48 = vrot.slane %v17003_v0, 4  ;;  %vm17092_vm11 = vcmp.ne.s32.totalorder %v2867_v14, %v18983_v43 }
 0x326   : > { %v1806_v15 = vsel %vm19970_vm4, %v1789_v9, %v17005_v58  ;;  %v17013_v47 = vpop.permute.xlu1 %4034  ;;  %v2212_v9 = vsel %vm2197_vm0, %v16768_v56, 0  ;;  %vm17087_vm0 = vcmp.ne.s32.totalorder %v2866_v59, %v18980_v35  ;;  %vm19987_vm4 = vmmov %vm19979_vm8 }
 0x327   : > { %2273 = vrot.lane.b32.xlu1 %v2221_v49, %s10612_s27  ;;  %v3404_v45 = vsel %vm19971_vm7, %v3381_v18, %v3382_v48  ;;  %v1807_v57 = vsel %vm19972_vm14, %v1806_v15, %v1782_v30  ;;  %v4055_v27 = vrot.slane %v17013_v47, 4  ;;  %v8416_v42 = vld [vmem:[#allocation3 + $0x18] sm:$0xf]  ;;  %v10107_v7 = vld [vmem:[#allocation3 + $0x1c] sm:$0xf]  ;;  %vm19988_vm7 = vcmask 130048   ;;  %vm2872_vm6 = vmpackc.low %vm17092_vm11, %vm17087_vm0 }
 0x328   : > { %v3405_v12 = vsel %vm19973_vm3, %v16801_v50, %v3404_v45  ;;  %v1857_v23 = vunpack.c.l.b16 %v1807_v57  ;;  %v1858_v24 = vunpack.c.h.b16 %v1807_v57  ;;  %v8417_v16 = vor.u32 %v10115_v25, %v8416_v42  ;;  %v8418_v18 = vld [vmem:[#allocation3 + $0x58] sm:$0xf0]  ;;  %2255 = vrot.lane.b32.xlu0 %v2212_v9, %s10612_s27  ;;  %v10228_v57 = vld [vmem:[#allocation3 + $0x3dc] sm:$0xf0]  ;;  %vm19989_vm14 = vmmov %vm19988_vm7 }
 0x329   : > { %3447 = vst [vmem:[#allocation3 + $0x2a8] sm:$0xff] %v3405_v12  ;;  %v4084_v38 = vsel %vm19974_vm13, %v4054_v32, %v4055_v27  ;;  %v4307_v50 = vsel %vm4292_vm10, %v16406_v2, 0  ;;  %v8421_v34 = vor.u32 %v10107_v7, %v8418_v18  ;;  %v8930_v15 = vld [vmem:[#allocation3 + $0x458] sm:$0xf0]  ;;  %v8873_v7 = vor.u32 %v10228_v57, %v8872_v39  ;;  %v8874_v12 = vld [vmem:[#allocation3 + $0x3e0] sm:$0xf0]  ;;  %vm19991_vm3 = vmmov %vm19986_vm12 }
 0x32a   : > { %vm17049_vm9 = vcmp.ne.s32.totalorder %v1857_v23, %v18980_v35  ;;  %vm17054_vm5 = vcmp.ne.s32.totalorder %v1858_v24, %v18983_v43  ;;  %v4085_v2 = vsel %vm19979_vm8, %v16583_v22, %v4084_v38  ;;  %5497 = vmatpush.bf16.msrb.mxu3 %v8417_v16  ;;  %v8928_v30 = vld [vmem:[#allocation3 + $0x418] sm:$0xf]  ;;  %v10235_v49 = vld [vmem:[#allocation3 + $0x41c] sm:$0xf]  ;;  %v8877_v24 = vor.u32 %v10220_v52, %v8874_v12  ;;  %v10212_v16 = vld [vmem:[#allocation3 + $0x35c] sm:$0xf0] }
 0x32b   : > { %4350 = vrot.lane.b32.xlu2 %v4307_v50, %s10621_s23  ;;  %4119 = vst [vmem:[#allocation3 + $0x3e8] sm:$0xff] %v4085_v2  ;;  %5523 = vmatpush.bf16.msra.mxu1 %v8421_v34  ;;  %v17061_v31 = vpop.permute.xlu0 %4016  ;;  %vm1863_vm2 = vmpackc.low %vm17054_vm5, %vm17049_vm9  ;;  %v8929_v25 = vor.u32 %v10243_v29, %v8928_v30  ;;  %v8933_v45 = vor.u32 %v10235_v49, %v8930_v15  ;;  %v2532_v18 = vunpack.c.l.b16 %v16710_v40  ;;  %v2533_v29 = vunpack.c.h.b16 %v16710_v40  ;;  %v8808_v30 = vld [vmem:[#allocation3 + $0x320] sm:$0xf]  ;;  %v10204_v15 = vld [vmem:[#allocation3 + $0x324] sm:$0xf] }
 0x32c   : > { %v17067_v9 = vpop.permute.xlu2 %2269  ;;  %v4046_v22 = vrot.slane %v17061_v31, 4  ;;  %v1878_v42 = vsel %vm1863_vm2, %v16768_v56, 0  ;;  %v8810_v56 = vld [vmem:[#allocation3 + $0x360] sm:$0xf0]  ;;  %v4316_v40 = vsel %vm4292_vm10, %v16363_v8, 0  ;;  %v8809_v49 = vor.u32 %v10212_v16, %v8808_v30  ;;  %vm19992_vm1 = vmmov %vm19988_vm7 }
 0x32d   : > { %v2291_v23 = vrot.slane %v17067_v9, 4  ;;  %5510 = vmatpush.bf16.msra.mxu2 %v8929_v25  ;;  %5536 = vmatpush.bf16.msrb.mxu0 %v8933_v45  ;;  %v1887_v8 = vsel %vm1863_vm2, %v16818_v10, 0  ;;  %v8813_v37 = vor.u32 %v10204_v15, %v8810_v56  ;;  %v2198_v25 = vunpack.c.l.b16 %v16861_v11  ;;  %v10188_v10 = vld [vmem:[#allocation3 + $0x2a4] sm:$0xf]  ;;  %v2711_v57 = vld [vmem:[#allocation2 + $0x88] sm:$0xf]  ;;  %vm19999_vm5 = vmmov %vm19991_vm3 }
 0x32e   : > { %v4068_v38 = vsel %vm19980_vm15, %v4045_v63, %v4046_v22  ;;  %v17084_v50 = vpop.permute.xlu1 %3684  ;;  %v19985_v63 = vrot.slane %v16561_v28, 4  ;;  %5498 = vmatmul.bf16.vlgmr.msrb.gmra.mxu3 %v15788_v3  ;;  %5524 = vmatmul.bf16.vlgmr.msra.gmra.mxu1 %v15788_v3  ;;  %v2199_v45 = vunpack.c.h.b16 %v16861_v11  ;;  %vm19993_vm10 = vcmask 924672   ;;  %v1708_v15 = vld [vmem:[#allocation2 + $0x88] sm:$0xf] }
 0x32f   : > { %1921 = vrot.lane.b32.xlu1 %v1878_v42, %s10611_s26  ;;  %v4069_v2 = vsel %vm19987_vm4, %v16631_v61, %v4068_v38  ;;  %v3714_v59 = vrot.slane %v17084_v50, 4  ;;  %v10196_v42 = vld [vmem:[#allocation3 + $0x2dc] sm:$0xf0]  ;;  %vm17143_vm13 = vcmp.ne.s32.totalorder %v2532_v18, %v18980_v35  ;;  %vm17148_vm9 = vcmp.ne.s32.totalorder %v2533_v29, %v18983_v43  ;;  %v8746_v18 = vld [vmem:[#allocation3 + $0x2e0] sm:$0xf0] }
 0x330   : > { %v2320_v52 = vsel %vm19986_vm12, %v19985_v63, %v2291_v23  ;;  %4111 = vst [vmem:[#allocation3 + $0x3a8] sm:$0xff] %v4069_v2  ;;  %8972 = vmatmul.msk.bf16.vlgmr.msra.gmra.mxu2 %vm19989_vm14, %v15687_v6  ;;  %4368 = vrot.lane.b32.xlu0 %v4316_v40, %s10621_s23  ;;  %v8745_v16 = vor.u32 %v10196_v42, %v8744_v33  ;;  %v8680_v29 = vld [vmem:[#allocation3 + $0x220] sm:$0xf]  ;;  %vm2538_vm8 = vmpackc.low %vm17148_vm9, %vm17143_vm13  ;;  %v8682_v40 = vld [vmem:[#allocation3 + $0x260] sm:$0xf0]  ;;  %vm20005_vm4 = vcmask 7168   ;;  %v1864_v34 = vunpack.c.l.b16 %v17005_v58 }
 0x331   : > { %5542 = vmatpush.bf16.msrb.mxu2 %v8873_v7  ;;  %5568 = vmatpush.bf16.msra.mxu0 %v8877_v24  ;;  %v2321_v14 = vsel %vm19988_vm7, %v16561_v28, %v2320_v52  ;;  %v19990_v28 = vrot.slane %v16478_v44, 4  ;;  %v2890_v24 = vsel %vm2872_vm6, %v2711_v57, 0  ;;  %v8749_v56 = vor.u32 %v10188_v10, %v8746_v18  ;;  %v10180_v63 = vld [vmem:[#allocation3 + $0x25c] sm:$0xf0]  ;;  %vm20004_vm12 = vmmov %vm19991_vm3 }
 0x332   : > { %2356 = vst [vmem:[#allocation3 + $0xe0] sm:$0xff] %v2321_v14  ;;  %8973 = vmatmul.msk.bf16.vlgmr.msrb.gmra.mxu0 %vm19992_vm1, %v15687_v6  ;;  %v19998_v52 = vrot.slane %v16501_v55, 4  ;;  %v10172_v14 = vld [vmem:[#allocation3 + $0x224] sm:$0xf]  ;;  %vm17172_vm2 = vcmp.ne.s32.totalorder %v2198_v25, %v18980_v35  ;;  %vm17177_vm15 = vcmp.ne.s32.totalorder %v2199_v45, %v18983_v43  ;;  %vm20006_vm7 = vcmask 138240   ;;  %vm20008_vm14 = vmmov %vm19991_vm3 }
 0x333   : > { %v3736_v61 = vsel %vm19991_vm3, %v19990_v28, %v3714_v59  ;;  %1939 = vrot.lane.b32.xlu2 %v1887_v8, %s10611_s26  ;;  %v17140_v53 = vpop.permute.xlu0 %2937  ;;  %v2368_v45 = vld [vmem:[#allocation2 + $0x40] sm:$0xf]  ;;  %v8685_v39 = vor.u32 %v10172_v14, %v8682_v40  ;;  %vm2204_vm0 = vmpackc.low %vm17177_vm15, %vm17172_vm2  ;;  %v1865_v10 = vunpack.c.h.b16 %v17005_v58  ;;  %vm20009_vm11 = vcmask 121856   ;;  %v8616_v14 = vld [vmem:[#allocation3 + $0x1a0] sm:$0xf] }
 0x334   : > { %v3737_v32 = vsel %vm19993_vm10, %v16478_v44, %v3736_v61  ;;  %v17152_v44 = vpop.permute.xlu2 %1917  ;;  %v2959_v12 = vrot.slane %v17140_v53, 4  ;;  %v10156_v40 = vld [vmem:[#allocation3 + $0x1a4] sm:$0xf]  ;;  %vm20015_vm10 = vmmov %vm19991_vm3  ;;  %vm20020_vm9 = vcmask 130048  }
 0x335   : > { %5543 = vmatpush.bf16.msrb.mxu2 %v8809_v49  ;;  %3779 = vst [vmem:[#allocation3 + $0x328] sm:$0xff] %v3737_v32  ;;  %5569 = vmatpush.bf16.msra.mxu0 %v8813_v37  ;;  %v1948_v38 = vrot.slane %v17152_v44, 4  ;;  %v2702_v37 = vld [vmem:[#allocation2 + $0x40] sm:$0xf]  ;;  %v8681_v32 = vor.u32 %v10180_v63, %v8680_v29  ;;  %v20010_v29 = vrot.slane %v16391_v4, 4  ;;  %vm17237_vm1 = vcmp.ne.s32.totalorder %v1865_v10, %v18983_v43  ;;  %vm20026_vm15 = vmmov %vm19991_vm3 }
 0x336   : > { %v2988_v2 = vsel %vm19999_vm5, %v19998_v52, %v2959_v12  ;;  %v17165_v30 = vpop.permute.xlu1 %2603  ;;  %v2881_v25 = vsel %vm2872_vm6, %v2702_v37, 0  ;;  %vm17232_vm6 = vcmp.ne.s32.totalorder %v1864_v34, %v18980_v35  ;;  %v4294_v37 = vunpack.c.h.b16 %v16857_v19  ;;  %vm20016_vm5 = vmmov %vm20009_vm11 }
 0x337   : > { %2943 = vrot.lane.b32.xlu1 %v2890_v24, %s10614_s11  ;;  %v1970_v28 = vsel %vm20004_vm12, %v1947_v46, %v1948_v38  ;;  %v2989_v61 = vsel %vm20005_vm4, %v16501_v55, %v2988_v2  ;;  %v2625_v8 = vrot.slane %v17165_v30, 4  ;;  %v20007_v55 = vrot.slane %v16692_v54, 4  ;;  %v2034_v24 = vld [vmem:[#allocation2 + $0x40] sm:$0xf]  ;;  %v2377_v2 = vld [vmem:[#allocation2 + $0x88] sm:$0xf]  ;;  %vm20017_vm12 = vmmov %vm20005_vm4 }
 0x338   : > { %v1971_v33 = vsel %vm20006_vm7, %v16924_v5, %v1970_v28  ;;  %3024 = vst [vmem:[#allocation3 + $0x1e0] sm:$0xff] %v2989_v61  ;;  %2925 = vrot.lane.b32.xlu0 %v2881_v25, %s10614_s11  ;;  %v2547_v5 = vsel %vm2538_vm8, %v2368_v45, 0  ;;  %vm20019_vm4 = vmmov %vm19991_vm3  ;;  %vm17281_vm2 = vcmp.ne.s32.totalorder %v4294_v37, %v18983_v43  ;;  %v20025_v43 = vrot.slane %v16639_v62, 4  ;;  %v4599_v61 = vld [vmem:[%s18341_s5] sm:$0xff] }
 0x339   : > { %5544 = vmatpush.bf16.msrb.mxu2 %v8745_v16  ;;  %5570 = vmatpush.bf16.msra.mxu0 %v8749_v56  ;;  %2014 = vst [vmem:[#allocation3 + $0x20] sm:$0xff] %v1971_v33  ;;  %v2654_v46 = vsel %vm20008_vm14, %v20007_v55, %v2625_v8  ;;  %v2213_v56 = vsel %vm2204_vm0, %v2034_v24, 0  ;;  %vm1870_vm13 = vmpackc.low %vm17237_vm1, %vm17232_vm6  ;;  %vm20031_vm6 = vcmask 908288  }
 0x33a   : > { %v2655_v57 = vsel %vm20009_vm11, %v16692_v54, %v2654_v46  ;;  %v4293_v54 = vunpack.c.l.b16 %v16857_v19  ;;  %v2556_v19 = vsel %vm2538_vm8, %v2377_v2, 0  ;;  %v1888_v24 = vsel %vm1870_vm13, %v1708_v15, 0  ;;  %vm20027_vm14 = vmmov %vm19991_vm3 }
 0x33b   : > { %2591 = vrot.lane.b32.xlu2 %v2547_v5, %s10613_s30  ;;  %2690 = vst [vmem:[#allocation3 + $0x160] sm:$0xff] %v2655_v57  ;;  %v2586_v42 = vpop.permute.xlu0 %2585  ;;  %v2043_v5 = vld [vmem:[#allocation2 + $0x88] sm:$0xf]  ;;  %vm20029_vm11 = vmmov %vm20016_vm5 }
 0x33c   : > { %v17216_v16 = vpop.permute.xlu2 %2939  ;;  %v2616_v18 = vrot.slane %v2586_v42, 4  ;;  %vm17276_vm8 = vcmp.ne.s32.totalorder %v4293_v54, %v18980_v35  ;;  %v4130_v54 = vld [vmem:[#allocation2 + $0x44] sm:$0xf]  ;;  %vm20032_vm1 = vmmov %vm19991_vm3 }
 0x33d   : > { %5545 = vmatpush.bf16.msrb.mxu2 %v8681_v32  ;;  %5571 = vmatpush.bf16.msra.mxu0 %v8685_v39  ;;  %v2960_v58 = vrot.slane %v17216_v16, 4  ;;  %vm4299_vm7 = vmpackc.low %vm17281_vm2, %vm17276_vm8  ;;  %vm20040_vm2 = vcmask 138240  }
 0x33e   : > { %v2638_v63 = vsel %vm19991_vm3, %v20010_v29, %v2616_v18  ;;  %v17229_v52 = vpop.permute.xlu1 %2251  ;;  %vm20039_vm8 = vmmov %vm20032_vm1 }
 0x33f   : > { %2257 = vrot.lane.b32.xlu1 %v2213_v56, %s10612_s27  ;;  %v2990_v33 = vsel %vm20015_vm10, %v2959_v12, %v2960_v58  ;;  %v2639_v25 = vsel %vm20016_vm5, %v16391_v4, %v2638_v63  ;;  %v2282_v45 = vrot.slane %v17229_v52, 4  ;;  %v10164_v32 = vld [vmem:[#allocation3 + $0x1dc] sm:$0xf0]  ;;  %v8618_v55 = vld [vmem:[#allocation3 + $0x1e0] sm:$0xf0]  ;;  %v20018_v4 = vrot.slane %v16731_v26, 4  ;;  %vm20033_vm10 = vmmov %vm20032_vm1 }
 0x340   : > { %v2991_v46 = vsel %vm20017_vm12, %v17140_v53, %v2990_v33  ;;  %2682 = vst [vmem:[#allocation3 + $0x120] sm:$0xff] %v2639_v25  ;;  %v8617_v39 = vor.u32 %v10164_v32, %v8616_v14  ;;  %v8621_v12 = vor.u32 %v10156_v40, %v8618_v55  ;;  %2609 = vrot.lane.b32.xlu0 %v2556_v19, %s10613_s30  ;;  %v2222_v53 = vsel %vm2204_vm0, %v2043_v5, 0  ;;  %v1699_v56 = vld [vmem:[#allocation2 + $0x40] sm:$0xf]  ;;  %vm20034_vm5 = vmmov %vm20031_vm6  ;;  %s371_s30 = scalar_lea.vmem %s18346_s10, %s8321_s22 }
 0x341   : > { %3025 = vst [vmem:[#allocation3 + $0x1e8] sm:$0xff] %v2991_v46  ;;  %v2304_v34 = vsel %vm20019_vm4, %v20018_v4, %v2282_v45  ;;  %vm20028_vm0 = vcmask 1039360   ;;  %v1879_v46 = vsel %vm1870_vm13, %v1699_v56, 0  ;;  %vm20035_vm12 = vcmask 924672   ;;  %vm20036_vm4 = vmmov %vm20032_vm1 }
 0x342   : > { %v2305_v7 = vsel %vm20020_vm9, %v16731_v26, %v2304_v34  ;;  %5546 = vmatpush.bf16.msrb.mxu2 %v8617_v39  ;;  %5572 = vmatpush.bf16.msra.mxu0 %v8621_v12  ;;  %v10148_v2 = vld [vmem:[#allocation3 + $0x15c] sm:$0xf0]  ;;  %v8554_v14 = vld [vmem:[#allocation3 + $0x160] sm:$0xf0]  ;;  %vm20037_vm13 = vcmask 7168   ;;  %vm20038_vm9 = vmmov %vm20032_vm1 }
 0x343   : > { %2275 = vrot.lane.b32.xlu2 %v2222_v53, %s10612_s27  ;;  %2348 = vst [vmem:[#allocation3 + $0xa0] sm:$0xff] %v2305_v7  ;;  %v17273_v11 = vpop.permute.xlu0 %3370  ;;  %v10132_v34 = vld [vmem:[#allocation3 + $0xdc] sm:$0xf0] }
 0x344   : > { %v3391_v26 = vrot.slane %v17273_v11, 4 }
 0x345   : > { %v17285_v57 = vpop.permute.xlu2 %2587 }
 0x346   : > { %v2617_v35 = vrot.slane %v17285_v57, 4  ;;  %v3420_v29 = vsel %vm20026_vm15, %v20025_v43, %v3391_v26  ;;  %v17300_v63 = vpop.permute.xlu1 %4364  ;;  %vm20041_vm15 = vmmov %vm20028_vm0 }
 0x347   : > { %1941 = vrot.lane.b32.xlu1 %v1888_v24, %s10611_s26  ;;  %v3421_v37 = vsel %vm20028_vm0, %v16639_v62, %v3420_v29  ;;  %v4386_v33 = vrot.slane %v17300_v63, 4  ;;  %v8552_v25 = vld [vmem:[#allocation3 + $0x120] sm:$0xf]  ;;  %v10140_v32 = vld [vmem:[#allocation3 + $0x124] sm:$0xf]  ;;  %v20030_v62 = vrot.slane %v16781_v60, 4 }
 0x348   : > { %v2640_v40 = vsel %vm20027_vm14, %v2616_v18, %v2617_v35  ;;  %3455 = vst [vmem:[#allocation3 + $0x2e8] sm:$0xff] %v3421_v37  ;;  %v8553_v19 = vor.u32 %v10148_v2, %v8552_v25  ;;  %v8557_v5 = vor.u32 %v10140_v32, %v8554_v14  ;;  %1923 = vrot.lane.b32.xlu0 %v1879_v46, %s10611_s26  ;;  %v8880_v32 = vld [vmem:[#allocation3 + $0x3a8] sm:$0xf]  ;;  %vm20043_vm14 = vcmask 916480  }
 0x349   : > { %v2641_v55 = vsel %vm20029_vm11, %v2586_v42, %v2640_v40  ;;  %v4414_v18 = vsel %vm19991_vm3, %v20030_v62, %v4386_v33  ;;  %v4308_v42 = vsel %vm4299_vm7, %v4130_v54, 0  ;;  %v4139_v54 = vld [vmem:[#allocation2 + $0x8c] sm:$0xf]  ;;  %vm20044_vm0 = vcmask 130048   ;;  %vm20046_vm3 = vmmov %vm20032_vm1 }
 0x34a   : > { %2683 = vst [vmem:[#allocation3 + $0x128] sm:$0xff] %v2641_v55  ;;  %v4415_v28 = vsel %vm20031_vm6, %v16781_v60, %v4414_v18  ;;  %5547 = vmatpush.bf16.msrb.mxu2 %v8553_v19  ;;  %v8488_v39 = vld [vmem:[#allocation3 + $0xa0] sm:$0xf]  ;;  %v10124_v12 = vld [vmem:[#allocation3 + $0xa4] sm:$0xf]  ;;  %5573 = vmatpush.bf16.msra.mxu0 %v8557_v5  ;;  %vm20045_vm11 = vmmov %vm20044_vm0 }
 0x34b   : > { %4352 = vrot.lane.b32.xlu2 %v4308_v42, %s10621_s23  ;;  %4450 = vst [vmem:[#allocation3 + $0x460] sm:$0xff] %v4415_v28  ;;  %v17335_v4 = vpop.permute.xlu0 %4346  ;;  %v8489_v15 = vor.u32 %v10132_v34, %v8488_v39  ;;  %v8490_v60 = vld [vmem:[#allocation3 + $0xe0] sm:$0xf0]  ;;  %v10221_v5 = vld [vmem:[#allocation3 + $0x3ac] sm:$0xf]  ;;  %vm20047_vm6 = vmmov %vm20032_vm1 }
 0x34c   : > { %v4377_v7 = vrot.slane %v17335_v4, 4  ;;  %v8493_v56 = vor.u32 %v10124_v12, %v8490_v60  ;;  %v10229_v12 = vld [vmem:[#allocation3 + $0x3e4] sm:$0xf0]  ;;  %v8882_v34 = vld [vmem:[#allocation3 + $0x3e8] sm:$0xf0] }
 0x34d   : > { %v17337_v53 = vpop.permute.xlu2 %3704 }
 0x34e   : > { %v3724_v24 = vrot.slane %v17337_v53, 4  ;;  %v4398_v43 = vsel %vm20032_vm1, %v4376_v1, %v4377_v7  ;;  %5548 = vmatpush.bf16.msrb.mxu2 %v8489_v15  ;;  %5574 = vmatpush.bf16.msra.mxu0 %v8493_v56  ;;  %v4317_v1 = vsel %vm4299_vm7, %v4139_v54, 0  ;;  %vm20042_vm7 = vmmov %vm20032_vm1  ;;  %v8885_v15 = vor.u32 %v10221_v5, %v8882_v34  ;;  %v10205_v56 = vld [vmem:[#allocation3 + $0x32c] sm:$0xf] }
 0x34f   : > { %4602 = vperm.xlu1 %10561, %v4599_v61   ;;  %v4399_v14 = vsel %vm20034_vm5, %v16951_v13, %v4398_v43  ;;  %vm20048_vm1 = vmmov %vm20043_vm14 }
 0x350   : > { %v3754_v2 = vsel %vm20033_vm10, %v3723_v51, %v3724_v24  ;;  %4442 = vst [vmem:[#allocation3 + $0x420] sm:$0xff] %v4399_v14  ;;  %4370 = vrot.lane.b32.xlu0 %v4317_v1, %s10621_s23  ;;  %v10213_v14 = vld [vmem:[#allocation3 + $0x364] sm:$0xf0]  ;;  %vm20049_vm10 = vmmov %vm20040_vm2 }
 0x351   : > { %v17346_v29 = vpop.permute.xlu1 %2921  ;;  %v3755_v37 = vsel %vm20035_vm12, %v16931_v20, %v3754_v2  ;;  %vm20050_vm5 = vmmov %vm20046_vm3 }
 0x352   : > { %v2951_v40 = vrot.slane %v17346_v29, 4  ;;  %3788 = vst [vmem:[#allocation3 + $0x370] sm:$0xff] %v3755_v37  ;;  %v8938_v19 = vld [vmem:[#allocation3 + $0x460] sm:$0xf0]  ;;  %v8818_v37 = vld [vmem:[#allocation3 + $0x368] sm:$0xf0] }
 0x353   : > { %v1936_v20 = vpop.permute.xlu0 %1935 }
 0x354   : > { %v2974_v51 = vsel %vm20036_vm4, %v2950_v17, %v2951_v40  ;;  %v1957_v10 = vrot.slane %v1936_v20, 4  ;;  %v10244_v17 = vld [vmem:[#allocation3 + $0x45c] sm:$0xf0]  ;;  %vm20051_vm4 = vmmov %vm20046_vm3 }
 0x355   : > { %v2975_v13 = vsel %vm20037_vm13, %v16859_v36, %v2974_v51  ;;  %v17371_v25 = vpop.permute.xlu2 %3354  ;;  %v8821_v51 = vor.u32 %v10205_v56, %v8818_v37  ;;  %vm20052_vm13 = vmmov %vm20046_vm3 }
 0x356   : > { %3017 = vst [vmem:[#allocation3 + $0x1a8] sm:$0xff] %v2975_v13  ;;  %v3383_v49 = vrot.slane %v17371_v25, 4  ;;  %v1986_v55 = vsel %vm20038_vm9, %v1956_v21, %v1957_v10  ;;  %v8424_v13 = vld [vmem:[#allocation3 + $0x20] sm:$0xf]  ;;  %vm20053_vm9 = vcmask 121856  }
 0x357   : > { %v1987_v62 = vsel %vm20040_vm2, %v16879_v41, %v1986_v55  ;;  %v8936_v42 = vld [vmem:[#allocation3 + $0x420] sm:$0xf]  ;;  %v10236_v28 = vld [vmem:[#allocation3 + $0x424] sm:$0xf]  ;;  %v8881_v41 = vor.u32 %v10229_v12, %v8880_v32  ;;  %v10189_v12 = vld [vmem:[#allocation3 + $0x2ac] sm:$0xf] }
 0x358   : > { %v3406_v36 = vsel %vm20039_vm8, %v3382_v48, %v3383_v49  ;;  %2022 = vst [vmem:[#allocation3 + $0x60] sm:$0xff] %v1987_v62  ;;  %v8937_v61 = vor.u32 %v10244_v17, %v8936_v42  ;;  %v8941_v39 = vor.u32 %v10236_v28, %v8938_v19  ;;  %v10108_v55 = vld [vmem:[#allocation3 + $0x24] sm:$0xf]  ;;  %v10197_v17 = vld [vmem:[#allocation3 + $0x2e4] sm:$0xf0]  ;;  %vm20054_vm8 = vmmov %vm20048_vm1 }
 0x359   : > { %v17377_v46 = vpop.permute.xlu1 %4036  ;;  %v3407_v21 = vsel %vm20041_vm15, %v17003_v0, %v3406_v36  ;;  %v8816_v0 = vld [vmem:[#allocation3 + $0x328] sm:$0xf]  ;;  %v8754_v19 = vld [vmem:[#allocation3 + $0x2e8] sm:$0xf0]  ;;  %vm20055_vm2 = vmmov %vm20046_vm3 }
 0x35a   : > { %v4056_v18 = vrot.slane %v17377_v46, 4  ;;  %3448 = vst [vmem:[#allocation3 + $0x2b0] sm:$0xff] %v3407_v21  ;;  %5562 = vmatpush.bf16.msra.mxu3 %v8937_v61  ;;  %5588 = vmatpush.bf16.msrb.mxu1 %v8941_v39  ;;  %v8817_v1 = vor.u32 %v10213_v14, %v8816_v0  ;;  %v8752_v39 = vld [vmem:[#allocation3 + $0x2a8] sm:$0xf]  ;;  %v8757_v34 = vor.u32 %v10189_v12, %v8754_v19  ;;  %v8690_v0 = vld [vmem:[#allocation3 + $0x268] sm:$0xf0]  ;;  %vm20056_vm15 = vmmov %vm20044_vm0 }
 0x35b   : > { %v4019_v54 = vpop.permute.xlu0 %4018 }
 0x35c   : > { %v4086_v48 = vsel %vm20042_vm7, %v4055_v27, %v4056_v18  ;;  %v4047_v2 = vrot.slane %v4019_v54, 4  ;;  %vm20057_vm7 = vmmov %vm20055_vm2 }
 0x35d   : > { %v4087_v60 = vsel %vm20043_vm14, %v17013_v47, %v4086_v48  ;;  %v17396_v43 = vpop.permute.xlu2 %1937  ;;  %8974 = vmatmul.msk.bf16.vlgmr.msra.gmra.mxu3 %vm20044_vm0, %v15687_v6  ;;  %8975 = vmatmul.msk.bf16.vlgmr.msrb.gmra.mxu1 %vm20045_vm11, %v15687_v6  ;;  %v8688_v48 = vld [vmem:[#allocation3 + $0x228] sm:$0xf]  ;;  %vm20058_vm14 = vmmov %vm20055_vm2  ;;  %vm20059_vm11 = vcmask 7168  }
 0x35e   : > { %4120 = vst [vmem:[#allocation3 + $0x3f0] sm:$0xff] %v4087_v60  ;;  %5594 = vmatpush.bf16.msrb.mxu3 %v8881_v41  ;;  %5620 = vmatpush.bf16.msra.mxu1 %v8885_v15  ;;  %v1958_v27 = vrot.slane %v17396_v43, 4  ;;  %v4070_v47 = vsel %vm20046_vm3, %v4046_v22, %v4047_v2  ;;  %v17420_v41 = vpop.f32.mrf.mxu1  ;;  %v10181_v15 = vld [vmem:[#allocation3 + $0x264] sm:$0xf0]  ;;  %v10173_v60 = vld [vmem:[#allocation3 + $0x22c] sm:$0xf]  ;;  %vm20060_vm3 = vmmov %vm20055_vm2 }
 0x35f   : > { %v4071_v36 = vsel %vm20048_vm1, %v17061_v31, %v4070_v47  ;;  %v10116_v42 = vld [vmem:[#allocation3 + $0x5c] sm:$0xf0]  ;;  %v8426_v28 = vld [vmem:[#allocation3 + $0x60] sm:$0xf0]  ;;  %v8624_v47 = vld [vmem:[#allocation3 + $0x1a8] sm:$0xf] }
 0x360   : > { %v1988_v5 = vsel %vm20047_vm6, %v1957_v10, %v1958_v27  ;;  %4112 = vst [vmem:[#allocation3 + $0x3b0] sm:$0xff] %v4071_v36  ;;  %v8425_v21 = vor.u32 %v10116_v42, %v8424_v13  ;;  %v8429_v61 = vor.u32 %v10108_v55, %v8426_v28  ;;  %v8753_v10 = vor.u32 %v10197_v17, %v8752_v39  ;;  %v10157_v55 = vld [vmem:[#allocation3 + $0x1ac] sm:$0xf]  ;;  %v10165_v42 = vld [vmem:[#allocation3 + $0x1e4] sm:$0xf0]  ;;  %vm20061_vm6 = vmmov %vm20049_vm10 }
 0x361   : > { %v17406_v32 = vpop.permute.xlu1 %3686  ;;  %v1989_v22 = vsel %vm20049_vm10, %v1936_v20, %v1988_v5  ;;  %v8626_v28 = vld [vmem:[#allocation3 + $0x1e8] sm:$0xf0]  ;;  %vm20062_vm1 = vmmov %vm20055_vm2 }
 0x362   : > { %5595 = vmatpush.bf16.msrb.mxu3 %v8817_v1  ;;  %5621 = vmatpush.bf16.msra.mxu1 %v8821_v51  ;;  %v3715_v62 = vrot.slane %v17406_v32, 4  ;;  %2023 = vst [vmem:[#allocation3 + $0x68] sm:$0xff] %v1989_v22  ;;  %v8689_v1 = vor.u32 %v10181_v15, %v8688_v48  ;;  %v8629_v22 = vor.u32 %v10157_v55, %v8626_v28  ;;  %vm20063_vm10 = vmmov %vm20062_vm1 }
 0x363   : > { %5549 = vmatpush.bf16.msrb.mxu2 %v8425_v21  ;;  %5575 = vmatpush.bf16.msra.mxu0 %v8429_v61  ;;  %v17424_v56 = vpop.permute.xlu0 %2605 }
 0x364   : > { %v3738_v31 = vsel %vm20050_vm5, %v3714_v59, %v3715_v62  ;;  %v2626_v59 = vrot.slane %v17424_v56, 4  ;;  %vm20064_vm5 = vcmask 1039360  }
 0x365   : > { %v3739_v20 = vsel %vm20035_vm12, %v17084_v50, %v3738_v31  ;;  %v4021_v14 = vpop.permute.xlu2 %4020  ;;  %v8693_v50 = vor.u32 %v10173_v60, %v8690_v0  ;;  %vm20065_vm12 = vmmov %vm20053_vm9 }
 0x366   : > { %3780 = vst [vmem:[#allocation3 + $0x330] sm:$0xff] %v3739_v20  ;;  %5596 = vmatpush.bf16.msrb.mxu3 %v8753_v10  ;;  %5622 = vmatpush.bf16.msra.mxu1 %v8757_v34  ;;  %v4048_v37 = vrot.slane %v4021_v14, 4  ;;  %v2656_v51 = vsel %vm20051_vm4, %v2625_v8, %v2626_v59  ;;  %v5358_v21 = vpop.f32.mrf.mxu1  ;;  %v10141_v10 = vld [vmem:[#allocation3 + $0x12c] sm:$0xf]  ;;  %vm20066_vm4 = vmmov %vm20062_vm1 }
 0x367   : > { %5550 = vmatmul.bf16.vlgmr.msrb.gmra.mxu2 %v15788_v3  ;;  %5576 = vmatmul.bf16.vlgmr.msra.gmra.mxu0 %v15788_v3  ;;  %v2657_v19 = vsel %vm20053_vm9, %v17165_v30, %v2656_v51  ;;  %vm20068_vm9 = vmmov %vm20062_vm1 }
 0x368   : > { %v4072_v17 = vsel %vm20052_vm13, %v4047_v2, %v4048_v37  ;;  %2691 = vst [vmem:[#allocation3 + $0x168] sm:$0xff] %v2657_v19  ;;  %v8625_v2 = vor.u32 %v10165_v42, %v8624_v47  ;;  %v17476_v37 = vpop.f32.mrf.mxu3  ;;  %vm20067_vm13 = vcmask 908288  }
 0x369   : > { %v17434_v13 = vpop.permute.xlu1 %2271  ;;  %v4073_v36 = vsel %vm20054_vm8, %v4019_v54, %v4072_v17  ;;  %vm20069_vm8 = vmmov %vm20062_vm1 }
 0x36a   : > { %5597 = vmatpush.bf16.msrb.mxu3 %v8689_v1  ;;  %5623 = vmatpush.bf16.msra.mxu1 %v8693_v50  ;;  %v2292_v5 = vrot.slane %v17434_v13, 4  ;;  %4113 = vst [vmem:[#allocation3 + $0x3b8] sm:$0xff] %v4073_v36  ;;  %v17482_v50 = vpop.f32.mrf.mxu0 }
 0x36b   : > { %v17448_v54 = vpop.permute.xlu0 %2253 }
 0x36c   : > { %v2322_v8 = vsel %vm20055_vm2, %v2291_v23, %v2292_v5  ;;  %v2283_v39 = vrot.slane %v17448_v54, 4  ;;  %vm20070_vm2 = vmmov %vm20067_vm13 }
 0x36d   : > { %v2323_v30 = vsel %vm20056_vm15, %v17067_v9, %v2322_v8  ;;  %v17450_v61 = vpop.permute.xlu2 %2941  ;;  %v8560_v9 = vld [vmem:[#allocation3 + $0x128] sm:$0xf]  ;;  %vm20071_vm15 = vmmov %vm20064_vm5 }
 0x36e   : > { %2357 = vst [vmem:[#allocation3 + $0xe8] sm:$0xff] %v2323_v30  ;;  %5598 = vmatpush.bf16.msrb.mxu3 %v8625_v2  ;;  %5624 = vmatpush.bf16.msra.mxu1 %v8629_v22  ;;  %v2961_v12 = vrot.slane %v17450_v61, 4  ;;  %v2306_v23 = vsel %vm20057_vm7, %v2282_v45, %v2283_v39  ;;  %vm20072_vm7 = vmmov %vm20062_vm1 }
 0x36f   : > { %v2307_v48 = vsel %vm20044_vm0, %v17229_v52, %v2306_v23  ;;  %v10149_v15 = vld [vmem:[#allocation3 + $0x164] sm:$0xf0]  ;;  %v8562_v60 = vld [vmem:[#allocation3 + $0x168] sm:$0xf0]  ;;  %v17478_v52 = vpop.f32.mrf.mxu1  ;;  %vm20074_vm0 = vmmov %vm20062_vm1 }
 0x370   : > { %v2992_v34 = vsel %vm20058_vm14, %v2960_v58, %v2961_v12  ;;  %2349 = vst [vmem:[#allocation3 + $0xa8] sm:$0xff] %v2307_v48  ;;  %v8561_v0 = vor.u32 %v10149_v15, %v8560_v9  ;;  %v8565_v14 = vor.u32 %v10141_v10, %v8562_v60  ;;  %v5384_v30 = vpop.f32.mrf.mxu3  ;;  %v8434_v48 = vld [vmem:[#allocation3 + $0x68] sm:$0xf0]  ;;  %vm20073_vm14 = vmmov %vm20059_vm11 }
 0x371   : > { %v17459_v31 = vpop.permute.xlu1 %1919  ;;  %v2993_v45 = vsel %vm20059_vm11, %v17216_v16, %v2992_v34  ;;  %v10117_v34 = vld [vmem:[#allocation3 + $0x64] sm:$0xf0]  ;;  %vm20075_vm11 = vmmov %vm20074_vm0 }
 0x372   : > { %v1949_v20 = vrot.slane %v17459_v31, 4  ;;  %3026 = vst [vmem:[#allocation3 + $0x1f0] sm:$0xff] %v2993_v45  ;;  %5599 = vmatpush.bf16.msrb.mxu3 %v8561_v0  ;;  %5625 = vmatpush.bf16.msra.mxu1 %v8565_v14  ;;  %v5345_v15 = vpop.f32.mrf.mxu0 }
 0x373   : > { %v3373_v16 = vpop.permute.xlu0 %3372 }
 0x374   : > { %v1972_v58 = vsel %vm20060_vm3, %v1948_v38, %v1949_v20  ;;  %v3392_v47 = vrot.slane %v3373_v16, 4  ;;  %vm20076_vm3 = vcmask 916480  }
 0x375   : > { %v1973_v1 = vsel %vm20061_vm6, %v17152_v44, %v1972_v58  ;;  %v17484_v51 = vpop.permute.xlu2 %2589  ;;  %v10133_v19 = vld [vmem:[#allocation3 + $0xe4] sm:$0xf0]  ;;  %v8498_v36 = vld [vmem:[#allocation3 + $0xe8] sm:$0xf0]  ;;  %vm20077_vm6 = vmmov %vm20070_vm2 }
 0x376   : > { %2015 = vst [vmem:[#allocation3 + $0x28] sm:$0xff] %v1973_v1  ;;  %v2618_v55 = vrot.slane %v17484_v51, 4  ;;  %v3422_v38 = vsel %vm20062_vm1, %v3391_v26, %v3392_v47  ;;  %vm20078_vm1 = vmmov %vm20074_vm0 }
 0x377   : > { %v3423_v42 = vsel %vm20064_vm5, %v17273_v11, %v3422_v38  ;;  %v8496_v8 = vld [vmem:[#allocation3 + $0xa8] sm:$0xf]  ;;  %v10125_v2 = vld [vmem:[#allocation3 + $0xac] sm:$0xf]  ;;  %v5397_v23 = vpop.f32.mrf.mxu1  ;;  %vm20080_vm5 = vcmask 130048  }
 0x378   : > { %v2642_v44 = vsel %vm20063_vm10, %v2617_v35, %v2618_v55  ;;  %3456 = vst [vmem:[#allocation3 + $0x2f0] sm:$0xff] %v3423_v42  ;;  %v8497_v22 = vor.u32 %v10133_v19, %v8496_v8  ;;  %v8501_v21 = vor.u32 %v10125_v2, %v8498_v36  ;;  %v17534_v2 = vpop.f32.mrf.mxu2  ;;  %vm20079_vm10 = vcmask 924672  }
 0x379   : > { %v17490_v17 = vpop.permute.xlu1 %4366  ;;  %v2643_v26 = vsel %vm20065_vm12, %v17285_v57, %v2642_v44  ;;  %vm20081_vm12 = vmmov %vm20080_vm5 }
 0x37a   : > { %v4387_v28 = vrot.slane %v17490_v17, 4  ;;  %2684 = vst [vmem:[#allocation3 + $0x130] sm:$0xff] %v2643_v26  ;;  %5600 = vmatpush.bf16.msrb.mxu3 %v8497_v22  ;;  %5626 = vmatpush.bf16.msra.mxu1 %v8501_v21  ;;  %v8888_v26 = vld [vmem:[#allocation3 + $0x3b0] sm:$0xf]  ;;  %v17537_v22 = vpop.f32.mrf.mxu0 }
 0x37b   : > { %v4349_v57 = vpop.permute.xlu0 %4348 }
 0x37c   : > { %v4416_v35 = vsel %vm20066_vm4, %v4386_v33, %v4387_v28  ;;  %v4378_v45 = vrot.slane %v4349_v57, 4  ;;  %vm20082_vm4 = vmmov %vm20074_vm0 }
 0x37d   : > { %v4417_v11 = vsel %vm20067_vm13, %v17300_v63, %v4416_v35  ;;  %v8432_v9 = vld [vmem:[#allocation3 + $0x28] sm:$0xf]  ;;  %v10109_v10 = vld [vmem:[#allocation3 + $0x2c] sm:$0xf]  ;;  %v3375_v60 = vpop.permute.xlu2 %3374  ;;  %vm20083_vm13 = vmmov %vm20074_vm0 }
 0x37e   : > { %4451 = vst [vmem:[#allocation3 + $0x468] sm:$0xff] %v4417_v11  ;;  %v8433_v0 = vor.u32 %v10117_v34, %v8432_v9  ;;  %v8437_v14 = vor.u32 %v10109_v10, %v8434_v48  ;;  %v3393_v58 = vrot.slane %v3375_v60, 4  ;;  %v4400_v33 = vsel %vm20068_vm9, %v4377_v7, %v4378_v45  ;;  %vm20084_vm9 = vmmov %vm20079_vm10 }
 0x37f   : > { %v4401_v38 = vsel %vm20070_vm2, %v17335_v4, %v4400_v33  ;;  %v17528_v44 = vpop.f32.mrf.mxu1  ;;  %vm20086_vm2 = vmmov %vm20074_vm0 }
 0x380   : > { %5601 = vmatpush.bf16.msrb.mxu3 %v8433_v0  ;;  %5627 = vmatpush.bf16.msra.mxu1 %v8437_v14  ;;  %v3424_v1 = vsel %vm20069_vm8, %v3392_v47, %v3393_v58  ;;  %4443 = vst [vmem:[#allocation3 + $0x428] sm:$0xff] %v4401_v38  ;;  %v17526_v47 = vpop.f32.mrf.mxu3  ;;  %v8890_v14 = vld [vmem:[#allocation3 + $0x3f0] sm:$0xf0]  ;;  %vm20085_vm8 = vcmask 138240  }
 0x381   : > { %v17512_v63 = vpop.permute.xlu1 %2923  ;;  %v3425_v36 = vsel %vm20071_vm15, %v3373_v16, %v3424_v1 }
 0x382   : > { %v2952_v19 = vrot.slane %v17512_v63, 4  ;;  %3457 = vst [vmem:[#allocation3 + $0x2f8] sm:$0xff] %v3425_v36  ;;  %v10206_v36 = vld [vmem:[#allocation3 + $0x334] sm:$0xf] }
 0x383   : > { %5602 = vmatmul.bf16.vlgmr.msrb.gmra.mxu3 %v15788_v3  ;;  %5628 = vmatmul.bf16.vlgmr.msra.gmra.mxu1 %v15788_v3  ;;  %v4039_v16 = vpop.permute.xlu0 %4038 }
 0x384   : > { %v2976_v7 = vsel %vm20072_vm7, %v2951_v40, %v2952_v19  ;;  %v4057_v8 = vrot.slane %v4039_v16, 4  ;;  %vm20087_vm7 = vmmov %vm20074_vm0 }
 0x385   : > { %v2977_v4 = vsel %vm20073_vm14, %v17346_v29, %v2976_v7  ;;  %v17532_v42 = vpop.permute.xlu2 %4350  ;;  %v10245_v30 = vld [vmem:[#allocation3 + $0x464] sm:$0xf0]  ;;  %v8946_v23 = vld [vmem:[#allocation3 + $0x468] sm:$0xf0]  ;;  %v10222_v29 = vld [vmem:[#allocation3 + $0x3b4] sm:$0xf] }
 0x386   : > { %3018 = vst [vmem:[#allocation3 + $0x1b0] sm:$0xff] %v2977_v4  ;;  %v4379_v40 = vrot.slane %v17532_v42, 4  ;;  %v4088_v21 = vsel %vm20074_vm0, %v4056_v18, %v4057_v8  ;;  %v10230_v18 = vld [vmem:[#allocation3 + $0x3ec] sm:$0xf0]  ;;  %vm20088_vm14 = vmmov %vm20074_vm0  ;;  %vm20089_vm0 = vcmask 121856  }
 0x387   : > { %v4089_v9 = vsel %vm20076_vm3, %v17377_v46, %v4088_v21  ;;  %v8944_v34 = vld [vmem:[#allocation3 + $0x428] sm:$0xf]  ;;  %v10237_v48 = vld [vmem:[#allocation3 + $0x42c] sm:$0xf]  ;;  %v8889_v33 = vor.u32 %v10230_v18, %v8888_v26  ;;  %v5462_v38 = vpop.f32.mrf.mxu1  ;;  %v10214_v8 = vld [vmem:[#allocation3 + $0x36c] sm:$0xf0]  ;;  %v5371_v26 = vpop.f32.mrf.mxu2 }
 0x388   : > { %v4402_v11 = vsel %vm20075_vm11, %v4378_v45, %v4379_v40  ;;  %4121 = vst [vmem:[#allocation3 + $0x3f8] sm:$0xff] %v4089_v9  ;;  %v8945_v60 = vor.u32 %v10245_v30, %v8944_v34  ;;  %v8949_v0 = vor.u32 %v10237_v48, %v8946_v23  ;;  %v8893_v45 = vor.u32 %v10222_v29, %v8890_v14  ;;  %v5410_v1 = vpop.f32.mrf.mxu3  ;;  %v5436_v30 = vpop.f32.mrf.mxu0  ;;  %v8762_v9 = vld [vmem:[#allocation3 + $0x2f0] sm:$0xf0]  ;;  %vm20090_vm11 = vmmov %vm20089_vm0 }
 0x389   : > { %v3707_v35 = vpop.permute.xlu1 %3706  ;;  %v4403_v15 = vsel %vm20077_vm6, %v4349_v57, %v4402_v11  ;;  %v8824_v57 = vld [vmem:[#allocation3 + $0x330] sm:$0xf]  ;;  %v8698_v1 = vld [vmem:[#allocation3 + $0x270] sm:$0xf0]  ;;  %vm20091_vm3 = vmmov %vm20078_vm1 }
 0x38a   : > { %v3725_v10 = vrot.slane %v3707_v35, 4  ;;  %4444 = vst [vmem:[#allocation3 + $0x430] sm:$0xff] %v4403_v15  ;;  %5614 = vmatpush.bf16.msra.mxu2 %v8945_v60  ;;  %5640 = vmatpush.bf16.msrb.mxu0 %v8949_v0  ;;  %v10198_v11 = vld [vmem:[#allocation3 + $0x2ec] sm:$0xf0]  ;;  %v10190_v60 = vld [vmem:[#allocation3 + $0x2b4] sm:$0xf]  ;;  %vm20092_vm6 = vmmov %vm20080_vm5 }
 0x38b   : > { %v3689_v7 = vpop.permute.xlu0 %3688  ;;  %v8765_v14 = vor.u32 %v10190_v60, %v8762_v9  ;;  %v8634_v9 = vld [vmem:[#allocation3 + $0x1f0] sm:$0xf0] }
 0x38c   : > { %v3756_v58 = vsel %vm20078_vm1, %v3724_v24, %v3725_v10  ;;  %v3716_v16 = vrot.slane %v3689_v7, 4  ;;  %v8826_v24 = vld [vmem:[#allocation3 + $0x370] sm:$0xf0] }
 0x38d   : > { %v3757_v46 = vsel %vm20079_vm10, %v17337_v53, %v3756_v58  ;;  %v17553_v4 = vpop.permute.xlu2 %1939  ;;  %8976 = vmatmul.msk.bf16.vlgmr.msra.gmra.mxu2 %vm20080_vm5, %v15687_v6  ;;  %8977 = vmatmul.msk.bf16.vlgmr.msrb.gmra.mxu0 %vm20081_vm12, %v15687_v6  ;;  %v8825_v53 = vor.u32 %v10214_v8, %v8824_v57  ;;  %v8829_v35 = vor.u32 %v10206_v36, %v8826_v24  ;;  %v8632_v26 = vld [vmem:[#allocation3 + $0x1b0] sm:$0xf]  ;;  %vm20093_vm10 = vmmov %vm20078_vm1 }
 0x38e   : > { %3789 = vst [vmem:[#allocation3 + $0x378] sm:$0xff] %v3757_v46  ;;  %5646 = vmatpush.bf16.msrb.mxu2 %v8889_v33  ;;  %5672 = vmatpush.bf16.msra.mxu0 %v8893_v45  ;;  %v1959_v21 = vrot.slane %v17553_v4, 4  ;;  %v3740_v23 = vsel %vm20082_vm4, %v3715_v62, %v3716_v16  ;;  %v8760_v62 = vld [vmem:[#allocation3 + $0x2b0] sm:$0xf]  ;;  %vm20094_vm12 = vmmov %vm20080_vm5 }
 0x38f   : > { %v3741_v34 = vsel %vm20084_vm9, %v17406_v32, %v3740_v23  ;;  %v8761_v18 = vor.u32 %v10198_v11, %v8760_v62  ;;  %v17577_v32 = vpop.f32.mrf.mxu1  ;;  %v10182_v45 = vld [vmem:[#allocation3 + $0x26c] sm:$0xf0]  ;;  %v17584_v57 = vpop.f32.mrf.mxu2  ;;  %vm20095_vm4 = vmmov %vm20078_vm1 }
 0x390   : > { %v1990_v10 = vsel %vm20083_vm13, %v1958_v27, %v1959_v21  ;;  %3781 = vst [vmem:[#allocation3 + $0x338] sm:$0xff] %v3741_v34  ;;  %v8696_v27 = vld [vmem:[#allocation3 + $0x230] sm:$0xf]  ;;  %v17575_v58 = vpop.f32.mrf.mxu3  ;;  %v17586_v8 = vpop.f32.mrf.mxu0  ;;  %vm20096_vm13 = vmmov %vm20085_vm8 }
 0x391   : > { %v3357_v29 = vpop.permute.xlu1 %3356  ;;  %v1991_v15 = vsel %vm20085_vm8, %v17396_v43, %v1990_v10  ;;  %v10174_v43 = vld [vmem:[#allocation3 + $0x234] sm:$0xf]  ;;  %v8697_v7 = vor.u32 %v10182_v45, %v8696_v27  ;;  %v10166_v11 = vld [vmem:[#allocation3 + $0x1ec] sm:$0xf0]  ;;  %vm20097_vm9 = vmmov %vm20078_vm1 }
 0x392   : > { %5647 = vmatpush.bf16.msrb.mxu2 %v8825_v53  ;;  %5673 = vmatpush.bf16.msra.mxu0 %v8829_v35  ;;  %v3384_v48 = vrot.slane %v3357_v29, 4  ;;  %2024 = vst [vmem:[#allocation3 + $0x70] sm:$0xff] %v1991_v15  ;;  %v8701_v16 = vor.u32 %v10174_v43, %v8698_v1  ;;  %v10158_v53 = vld [vmem:[#allocation3 + $0x1b4] sm:$0xf]  ;;  %v8633_v10 = vor.u32 %v10166_v11, %v8632_v26  ;;  %vm20098_vm8 = vmmov %vm20078_vm1 }
 0x393   : > { %v17581_v38 = vpop.permute.xlu0 %2607  ;;  %v8637_v34 = vor.u32 %v10158_v53, %v8634_v9  ;;  %v10142_v43 = vld [vmem:[#allocation3 + $0x134] sm:$0xf] }
 0x394   : > { %v3408_v0 = vsel %vm20086_vm2, %v3383_v49, %v3384_v48  ;;  %v2627_v49 = vrot.slane %v17581_v38, 4  ;;  %vm20099_vm2 = vcmask 908288  }
 0x395   : > { %v3409_v33 = vsel %vm20071_vm15, %v17371_v25, %v3408_v0  ;;  %v2592_v46 = vpop.permute.xlu2 %2591  ;;  %vm20100_vm15 = vmmov %vm20099_vm2 }
 0x396   : > { %3449 = vst [vmem:[#allocation3 + $0x2b8] sm:$0xff] %v3409_v33  ;;  %5648 = vmatpush.bf16.msrb.mxu2 %v8761_v18  ;;  %5674 = vmatpush.bf16.msra.mxu0 %v8765_v14  ;;  %v2619_v36 = vrot.slane %v2592_v46, 4  ;;  %v2658_v25 = vsel %vm20087_vm7, %v2626_v59, %v2627_v49  ;;  %v8568_v14 = vld [vmem:[#allocation3 + $0x130] sm:$0xf]  ;;  %vm20101_vm7 = vmmov %vm20078_vm1 }
 0x397   : > { %v2659_v30 = vsel %vm20089_vm0, %v17424_v56, %v2658_v25  ;;  %v5488_v48 = vpop.f32.mrf.mxu1  ;;  %v5449_v60 = vpop.f32.mrf.mxu2  ;;  %vm20103_vm0 = vmmov %vm20078_vm1 }
 0x398   : > { %v2644_v35 = vsel %vm20088_vm14, %v2618_v55, %v2619_v36  ;;  %2692 = vst [vmem:[#allocation3 + $0x170] sm:$0xff] %v2659_v30  ;;  %v5423_v55 = vpop.f32.mrf.mxu3  ;;  %v5475_v18 = vpop.f32.mrf.mxu0  ;;  %vm20102_vm14 = vcmask 7168  }
 0x399   : > { %v2274_v24 = vpop.permute.xlu1 %2273  ;;  %v2645_v29 = vsel %vm20090_vm11, %v17484_v51, %v2644_v35  ;;  %v8442_v60 = vld [vmem:[#allocation3 + $0x70] sm:$0xf0]  ;;  %vm20104_vm11 = vmmov %vm20102_vm14 }
 0x39a   : > { %5649 = vmatpush.bf16.msrb.mxu2 %v8697_v7  ;;  %5675 = vmatpush.bf16.msra.mxu0 %v8701_v16  ;;  %v2293_v23 = vrot.slane %v2274_v24, 4  ;;  %2685 = vst [vmem:[#allocation3 + $0x138] sm:$0xff] %v2645_v29 }
 0x39b   : > { %v17605_v15 = vpop.permute.xlu0 %2255 }
 0x39c   : > { %v2324_v59 = vsel %vm20091_vm3, %v2292_v5, %v2293_v23  ;;  %v2284_v62 = vrot.slane %v17605_v15, 4  ;;  %vm20105_vm3 = vmmov %vm20103_vm0 }
 0x39d   : > { %v2325_v56 = vsel %vm20092_vm6, %v17434_v13, %v2324_v59  ;;  %v2276_v51 = vpop.permute.xlu2 %2275  ;;  %vm20106_vm6 = vmmov %vm20080_vm5 }
 0x39e   : > { %2358 = vst [vmem:[#allocation3 + $0xf0] sm:$0xff] %v2325_v56  ;;  %5650 = vmatpush.bf16.msrb.mxu2 %v8633_v10  ;;  %5676 = vmatpush.bf16.msra.mxu0 %v8637_v34  ;;  %v2294_v0 = vrot.slane %v2276_v51, 4  ;;  %v2308_v5 = vsel %vm20078_vm1, %v2283_v39, %v2284_v62  ;;  %vm20107_vm1 = vmmov %vm20080_vm5 }
 0x39f   : > { %v2309_v27 = vsel %vm20080_vm5, %v17448_v54, %v2308_v5  ;;  %v10150_v45 = vld [vmem:[#allocation3 + $0x16c] sm:$0xf0]  ;;  %v8570_v1 = vld [vmem:[#allocation3 + $0x170] sm:$0xf0]  ;;  %vm20109_vm5 = vmmov %vm20103_vm0 }
 0x3a0   : > { %v2326_v13 = vsel %vm20093_vm10, %v2293_v23, %v2294_v0  ;;  %2350 = vst [vmem:[#allocation3 + $0xb0] sm:$0xff] %v2309_v27  ;;  %v8569_v7 = vor.u32 %v10150_v45, %v8568_v14  ;;  %v8573_v16 = vor.u32 %v10142_v43, %v8570_v1  ;;  %v8952_v14 = vld [vmem:[#allocation3 + $0x430] sm:$0xf]  ;;  %v8898_v27 = vld [vmem:[#allocation3 + $0x3f8] sm:$0xf0]  ;;  %vm20108_vm10 = vmmov %vm20107_vm1 }
 0x3a1   : > { %v17616_v33 = vpop.permute.xlu1 %1921  ;;  %v2327_v46 = vsel %vm20094_vm12, %v2274_v24, %v2326_v13  ;;  %v10231_v13 = vld [vmem:[#allocation3 + $0x3f4] sm:$0xf0]  ;;  %vm20110_vm12 = vcmask 121856  }
 0x3a2   : > { %v1950_v36 = vrot.slane %v17616_v33, 4  ;;  %2359 = vst [vmem:[#allocation3 + $0xf8] sm:$0xff] %v2327_v46  ;;  %5651 = vmatpush.bf16.msrb.mxu2 %v8569_v7  ;;  %5677 = vmatpush.bf16.msra.mxu0 %v8573_v16  ;;  %v10238_v46 = vld [vmem:[#allocation3 + $0x434] sm:$0xf] }
 0x3a3   : > { %v17627_v25 = vpop.permute.xlu0 %4368 }
 0x3a4   : > { %v1974_v39 = vsel %vm20095_vm4, %v1949_v20, %v1950_v36  ;;  %v4388_v26 = vrot.slane %v17627_v25, 4  ;;  %vm20111_vm4 = vmmov %vm20103_vm0 }
 0x3a5   : > { %v1975_v54 = vsel %vm20096_vm13, %v17459_v31, %v1974_v39  ;;  %v4353_v24 = vpop.permute.xlu2 %4352  ;;  %v10134_v30 = vld [vmem:[#allocation3 + $0xec] sm:$0xf0]  ;;  %v8506_v9 = vld [vmem:[#allocation3 + $0xf0] sm:$0xf0] }
 0x3a6   : > { %2016 = vst [vmem:[#allocation3 + $0x30] sm:$0xff] %v1975_v54  ;;  %v4380_v53 = vrot.slane %v4353_v24, 4  ;;  %v4418_v35 = vsel %vm20097_vm9, %v4387_v28, %v4388_v26  ;;  %v8896_v24 = vld [vmem:[#allocation3 + $0x3b8] sm:$0xf]  ;;  %vm20112_vm9 = vmmov %vm20103_vm0 }
 0x3a7   : > { %v4419_v31 = vsel %vm20099_vm2, %v17490_v17, %v4418_v35  ;;  %v8504_v29 = vld [vmem:[#allocation3 + $0xb0] sm:$0xf]  ;;  %v10126_v11 = vld [vmem:[#allocation3 + $0xb4] sm:$0xf]  ;;  %vm5795_vm2 = vcmask 1040384  }
 0x3a8   : > { %v4404_v20 = vsel %vm20098_vm8, %v4379_v40, %v4380_v53  ;;  %4452 = vst [vmem:[#allocation3 + $0x470] sm:$0xff] %v4419_v31  ;;  %v8505_v34 = vor.u32 %v10134_v30, %v8504_v29  ;;  %v8509_v55 = vor.u32 %v10126_v11, %v8506_v9  ;;  %v10118_v40 = vld [vmem:[#allocation3 + $0x6c] sm:$0xf0]  ;;  %v8897_v53 = vor.u32 %v10231_v13, %v8896_v24  ;;  %v8832_v30 = vld [vmem:[#allocation3 + $0x338] sm:$0xf]  ;;  %vm20113_vm8 = vmmov %vm20096_vm13 }
 0x3a9   : > { %v2944_v23 = vpop.permute.xlu1 %2943  ;;  %v4405_v59 = vsel %vm20100_vm15, %v17532_v42, %v4404_v20  ;;  %v10207_v20 = vld [vmem:[#allocation3 + $0x33c] sm:$0xf]  ;;  %vm5797_vm15 = vcmask 1042434  }
 0x3aa   : > { %v2962_v10 = vrot.slane %v2944_v23, 4  ;;  %4445 = vst [vmem:[#allocation3 + $0x438] sm:$0xff] %v4405_v59  ;;  %5652 = vmatpush.bf16.msrb.mxu2 %v8505_v34  ;;  %5678 = vmatpush.bf16.msra.mxu0 %v8509_v55  ;;  %v10215_v59 = vld [vmem:[#allocation3 + $0x374] sm:$0xf0]  ;;  %v10175_v13 = vld [vmem:[#allocation3 + $0x23c] sm:$0xf] }
 0x3ab   : > { %v2926_v48 = vpop.permute.xlu0 %2925  ;;  %v17647_v5 = vpop.f32.mrf.mxu1 }
 0x3ac   : > { %v2994_v28 = vsel %vm20101_vm7, %v2961_v12, %v2962_v10  ;;  %v2953_v42 = vrot.slane %v2926_v48, 4  ;;  %v8834_v10 = vld [vmem:[#allocation3 + $0x378] sm:$0xf0]  ;;  %vm5799_vm7 = vcmask 1041408  }
 0x3ad   : > { %v2995_v17 = vsel %vm20102_vm14, %v17450_v61, %v2994_v28  ;;  %v8440_v56 = vld [vmem:[#allocation3 + $0x30] sm:$0xf]  ;;  %v10110_v51 = vld [vmem:[#allocation3 + $0x34] sm:$0xf]  ;;  %v8837_v34 = vor.u32 %v10207_v20, %v8834_v10  ;;  %v8768_v28 = vld [vmem:[#allocation3 + $0x2b8] sm:$0xf] }
 0x3ae   : > { %3027 = vst [vmem:[#allocation3 + $0x1f8] sm:$0xff] %v2995_v17  ;;  %v8441_v0 = vor.u32 %v10118_v40, %v8440_v56  ;;  %v8445_v18 = vor.u32 %v10110_v51, %v8442_v60  ;;  %v2978_v12 = vsel %vm20103_vm0, %v2952_v19, %v2953_v42  ;;  %v10223_v19 = vld [vmem:[#allocation3 + $0x3bc] sm:$0xf]  ;;  %v10199_v60 = vld [vmem:[#allocation3 + $0x2f4] sm:$0xf0]  ;;  %vm5801_vm14 = vcmask 1044484  }
 0x3af   : > { %v17652_v61 = vpop.f32.mrf.mxu0  ;;  %v2979_v45 = vsel %vm20104_vm11, %v17512_v63, %v2978_v12  ;;  %v10246_v1 = vld [vmem:[#allocation3 + $0x46c] sm:$0xf0]  ;;  %v8954_v7 = vld [vmem:[#allocation3 + $0x470] sm:$0xf0]  ;;  %v8901_v35 = vor.u32 %v10223_v19, %v8898_v27  ;;  %v10191_v40 = vld [vmem:[#allocation3 + $0x2bc] sm:$0xf] }
 0x3b0   : > { %5653 = vmatpush.bf16.msrb.mxu2 %v8441_v0  ;;  %5679 = vmatpush.bf16.msra.mxu0 %v8445_v18  ;;  %3019 = vst [vmem:[#allocation3 + $0x1b8] sm:$0xff] %v2979_v45  ;;  %v8953_v39 = vor.u32 %v10246_v1, %v8952_v14  ;;  %v8957_v54 = vor.u32 %v10238_v46, %v8954_v7  ;;  %v8770_v42 = vld [vmem:[#allocation3 + $0x2f8] sm:$0xf0]  ;;  %v8704_v12 = vld [vmem:[#allocation3 + $0x238] sm:$0xf]  ;;  %vm5803_vm0 = vcmask 1046534  }
 0x3b1   : > { %v2258_v43 = vpop.permute.xlu1 %2257  ;;  %v5499_v31 = vpop.f32.mrf.mxu3  ;;  %v8769_v0 = vor.u32 %v10199_v60, %v8768_v28  ;;  %v8773_v18 = vor.u32 %v10191_v40, %v8770_v42  ;;  %v10183_v14 = vld [vmem:[#allocation3 + $0x274] sm:$0xf0]  ;;  %v8706_v27 = vld [vmem:[#allocation3 + $0x278] sm:$0xf0]  ;;  %vm5805_vm11 = vcmask 1045508  }
 0x3b2   : > { %v2285_v16 = vrot.slane %v2258_v43, 4  ;;  %5666 = vmatpush.bf16.msra.mxu3 %v8953_v39  ;;  %5692 = vmatpush.bf16.msrb.mxu1 %v8957_v54  ;;  %v8705_v7 = vor.u32 %v10183_v14, %v8704_v12 }
 0x3b3   : > { %5654 = vmatmul.bf16.vlgmr.msrb.gmra.mxu2 %v15788_v3  ;;  %5680 = vmatmul.bf16.vlgmr.msra.gmra.mxu0 %v15788_v3  ;;  %v2610_v29 = vpop.permute.xlu0 %2609  ;;  %v17663_v11 = vpop.f32.mrf.mxu2 }
 0x3b4   : > { %v2310_v63 = vsel %vm20105_vm3, %v2284_v62, %v2285_v16  ;;  %v2628_v9 = vrot.slane %v2610_v29, 4  ;;  %v8833_v62 = vor.u32 %v10215_v59, %v8832_v30  ;;  %v5527_v55 = vpop.f32.mrf.mxu1  ;;  %v8709_v16 = vor.u32 %v10175_v13, %v8706_v27 }
 0x3b5   : > { %v2311_v23 = vsel %vm20106_vm6, %v17605_v15, %v2310_v63  ;;  %8978 = vmatmul.msk.bf16.vlgmr.msra.gmra.mxu3 %vm20107_vm1, %v15687_v6  ;;  %8979 = vmatmul.msk.bf16.vlgmr.msrb.gmra.mxu1 %vm20108_vm10, %v15687_v6  ;;  %v8642_v20 = vld [vmem:[#allocation3 + $0x1f8] sm:$0xf0]  ;;  %vm20114_vm6 = vmmov %vm20105_vm3  ;;  %vm20116_vm10 = vcmask 908288  }
 0x3b6   : > { %5698 = vmatpush.bf16.msrb.mxu3 %v8897_v53  ;;  %5724 = vmatpush.bf16.msra.mxu1 %v8901_v35  ;;  %2351 = vst [vmem:[#allocation3 + $0xb8] sm:$0xff] %v2311_v23  ;;  %v2660_v15 = vsel %vm20109_vm5, %v2627_v49, %v2628_v9  ;;  %vm20115_vm1 = vmmov %vm20105_vm3  ;;  %vm20117_vm5 = vcmask 130048  }
 0x3b7   : > { %v5540_v17 = vpop.f32.mrf.mxu0  ;;  %v2661_v48 = vsel %vm20110_vm12, %v17581_v38, %v2660_v15  ;;  %v8640_v39 = vld [vmem:[#allocation3 + $0x1b8] sm:$0xf]  ;;  %v10159_v19 = vld [vmem:[#allocation3 + $0x1bc] sm:$0xf]  ;;  %vm20118_vm12 = vmmov %vm20117_vm5 }
 0x3b8   : > { %2693 = vst [vmem:[#allocation3 + $0x178] sm:$0xff] %v2661_v48  ;;  %v10143_v15 = vld [vmem:[#allocation3 + $0x13c] sm:$0xf] }
 0x3b9   : > { %v1942_v56 = vpop.permute.xlu1 %1941  ;;  %v5501_v45 = vpop.f32.mrf.mxu3 }
 0x3ba   : > { %5699 = vmatpush.bf16.msrb.mxu3 %v8833_v62  ;;  %5725 = vmatpush.bf16.msra.mxu1 %v8837_v34  ;;  %v1960_v51 = vrot.slane %v1942_v56, 4  ;;  %v8576_v62 = vld [vmem:[#allocation3 + $0x138] sm:$0xf] }
 0x3bb   : > { %v1924_v43 = vpop.permute.xlu0 %1923  ;;  %v5514_v1 = vpop.f32.mrf.mxu2  ;;  %v10135_v34 = vld [vmem:[#allocation3 + $0xf4] sm:$0xf0] }
 0x3bc   : > { %v1992_v49 = vsel %vm20111_vm4, %v1959_v21, %v1960_v51  ;;  %v1951_v46 = vrot.slane %v1924_v43, 4  ;;  %vm20119_vm4 = vmmov %vm20115_vm1 }
 0x3bd   : > { %v1993_v38 = vsel %vm20096_vm13, %v17553_v4, %v1992_v49  ;;  %v10167_v4 = vld [vmem:[#allocation3 + $0x1f4] sm:$0xf0]  ;;  %vm20120_vm13 = vmmov %vm20115_vm1 }
 0x3be   : > { %5700 = vmatpush.bf16.msrb.mxu3 %v8769_v0  ;;  %5726 = vmatpush.bf16.msra.mxu1 %v8773_v18  ;;  %2025 = vst [vmem:[#allocation3 + $0x78] sm:$0xff] %v1993_v38  ;;  %v1976_v21 = vsel %vm20112_vm9, %v1950_v36, %v1951_v46  ;;  %v8641_v35 = vor.u32 %v10167_v4, %v8640_v39  ;;  %v8512_v29 = vld [vmem:[#allocation3 + $0xb8] sm:$0xf]  ;;  %vm20121_vm9 = vmmov %vm20115_vm1 }
 0x3bf   : > { %v1977_v54 = vsel %vm20113_vm8, %v17616_v33, %v1976_v21  ;;  %v10151_v59 = vld [vmem:[#allocation3 + $0x174] sm:$0xf0]  ;;  %v8578_v10 = vld [vmem:[#allocation3 + $0x178] sm:$0xf0]  ;;  %v8513_v28 = vor.u32 %v10135_v34, %v8512_v29  ;;  %vm20122_vm8 = vmmov %vm20115_vm1 }
 0x3c0   : > { %2017 = vst [vmem:[#allocation3 + $0x38] sm:$0xff] %v1977_v54  ;;  %v8577_v17 = vor.u32 %v10151_v59, %v8576_v62 }
 0x3c1   : > { %v17684_v24 = vpop.permute.xlu1 %4602 }
 0x3c2   : > { %5701 = vmatpush.bf16.msrb.mxu3 %v8705_v7  ;;  %5727 = vmatpush.bf16.msra.mxu1 %v8709_v16  ;;  %v5422_v53 = vadd.f32 %v17575_v58, %v17684_v24  ;;  %v5448_v63 = vadd.f32 %v17584_v57, %v17684_v24  ;;  %v5474_v36 = vadd.f32 %v17586_v8, %v17684_v24 }
 0x3c3   : > { %v5500_v33 = vadd.f32 %v5499_v31, %v17684_v24  ;;  %v5526_v30 = vadd.f32 %v17647_v5, %v17684_v24  ;;  %v8645_v58 = vor.u32 %v10159_v19, %v8642_v20  ;;  %v4371_v5 = vpop.permute.xlu0 %4370 }
 0x3c4   : > { %v17696_v23 = vadd.f32 %v17537_v22, %v5422_v53  ;;  %v17699_v9 = vadd.f32 %v17528_v44, %v5448_v63  ;;  %v17702_v57 = vadd.f32 %v17577_v32, %v5474_v36  ;;  %v10127_v22 = vld [vmem:[#allocation3 + $0xbc] sm:$0xf]  ;;  %v4389_v40 = vrot.slane %v4371_v5, 4 }
 0x3c5   : > { %v5513_v8 = vadd.f32 %v17663_v11, %v5500_v33  ;;  %v5539_v31 = vadd.f32 %v17652_v61, %v5526_v30  ;;  %v8514_v32 = vld [vmem:[#allocation3 + $0xf8] sm:$0xf0]  ;;  %v8581_v11 = vor.u32 %v10143_v15, %v8578_v10  ;;  %v10119_v30 = vld [vmem:[#allocation3 + $0x74] sm:$0xf0] }
 0x3c6   : > { %5702 = vmatpush.bf16.msrb.mxu3 %v8641_v35  ;;  %5728 = vmatpush.bf16.msra.mxu1 %v8645_v58  ;;  %v8517_v48 = vor.u32 %v10127_v22, %v8514_v32  ;;  %v4420_v33 = vsel %vm20114_vm6, %v4388_v26, %v4389_v40  ;;  %v8960_v26 = vld [vmem:[#allocation3 + $0x438] sm:$0xf]  ;;  %v10239_v22 = vld [vmem:[#allocation3 + $0x43c] sm:$0xf]  ;;  %vm20124_vm6 = vmmov %vm20115_vm1 }
 0x3c7   : > { %v5756_v55 = vmax.f32 %v5513_v8, 0.0  ;;  %v5757_v44 = vmax.f32 %v5539_v31, 0.0  ;;  %v8448_v21 = vld [vmem:[#allocation3 + $0x38] sm:$0xf]  ;;  %v10111_v53 = vld [vmem:[#allocation3 + $0x3c] sm:$0xf]  ;;  %v4421_v5 = vsel %vm20116_vm10, %v17627_v25, %v4420_v33  ;;  %vm20125_vm10 = vmmov %vm20115_vm1 }
 0x3c8   : > { %v8449_v29 = vor.u32 %v10119_v30, %v8448_v21  ;;  %v8450_v8 = vld [vmem:[#allocation3 + $0x78] sm:$0xf0]  ;;  %4453 = vst [vmem:[#allocation3 + $0x478] sm:$0xff] %v4421_v5 }
 0x3c9   : > { %v5933_v61 = vrot.slane %v5756_v55, 4  ;;  %v9018_v56 = vrot.slane %v5756_v55, 7  ;;  %v9020_v51 = vrot.slane %v5756_v55, 6  ;;  %v9022_v60 = vrot.slane %v5756_v55, 5 }
 0x3ca   : > { %v9025_v42 = vrot.slane %v5756_v55, 11  ;;  %v9027_v0 = vrot.slane %v5756_v55, 10  ;;  %v9029_v18 = vrot.slane %v5756_v55, 9  ;;  %v5940_v12 = vrot.slane %v5757_v44, 7  ;;  %5703 = vmatpush.bf16.msrb.mxu3 %v8577_v17  ;;  %5729 = vmatpush.bf16.msra.mxu1 %v8581_v11 }
 0x3cb   : > { %v9019_v49 = vrot.slane %v5757_v44, 6  ;;  %v9021_v14 = vrot.slane %v5757_v44, 5  ;;  %v9023_v13 = vrot.slane %v5757_v44, 4  ;;  %v9024_v27 = vrot.slane %v5757_v44, 11 }
 0x3cc   : > { %v9026_v45 = vrot.slane %v5757_v44, 10  ;;  %v9028_v38 = vrot.slane %v5757_v44, 9  ;;  %v5953_v43 = vrot.slane %v5940_v12, 1  ;;  %v5954_v1 = vsel %vm5795_vm2, %v5756_v55, %v5940_v12 }
 0x3cd   : > { %v5955_v46 = vsel %vm5797_vm15, %v9018_v56, %v9019_v49  ;;  %v5957_v7 = vsel %vm5801_vm14, %v9020_v51, %v9021_v14  ;;  %v5958_v16 = vsel %vm5803_vm0, %v9022_v60, %v9023_v13  ;;  %v5961_v39 = vsel %vm5795_vm2, %v5933_v61, %v9024_v27 }
 0x3ce   : > { %v5956_v54 = vsel %vm5799_vm7, %v5954_v1, %v5955_v46  ;;  %v5959_v4 = vsel %vm5805_vm11, %v5957_v7, %v5958_v16  ;;  %v5962_v19 = vsel %vm5797_vm15, %v9025_v42, %v9026_v45  ;;  %5704 = vmatpush.bf16.msrb.mxu3 %v8513_v28  ;;  %v5964_v63 = vsel %vm5801_vm14, %v9027_v0, %v9028_v38 }
 0x3cf   : > { %v5960_v35 = vsel %vm20105_vm3, %v5956_v54, %v5959_v4  ;;  %v5965_v36 = vsel %vm5803_vm0, %v9029_v18, %v5953_v43  ;;  %5730 = vmatpush.bf16.msra.mxu1 %v8517_v48  ;;  %v5963_v20 = vsel %vm5799_vm7, %v5961_v39, %v5962_v19  ;;  %v8453_v59 = vor.u32 %v10111_v53, %v8450_v8  ;;  %v10247_v10 = vld [vmem:[#allocation3 + $0x474] sm:$0xf0]  ;;  %v8962_v62 = vld [vmem:[#allocation3 + $0x478] sm:$0xf0]  ;;  %vm20123_vm3 = vmmov %vm20115_vm1 }
 0x3d0   : > { %v5966_v58 = vsel %vm5805_vm11, %v5964_v63, %v5965_v36  ;;  %5971 = vst [vmem:[#allocation4 + $0x3] ss:$8 sm:$0xf] %v5960_v35  ;;  %v8961_v34 = vor.u32 %v10247_v10, %v8960_v26  ;;  %v8965_v55 = vor.u32 %v10239_v22, %v8962_v62 }
 0x3d1   : > { %v5967_v31 = vsel %vm20115_vm1, %v5963_v20, %v5966_v58  ;;  %5972 = vst [vmem:[#allocation4 + $0x3] ss:$8 sm:$0xf0] %v5960_v35 }
 0x3d2   : > { %5974 = vst [vmem:[#allocation4 + $0x43] ss:$8 sm:$0xf] %v5967_v31  ;;  %5705 = vmatpush.bf16.msrb.mxu3 %v8449_v29  ;;  %5718 = vmatpush.bf16.msra.mxu2 %v8961_v34 }
 0x3d3   : > { %5975 = vst [vmem:[#allocation4 + $0x43] ss:$8 sm:$0xf0] %v5967_v31  ;;  %5731 = vmatpush.bf16.msra.mxu1 %v8453_v59  ;;  %5744 = vmatpush.bf16.msrb.mxu0 %v8965_v55 }
 0x3d5   : > { %5706 = vmatmul.bf16.vlgmr.msrb.gmra.mxu3 %v15788_v3  ;;  %8980 = vmatmul.msk.bf16.vlgmr.msra.gmra.mxu2 %vm20117_vm5, %v15687_v6  ;;  %vm20126_vm5 = vmmov %vm20115_vm1 }
 0x3d6   : > { %5732 = vmatmul.bf16.vlgmr.msra.gmra.mxu1 %v15788_v3  ;;  %8981 = vmatmul.msk.bf16.vlgmr.msrb.gmra.mxu0 %vm20118_vm12, %v15687_v6  ;;  %vm20127_vm12 = vmmov %vm20115_vm1 }
 0x3da   : > { %v5590_v44 = vpop.f32.mrf.mxu1 }
 0x3e0   : > { %v5564_v25 = vpop.f32.mrf.mxu3 }
 0x3e2   : > { %v5592_v28 = vpop.f32.mrf.mxu1 }
 0x3e4   : > { %v5577_v15 = vpop.f32.mrf.mxu0 }
 0x3e5   : > { %v5578_v3 = vadd.f32 %v5577_v15, %v17684_v24 }
 0x3e7   : > { %v5591_v32 = vadd.f32 %v5590_v44, %v5578_v3 }
 0x3e8   : > { %v5566_v11 = vpop.f32.mrf.mxu3 }
 0x3e9   : > { %v5759_v40 = vmax.f32 %v5591_v32, 0.0 }
 0x3ea   : > { %v5551_v17 = vpop.f32.mrf.mxu2 }
 0x3eb   : > { %v5552_v48 = vadd.f32 %v5551_v17, %v17684_v24  ;;  %v5991_v56 = vrot.slane %v5759_v40, 7  ;;  %v9031_v60 = vrot.slane %v5759_v40, 6  ;;  %v9033_v42 = vrot.slane %v5759_v40, 5 }
 0x3ec   : > { %v5579_v61 = vpop.f32.mrf.mxu0  ;;  %v9035_v0 = vrot.slane %v5759_v40, 4  ;;  %v9036_v12 = vrot.slane %v5759_v40, 11  ;;  %v9038_v6 = vrot.slane %v5759_v40, 10  ;;  %v9040_v49 = vrot.slane %v5759_v40, 9 }
 0x3ed   : > { %v5565_v51 = vadd.f32 %v5564_v25, %v5552_v48  ;;  %v6004_v14 = vrot.slane %v5991_v56, 1 }
 0x3ef   : > { %v5758_v18 = vmax.f32 %v5565_v51, 0.0 }
 0x3f1   : > { %v5984_v13 = vrot.slane %v5758_v18, 4  ;;  %v9030_v27 = vrot.slane %v5758_v18, 7  ;;  %v9032_v45 = vrot.slane %v5758_v18, 6  ;;  %v9034_v38 = vrot.slane %v5758_v18, 5 }
 0x3f2   : > { %v5553_v43 = vpop.f32.mrf.mxu2  ;;  %v9037_v1 = vrot.slane %v5758_v18, 11  ;;  %v9039_v46 = vrot.slane %v5758_v18, 10  ;;  %v9041_v7 = vrot.slane %v5758_v18, 9  ;;  %v6005_v16 = vsel %vm5795_vm2, %v5758_v18, %v5991_v56 }
 0x3f3   : > { %v6006_v39 = vsel %vm5797_vm15, %v9030_v27, %v9031_v60  ;;  %v6008_v21 = vsel %vm5801_vm14, %v9032_v45, %v9033_v42  ;;  %v6009_v54 = vsel %vm5803_vm0, %v9034_v38, %v9035_v0  ;;  %v6012_v4 = vsel %vm5795_vm2, %v5984_v13, %v9036_v12 }
 0x3f4   : > { %v6007_v19 = vsel %vm5799_vm7, %v6005_v16, %v6006_v39  ;;  %v6010_v53 = vsel %vm5805_vm11, %v6008_v21, %v6009_v54  ;;  %v6013_v35 = vsel %vm5797_vm15, %v9037_v1, %v9038_v6  ;;  %v6015_v63 = vsel %vm5801_vm14, %v9039_v46, %v9040_v49  ;;  %v9136_v16 = vld [vmem:[#allocation5 + $0x70] sm:$0xf]  ;;  %v10263_v39 = vld [vmem:[#allocation5 + $0x74] sm:$0xf0] }
 0x3f5   : > { %v6011_v36 = vsel %vm20119_vm4, %v6007_v19, %v6010_v53  ;;  %v17744_v33 = vsel %vm5799_vm7, %v6012_v4, %v6013_v35  ;;  %v6016_v30 = vsel %vm5803_vm0, %v9041_v7, %v6004_v14  ;;  %v9200_v21 = vld [vmem:[#allocation5 + $0xf0] sm:$0xf]  ;;  %v9137_v4 = vor.u32 %v10263_v39, %v9136_v16  ;;  %v10279_v19 = vld [vmem:[#allocation5 + $0xf4] sm:$0xf0]  ;;  %vm20128_vm4 = vmmov %vm20115_vm1 }
 0x3f6   : > { %v17748_v20 = vsel %vm5805_vm11, %v6015_v63, %v6016_v30  ;;  %6022 = vst [vmem:[#allocation4 + $0x4] ss:$8 sm:$0xf] %v6011_v36  ;;  %v9201_v53 = vor.u32 %v10279_v19, %v9200_v21  ;;  %v9264_v35 = vld [vmem:[#allocation5 + $0x170] sm:$0xf] }
 0x3f7   : > { %6023 = vst [vmem:[#allocation4 + $0x4] ss:$8 sm:$0xf0] %v6011_v36  ;;  %7754 = vmatpush.bf16.msrb.mxu2 %v9137_v4  ;;  %v10295_v63 = vld [vmem:[#allocation5 + $0x174] sm:$0xf0] }
 0x3f8   : > { %v9328_v36 = vld [vmem:[#allocation5 + $0x1f0] sm:$0xf]  ;;  %v10311_v30 = vld [vmem:[#allocation5 + $0x1f4] sm:$0xf0]  ;;  %7767 = vmatpush.bf16.msra.mxu3 %v9201_v53 }
 0x3f9   : > { %v9168_v16 = vld [vmem:[#allocation5 + $0xb0] sm:$0xf]  ;;  %v10271_v39 = vld [vmem:[#allocation5 + $0xb4] sm:$0xf0] }
 0x3fa   : > { %v9232_v21 = vld [vmem:[#allocation5 + $0x130] sm:$0xf]  ;;  %v10287_v19 = vld [vmem:[#allocation5 + $0x134] sm:$0xf0] }
 0x3fb   : > { %v9296_v53 = vld [vmem:[#allocation5 + $0x1b0] sm:$0xf] }
 0x400   : > { %v5629_v58 = vpop.f32.mrf.mxu1 }
 0x401   : > { %v5630_v31 = vadd.f32 %v5629_v58, %v17684_v24  ;;  %v9265_v58 = vor.u32 %v10295_v63, %v9264_v35  ;;  %v10303_v35 = vld [vmem:[#allocation5 + $0x1b4] sm:$0xf0]  ;;  %v9169_v63 = vor.u32 %v10271_v39, %v9168_v16  ;;  %v9456_v16 = vld [vmem:[#allocation5 + $0x2f0] sm:$0xf] }
 0x403   : > { %7780 = vmatpush.bf16.msra.mxu0 %v9265_v58  ;;  %v10253_v58 = vld [vmem:[#allocation5 + $0x24] sm:$0xf0] }
 0x406   : > { %v5603_v29 = vpop.f32.mrf.mxu3 }
 0x407   : > { %v5604_v22 = vadd.f32 %v5603_v29, %v17684_v24  ;;  %v9329_v29 = vor.u32 %v10311_v30, %v9328_v36  ;;  %v9233_v36 = vor.u32 %v10287_v19, %v9232_v21  ;;  %v9096_v30 = vld [vmem:[#allocation5 + $0x20] sm:$0xf]  ;;  %v9520_v19 = vld [vmem:[#allocation5 + $0x370] sm:$0xf] }
 0x408   : > { %v5631_v8 = vpop.f32.mrf.mxu1 }
 0x409   : > { %v9128_v8 = vld [vmem:[#allocation5 + $0x60] sm:$0xf]  ;;  %7793 = vmatpush.bf16.msrb.mxu1 %v9329_v29 }
 0x40a   : > { %v5642_v5 = vpop.f32.mrf.mxu0  ;;  %v9160_v29 = vld [vmem:[#allocation5 + $0xa0] sm:$0xf] }
 0x40b   : > { %v5643_v59 = vadd.f32 %v5642_v5, %v5630_v31  ;;  %v10261_v31 = vld [vmem:[#allocation5 + $0x64] sm:$0xf0]  ;;  %v9192_v5 = vld [vmem:[#allocation5 + $0xe0] sm:$0xf] }
 0x40d   : > { %v5761_v10 = vmax.f32 %v5643_v59, 0.0  ;;  %v9129_v59 = vor.u32 %v10261_v31, %v9128_v8  ;;  %v9297_v8 = vor.u32 %v10303_v35, %v9296_v53  ;;  %v10269_v31 = vld [vmem:[#allocation5 + $0xa4] sm:$0xf0]  ;;  %v10359_v53 = vld [vmem:[#allocation5 + $0x374] sm:$0xf0] }
 0x40e   : > { %v5605_v26 = vpop.f32.mrf.mxu3 }
 0x40f   : > { %v6042_v62 = vrot.slane %v5761_v10, 7  ;;  %v9043_v25 = vrot.slane %v5761_v10, 6  ;;  %v9045_v15 = vrot.slane %v5761_v10, 5  ;;  %v9047_v28 = vrot.slane %v5761_v10, 4  ;;  %v10277_v26 = vld [vmem:[#allocation5 + $0xe4] sm:$0xf0]  ;;  %7755 = vmatpush.bf16.msrb.mxu2 %v9129_v59 }
 0x410   : > { %v5616_v34 = vpop.f32.mrf.mxu2  ;;  %v9048_v32 = vrot.slane %v5761_v10, 11  ;;  %v9050_v40 = vrot.slane %v5761_v10, 10  ;;  %v9052_v17 = vrot.slane %v5761_v10, 9  ;;  %v9256_v10 = vld [vmem:[#allocation5 + $0x160] sm:$0xf] }
 0x411   : > { %v5617_v55 = vadd.f32 %v5616_v34, %v5604_v22  ;;  %v6055_v11 = vrot.slane %v6042_v62, 1  ;;  %v10293_v22 = vld [vmem:[#allocation5 + $0x164] sm:$0xf0] }
 0x412   : > { %v5644_v44 = vpop.f32.mrf.mxu0  ;;  %v9257_v34 = vor.u32 %v10293_v22, %v9256_v10  ;;  %v10285_v59 = vld [vmem:[#allocation5 + $0x124] sm:$0xf0] }
 0x413   : > { %v5760_v3 = vmax.f32 %v5617_v55, 0.0  ;;  %v9320_v55 = vld [vmem:[#allocation5 + $0x1e0] sm:$0xf]  ;;  %v10309_v44 = vld [vmem:[#allocation5 + $0x1e4] sm:$0xf0] }
 0x414   : > { %7781 = vmatpush.bf16.msra.mxu0 %v9257_v34  ;;  %v10301_v10 = vld [vmem:[#allocation5 + $0x1a4] sm:$0xf0]  ;;  %v9161_v34 = vor.u32 %v10269_v31, %v9160_v29 }
 0x415   : > { %v6035_v48 = vrot.slane %v5760_v3, 4  ;;  %v9042_v61 = vrot.slane %v5760_v3, 7  ;;  %v9044_v56 = vrot.slane %v5760_v3, 6  ;;  %v9046_v51 = vrot.slane %v5760_v3, 5 }
 0x416   : > { %v9049_v60 = vrot.slane %v5760_v3, 11  ;;  %v9051_v42 = vrot.slane %v5760_v3, 10  ;;  %v9053_v0 = vrot.slane %v5760_v3, 9  ;;  %v6056_v18 = vsel %vm5795_vm2, %v5760_v3, %v6042_v62  ;;  %v9184_v3 = vld [vmem:[#allocation5 + $0xd0] sm:$0xf] }
 0x417   : > { %v6057_v12 = vsel %vm5797_vm15, %v9042_v61, %v9043_v25  ;;  %v6059_v6 = vsel %vm5801_vm14, %v9044_v56, %v9045_v15  ;;  %v6060_v49 = vsel %vm5803_vm0, %v9046_v51, %v9047_v28  ;;  %v6063_v14 = vsel %vm5795_vm2, %v6035_v48, %v9048_v32  ;;  %v9120_v15 = vld [vmem:[#allocation5 + $0x50] sm:$0xf]  ;;  %v10259_v28 = vld [vmem:[#allocation5 + $0x54] sm:$0xf0] }
 0x418   : > { %v6058_v13 = vsel %vm5799_vm7, %v6056_v18, %v6057_v12  ;;  %v6061_v27 = vsel %vm5805_vm11, %v6059_v6, %v6060_v49  ;;  %v6064_v45 = vsel %vm5797_vm15, %v9049_v60, %v9050_v40  ;;  %v6066_v38 = vsel %vm5801_vm14, %v9051_v42, %v9052_v17  ;;  %v5618_v43 = vpop.f32.mrf.mxu2  ;;  %v10275_v40 = vld [vmem:[#allocation5 + $0xd4] sm:$0xf0]  ;;  %v9248_v17 = vld [vmem:[#allocation5 + $0x150] sm:$0xf]  ;;  %v9112_v60 = vld [vmem:[#allocation5 + $0x40] sm:$0xf] }
 0x419   : > { %v6062_v1 = vsel %vm20120_vm13, %v6058_v13, %v6061_v27  ;;  %v17763_v46 = vsel %vm5799_vm7, %v6063_v14, %v6064_v45  ;;  %v6067_v7 = vsel %vm5803_vm0, %v9053_v0, %v6055_v11  ;;  %v9193_v62 = vor.u32 %v10277_v26, %v9192_v5  ;;  %v10291_v11 = vld [vmem:[#allocation5 + $0x154] sm:$0xf0]  ;;  %v9312_v56 = vld [vmem:[#allocation5 + $0x1d0] sm:$0xf]  ;;  %v10257_v0 = vld [vmem:[#allocation5 + $0x44] sm:$0xf0] }
 0x41a   : > { %v17767_v54 = vsel %vm5805_vm11, %v6066_v38, %v6067_v7  ;;  %6073 = vst [vmem:[#allocation4 + $0x5] ss:$8 sm:$0xf] %v6062_v1  ;;  %v9321_v25 = vor.u32 %v10309_v44, %v9320_v55  ;;  %v9121_v32 = vor.u32 %v10259_v28, %v9120_v15  ;;  %v9185_v48 = vor.u32 %v10275_v40, %v9184_v3  ;;  %v10307_v51 = vld [vmem:[#allocation5 + $0x1d4] sm:$0xf0]  ;;  %vm20129_vm13 = vmmov %vm20115_vm1 }
 0x41b   : > { %6074 = vst [vmem:[#allocation4 + $0x5] ss:$8 sm:$0xf0] %v6062_v1  ;;  %7768 = vmatpush.bf16.msra.mxu3 %v9193_v62  ;;  %v9249_v61 = vor.u32 %v10291_v11, %v9248_v17  ;;  %v9313_v42 = vor.u32 %v10307_v51, %v9312_v56  ;;  %v9176_v18 = vld [vmem:[#allocation5 + $0xc0] sm:$0xf]  ;;  %v9113_v6 = vor.u32 %v10257_v0, %v9112_v60 }
 0x41c   : > { %7794 = vmatpush.bf16.msrb.mxu1 %v9321_v25  ;;  %7756 = vmatpush.bf16.msrb.mxu2 %v9121_v32  ;;  %v10273_v12 = vld [vmem:[#allocation5 + $0xc4] sm:$0xf0]  ;;  %v9240_v14 = vld [vmem:[#allocation5 + $0x140] sm:$0xf]  ;;  %v9104_v43 = vld [vmem:[#allocation5 + $0x30] sm:$0xf]  ;;  %v9097_v62 = vor.u32 %v10253_v58, %v9096_v30 }
 0x41d   : > { %7782 = vmatpush.bf16.msra.mxu0 %v9249_v61  ;;  %v9177_v49 = vor.u32 %v10273_v12, %v9176_v18  ;;  %v10289_v13 = vld [vmem:[#allocation5 + $0x144] sm:$0xf0]  ;;  %v9304_v27 = vld [vmem:[#allocation5 + $0x1c0] sm:$0xf]  ;;  %v10255_v1 = vld [vmem:[#allocation5 + $0x34] sm:$0xf0] }
 0x41e   : > { %v9241_v45 = vor.u32 %v10289_v13, %v9240_v14  ;;  %v10305_v38 = vld [vmem:[#allocation5 + $0x1c4] sm:$0xf0]  ;;  %v9105_v4 = vor.u32 %v10255_v1, %v9104_v43  ;;  %v9224_v5 = vld [vmem:[#allocation5 + $0x120] sm:$0xf]  ;;  %v9088_v44 = vld [vmem:[#allocation5 + $0x10] sm:$0xf] }
 0x41f   : > { %7769 = vmatpush.bf16.msra.mxu3 %v9185_v48  ;;  %v9305_v7 = vor.u32 %v10305_v38, %v9304_v27  ;;  %v9288_v26 = vld [vmem:[#allocation5 + $0x1a0] sm:$0xf]  ;;  %v9225_v55 = vor.u32 %v10285_v59, %v9224_v5  ;;  %v10251_v25 = vld [vmem:[#allocation5 + $0x14] sm:$0xf0]  ;;  %v9152_v15 = vld [vmem:[#allocation5 + $0x90] sm:$0xf] }
 0x420   : > { %7795 = vmatpush.bf16.msrb.mxu1 %v9313_v42  ;;  %7757 = vmatpush.bf16.msrb.mxu2 %v9113_v6  ;;  %v9289_v28 = vor.u32 %v10301_v10, %v9288_v26  ;;  %v10267_v3 = vld [vmem:[#allocation5 + $0x94] sm:$0xf0]  ;;  %v9216_v32 = vld [vmem:[#allocation5 + $0x110] sm:$0xf]  ;;  %v9089_v56 = vor.u32 %v10251_v25, %v9088_v44  ;;  %v9080_v51 = vld [vmem:[#allocation5] sm:$0xf]  ;;  %v9521_v10 = vor.u32 %v10359_v53, %v9520_v19 }
 0x421   : > { %7783 = vmatpush.bf16.msra.mxu0 %v9241_v45  ;;  %v10283_v40 = vld [vmem:[#allocation5 + $0x114] sm:$0xf0]  ;;  %v9280_v11 = vld [vmem:[#allocation5 + $0x190] sm:$0xf]  ;;  %v10249_v60 = vld [vmem:[#allocation5 + $0x4] sm:$0xf0]  ;;  %v9153_v18 = vor.u32 %v10267_v3, %v9152_v15 }
 0x422   : > { %v10299_v48 = vld [vmem:[#allocation5 + $0x194] sm:$0xf0]  ;;  %v9144_v42 = vld [vmem:[#allocation5 + $0x80] sm:$0xf]  ;;  %v9217_v12 = vor.u32 %v10283_v40, %v9216_v32  ;;  %v10265_v6 = vld [vmem:[#allocation5 + $0x84] sm:$0xf0]  ;;  %v9081_v21 = vor.u32 %v10249_v60, %v9080_v51 }
 0x423   : > { %7770 = vmatpush.bf16.msra.mxu3 %v9177_v49  ;;  %v9208_v49 = vld [vmem:[#allocation5 + $0x100] sm:$0xf]  ;;  %v10281_v14 = vld [vmem:[#allocation5 + $0x104] sm:$0xf0]  ;;  %v9281_v27 = vor.u32 %v10299_v48, %v9280_v11  ;;  %v9392_v43 = vld [vmem:[#allocation5 + $0x270] sm:$0xf] }
 0x424   : > { %7796 = vmatpush.bf16.msrb.mxu1 %v9305_v7  ;;  %7758 = vmatpush.bf16.msrb.mxu2 %v9105_v4  ;;  %v9272_v45 = vld [vmem:[#allocation5 + $0x180] sm:$0xf]  ;;  %v10297_v38 = vld [vmem:[#allocation5 + $0x184] sm:$0xf0]  ;;  %v10327_v7 = vld [vmem:[#allocation5 + $0x274] sm:$0xf0] }
 0x425   : > { %7784 = vmatpush.bf16.msra.mxu0 %v9233_v36  ;;  %v10343_v4 = vld [vmem:[#allocation5 + $0x2f4] sm:$0xf0]  ;;  %v9209_v36 = vor.u32 %v10281_v14, %v9208_v49  ;;  %v9584_v30 = vld [vmem:[#allocation5 + $0x3f0] sm:$0xf]  ;;  %v9273_v31 = vor.u32 %v10297_v38, %v9272_v45  ;;  %v9393_v5 = vor.u32 %v10327_v7, %v9392_v43  ;;  %v5344_v7 = vadd.f32 %v17482_v50, %v17684_v24  ;;  %v10325_v19 = vld [vmem:[#allocation5 + $0x264] sm:$0xf0] }
 0x426   : > { %v10375_v58 = vld [vmem:[#allocation5 + $0x3f4] sm:$0xf0]  ;;  %v9457_v26 = vor.u32 %v10343_v4, %v9456_v16  ;;  %v5396_v4 = vadd.f32 %v17478_v52, %v17684_v24  ;;  %v9448_v53 = vld [vmem:[#allocation5 + $0x2e0] sm:$0xf] }
 0x427   : > { %7771 = vmatpush.bf16.msra.mxu3 %v9169_v63  ;;  %v9145_v63 = vor.u32 %v10265_v6, %v9144_v42  ;;  %v9576_v50 = vld [vmem:[#allocation5 + $0x3e0] sm:$0xf] }
 0x428   : > { %7797 = vmatpush.bf16.msrb.mxu1 %v9297_v8  ;;  %7759 = vmatpush.bf16.msrb.mxu2 %v9097_v62  ;;  %v9585_v62 = vor.u32 %v10375_v58, %v9584_v30  ;;  %v9512_v30 = vld [vmem:[#allocation5 + $0x360] sm:$0xf]  ;;  %v10357_v58 = vld [vmem:[#allocation5 + $0x364] sm:$0xf0] }
 0x429   : > { %7785 = vmatpush.bf16.msra.mxu0 %v9225_v55 }
 0x42b   : > { %7772 = vmatpush.bf16.msra.mxu3 %v9161_v34 }
 0x42c   : > { %7798 = vmatpush.bf16.msrb.mxu1 %v9289_v28  ;;  %7760 = vmatpush.bf16.msrb.mxu2 %v9089_v56 }
 0x42d   : > { %7786 = vmatpush.bf16.msra.mxu0 %v9217_v12 }
 0x42f   : > { %7773 = vmatpush.bf16.msra.mxu3 %v9153_v18 }
 0x430   : > { %v5681_v22 = vpop.f32.mrf.mxu0  ;;  %7799 = vmatpush.bf16.msrb.mxu1 %v9281_v27  ;;  %7761 = vmatpush.bf16.msrb.mxu2 %v9081_v21  ;;  %v9384_v21 = vld [vmem:[#allocation5 + $0x260] sm:$0xf] }
 0x431   : > { %v5682_v17 = vadd.f32 %v5681_v22, %v17684_v24  ;;  %7787 = vmatpush.bf16.msra.mxu0 %v9209_v36 }
 0x432   : > { %v5694_v61 = vpop.f32.mrf.mxu1 }
 0x433   : > { %v5695_v0 = vadd.f32 %v5694_v61, %v5682_v17  ;;  %7774 = vmatpush.bf16.msra.mxu3 %v9145_v63  ;;  %v9385_v63 = vor.u32 %v10325_v19, %v9384_v21  ;;  %v10367_v21 = vld [vmem:[#allocation5 + $0x3b4] sm:$0xf0]  ;;  %v10317_v19 = vld [vmem:[#allocation5 + $0x224] sm:$0xf0] }
 0x434   : > { %7800 = vmatpush.bf16.msrb.mxu1 %v9273_v31  ;;  %7806 = vmatpush.bf16.msra.mxu2 %v9393_v5  ;;  %v10373_v31 = vld [vmem:[#allocation5 + $0x3e4] sm:$0xf0]  ;;  %v9376_v5 = vld [vmem:[#allocation5 + $0x250] sm:$0xf] }
 0x435   : > { %v5763_v1 = vmax.f32 %v5695_v0, 0.0  ;;  %7832 = vmatpush.bf16.msrb.mxu0 %v9521_v10  ;;  %v9440_v10 = vld [vmem:[#allocation5 + $0x2d0] sm:$0xf] }
 0x436   : > { %v5655_v13 = vpop.f32.mrf.mxu2 }
 0x437   : > { %v5656_v35 = vadd.f32 %v5655_v13, %v17684_v24  ;;  %v6093_v29 = vrot.slane %v5763_v1, 7  ;;  %v9055_v34 = vrot.slane %v5763_v1, 6  ;;  %v9057_v55 = vrot.slane %v5763_v1, 5  ;;  %7819 = vmatpush.bf16.msrb.mxu3 %v9457_v26 }
 0x438   : > { %v5683_v39 = vpop.f32.mrf.mxu0  ;;  %v5668_v8 = vpop.f32.mrf.mxu3  ;;  %v9059_v44 = vrot.slane %v5763_v1, 4  ;;  %v9060_v15 = vrot.slane %v5763_v1, 11  ;;  %v9062_v28 = vrot.slane %v5763_v1, 10  ;;  %v9064_v3 = vrot.slane %v5763_v1, 9  ;;  %7845 = vmatpush.bf16.msra.mxu1 %v9585_v62  ;;  %7807 = vmatpush.bf16.msra.mxu2 %v9385_v63  ;;  %v9504_v62 = vld [vmem:[#allocation5 + $0x350] sm:$0xf] }
 0x439   : > { %v5669_v59 = vadd.f32 %v5668_v8, %v5656_v35  ;;  %v6106_v32 = vrot.slane %v6093_v29, 1  ;;  %v5370_v39 = vadd.f32 %v17534_v2, %v17684_v24  ;;  %v10341_v35 = vld [vmem:[#allocation5 + $0x2e4] sm:$0xf0]  ;;  %v9513_v8 = vor.u32 %v10357_v58, %v9512_v30 }
 0x43a   : > { %v5696_v22 = vpop.f32.mrf.mxu1  ;;  %v9449_v36 = vor.u32 %v10341_v35, %v9448_v53  ;;  %v9577_v26 = vor.u32 %v10373_v31, %v9576_v50  ;;  %v9416_v35 = vld [vmem:[#allocation5 + $0x2a0] sm:$0xf]  ;;  %v10333_v63 = vld [vmem:[#allocation5 + $0x2a4] sm:$0xf0] }
 0x43b   : > { %v5762_v25 = vmax.f32 %v5669_v59, 0.0  ;;  %v10323_v59 = vld [vmem:[#allocation5 + $0x254] sm:$0xf0]  ;;  %v5383_v2 = vadd.f32 %v17476_v37, %v5370_v39  ;;  %7833 = vmatpush.bf16.msrb.mxu0 %v9513_v8  ;;  %v10349_v58 = vld [vmem:[#allocation5 + $0x324] sm:$0xf0]  ;;  %v9417_v8 = vor.u32 %v10333_v63, %v9416_v35 }
 0x43c   : > { %7820 = vmatpush.bf16.msrb.mxu3 %v9449_v36  ;;  %v9377_v52 = vor.u32 %v10323_v59, %v9376_v5  ;;  %v10339_v22 = vld [vmem:[#allocation5 + $0x2d4] sm:$0xf0]  ;;  %7846 = vmatpush.bf16.msra.mxu1 %v9577_v26  ;;  %v9480_v36 = vld [vmem:[#allocation5 + $0x320] sm:$0xf]  ;;  %v9344_v5 = vld [vmem:[#allocation5 + $0x210] sm:$0xf] }
 0x43d   : > { %v6086_v17 = vrot.slane %v5762_v25, 4  ;;  %v9054_v11 = vrot.slane %v5762_v25, 7  ;;  %v9056_v48 = vrot.slane %v5762_v25, 6  ;;  %v9058_v61 = vrot.slane %v5762_v25, 5  ;;  %v9544_v50 = vld [vmem:[#allocation5 + $0x3a0] sm:$0xf] }
 0x43e   : > { %v5657_v40 = vpop.f32.mrf.mxu2  ;;  %v9061_v56 = vrot.slane %v5762_v25, 11  ;;  %v9063_v51 = vrot.slane %v5762_v25, 10  ;;  %v9065_v60 = vrot.slane %v5762_v25, 9  ;;  %v6107_v42 = vsel %vm5795_vm2, %v5762_v25, %v6093_v29  ;;  %v9568_v25 = vld [vmem:[#allocation5 + $0x3d0] sm:$0xf]  ;;  %7808 = vmatpush.bf16.msra.mxu2 %v9377_v52 }
 0x43f   : > { %v6108_v0 = vsel %vm5797_vm15, %v9054_v11, %v9055_v34  ;;  %v6110_v18 = vsel %vm5801_vm14, %v9056_v48, %v9057_v55  ;;  %v6111_v12 = vsel %vm5803_vm0, %v9058_v61, %v9059_v44  ;;  %v6114_v6 = vsel %vm5795_vm2, %v6086_v17, %v9060_v15  ;;  %v10355_v44 = vld [vmem:[#allocation5 + $0x354] sm:$0xf0]  ;;  %v9368_v11 = vld [vmem:[#allocation5 + $0x240] sm:$0xf]  ;;  %v10321_v48 = vld [vmem:[#allocation5 + $0x244] sm:$0xf0] }
 0x440   : > { %v6109_v49 = vsel %vm5799_vm7, %v6107_v42, %v6108_v0  ;;  %v6112_v14 = vsel %vm5805_vm11, %v6110_v18, %v6111_v12  ;;  %v6115_v13 = vsel %vm5797_vm15, %v9061_v56, %v9062_v28  ;;  %v6117_v27 = vsel %vm5801_vm14, %v9063_v51, %v9064_v3  ;;  %v5670_v45 = vpop.f32.mrf.mxu3  ;;  %v9432_v61 = vld [vmem:[#allocation5 + $0x2c0] sm:$0xf]  ;;  %v10337_v51 = vld [vmem:[#allocation5 + $0x2c4] sm:$0xf0]  ;;  %v10315_v59 = vld [vmem:[#allocation5 + $0x214] sm:$0xf0] }
 0x441   : > { %v6113_v38 = vsel %vm20121_vm9, %v6109_v49, %v6112_v14  ;;  %v17782_v43 = vsel %vm5799_vm7, %v6114_v6, %v6115_v13  ;;  %v6118_v1 = vsel %vm5803_vm0, %v9065_v60, %v6106_v32  ;;  %v5357_v29 = vadd.f32 %v17420_v41, %v5344_v7  ;;  %v10371_v41 = vld [vmem:[#allocation5 + $0x3d4] sm:$0xf0]  ;;  %v9496_v60 = vld [vmem:[#allocation5 + $0x340] sm:$0xf]  ;;  %v10353_v42 = vld [vmem:[#allocation5 + $0x344] sm:$0xf0] }
 0x442   : > { %v17788_v16 = vsel %vm5805_vm11, %v6117_v27, %v6118_v1  ;;  %6124 = vst [vmem:[#allocation4 + $0x6] ss:$8 sm:$0xf] %v6113_v38  ;;  %v5409_v34 = vadd.f32 %v17526_v47, %v5396_v4  ;;  %v9441_v55 = vor.u32 %v10339_v22, %v9440_v10  ;;  %v9505_v15 = vor.u32 %v10355_v44, %v9504_v62  ;;  %v9560_v12 = vld [vmem:[#allocation5 + $0x3c0] sm:$0xf]  ;;  %vm20130_vm9 = vmmov %vm20115_vm1 }
 0x443   : > { %6125 = vst [vmem:[#allocation4 + $0x6] ss:$8 sm:$0xf0] %v6113_v38  ;;  %v9569_v28 = vor.u32 %v10371_v41, %v9568_v25  ;;  %v17797_v3 = vmax.f32 %v5357_v29, 0.0  ;;  %v17799_v37 = vmax.f32 %v5383_v2, 0.0  ;;  %v17804_v40 = vmax.f32 %v17696_v23, 0.0 }
 0x444   : > { %7821 = vmatpush.bf16.msrb.mxu3 %v9441_v55  ;;  %v17801_v32 = vmax.f32 %v5409_v34, 0.0  ;;  %v17807_v47 = vmax.f32 %v17699_v9, 0.0  ;;  %v17810_v17 = vmax.f32 %v17702_v57, 0.0  ;;  %7834 = vmatpush.bf16.msrb.mxu0 %v9505_v15  ;;  %v9369_v56 = vor.u32 %v10321_v48, %v9368_v11  ;;  %v10369_v23 = vld [vmem:[#allocation5 + $0x3c4] sm:$0xf0] }
 0x445   : > { %7847 = vmatpush.bf16.msra.mxu1 %v9569_v28  ;;  %v9433_v0 = vor.u32 %v10337_v51, %v9432_v61  ;;  %v9497_v18 = vor.u32 %v10353_v42, %v9496_v60  ;;  %v9360_v6 = vld [vmem:[#allocation5 + $0x230] sm:$0xf]  ;;  %v9561_v9 = vor.u32 %v10369_v23, %v9560_v12  ;;  %v10319_v49 = vld [vmem:[#allocation5 + $0x234] sm:$0xf0]  ;;  %v9352_v4 = vld [vmem:[#allocation5 + $0x220] sm:$0xf]  ;;  %v9481_v31 = vor.u32 %v10349_v58, %v9480_v36 }
 0x446   : > { %7809 = vmatpush.bf16.msra.mxu2 %v9369_v56  ;;  %v9424_v14 = vld [vmem:[#allocation5 + $0x2b0] sm:$0xf]  ;;  %v10335_v57 = vld [vmem:[#allocation5 + $0x2b4] sm:$0xf0]  ;;  %v9361_v27 = vor.u32 %v10319_v49, %v9360_v6  ;;  %v9353_v30 = vor.u32 %v10317_v19, %v9352_v4  ;;  %v10365_v29 = vld [vmem:[#allocation5 + $0x3a4] sm:$0xf0]  ;;  %v9345_v41 = vor.u32 %v10315_v59, %v9344_v5 }
 0x447   : > { %v9425_v45 = vor.u32 %v10335_v57, %v9424_v14  ;;  %v9488_v38 = vld [vmem:[#allocation5 + $0x330] sm:$0xf]  ;;  %v10351_v1 = vld [vmem:[#allocation5 + $0x334] sm:$0xf0]  ;;  %v9545_v52 = vor.u32 %v10365_v29, %v9544_v50  ;;  %v9336_v44 = vld [vmem:[#allocation5 + $0x200] sm:$0xf] }
 0x448   : > { %7822 = vmatpush.bf16.msrb.mxu3 %v9433_v0  ;;  %7835 = vmatpush.bf16.msrb.mxu0 %v9497_v18  ;;  %v9552_v7 = vld [vmem:[#allocation5 + $0x3b0] sm:$0xf]  ;;  %v9489_v39 = vor.u32 %v10351_v1, %v9488_v38  ;;  %v10331_v10 = vld [vmem:[#allocation5 + $0x294] sm:$0xf0]  ;;  %v10313_v11 = vld [vmem:[#allocation5 + $0x204] sm:$0xf0] }
 0x449   : > { %7848 = vmatpush.bf16.msra.mxu1 %v9561_v9  ;;  %v9553_v53 = vor.u32 %v10367_v21, %v9552_v7  ;;  %v9408_v2 = vld [vmem:[#allocation5 + $0x290] sm:$0xf]  ;;  %v10347_v62 = vld [vmem:[#allocation5 + $0x314] sm:$0xf0]  ;;  %v9400_v48 = vld [vmem:[#allocation5 + $0x280] sm:$0xf]  ;;  %v9337_v60 = vor.u32 %v10313_v11, %v9336_v44 }
 0x44a   : > { %7810 = vmatpush.bf16.msra.mxu2 %v9361_v27  ;;  %v9472_v22 = vld [vmem:[#allocation5 + $0x310] sm:$0xf]  ;;  %v10363_v55 = vld [vmem:[#allocation5 + $0x394] sm:$0xf0]  ;;  %v9409_v15 = vor.u32 %v10331_v10, %v9408_v2  ;;  %v10329_v61 = vld [vmem:[#allocation5 + $0x284] sm:$0xf0] }
 0x44b   : > { %v9536_v34 = vld [vmem:[#allocation5 + $0x390] sm:$0xf]  ;;  %v9473_v28 = vor.u32 %v10347_v62, %v9472_v22  ;;  %v9401_v42 = vor.u32 %v10329_v61, %v9400_v48  ;;  %v9464_v0 = vld [vmem:[#allocation5 + $0x300] sm:$0xf]  ;;  %v10345_v18 = vld [vmem:[#allocation5 + $0x304] sm:$0xf0] }
 0x44c   : > { %7823 = vmatpush.bf16.msrb.mxu3 %v9425_v45  ;;  %7836 = vmatpush.bf16.msrb.mxu0 %v9489_v39  ;;  %v9537_v51 = vor.u32 %v10363_v55, %v9536_v34  ;;  %v9528_v12 = vld [vmem:[#allocation5 + $0x380] sm:$0xf]  ;;  %v9465_v23 = vor.u32 %v10345_v18, %v9464_v0  ;;  %v10361_v6 = vld [vmem:[#allocation5 + $0x384] sm:$0xf0]  ;;  %v5781_v9 = vrot.slane %v17799_v37, 7  ;;  %v8982_v49 = vrot.slane %v17797_v3, 7 }
 0x44d   : > { %7849 = vmatpush.bf16.msra.mxu1 %v9553_v53  ;;  %v8983_v14 = vrot.slane %v17799_v37, 6  ;;  %v9529_v57 = vor.u32 %v10361_v6, %v9528_v12  ;;  %v8985_v27 = vrot.slane %v17799_v37, 5  ;;  %v8986_v45 = vrot.slane %v17797_v3, 5 }
 0x44e   : > { %7811 = vmatpush.bf16.msra.mxu2 %v9353_v30  ;;  %v8987_v1 = vrot.slane %v17799_v37, 4  ;;  %v5796_v7 = vsel %vm5795_vm2, %v17797_v3, %v5781_v9  ;;  %v5838_v21 = vrot.slane %v17804_v40, 7  ;;  %v8994_v35 = vrot.slane %v17801_v32, 7 }
 0x44f   : > { %v5798_v39 = vsel %vm5797_vm15, %v8982_v49, %v8983_v14  ;;  %v8995_v30 = vrot.slane %v17804_v40, 6  ;;  %v8996_v58 = vrot.slane %v17801_v32, 6  ;;  %v8997_v50 = vrot.slane %v17804_v40, 5 }
 0x450   : > { %7824 = vmatpush.bf16.msrb.mxu3 %v9417_v8  ;;  %7837 = vmatpush.bf16.msrb.mxu0 %v9481_v31  ;;  %v5800_v19 = vsel %vm5799_vm7, %v5796_v7, %v5798_v39  ;;  %v5804_v36 = vsel %vm5803_vm0, %v8986_v45, %v8987_v1  ;;  %v8998_v31 = vrot.slane %v17801_v32, 5  ;;  %v8999_v5 = vrot.slane %v17804_v40, 4 }
 0x451   : > { %7850 = vmatpush.bf16.msra.mxu1 %v9545_v52  ;;  %v5852_v2 = vsel %vm5795_vm2, %v17801_v32, %v5838_v21  ;;  %v5853_v52 = vsel %vm5797_vm15, %v8994_v35, %v8995_v30  ;;  %v5855_v10 = vsel %vm5801_vm14, %v8996_v58, %v8997_v50  ;;  %v5889_v55 = vrot.slane %v17810_v17, 7  ;;  %v17880_v30 = vld [vmem:[#allocation5 + $0x474] sm:$0xf0] }
 0x452   : > { %7812 = vmatpush.bf16.msra.mxu2 %v9345_v41  ;;  %v5856_v34 = vsel %vm5803_vm0, %v8998_v31, %v8999_v5  ;;  %v9006_v41 = vrot.slane %v17807_v47, 7  ;;  %v9009_v6 = vrot.slane %v17810_v17, 5  ;;  %v9010_v49 = vrot.slane %v17807_v47, 5  ;;  %v17882_v31 = vld [vmem:[#allocation5 + $0x4f0] sm:$0xf] }
 0x453   : > { %v5733_v13 = vpop.f32.mrf.mxu1  ;;  %v5746_v38 = vpop.f32.mrf.mxu0  ;;  %v9011_v14 = vrot.slane %v17810_v17, 4  ;;  %v17884_v5 = vld [vmem:[#allocation5 + $0x4f4] sm:$0xf0] }
 0x454   : > { %v5734_v25 = vadd.f32 %v5733_v13, %v17684_v24  ;;  %v8984_v13 = vrot.slane %v17797_v3, 6  ;;  %7825 = vmatpush.bf16.msrb.mxu3 %v9409_v15  ;;  %7838 = vmatpush.bf16.msrb.mxu0 %v9473_v28  ;;  %v9007_v15 = vrot.slane %v17810_v17, 6 }
 0x455   : > { %7851 = vmatpush.bf16.msra.mxu1 %v9537_v51 }
 0x456   : > { %v5747_v4 = vadd.f32 %v5746_v38, %v5734_v25  ;;  %v5802_v53 = vsel %vm5801_vm14, %v8984_v13, %v8985_v27  ;;  %7813 = vmatpush.bf16.msra.mxu2 %v9337_v60  ;;  %v5857_v25 = vsel %vm5805_vm11, %v5855_v10, %v5856_v34  ;;  %v5903_v60 = vsel %vm5795_vm2, %v17807_v47, %v5889_v55  ;;  %v17892_v10 = vld [vmem:[#allocation5 + $0x5f4] sm:$0xf0] }
 0x457   : > { %v5806_v8 = vsel %vm5805_vm11, %v5802_v53, %v5804_v36  ;;  %v5907_v53 = vsel %vm5803_vm0, %v9010_v49, %v9011_v14  ;;  %v17878_v36 = vld [vmem:[#allocation5 + $0x470] sm:$0xf] }
 0x458   : > { %v5707_v26 = vpop.f32.mrf.mxu3  ;;  %v5808_v59 = vsel %vm20122_vm8, %v5800_v19, %v5806_v8  ;;  %v17844_v22 = vmax.f32 %v5747_v4, 0.0  ;;  %7826 = vmatpush.bf16.msrb.mxu3 %v9401_v42  ;;  %7839 = vmatpush.bf16.msrb.mxu0 %v9465_v23  ;;  %v5904_v42 = vsel %vm5797_vm15, %v9006_v41, %v9007_v15  ;;  %v9008_v23 = vrot.slane %v17807_v47, 6  ;;  %v17903_v15 = vld [vmem:[#allocation5 + $0x4e0] sm:$0xf] }
 0x459   : > { %v5708_v29 = vadd.f32 %v5707_v26, %v17684_v24  ;;  %v5720_v24 = vpop.f32.mrf.mxu2  ;;  %7852 = vmatpush.bf16.msra.mxu1 %v9529_v57  ;;  %5818 = vst [vmem:[#allocation4] ss:$8 sm:$0xf] %v5808_v59  ;;  %v5854_v26 = vsel %vm5799_vm7, %v5852_v2, %v5853_v52  ;;  %v5905_v4 = vsel %vm5799_vm7, %v5903_v60, %v5904_v42  ;;  %v17888_v2 = vld [vmem:[#allocation5 + $0x574] sm:$0xf0] }
 0x45a   : > { %5819 = vst [vmem:[#allocation4] ss:$8 sm:$0xf0] %v5808_v59  ;;  %v6144_v28 = vrot.slane %v17844_v22, 7  ;;  %v9067_v11 = vrot.slane %v17844_v22, 6  ;;  %v5858_v61 = vsel %vm20123_vm3, %v5854_v26, %v5857_v25  ;;  %v9071_v51 = vrot.slane %v17844_v22, 4 }
 0x45b   : > { %v5735_v56 = vpop.f32.mrf.mxu1  ;;  %v5721_v62 = vadd.f32 %v5720_v24, %v5708_v29  ;;  %v5748_v44 = vpop.f32.mrf.mxu0  ;;  %5869 = vst [vmem:[#allocation4 + $0x1] ss:$8 sm:$0xf] %v5858_v61  ;;  %v5906_v19 = vsel %vm5801_vm14, %v9008_v23, %v9009_v6  ;;  %v17886_v59 = vld [vmem:[#allocation5 + $0x570] sm:$0xf]  ;;  %v9072_v24 = vrot.slane %v17844_v22, 11  ;;  %v9649_v41 = vor.u32 %v17880_v30, %v17878_v36 }
 0x45c   : > { %v9069_v56 = vrot.slane %v17844_v22, 5  ;;  %5870 = vst [vmem:[#allocation4 + $0x1] ss:$8 sm:$0xf0] %v5858_v61  ;;  %v5908_v35 = vsel %vm5805_vm11, %v5906_v19, %v5907_v53  ;;  %v17890_v52 = vld [vmem:[#allocation5 + $0x5f0] sm:$0xf] }
 0x45d   : > { %v5764_v48 = vmax.f32 %v5721_v62, 0.0  ;;  %v9074_v26 = vrot.slane %v17844_v22, 10  ;;  %v9076_v62 = vrot.slane %v17844_v22, 9  ;;  %v6157_v34 = vrot.slane %v6144_v28, 1  ;;  %v17897_v44 = vld [vmem:[#allocation5 + $0x460] sm:$0xf] }
 0x45e   : > { %v17899_v25 = vld [vmem:[#allocation5 + $0x464] sm:$0xf0]  ;;  %v9841_v19 = vor.u32 %v17892_v10, %v17890_v52  ;;  %v17945_v53 = vld [vmem:[#allocation5 + $0x5d0] sm:$0xf]  ;;  %v17953_v30 = vld [vmem:[#allocation5 + $0x4c0] sm:$0xf] }
 0x45f   : > { %v9066_v0 = vrot.slane %v5764_v48, 7  ;;  %v9068_v18 = vrot.slane %v5764_v48, 6  ;;  %v9070_v12 = vrot.slane %v5764_v48, 5  ;;  %v6158_v57 = vsel %vm5795_vm2, %v5764_v48, %v6144_v28  ;;  %v17909_v61 = vld [vmem:[#allocation5 + $0x564] sm:$0xf0] }
 0x460   : > { %v5709_v63 = vpop.f32.mrf.mxu3  ;;  %v6137_v58 = vrot.slane %v5764_v48, 4  ;;  %v9073_v50 = vrot.slane %v5764_v48, 11  ;;  %v9075_v29 = vrot.slane %v5764_v48, 10  ;;  %v9077_v8 = vrot.slane %v5764_v48, 9  ;;  %v17907_v48 = vld [vmem:[#allocation5 + $0x560] sm:$0xf] }
 0x461   : > { %v6159_v13 = vsel %vm5797_vm15, %v9066_v0, %v9067_v11  ;;  %v6161_v27 = vsel %vm5801_vm14, %v9068_v18, %v9069_v56  ;;  %v6162_v45 = vsel %vm5803_vm0, %v9070_v12, %v9071_v51  ;;  %v5722_v7 = vpop.f32.mrf.mxu2  ;;  %v5909_v63 = vsel %vm20115_vm1, %v5905_v4, %v5908_v35  ;;  %v17905_v11 = vld [vmem:[#allocation5 + $0x4e4] sm:$0xf0]  ;;  %v17915_v18 = vld [vmem:[#allocation5 + $0x5e0] sm:$0xf]  ;;  %v17947_v35 = vld [vmem:[#allocation5 + $0x5d4] sm:$0xf0] }
 0x462   : > { %v6160_v38 = vsel %vm5799_vm7, %v6158_v57, %v6159_v13  ;;  %v6163_v1 = vsel %vm5805_vm11, %v6161_v27, %v6162_v45  ;;  %5920 = vst [vmem:[#allocation4 + $0x2] ss:$8 sm:$0xf] %v5909_v63  ;;  %v6165_v56 = vsel %vm5795_vm2, %v6137_v58, %v9072_v24  ;;  %v6166_v22 = vsel %vm5797_vm15, %v9073_v50, %v9074_v26  ;;  %v17917_v12 = vld [vmem:[#allocation5 + $0x5e4] sm:$0xf0] }
 0x463   : > { %v6164_v39 = vsel %vm20124_vm6, %v6160_v38, %v6163_v1  ;;  %5921 = vst [vmem:[#allocation4 + $0x2] ss:$8 sm:$0xf0] %v5909_v63  ;;  %v6168_v28 = vsel %vm5801_vm14, %v9075_v29, %v9076_v62  ;;  %v6169_v51 = vsel %vm5803_vm0, %v9077_v8, %v6157_v34  ;;  %v9713_v57 = vor.u32 %v17884_v5, %v17882_v31  ;;  %v17927_v13 = vld [vmem:[#allocation5 + $0x450] sm:$0xf] }
 0x464   : > { %6175 = vst [vmem:[#allocation4 + $0x7] ss:$8 sm:$0xf] %v6164_v39  ;;  %v17929_v27 = vld [vmem:[#allocation5 + $0x454] sm:$0xf0]  ;;  %v9777_v4 = vor.u32 %v17888_v2, %v17886_v59  ;;  %v17962_v8 = vsel %vm5799_vm7, %v6165_v56, %v6166_v22  ;;  %v17965_v31 = vsel %vm5805_vm11, %v6168_v28, %v6169_v51  ;;  %v9641_v5 = vor.u32 %v17899_v25, %v17897_v44 }
 0x465   : > { %6176 = vst [vmem:[#allocation4 + $0x7] ss:$8 sm:$0xf0] %v6164_v39  ;;  %v17931_v45 = vld [vmem:[#allocation5 + $0x4d0] sm:$0xf]  ;;  %v9705_v26 = vor.u32 %v17905_v11, %v17903_v15  ;;  %v9769_v62 = vor.u32 %v17909_v61, %v17907_v48  ;;  %v17996_v56 = vsel %vm20125_vm10, %v17744_v33, %v17748_v20  ;;  %v9833_v22 = vor.u32 %v17917_v12, %v17915_v18 }
 0x466   : > { %v17933_v38 = vld [vmem:[#allocation5 + $0x4d4] sm:$0xf0]  ;;  %v17935_v1 = vld [vmem:[#allocation5 + $0x550] sm:$0xf]  ;;  %v17949_v63 = vld [vmem:[#allocation5 + $0x440] sm:$0xf]  ;;  %v18009_v61 = vsel %vm20126_vm5, %v17763_v46, %v17767_v54  ;;  %v18014_v33 = vsel %vm20127_vm12, %v17782_v43, %v17788_v16  ;;  %v9633_v20 = vor.u32 %v17929_v27, %v17927_v13  ;;  %v9825_v43 = vor.u32 %v17947_v35, %v17945_v53 }
 0x467   : > { %v17937_v7 = vld [vmem:[#allocation5 + $0x554] sm:$0xf0]  ;;  %v17951_v36 = vld [vmem:[#allocation5 + $0x444] sm:$0xf0]  ;;  %v17957_v50 = vld [vmem:[#allocation5 + $0x540] sm:$0xf] }
 0x468   : > { %v17955_v58 = vld [vmem:[#allocation5 + $0x4c4] sm:$0xf0]  ;;  %v17971_v59 = vld [vmem:[#allocation5 + $0x5c0] sm:$0xf]  ;;  %v17975_v52 = vld [vmem:[#allocation5 + $0x430] sm:$0xf]  ;;  %v9761_v28 = vor.u32 %v17937_v7, %v17935_v1  ;;  %v9625_v16 = vor.u32 %v17951_v36, %v17949_v63 }
 0x469   : > { %v17959_v29 = vld [vmem:[#allocation5 + $0x544] sm:$0xf0]  ;;  %v17977_v10 = vld [vmem:[#allocation5 + $0x434] sm:$0xf0]  ;;  %v17979_v24 = vld [vmem:[#allocation5 + $0x4b0] sm:$0xf] }
 0x46a   : > { %v17973_v2 = vld [vmem:[#allocation5 + $0x5c4] sm:$0xf0]  ;;  %v17987_v34 = vld [vmem:[#allocation5 + $0x4b4] sm:$0xf0]  ;;  %v17989_v44 = vld [vmem:[#allocation5 + $0x530] sm:$0xf]  ;;  %v9617_v13 = vor.u32 %v17977_v10, %v17975_v52 }
 0x46b   : > { %v6180_v60 = vld [vmem:[#allocation4] sm:$0xff]  ;;  %v6181_v42 = vld [vmem:[#allocation4 + $0x8] sm:$0xff]  ;;  %v6182_v0 = vld [vmem:[#allocation4 + $0x10] sm:$0xff]  ;;  %v9681_v27 = vor.u32 %v17987_v34, %v17979_v24  ;;  %v5774_v63 = vrot.slane %v17797_v3, 4  ;;  %v8988_v36 = vrot.slane %v17799_v37, 11 }
 0x46c   : > { %v17919_v23 = vpack.c.bf16 %v6180_v60, %v6180_v60  ;;  %v17921_v6 = vpack.c.bf16 %v6181_v42, %v6181_v42  ;;  %v17923_v49 = vpack.c.bf16 %v6182_v0, %v6182_v0  ;;  %v6183_v14 = vld [vmem:[#allocation4 + $0x18] sm:$0xff]  ;;  %v18000_v15 = vld [vmem:[#allocation5 + $0x5b0] sm:$0xf]  ;;  %v18004_v48 = vld [vmem:[#allocation5 + $0x420] sm:$0xf]  ;;  %v9689_v60 = vor.u32 %v17955_v58, %v17953_v30 }
 0x46d   : > { %v17939_v39 = vpack.c.bf16 %v6183_v14, %v6183_v14  ;;  %v17991_v25 = vld [vmem:[#allocation5 + $0x534] sm:$0xf0]  ;;  %v18022_v51 = vld [vmem:[#allocation5 + $0x424] sm:$0xf0]  ;;  %v18024_v46 = vld [vmem:[#allocation5 + $0x4a0] sm:$0xf]  ;;  %v9753_v42 = vor.u32 %v17959_v29, %v17957_v50  ;;  %v9817_v14 = vor.u32 %v17973_v2, %v17971_v59 }
 0x46e   : > { %7762 = vmatmul.bf16.vlgmr.msrb.gmra.mxu2 %v17919_v23  ;;  %7775 = vmatmul.bf16.vlgmr.msra.gmra.mxu3 %v17921_v6  ;;  %v18002_v11 = vld [vmem:[#allocation5 + $0x5b4] sm:$0xf0]  ;;  %v18026_v54 = vld [vmem:[#allocation5 + $0x4a4] sm:$0xf0]  ;;  %v6184_v0 = vld [vmem:[#allocation4 + $0x20] sm:$0xff]  ;;  %v9609_v1 = vor.u32 %v18022_v51, %v18004_v48  ;;  %v8989_v30 = vrot.slane %v17797_v3, 11 }
 0x46f   : > { %7788 = vmatmul.bf16.vlgmr.msra.gmra.mxu0 %v17923_v49  ;;  %7801 = vmatmul.bf16.vlgmr.msrb.gmra.mxu1 %v17939_v39  ;;  %v6185_v18 = vld [vmem:[#allocation4 + $0x28] sm:$0xff]  ;;  %v6186_v12 = vld [vmem:[#allocation4 + $0x30] sm:$0xff]  ;;  %v9673_v7 = vor.u32 %v18026_v54, %v18024_v46  ;;  %v8990_v58 = vrot.slane %v17799_v37, 10  ;;  %v8991_v50 = vrot.slane %v17797_v3, 10  ;;  %v8992_v29 = vrot.slane %v17799_v37, 9 }
 0x470   : > { %7858 = vmatpush.bf16.msrb.mxu2 %v9649_v41  ;;  %7871 = vmatpush.bf16.msra.mxu3 %v9713_v57  ;;  %v9697_v41 = vor.u32 %v17933_v38, %v17931_v45  ;;  %v6187_v57 = vld [vmem:[#allocation4 + $0x38] sm:$0xff]  ;;  %v9745_v45 = vor.u32 %v17991_v25, %v17989_v44  ;;  %v9809_v38 = vor.u32 %v18002_v11, %v18000_v15  ;;  %v8993_v59 = vrot.slane %v17797_v3, 9  ;;  %v18081_v3 = vld [vmem:[#allocation5 + $0x520] sm:$0xf]  ;;  %v9792_v10 = vld [vmem:[#allocation5 + $0x590] sm:$0xf] }
 0x471   : > { %7884 = vmatpush.bf16.msra.mxu0 %v9777_v4  ;;  %7897 = vmatpush.bf16.msrb.mxu1 %v9841_v19  ;;  %v18050_v4 = vpack.c.bf16 %v6184_v0, %v6184_v0  ;;  %v18052_v19 = vpack.c.bf16 %v6185_v18, %v6185_v18  ;;  %v18054_v53 = vpack.c.bf16 %v6186_v12, %v6186_v12  ;;  %v5794_v2 = vrot.slane %v5781_v9, 1  ;;  %v9592_v34 = vld [vmem:[#allocation5 + $0x400] sm:$0xf]  ;;  %v10377_v44 = vld [vmem:[#allocation5 + $0x404] sm:$0xf0] }
 0x472   : > { %v18056_v35 = vpack.c.bf16 %v6187_v57, %v6187_v57  ;;  %6025 = vst [vmem:[#allocation4 + $0x44] ss:$8 sm:$0xf] %v17996_v56  ;;  %v9004_v0 = vrot.slane %v17804_v40, 9  ;;  %v9005_v18 = vrot.slane %v17801_v32, 9  ;;  %v5851_v12 = vrot.slane %v5838_v21, 1 }
 0x473   : > { %6076 = vst [vmem:[#allocation4 + $0x45] ss:$8 sm:$0xf] %v18009_v61  ;;  %v5813_v9 = vsel %vm5803_vm0, %v8993_v59, %v5794_v2  ;;  %v18094_v57 = vld [vmem:[#allocation5 + $0x524] sm:$0xf0]  ;;  %v9593_v54 = vor.u32 %v10377_v44, %v9592_v34 }
 0x474   : > { %7859 = vmatpush.bf16.msrb.mxu2 %v9641_v5  ;;  %7872 = vmatpush.bf16.msra.mxu3 %v9705_v26  ;;  %v18068_v5 = vsel %vm20128_vm4, %v17962_v8, %v17965_v31  ;;  %v5809_v26 = vsel %vm5795_vm2, %v5774_v63, %v8988_v36  ;;  %v5812_v8 = vsel %vm5801_vm14, %v8991_v50, %v8992_v29  ;;  %v9000_v31 = vrot.slane %v17804_v40, 11  ;;  %v18096_v63 = vld [vmem:[#allocation5 + $0x5a0] sm:$0xf]  ;;  %v9600_v59 = vld [vmem:[#allocation5 + $0x410] sm:$0xf] }
 0x475   : > { %7885 = vmatpush.bf16.msra.mxu0 %v9769_v62  ;;  %7898 = vmatpush.bf16.msrb.mxu1 %v9833_v22  ;;  %v5831_v62 = vrot.slane %v17801_v32, 4  ;;  %v5810_v22 = vsel %vm5797_vm15, %v8989_v30, %v8990_v58  ;;  %6127 = vst [vmem:[#allocation4 + $0x46] ss:$8 sm:$0xf] %v18014_v33  ;;  %v5882_v50 = vrot.slane %v17807_v47, 4  ;;  %v9013_v29 = vrot.slane %v17807_v47, 11 }
 0x476   : > { %v5811_v37 = vsel %vm5799_vm7, %v5809_v26, %v5810_v22  ;;  %6178 = vst [vmem:[#allocation4 + $0x47] ss:$8 sm:$0xf] %v18068_v5  ;;  %v10379_v2 = vld [vmem:[#allocation5 + $0x414] sm:$0xf0] }
 0x477   : > { %6026 = vst [vmem:[#allocation4 + $0x44] ss:$8 sm:$0xf0] %v17996_v56  ;;  %v5859_v30 = vsel %vm5795_vm2, %v5831_v62, %v9000_v31  ;;  %v5863_v56 = vsel %vm5803_vm0, %v9005_v18, %v5851_v12  ;;  %v9664_v26 = vld [vmem:[#allocation5 + $0x490] sm:$0xf]  ;;  %v9016_v31 = vrot.slane %v17810_v17, 9  ;;  %v9601_v11 = vor.u32 %v10379_v2, %v9600_v59 }
 0x478   : > { %7860 = vmatpush.bf16.msrb.mxu2 %v9633_v20  ;;  %7873 = vmatpush.bf16.msra.mxu3 %v9697_v41  ;;  %v9001_v20 = vrot.slane %v17801_v32, 11  ;;  %v9002_v41 = vrot.slane %v17804_v40, 10  ;;  %v10395_v62 = vld [vmem:[#allocation5 + $0x494] sm:$0xf0]  ;;  %v9656_v25 = vld [vmem:[#allocation5 + $0x480] sm:$0xf] }
 0x479   : > { %7886 = vmatpush.bf16.msra.mxu0 %v9761_v28  ;;  %7899 = vmatpush.bf16.msrb.mxu1 %v9825_v43  ;;  %v9003_v28 = vrot.slane %v17801_v32, 10  ;;  %v5814_v43 = vsel %vm5805_vm11, %v5812_v8, %v5813_v9  ;;  %v10429_v32 = vld [vmem:[#allocation5 + $0x5a4] sm:$0xf0]  ;;  %v9015_v8 = vrot.slane %v17807_v47, 10  ;;  %v5902_v9 = vrot.slane %v5889_v55, 1 }
 0x47a   : > { %v5815_v36 = vsel %vm20129_vm13, %v5811_v37, %v5814_v43  ;;  %v5860_v58 = vsel %vm5797_vm15, %v9001_v20, %v9002_v41  ;;  %6077 = vst [vmem:[#allocation4 + $0x45] ss:$8 sm:$0xf0] %v18009_v61  ;;  %v9728_v20 = vld [vmem:[#allocation5 + $0x510] sm:$0xf]  ;;  %v9017_v37 = vrot.slane %v17807_v47, 9  ;;  %v9801_v52 = vor.u32 %v10429_v32, %v18096_v63 }
 0x47b   : > { %5821 = vst [vmem:[#allocation4 + $0x40] ss:$8 sm:$0xf] %v5815_v36  ;;  %v5861_v40 = vsel %vm5799_vm7, %v5859_v30, %v5860_v58  ;;  %v5862_v21 = vsel %vm5801_vm14, %v9003_v28, %v9004_v0  ;;  %v10427_v55 = vld [vmem:[#allocation5 + $0x594] sm:$0xf0] }
 0x47c   : > { %7861 = vmatpush.bf16.msrb.mxu2 %v9625_v16  ;;  %7874 = vmatpush.bf16.msra.mxu3 %v9689_v60  ;;  %v5864_v16 = vsel %vm5805_vm11, %v5862_v21, %v5863_v56  ;;  %v9012_v60 = vrot.slane %v17810_v17, 11  ;;  %5822 = vst [vmem:[#allocation4 + $0x40] ss:$8 sm:$0xf0] %v5815_v36  ;;  %v5914_v24 = vsel %vm5803_vm0, %v9017_v37, %v5902_v9  ;;  %v10425_v28 = vld [vmem:[#allocation5 + $0x584] sm:$0xf0] }
 0x47d   : > { %7887 = vmatpush.bf16.msra.mxu0 %v9753_v42  ;;  %7900 = vmatpush.bf16.msrb.mxu1 %v9817_v14  ;;  %v9014_v42 = vrot.slane %v17810_v17, 10  ;;  %v9737_v14 = vor.u32 %v18094_v57, %v18081_v3  ;;  %v5865_v22 = vsel %vm20130_vm9, %v5861_v40, %v5864_v16  ;;  %v10411_v3 = vld [vmem:[#allocation5 + $0x514] sm:$0xf0]  ;;  %v5913_v17 = vsel %vm5801_vm14, %v9015_v8, %v9016_v31  ;;  %v9904_v18 = vld [vmem:[#allocation5 + $0x670] sm:$0xf] }
 0x47e   : > { %7814 = vmatmul.bf16.vlgmr.msra.gmra.mxu2 %v18050_v4  ;;  %7827 = vmatmul.bf16.vlgmr.msrb.gmra.mxu3 %v18052_v19  ;;  %5872 = vst [vmem:[#allocation4 + $0x41] ss:$8 sm:$0xf] %v5865_v22  ;;  %v5910_v41 = vsel %vm5795_vm2, %v5882_v50, %v9012_v60  ;;  %v5915_v15 = vsel %vm5805_vm11, %v5913_v17, %v5914_v24  ;;  %vm20131_vm2 = vmmov %vm20115_vm1  ;;  %v10455_v48 = vld [vmem:[#allocation5 + $0x674] sm:$0xf0] }
 0x47f   : > { %7840 = vmatmul.bf16.vlgmr.msrb.gmra.mxu0 %v18054_v53  ;;  %7853 = vmatmul.bf16.vlgmr.msra.gmra.mxu1 %v18056_v35  ;;  %v5911_v61 = vsel %vm5797_vm15, %v9013_v29, %v9014_v42  ;;  %5873 = vst [vmem:[#allocation4 + $0x41] ss:$8 sm:$0xf0] %v5865_v22  ;;  %v9729_v0 = vor.u32 %v10411_v3, %v9728_v20  ;;  %v9968_v51 = vld [vmem:[#allocation5 + $0x6f0] sm:$0xf] }
 0x480   : > { %7862 = vmatpush.bf16.msrb.mxu2 %v9617_v13  ;;  %7875 = vmatpush.bf16.msra.mxu3 %v9681_v27  ;;  %v5912_v47 = vsel %vm5799_vm7, %v5910_v41, %v5911_v61  ;;  %6128 = vst [vmem:[#allocation4 + $0x46] ss:$8 sm:$0xf0] %v18014_v33  ;;  %v10393_v13 = vld [vmem:[#allocation5 + $0x484] sm:$0xf0]  ;;  %v9665_v27 = vor.u32 %v10395_v62, %v9664_v26 }
 0x481   : > { %7888 = vmatpush.bf16.msra.mxu0 %v9745_v45  ;;  %7901 = vmatpush.bf16.msrb.mxu1 %v9809_v38  ;;  %6179 = vst [vmem:[#allocation4 + $0x47] ss:$8 sm:$0xf0] %v18068_v5  ;;  %v9720_v45 = vld [vmem:[#allocation5 + $0x500] sm:$0xf]  ;;  %v5916_v43 = vsel %vm20131_vm2, %v5912_v47, %v5915_v15  ;;  %v9793_v5 = vor.u32 %v10427_v55, %v9792_v10 }
 0x482   : > { %v10409_v33 = vld [vmem:[#allocation5 + $0x504] sm:$0xf0]  ;;  %v9784_v38 = vld [vmem:[#allocation5 + $0x580] sm:$0xf]  ;;  %v10032_v46 = vld [vmem:[#allocation5 + $0x770] sm:$0xf]  ;;  %v9905_v32 = vor.u32 %v10455_v48, %v9904_v18 }
 0x483   : > { %5923 = vst [vmem:[#allocation4 + $0x42] ss:$8 sm:$0xf] %v5916_v43  ;;  %v10487_v12 = vld [vmem:[#allocation5 + $0x774] sm:$0xf0]  ;;  %v9721_v36 = vor.u32 %v10409_v33, %v9720_v45  ;;  %v9785_v30 = vor.u32 %v10425_v28, %v9784_v38 }
 0x484   : > { %7863 = vmatpush.bf16.msrb.mxu2 %v9609_v1  ;;  %7876 = vmatpush.bf16.msra.mxu3 %v9673_v7  ;;  %5924 = vst [vmem:[#allocation4 + $0x42] ss:$8 sm:$0xf0] %v5916_v43  ;;  %v10471_v1 = vld [vmem:[#allocation5 + $0x6f4] sm:$0xf0]  ;;  %v9657_v7 = vor.u32 %v10393_v13, %v9656_v25  ;;  %v10033_v60 = vor.u32 %v10487_v12, %v10032_v46 }
 0x485   : > { %7889 = vmatpush.bf16.msra.mxu0 %v9737_v14  ;;  %7902 = vmatpush.bf16.msrb.mxu1 %v9801_v52  ;;  %v10096_v57 = vld [vmem:[#allocation5 + $0x7f0] sm:$0xf]  ;;  %v10503_v63 = vld [vmem:[#allocation5 + $0x7f4] sm:$0xf0]  ;;  %v9896_v58 = vld [vmem:[#allocation5 + $0x660] sm:$0xf]  ;;  %v9969_v40 = vor.u32 %v10471_v1, %v9968_v51 }
 0x486   : > { %v10453_v50 = vld [vmem:[#allocation5 + $0x664] sm:$0xf0]  ;;  %v9960_v21 = vld [vmem:[#allocation5 + $0x6e0] sm:$0xf]  ;;  %v10097_v29 = vor.u32 %v10503_v63, %v10096_v57  ;;  %v9888_v9 = vld [vmem:[#allocation5 + $0x650] sm:$0xf] }
 0x487   : > { %v10469_v56 = vld [vmem:[#allocation5 + $0x6e4] sm:$0xf0]  ;;  %v10024_v16 = vld [vmem:[#allocation5 + $0x760] sm:$0xf]  ;;  %v9897_v8 = vor.u32 %v10453_v50, %v9896_v58  ;;  %v10451_v41 = vld [vmem:[#allocation5 + $0x654] sm:$0xf0] }
 0x488   : > { %7864 = vmatpush.bf16.msrb.mxu2 %v9601_v11  ;;  %7877 = vmatpush.bf16.msra.mxu3 %v9665_v27  ;;  %v10485_v42 = vld [vmem:[#allocation5 + $0x764] sm:$0xf0]  ;;  %v10088_v14 = vld [vmem:[#allocation5 + $0x7e0] sm:$0xf]  ;;  %v9961_v31 = vor.u32 %v10469_v56, %v9960_v21  ;;  %v9952_v47 = vld [vmem:[#allocation5 + $0x6d0] sm:$0xf]  ;;  %v9889_v25 = vor.u32 %v10451_v41, %v9888_v9 }
 0x489   : > { %7890 = vmatpush.bf16.msra.mxu0 %v9729_v0  ;;  %7903 = vmatpush.bf16.msrb.mxu1 %v9793_v5  ;;  %v10501_v59 = vld [vmem:[#allocation5 + $0x7e4] sm:$0xf0]  ;;  %v10025_v37 = vor.u32 %v10485_v42, %v10024_v16  ;;  %v10467_v17 = vld [vmem:[#allocation5 + $0x6d4] sm:$0xf0]  ;;  %v10016_v55 = vld [vmem:[#allocation5 + $0x750] sm:$0xf] }
 0x48a   : > { %v6188_v2 = vld [vmem:[#allocation4 + $0x40] sm:$0xff]  ;;  %v6189_v26 = vld [vmem:[#allocation4 + $0x48] sm:$0xff]  ;;  %v6190_v62 = vld [vmem:[#allocation4 + $0x50] sm:$0xff]  ;;  %v10089_v10 = vor.u32 %v10501_v59, %v10088_v14  ;;  %v9953_v13 = vor.u32 %v10467_v17, %v9952_v47 }
 0x48b   : > { %v6191_v22 = vld [vmem:[#allocation4 + $0x58] sm:$0xff]  ;;  %v18150_v20 = vpack.c.bf16 %v6188_v2, %v6188_v2  ;;  %v18152_v3 = vpack.c.bf16 %v6189_v26, %v6189_v26  ;;  %v18154_v61 = vpack.c.bf16 %v6190_v62, %v6190_v62  ;;  %v10080_v34 = vld [vmem:[#allocation5 + $0x7d0] sm:$0xf]  ;;  %v9880_v15 = vld [vmem:[#allocation5 + $0x640] sm:$0xf] }
 0x48c   : > { %7865 = vmatpush.bf16.msrb.mxu2 %v9593_v54  ;;  %7878 = vmatpush.bf16.msra.mxu3 %v9657_v7  ;;  %v18156_v52 = vpack.c.bf16 %v6191_v22, %v6191_v22  ;;  %v10483_v24 = vld [vmem:[#allocation5 + $0x754] sm:$0xf0]  ;;  %v10449_v11 = vld [vmem:[#allocation5 + $0x644] sm:$0xf0]  ;;  %v9944_v33 = vld [vmem:[#allocation5 + $0x6c0] sm:$0xf] }
 0x48d   : > { %7891 = vmatpush.bf16.msra.mxu0 %v9721_v36  ;;  %7904 = vmatpush.bf16.msrb.mxu1 %v9785_v30  ;;  %v10499_v44 = vld [vmem:[#allocation5 + $0x7d4] sm:$0xf0]  ;;  %v10017_v27 = vor.u32 %v10483_v24, %v10016_v55  ;;  %v10465_v38 = vld [vmem:[#allocation5 + $0x6c4] sm:$0xf0]  ;;  %v10008_v28 = vld [vmem:[#allocation5 + $0x740] sm:$0xf]  ;;  %v9881_v18 = vor.u32 %v10449_v11, %v9880_v15 }
 0x48e   : > { %v10081_v45 = vor.u32 %v10499_v44, %v10080_v34  ;;  %v10481_v43 = vld [vmem:[#allocation5 + $0x744] sm:$0xf0]  ;;  %v10072_v0 = vld [vmem:[#allocation5 + $0x7c0] sm:$0xf]  ;;  %v9945_v48 = vor.u32 %v10465_v38, %v9944_v33  ;;  %v9872_v51 = vld [vmem:[#allocation5 + $0x630] sm:$0xf] }
 0x48f   : > { %7866 = vmatmul.bf16.vlgmr.msrb.gmra.mxu2 %v18150_v20  ;;  %7879 = vmatmul.bf16.vlgmr.msra.gmra.mxu3 %v18152_v3  ;;  %v10497_v5 = vld [vmem:[#allocation5 + $0x7c4] sm:$0xf0]  ;;  %v10447_v1 = vld [vmem:[#allocation5 + $0x634] sm:$0xf0]  ;;  %v10009_v46 = vor.u32 %v10481_v43, %v10008_v28  ;;  %v9936_v7 = vld [vmem:[#allocation5 + $0x6b0] sm:$0xf] }
 0x490   : > { %7910 = vmatpush.bf16.msra.mxu2 %v9905_v32  ;;  %7923 = vmatpush.bf16.msrb.mxu3 %v9969_v40  ;;  %v10073_v54 = vor.u32 %v10497_v5, %v10072_v0  ;;  %v10463_v12 = vld [vmem:[#allocation5 + $0x6b4] sm:$0xf0]  ;;  %v10000_v57 = vld [vmem:[#allocation5 + $0x730] sm:$0xf]  ;;  %v9873_v58 = vor.u32 %v10447_v1, %v9872_v51  ;;  %v9864_v32 = vld [vmem:[#allocation5 + $0x620] sm:$0xf] }
 0x491   : > { %7936 = vmatpush.bf16.msrb.mxu0 %v10033_v60  ;;  %7949 = vmatpush.bf16.msra.mxu1 %v10097_v29  ;;  %v10479_v63 = vld [vmem:[#allocation5 + $0x734] sm:$0xf0]  ;;  %v10064_v36 = vld [vmem:[#allocation5 + $0x7b0] sm:$0xf]  ;;  %v9937_v50 = vor.u32 %v10463_v12, %v9936_v7  ;;  %v10445_v40 = vld [vmem:[#allocation5 + $0x624] sm:$0xf0] }
 0x492   : > { %7892 = vmatmul.bf16.vlgmr.msra.gmra.mxu0 %v18154_v61  ;;  %7905 = vmatmul.bf16.vlgmr.msrb.gmra.mxu1 %v18156_v52  ;;  %v10495_v30 = vld [vmem:[#allocation5 + $0x7b4] sm:$0xf0]  ;;  %v10001_v21 = vor.u32 %v10479_v63, %v10000_v57  ;;  %v9928_v16 = vld [vmem:[#allocation5 + $0x6a0] sm:$0xf]  ;;  %v10461_v60 = vld [vmem:[#allocation5 + $0x6a4] sm:$0xf0]  ;;  %v9865_v2 = vor.u32 %v10445_v40, %v9864_v32 }
 0x493   : > { %v10065_v56 = vor.u32 %v10495_v30, %v10064_v36  ;;  %v9992_v29 = vld [vmem:[#allocation5 + $0x720] sm:$0xf]  ;;  %v10477_v42 = vld [vmem:[#allocation5 + $0x724] sm:$0xf0]  ;;  %v9929_v26 = vor.u32 %v10461_v60, %v9928_v16  ;;  %v9856_v62 = vld [vmem:[#allocation5 + $0x610] sm:$0xf] }
 0x494   : > { %7911 = vmatpush.bf16.msra.mxu2 %v9897_v8  ;;  %7924 = vmatpush.bf16.msrb.mxu3 %v9961_v31  ;;  %v10056_v14 = vld [vmem:[#allocation5 + $0x7a0] sm:$0xf]  ;;  %v10493_v59 = vld [vmem:[#allocation5 + $0x7a4] sm:$0xf0]  ;;  %v10443_v22 = vld [vmem:[#allocation5 + $0x614] sm:$0xf0]  ;;  %v9993_v8 = vor.u32 %v10477_v42, %v9992_v29 }
 0x495   : > { %7937 = vmatpush.bf16.msrb.mxu0 %v10025_v37  ;;  %7950 = vmatpush.bf16.msra.mxu1 %v10089_v10  ;;  %v10057_v31 = vor.u32 %v10493_v59, %v10056_v14  ;;  %v9920_v37 = vld [vmem:[#allocation5 + $0x690] sm:$0xf]  ;;  %v10459_v9 = vld [vmem:[#allocation5 + $0x694] sm:$0xf0]  ;;  %v9848_v55 = vld [vmem:[#allocation5 + $0x600] sm:$0xf]  ;;  %v9857_v24 = vor.u32 %v10443_v22, %v9856_v62 }
 0x496   : > { %v9984_v41 = vld [vmem:[#allocation5 + $0x710] sm:$0xf]  ;;  %v10475_v10 = vld [vmem:[#allocation5 + $0x714] sm:$0xf0]  ;;  %v9921_v34 = vor.u32 %v10459_v9, %v9920_v37  ;;  %v10441_v44 = vld [vmem:[#allocation5 + $0x604] sm:$0xf0] }
 0x497   : > { %v10048_v47 = vld [vmem:[#allocation5 + $0x790] sm:$0xf]  ;;  %v10491_v17 = vld [vmem:[#allocation5 + $0x794] sm:$0xf0]  ;;  %v9985_v15 = vor.u32 %v10475_v10, %v9984_v41  ;;  %v10040_v33 = vld [vmem:[#allocation5 + $0x780] sm:$0xf] }
 0x498   : > { %7912 = vmatpush.bf16.msra.mxu2 %v9889_v25  ;;  %7925 = vmatpush.bf16.msrb.mxu3 %v9953_v13  ;;  %v9912_v25 = vld [vmem:[#allocation5 + $0x680] sm:$0xf]  ;;  %v10457_v13 = vld [vmem:[#allocation5 + $0x684] sm:$0xf0]  ;;  %v10049_v11 = vor.u32 %v10491_v17, %v10048_v47  ;;  %v10262_v28 = vld [vmem:[#allocation5 + $0x74] sm:$0xf] }
 0x499   : > { %7938 = vmatpush.bf16.msrb.mxu0 %v10017_v27  ;;  %7951 = vmatpush.bf16.msra.mxu1 %v10081_v45  ;;  %v9976_v27 = vld [vmem:[#allocation5 + $0x700] sm:$0xf]  ;;  %v10473_v45 = vld [vmem:[#allocation5 + $0x704] sm:$0xf0]  ;;  %v9138_v43 = vld [vmem:[#allocation5 + $0x78] sm:$0xf0]  ;;  %v9913_v51 = vor.u32 %v10457_v13, %v9912_v25 }
 0x49a   : > { %v10489_v38 = vld [vmem:[#allocation5 + $0x784] sm:$0xf0]  ;;  %v10278_v0 = vld [vmem:[#allocation5 + $0xf4] sm:$0xf]  ;;  %v9202_v5 = vld [vmem:[#allocation5 + $0xf8] sm:$0xf0]  ;;  %v9977_v7 = vor.u32 %v10473_v45, %v9976_v27  ;;  %v9141_v30 = vor.u32 %v10262_v28, %v9138_v43 }
 0x49b   : > { %v9266_v1 = vld [vmem:[#allocation5 + $0x178] sm:$0xf0]  ;;  %v10041_v12 = vor.u32 %v10489_v38, %v10040_v33  ;;  %v6192_v57 = vld [vmem:[#allocation4 + $0x60] sm:$0xff]  ;;  %v6193_v63 = vld [vmem:[#allocation4 + $0x68] sm:$0xff] }
 0x49c   : > { %7913 = vmatpush.bf16.msra.mxu2 %v9881_v18  ;;  %7926 = vmatpush.bf16.msrb.mxu3 %v9945_v48  ;;  %v10294_v18 = vld [vmem:[#allocation5 + $0x174] sm:$0xf]  ;;  %v9849_v48 = vor.u32 %v10441_v44, %v9848_v55  ;;  %v10260_v32 = vld [vmem:[#allocation5 + $0x64] sm:$0xf]  ;;  %v9130_v40 = vld [vmem:[#allocation5 + $0x68] sm:$0xf0] }
 0x49d   : > { %7939 = vmatpush.bf16.msrb.mxu0 %v10009_v46  ;;  %7952 = vmatpush.bf16.msra.mxu1 %v10073_v54  ;;  %v10310_v46 = vld [vmem:[#allocation5 + $0x1f4] sm:$0xf]  ;;  %v9330_v54 = vld [vmem:[#allocation5 + $0x1f8] sm:$0xf0]  ;;  %v10276_v16 = vld [vmem:[#allocation5 + $0xe4] sm:$0xf]  ;;  %v9133_v22 = vor.u32 %v10260_v32, %v9130_v40 }
 0x49e   : > { %v6194_v36 = vld [vmem:[#allocation4 + $0x70] sm:$0xff]  ;;  %v9194_v60 = vld [vmem:[#allocation5 + $0xe8] sm:$0xf0]  ;;  %v10292_v29 = vld [vmem:[#allocation5 + $0x164] sm:$0xf] }
 0x49f   : > { %v9258_v42 = vld [vmem:[#allocation5 + $0x168] sm:$0xf0]  ;;  %v10308_v14 = vld [vmem:[#allocation5 + $0x1e4] sm:$0xf]  ;;  %v18166_v62 = vpack.c.bf16 %v6194_v36, %v6194_v36  ;;  %v9122_v37 = vld [vmem:[#allocation5 + $0x58] sm:$0xf0] }
 0x4a0   : > { %7914 = vmatpush.bf16.msra.mxu2 %v9873_v58  ;;  %7927 = vmatpush.bf16.msrb.mxu3 %v9937_v50  ;;  %v9205_v58 = vor.u32 %v10278_v0, %v9202_v5  ;;  %v6195_v50 = vld [vmem:[#allocation4 + $0x78] sm:$0xff]  ;;  %v9322_v59 = vld [vmem:[#allocation5 + $0x1e8] sm:$0xf0]  ;;  %v9261_v41 = vor.u32 %v10292_v29, %v9258_v42  ;;  %v10274_v47 = vld [vmem:[#allocation5 + $0xd4] sm:$0xf] }
 0x4a1   : > { %7940 = vmatpush.bf16.msrb.mxu0 %v10001_v21  ;;  %7953 = vmatpush.bf16.msra.mxu1 %v10065_v56  ;;  %v9269_v21 = vor.u32 %v10294_v18, %v9266_v1  ;;  %v9333_v56 = vor.u32 %v10310_v46, %v9330_v54  ;;  %v18168_v9 = vpack.c.bf16 %v6195_v50, %v6195_v50  ;;  %v9186_v17 = vld [vmem:[#allocation5 + $0xd8] sm:$0xf0]  ;;  %v10290_v55 = vld [vmem:[#allocation5 + $0x154] sm:$0xf]  ;;  %v10272_v33 = vld [vmem:[#allocation5 + $0xc4] sm:$0xf] }
 0x4a2   : > { %v9325_v10 = vor.u32 %v10308_v14, %v9322_v59  ;;  %v9314_v44 = vld [vmem:[#allocation5 + $0x1d8] sm:$0xf0]  ;;  %v9189_v13 = vor.u32 %v10274_v47, %v9186_v17  ;;  %v9178_v38 = vld [vmem:[#allocation5 + $0xc8] sm:$0xf0]  ;;  %v10288_v28 = vld [vmem:[#allocation5 + $0x144] sm:$0xf] }
 0x4a3   : > { %v9242_v43 = vld [vmem:[#allocation5 + $0x148] sm:$0xf0]  ;;  %v10304_v0 = vld [vmem:[#allocation5 + $0x1c4] sm:$0xf]  ;;  %v9106_v1 = vld [vmem:[#allocation5 + $0x38] sm:$0xf0] }
 0x4a4   : > { %7915 = vmatpush.bf16.msra.mxu2 %v9865_v2  ;;  %7928 = vmatpush.bf16.msrb.mxu3 %v9929_v26  ;;  %v18162_v2 = vpack.c.bf16 %v6192_v57, %v6192_v57  ;;  %v18164_v26 = vpack.c.bf16 %v6193_v63, %v6193_v63  ;;  %v9306_v5 = vld [vmem:[#allocation5 + $0x1c8] sm:$0xf0]  ;;  %v9245_v46 = vor.u32 %v10288_v28, %v9242_v43  ;;  %v10286_v57 = vld [vmem:[#allocation5 + $0x134] sm:$0xf]  ;;  %v9234_v63 = vld [vmem:[#allocation5 + $0x138] sm:$0xf0] }
 0x4a5   : > { %7941 = vmatpush.bf16.msrb.mxu0 %v9993_v8  ;;  %7954 = vmatpush.bf16.msra.mxu1 %v10057_v31  ;;  %v9197_v8 = vor.u32 %v10276_v16, %v9194_v60  ;;  %v10258_v31 = vld [vmem:[#allocation5 + $0x54] sm:$0xf]  ;;  %v9309_v54 = vor.u32 %v10304_v0, %v9306_v5  ;;  %v10252_v32 = vld [vmem:[#allocation5 + $0x24] sm:$0xf]  ;;  %v9098_v40 = vld [vmem:[#allocation5 + $0x28] sm:$0xf0] }
 0x4a6   : > { %v9125_v25 = vor.u32 %v10258_v31, %v9122_v37  ;;  %v10302_v36 = vld [vmem:[#allocation5 + $0x1b4] sm:$0xf]  ;;  %v10268_v16 = vld [vmem:[#allocation5 + $0xa4] sm:$0xf]  ;;  %v9162_v60 = vld [vmem:[#allocation5 + $0xa8] sm:$0xf0] }
 0x4a7   : > { %v10284_v29 = vld [vmem:[#allocation5 + $0x124] sm:$0xf]  ;;  %v9226_v42 = vld [vmem:[#allocation5 + $0x128] sm:$0xf0]  ;;  %v10250_v31 = vld [vmem:[#allocation5 + $0x14] sm:$0xf] }
 0x4a8   : > { %7916 = vmatpush.bf16.msra.mxu2 %v9857_v24  ;;  %7929 = vmatpush.bf16.msrb.mxu3 %v9921_v34  ;;  %v9250_v24 = vld [vmem:[#allocation5 + $0x158] sm:$0xf0]  ;;  %v10306_v34 = vld [vmem:[#allocation5 + $0x1d4] sm:$0xf]  ;;  %v10300_v14 = vld [vmem:[#allocation5 + $0x1a4] sm:$0xf] }
 0x4a9   : > { %7942 = vmatpush.bf16.msrb.mxu0 %v9985_v15  ;;  %7955 = vmatpush.bf16.msra.mxu1 %v10049_v11  ;;  %v10256_v15 = vld [vmem:[#allocation5 + $0x44] sm:$0xf]  ;;  %v9114_v11 = vld [vmem:[#allocation5 + $0x48] sm:$0xf0]  ;;  %v9253_v27 = vor.u32 %v10290_v55, %v9250_v24  ;;  %v9317_v45 = vor.u32 %v10306_v34, %v9314_v44  ;;  %v9090_v37 = vld [vmem:[#allocation5 + $0x18] sm:$0xf0] }
 0x4aa   : > { %v9117_v18 = vor.u32 %v10256_v15, %v9114_v11  ;;  %v9290_v59 = vld [vmem:[#allocation5 + $0x1a8] sm:$0xf0]  ;;  %v10266_v47 = vld [vmem:[#allocation5 + $0x94] sm:$0xf]  ;;  %v9154_v17 = vld [vmem:[#allocation5 + $0x98] sm:$0xf0] }
 0x4ab   : > { %v10282_v55 = vld [vmem:[#allocation5 + $0x114] sm:$0xf]  ;;  %v9218_v24 = vld [vmem:[#allocation5 + $0x118] sm:$0xf0]  ;;  %v9157_v15 = vor.u32 %v10266_v47, %v9154_v17  ;;  %v9082_v11 = vld [vmem:[#allocation5 + $0x8] sm:$0xf0] }
 0x4ac   : > { %7917 = vmatpush.bf16.msra.mxu2 %v9849_v48  ;;  %7930 = vmatpush.bf16.msrb.mxu3 %v9913_v51  ;;  %v9181_v48 = vor.u32 %v10272_v33, %v9178_v38  ;;  %v10254_v51 = vld [vmem:[#allocation5 + $0x34] sm:$0xf]  ;;  %v9282_v44 = vld [vmem:[#allocation5 + $0x198] sm:$0xf0]  ;;  %v9221_v33 = vor.u32 %v10282_v55, %v9218_v24  ;;  %v10280_v28 = vld [vmem:[#allocation5 + $0x104] sm:$0xf] }
 0x4ad   : > { %7943 = vmatpush.bf16.msrb.mxu0 %v9977_v7  ;;  %7956 = vmatpush.bf16.msra.mxu1 %v10041_v12  ;;  %v10270_v7 = vld [vmem:[#allocation5 + $0xb4] sm:$0xf]  ;;  %v9170_v12 = vld [vmem:[#allocation5 + $0xb8] sm:$0xf0]  ;;  %v9210_v43 = vld [vmem:[#allocation5 + $0x108] sm:$0xf0] }
 0x4ae   : > { %v9173_v50 = vor.u32 %v10270_v7, %v9170_v12  ;;  %v10298_v34 = vld [vmem:[#allocation5 + $0x194] sm:$0xf]  ;;  %v10296_v0 = vld [vmem:[#allocation5 + $0x184] sm:$0xf]  ;;  %v9274_v5 = vld [vmem:[#allocation5 + $0x188] sm:$0xf0] }
 0x4af   : > { %7918 = vmatmul.bf16.vlgmr.msra.gmra.mxu2 %v18162_v2  ;;  %7931 = vmatmul.bf16.vlgmr.msrb.gmra.mxu3 %v18164_v26  ;;  %v9285_v38 = vor.u32 %v10298_v34, %v9282_v44  ;;  %v9522_v12 = vld [vmem:[#allocation5 + $0x378] sm:$0xf0]  ;;  %v10338_v47 = vld [vmem:[#allocation5 + $0x2d4] sm:$0xf] }
 0x4b0   : > { %7962 = vmatpush.bf16.msrb.mxu2 %v9141_v30  ;;  %7975 = vmatpush.bf16.msra.mxu3 %v9205_v58  ;;  %v9298_v30 = vld [vmem:[#allocation5 + $0x1b8] sm:$0xf0]  ;;  %v9109_v58 = vor.u32 %v10254_v51, %v9106_v1  ;;  %v10342_v51 = vld [vmem:[#allocation5 + $0x2f4] sm:$0xf] }
 0x4b1   : > { %7988 = vmatpush.bf16.msra.mxu0 %v9269_v21  ;;  %8001 = vmatpush.bf16.msrb.mxu1 %v9333_v56  ;;  %v9237_v21 = vor.u32 %v10286_v57, %v9234_v63  ;;  %v9301_v56 = vor.u32 %v10302_v36, %v9298_v30  ;;  %v9458_v1 = vld [vmem:[#allocation5 + $0x2f8] sm:$0xf0]  ;;  %v10374_v57 = vld [vmem:[#allocation5 + $0x3f4] sm:$0xf]  ;;  %v9213_v36 = vor.u32 %v10280_v28, %v9210_v43  ;;  %v10368_v28 = vld [vmem:[#allocation5 + $0x3c4] sm:$0xf] }
 0x4b2   : > { %7944 = vmatmul.bf16.vlgmr.msrb.gmra.mxu0 %v18166_v62  ;;  %7957 = vmatmul.bf16.vlgmr.msra.gmra.mxu1 %v18168_v9  ;;  %v9586_v63 = vld [vmem:[#allocation5 + $0x3f8] sm:$0xf0]  ;;  %v9277_v30 = vor.u32 %v10296_v0, %v9274_v5  ;;  %v10354_v55 = vld [vmem:[#allocation5 + $0x354] sm:$0xf]  ;;  %v9562_v43 = vld [vmem:[#allocation5 + $0x3c8] sm:$0xf0] }
 0x4b3   : > { %v9442_v17 = vld [vmem:[#allocation5 + $0x2d8] sm:$0xf0]  ;;  %v10370_v34 = vld [vmem:[#allocation5 + $0x3d4] sm:$0xf] }
 0x4b4   : > { %7963 = vmatpush.bf16.msrb.mxu2 %v9133_v22  ;;  %7976 = vmatpush.bf16.msra.mxu3 %v9197_v8  ;;  %v9101_v22 = vor.u32 %v10252_v32, %v9098_v40  ;;  %v9165_v8 = vor.u32 %v10268_v16, %v9162_v60  ;;  %v10324_v32 = vld [vmem:[#allocation5 + $0x264] sm:$0xf]  ;;  %v9386_v40 = vld [vmem:[#allocation5 + $0x268] sm:$0xf0]  ;;  %v9506_v24 = vld [vmem:[#allocation5 + $0x358] sm:$0xf0] }
 0x4b5   : > { %7989 = vmatpush.bf16.msra.mxu0 %v9261_v41  ;;  %8002 = vmatpush.bf16.msrb.mxu1 %v9325_v10  ;;  %v9229_v41 = vor.u32 %v10284_v29, %v9226_v42  ;;  %v9293_v10 = vor.u32 %v10300_v14, %v9290_v59  ;;  %v10340_v16 = vld [vmem:[#allocation5 + $0x2e4] sm:$0xf]  ;;  %v9450_v60 = vld [vmem:[#allocation5 + $0x2e8] sm:$0xf0]  ;;  %v9570_v44 = vld [vmem:[#allocation5 + $0x3d8] sm:$0xf0] }
 0x4b6   : > { %v10356_v29 = vld [vmem:[#allocation5 + $0x364] sm:$0xf]  ;;  %v9514_v42 = vld [vmem:[#allocation5 + $0x368] sm:$0xf0]  ;;  %v10318_v0 = vld [vmem:[#allocation5 + $0x234] sm:$0xf] }
 0x4b7   : > { %v10372_v14 = vld [vmem:[#allocation5 + $0x3e4] sm:$0xf]  ;;  %v9578_v59 = vld [vmem:[#allocation5 + $0x3e8] sm:$0xf0]  ;;  %v9362_v5 = vld [vmem:[#allocation5 + $0x238] sm:$0xf0] }
 0x4b8   : > { %7964 = vmatpush.bf16.msrb.mxu2 %v9125_v25  ;;  %7977 = vmatpush.bf16.msra.mxu3 %v9189_v13  ;;  %v10248_v25 = vld [vmem:[#allocation5 + $0x4] sm:$0xf]  ;;  %v9093_v13 = vor.u32 %v10250_v31, %v9090_v37  ;;  %v10322_v31 = vld [vmem:[#allocation5 + $0x254] sm:$0xf]  ;;  %v9378_v37 = vld [vmem:[#allocation5 + $0x258] sm:$0xf0] }
 0x4b9   : > { %7990 = vmatpush.bf16.msra.mxu0 %v9253_v27  ;;  %8003 = vmatpush.bf16.msrb.mxu1 %v9317_v45  ;;  %v10264_v27 = vld [vmem:[#allocation5 + $0x84] sm:$0xf]  ;;  %v9146_v45 = vld [vmem:[#allocation5 + $0x88] sm:$0xf0] }
 0x4ba   : > { %v9149_v7 = vor.u32 %v10264_v27, %v9146_v45  ;;  %v9509_v27 = vor.u32 %v10354_v55, %v9506_v24  ;;  %v9573_v45 = vor.u32 %v10370_v34, %v9570_v44  ;;  %v10312_v55 = vld [vmem:[#allocation5 + $0x204] sm:$0xf]  ;;  %v9338_v44 = vld [vmem:[#allocation5 + $0x208] sm:$0xf0] }
 0x4bc   : > { %7965 = vmatpush.bf16.msrb.mxu2 %v9117_v18  ;;  %7978 = vmatpush.bf16.msra.mxu3 %v9181_v48  ;;  %v10326_v18 = vld [vmem:[#allocation5 + $0x274] sm:$0xf]  ;;  %v9394_v48 = vld [vmem:[#allocation5 + $0x278] sm:$0xf0] }
 0x4bd   : > { %7991 = vmatpush.bf16.msra.mxu0 %v9245_v46  ;;  %8004 = vmatpush.bf16.msrb.mxu1 %v9309_v54  ;;  %v10358_v46 = vld [vmem:[#allocation5 + $0x374] sm:$0xf]  ;;  %v9085_v54 = vor.u32 %v10248_v25, %v9082_v11  ;;  %v9381_v25 = vor.u32 %v10322_v31, %v9378_v37  ;;  %v9370_v11 = vld [vmem:[#allocation5 + $0x248] sm:$0xf0]  ;;  %v9410_v37 = vld [vmem:[#allocation5 + $0x298] sm:$0xf0] }
 0x4be   : > { %v10330_v31 = vld [vmem:[#allocation5 + $0x294] sm:$0xf] }
 0x4bf   : > { %v9413_v34 = vor.u32 %v10330_v31, %v9410_v37  ;;  %v10434_v31 = vld [vmem:[#allocation5 + $0x5d4] sm:$0xf]  ;;  %v9826_v37 = vld [vmem:[#allocation5 + $0x5d8] sm:$0xf0] }
 0x4c0   : > { %7966 = vmatpush.bf16.msrb.mxu2 %v9109_v58  ;;  %7979 = vmatpush.bf16.msra.mxu3 %v9173_v50  ;;  %v9397_v58 = vor.u32 %v10326_v18, %v9394_v48  ;;  %v9461_v50 = vor.u32 %v10342_v51, %v9458_v1  ;;  %v9565_v48 = vor.u32 %v10368_v28, %v9562_v43  ;;  %v10334_v51 = vld [vmem:[#allocation5 + $0x2b4] sm:$0xf]  ;;  %v9426_v1 = vld [vmem:[#allocation5 + $0x2b8] sm:$0xf0] }
 0x4c1   : > { %7992 = vmatpush.bf16.msra.mxu0 %v9237_v21  ;;  %8005 = vmatpush.bf16.msrb.mxu1 %v9301_v56  ;;  %v9525_v21 = vor.u32 %v10358_v46, %v9522_v12  ;;  %v9589_v56 = vor.u32 %v10374_v57, %v9586_v63  ;;  %v10350_v46 = vld [vmem:[#allocation5 + $0x334] sm:$0xf]  ;;  %v9554_v12 = vld [vmem:[#allocation5 + $0x3b8] sm:$0xf0]  ;;  %v9365_v57 = vor.u32 %v10318_v0, %v9362_v5 }
 0x4c2   : > { %v9429_v63 = vor.u32 %v10334_v51, %v9426_v1  ;;  %v10406_v28 = vld [vmem:[#allocation5 + $0x4f4] sm:$0xf]  ;;  %v9714_v43 = vld [vmem:[#allocation5 + $0x4f8] sm:$0xf0] }
 0x4c3   : > { %v9778_v5 = vld [vmem:[#allocation5 + $0x578] sm:$0xf0] }
 0x4c4   : > { %7967 = vmatpush.bf16.msrb.mxu2 %v9101_v22  ;;  %7980 = vmatpush.bf16.msra.mxu3 %v9165_v8  ;;  %v9389_v22 = vor.u32 %v10324_v32, %v9386_v40  ;;  %v9453_v8 = vor.u32 %v10340_v16, %v9450_v60  ;;  %v10332_v32 = vld [vmem:[#allocation5 + $0x2a4] sm:$0xf]  ;;  %v9418_v40 = vld [vmem:[#allocation5 + $0x2a8] sm:$0xf0] }
 0x4c5   : > { %7993 = vmatpush.bf16.msra.mxu0 %v9229_v41  ;;  %8006 = vmatpush.bf16.msrb.mxu1 %v9293_v10  ;;  %v9517_v41 = vor.u32 %v10356_v29, %v9514_v42  ;;  %v9581_v10 = vor.u32 %v10372_v14, %v9578_v59  ;;  %v10364_v16 = vld [vmem:[#allocation5 + $0x3a4] sm:$0xf]  ;;  %v9546_v60 = vld [vmem:[#allocation5 + $0x3a8] sm:$0xf0]  ;;  %v9421_v42 = vor.u32 %v10332_v32, %v9418_v40  ;;  %v10314_v14 = vld [vmem:[#allocation5 + $0x214] sm:$0xf] }
 0x4c6   : > { %v9346_v59 = vld [vmem:[#allocation5 + $0x218] sm:$0xf0]  ;;  %v10436_v32 = vld [vmem:[#allocation5 + $0x5e4] sm:$0xf]  ;;  %v9834_v40 = vld [vmem:[#allocation5 + $0x5e8] sm:$0xf0] }
 0x4c7   : > { %v9349_v24 = vor.u32 %v10314_v14, %v9346_v59  ;;  %v10402_v14 = vld [vmem:[#allocation5 + $0x4d4] sm:$0xf]  ;;  %v9698_v59 = vld [vmem:[#allocation5 + $0x4d8] sm:$0xf0] }
 0x4c8   : > { %7968 = vmatpush.bf16.msrb.mxu2 %v9093_v13  ;;  %7981 = vmatpush.bf16.msra.mxu3 %v9157_v15  ;;  %v9445_v13 = vor.u32 %v10338_v47, %v9442_v17  ;;  %v10320_v15 = vld [vmem:[#allocation5 + $0x244] sm:$0xf]  ;;  %v10362_v47 = vld [vmem:[#allocation5 + $0x394] sm:$0xf]  ;;  %v9538_v17 = vld [vmem:[#allocation5 + $0x398] sm:$0xf0] }
 0x4c9   : > { %7994 = vmatpush.bf16.msra.mxu0 %v9221_v33  ;;  %8007 = vmatpush.bf16.msrb.mxu1 %v9285_v38  ;;  %v9434_v33 = vld [vmem:[#allocation5 + $0x2c8] sm:$0xf0] }
 0x4ca   : > { %v9498_v38 = vld [vmem:[#allocation5 + $0x348] sm:$0xf0] }
 0x4cc   : > { %7969 = vmatpush.bf16.msrb.mxu2 %v9085_v54  ;;  %7982 = vmatpush.bf16.msra.mxu3 %v9149_v7  ;;  %v9490_v54 = vld [vmem:[#allocation5 + $0x338] sm:$0xf0]  ;;  %v10366_v7 = vld [vmem:[#allocation5 + $0x3b4] sm:$0xf] }
 0x4cd   : > { %7995 = vmatpush.bf16.msra.mxu0 %v9213_v36  ;;  %8008 = vmatpush.bf16.msrb.mxu1 %v9277_v30  ;;  %v10316_v36 = vld [vmem:[#allocation5 + $0x224] sm:$0xf]  ;;  %v9354_v30 = vld [vmem:[#allocation5 + $0x228] sm:$0xf0] }
 0x4ce   : > { %v9357_v29 = vor.u32 %v10316_v36, %v9354_v30  ;;  %v10404_v36 = vld [vmem:[#allocation5 + $0x4e4] sm:$0xf]  ;;  %v9706_v30 = vld [vmem:[#allocation5 + $0x4e8] sm:$0xf0] }
 0x4cf   : > { %7970 = vmatmul.bf16.vlgmr.msrb.gmra.mxu2 %v17919_v23  ;;  %7983 = vmatmul.bf16.vlgmr.msra.gmra.mxu3 %v17921_v6  ;;  %v10336_v23 = vld [vmem:[#allocation5 + $0x2c4] sm:$0xf] }
 0x4d0   : > { %8014 = vmatpush.bf16.msra.mxu2 %v9397_v58  ;;  %8027 = vmatpush.bf16.msrb.mxu3 %v9461_v50  ;;  %v10352_v6 = vld [vmem:[#allocation5 + $0x344] sm:$0xf]  ;;  %v9493_v58 = vor.u32 %v10350_v46, %v9490_v54  ;;  %v9557_v50 = vor.u32 %v10366_v7, %v9554_v12  ;;  %v9717_v54 = vor.u32 %v10406_v28, %v9714_v43  ;;  %v9642_v12 = vld [vmem:[#allocation5 + $0x468] sm:$0xf0]  ;;  %v10398_v28 = vld [vmem:[#allocation5 + $0x4b4] sm:$0xf] }
 0x4d1   : > { %8040 = vmatpush.bf16.msrb.mxu0 %v9525_v21  ;;  %8053 = vmatpush.bf16.msra.mxu1 %v9589_v56  ;;  %v9501_v18 = vor.u32 %v10352_v6, %v9498_v38  ;;  %v10348_v21 = vld [vmem:[#allocation5 + $0x324] sm:$0xf]  ;;  %v9482_v56 = vld [vmem:[#allocation5 + $0x328] sm:$0xf0]  ;;  %v10390_v6 = vld [vmem:[#allocation5 + $0x474] sm:$0xf] }
 0x4d2   : > { %7996 = vmatmul.bf16.vlgmr.msra.gmra.mxu0 %v17923_v49  ;;  %8009 = vmatmul.bf16.vlgmr.msrb.gmra.mxu1 %v17939_v39  ;;  %v9373_v49 = vor.u32 %v10320_v15, %v9370_v11  ;;  %v9437_v39 = vor.u32 %v10336_v23, %v9434_v33  ;;  %v9541_v11 = vor.u32 %v10362_v47, %v9538_v17  ;;  %v10360_v23 = vld [vmem:[#allocation5 + $0x384] sm:$0xf]  ;;  %v9530_v33 = vld [vmem:[#allocation5 + $0x388] sm:$0xf0]  ;;  %v9650_v38 = vld [vmem:[#allocation5 + $0x478] sm:$0xf0] }
 0x4d3   : > { %v9533_v1 = vor.u32 %v10360_v23, %v9530_v33  ;;  %v9653_v46 = vor.u32 %v10390_v6, %v9650_v38  ;;  %v10388_v7 = vld [vmem:[#allocation5 + $0x464] sm:$0xf]  ;;  %v9682_v43 = vld [vmem:[#allocation5 + $0x4b8] sm:$0xf0] }
 0x4d4   : > { %8015 = vmatpush.bf16.msra.mxu2 %v9389_v22  ;;  %8028 = vmatpush.bf16.msrb.mxu3 %v9453_v8  ;;  %v9485_v22 = vor.u32 %v10348_v21, %v9482_v56  ;;  %v9549_v8 = vor.u32 %v10364_v16, %v9546_v60  ;;  %v9645_v21 = vor.u32 %v10388_v7, %v9642_v12  ;;  %v10386_v16 = vld [vmem:[#allocation5 + $0x454] sm:$0xf]  ;;  %v9634_v60 = vld [vmem:[#allocation5 + $0x458] sm:$0xf0] }
 0x4d5   : > { %8041 = vmatpush.bf16.msrb.mxu0 %v9517_v41  ;;  %8054 = vmatpush.bf16.msra.mxu1 %v9581_v10  ;;  %v10346_v41 = vld [vmem:[#allocation5 + $0x314] sm:$0xf]  ;;  %v9474_v10 = vld [vmem:[#allocation5 + $0x318] sm:$0xf0]  ;;  %v9709_v56 = vor.u32 %v10404_v36, %v9706_v30  ;;  %v10412_v36 = vld [vmem:[#allocation5 + $0x524] sm:$0xf] }
 0x4d6   : > { %v9477_v15 = vor.u32 %v10346_v41, %v9474_v10  ;;  %v9637_v41 = vor.u32 %v10386_v16, %v9634_v60  ;;  %v9701_v10 = vor.u32 %v10402_v14, %v9698_v59  ;;  %v9738_v30 = vld [vmem:[#allocation5 + $0x528] sm:$0xf0]  ;;  %v10394_v14 = vld [vmem:[#allocation5 + $0x494] sm:$0xf]  ;;  %v9666_v59 = vld [vmem:[#allocation5 + $0x498] sm:$0xf0] }
 0x4d7   : > { %v9741_v16 = vor.u32 %v10412_v36, %v9738_v30 }
 0x4d8   : > { %8016 = vmatpush.bf16.msra.mxu2 %v9381_v25  ;;  %8029 = vmatpush.bf16.msrb.mxu3 %v9445_v13  ;;  %v10328_v25 = vld [vmem:[#allocation5 + $0x284] sm:$0xf]  ;;  %v9402_v13 = vld [vmem:[#allocation5 + $0x288] sm:$0xf0] }
 0x4d9   : > { %8042 = vmatpush.bf16.msrb.mxu0 %v9509_v27  ;;  %8055 = vmatpush.bf16.msra.mxu1 %v9573_v45  ;;  %v10344_v27 = vld [vmem:[#allocation5 + $0x304] sm:$0xf]  ;;  %v9466_v45 = vld [vmem:[#allocation5 + $0x308] sm:$0xf0]  ;;  %v9405_v0 = vor.u32 %v10328_v25, %v9402_v13 }
 0x4da   : > { %v9469_v51 = vor.u32 %v10344_v27, %v9466_v45  ;;  %v10416_v25 = vld [vmem:[#allocation5 + $0x544] sm:$0xf]  ;;  %v10382_v27 = vld [vmem:[#allocation5 + $0x434] sm:$0xf]  ;;  %v9618_v45 = vld [vmem:[#allocation5 + $0x438] sm:$0xf0] }
 0x4db   : > { %v10432_v13 = vld [vmem:[#allocation5 + $0x5c4] sm:$0xf] }
 0x4dc   : > { %8017 = vmatpush.bf16.msra.mxu2 %v9373_v49  ;;  %8030 = vmatpush.bf16.msrb.mxu3 %v9437_v39  ;;  %v10422_v49 = vld [vmem:[#allocation5 + $0x574] sm:$0xf]  ;;  %v9341_v39 = vor.u32 %v10312_v55, %v9338_v44  ;;  %v10384_v55 = vld [vmem:[#allocation5 + $0x444] sm:$0xf]  ;;  %v9690_v44 = vld [vmem:[#allocation5 + $0x4c8] sm:$0xf0] }
 0x4dd   : > { %8043 = vmatpush.bf16.msrb.mxu0 %v9501_v18  ;;  %8056 = vmatpush.bf16.msra.mxu1 %v9565_v48  ;;  %v10438_v18 = vld [vmem:[#allocation5 + $0x5f4] sm:$0xf]  ;;  %v9842_v48 = vld [vmem:[#allocation5 + $0x5f8] sm:$0xf0] }
 0x4e0   : > { %8018 = vmatpush.bf16.msra.mxu2 %v9365_v57  ;;  %8031 = vmatpush.bf16.msrb.mxu3 %v9429_v63  ;;  %v9781_v57 = vor.u32 %v10422_v49, %v9778_v5  ;;  %v9845_v63 = vor.u32 %v10438_v18, %v9842_v48  ;;  %v10414_v49 = vld [vmem:[#allocation5 + $0x534] sm:$0xf]  ;;  %v9810_v5 = vld [vmem:[#allocation5 + $0x5b8] sm:$0xf0]  ;;  %v9621_v18 = vor.u32 %v10382_v27, %v9618_v45  ;;  %v9786_v27 = vld [vmem:[#allocation5 + $0x588] sm:$0xf0] }
 0x4e1   : > { %8044 = vmatpush.bf16.msrb.mxu0 %v9493_v58  ;;  %8057 = vmatpush.bf16.msra.mxu1 %v9557_v50  ;;  %v10420_v58 = vld [vmem:[#allocation5 + $0x564] sm:$0xf]  ;;  %v9770_v50 = vld [vmem:[#allocation5 + $0x568] sm:$0xf0]  ;;  %v9685_v48 = vor.u32 %v10398_v28, %v9682_v43  ;;  %v10454_v45 = vld [vmem:[#allocation5 + $0x674] sm:$0xf] }
 0x4e2   : > { %v9970_v28 = vld [vmem:[#allocation5 + $0x6f8] sm:$0xf0]  ;;  %v10486_v43 = vld [vmem:[#allocation5 + $0x774] sm:$0xf] }
 0x4e4   : > { %8019 = vmatpush.bf16.msra.mxu2 %v9357_v29  ;;  %8032 = vmatpush.bf16.msrb.mxu3 %v9421_v42  ;;  %v9773_v29 = vor.u32 %v10420_v58, %v9770_v50  ;;  %v9837_v42 = vor.u32 %v10436_v32, %v9834_v40  ;;  %v10428_v58 = vld [vmem:[#allocation5 + $0x5a4] sm:$0xf]  ;;  %v9802_v50 = vld [vmem:[#allocation5 + $0x5a8] sm:$0xf0] }
 0x4e5   : > { %8045 = vmatpush.bf16.msrb.mxu0 %v9485_v22  ;;  %8058 = vmatpush.bf16.msra.mxu1 %v9549_v8  ;;  %v10418_v22 = vld [vmem:[#allocation5 + $0x554] sm:$0xf]  ;;  %v9762_v8 = vld [vmem:[#allocation5 + $0x558] sm:$0xf0]  ;;  %v9805_v60 = vor.u32 %v10428_v58, %v9802_v50  ;;  %v10468_v58 = vld [vmem:[#allocation5 + $0x6e4] sm:$0xf] }
 0x4e6   : > { %v9962_v50 = vld [vmem:[#allocation5 + $0x6e8] sm:$0xf0] }
 0x4e8   : > { %8020 = vmatpush.bf16.msra.mxu2 %v9349_v24  ;;  %8033 = vmatpush.bf16.msrb.mxu3 %v9413_v34  ;;  %v9626_v24 = vld [vmem:[#allocation5 + $0x448] sm:$0xf0]  ;;  %v10400_v34 = vld [vmem:[#allocation5 + $0x4c4] sm:$0xf] }
 0x4e9   : > { %8046 = vmatpush.bf16.msrb.mxu0 %v9477_v15  ;;  %8059 = vmatpush.bf16.msra.mxu1 %v9541_v11  ;;  %v9629_v15 = vor.u32 %v10384_v55, %v9626_v24  ;;  %v9693_v11 = vor.u32 %v10400_v34, %v9690_v44  ;;  %v9669_v55 = vor.u32 %v10394_v14, %v9666_v59  ;;  %v10392_v34 = vld [vmem:[#allocation5 + $0x484] sm:$0xf]  ;;  %v9658_v44 = vld [vmem:[#allocation5 + $0x488] sm:$0xf0]  ;;  %v10450_v14 = vld [vmem:[#allocation5 + $0x654] sm:$0xf] }
 0x4ea   : > { %v9890_v59 = vld [vmem:[#allocation5 + $0x658] sm:$0xf0] }
 0x4ec   : > { %8021 = vmatpush.bf16.msra.mxu2 %v9341_v39  ;;  %8034 = vmatpush.bf16.msrb.mxu3 %v9405_v0  ;;  %v18182_v47 = vpop.f32.mrf.mxu0  ;;  %v18184_v17 = vpop.f32.mrf.mxu1  ;;  %v9746_v39 = vld [vmem:[#allocation5 + $0x538] sm:$0xf0]  ;;  %v10430_v0 = vld [vmem:[#allocation5 + $0x5b4] sm:$0xf] }
 0x4ed   : > { %8047 = vmatpush.bf16.msrb.mxu0 %v9469_v51  ;;  %8060 = vmatpush.bf16.msra.mxu1 %v9533_v1  ;;  %v9749_v7 = vor.u32 %v10414_v49, %v9746_v39  ;;  %v9813_v12 = vor.u32 %v10430_v0, %v9810_v5  ;;  %v9661_v39 = vor.u32 %v10392_v34, %v9658_v44  ;;  %v10034_v0 = vld [vmem:[#allocation5 + $0x778] sm:$0xf0]  ;;  %v10502_v5 = vld [vmem:[#allocation5 + $0x7f4] sm:$0xf] }
 0x4ee   : > { %v10037_v36 = vor.u32 %v10486_v43, %v10034_v0  ;;  %v10082_v34 = vld [vmem:[#allocation5 + $0x7d8] sm:$0xf0]  ;;  %v10446_v0 = vld [vmem:[#allocation5 + $0x634] sm:$0xf] }
 0x4ef   : > { %8022 = vmatmul.bf16.vlgmr.msra.gmra.mxu2 %v18050_v4  ;;  %8035 = vmatmul.bf16.vlgmr.msrb.gmra.mxu3 %v18052_v19  ;;  %v9765_v4 = vor.u32 %v10418_v22, %v9762_v8  ;;  %v9829_v19 = vor.u32 %v10434_v31, %v9826_v37  ;;  %v10410_v22 = vld [vmem:[#allocation5 + $0x514] sm:$0xf]  ;;  %v9730_v8 = vld [vmem:[#allocation5 + $0x518] sm:$0xf0] }
 0x4f0   : > { %8066 = vmatpush.bf16.msrb.mxu2 %v9653_v46  ;;  %8079 = vmatpush.bf16.msra.mxu3 %v9717_v54  ;;  %v10380_v46 = vld [vmem:[#allocation5 + $0x424] sm:$0xf]  ;;  %v9610_v54 = vld [vmem:[#allocation5 + $0x428] sm:$0xf0]  ;;  %v10426_v31 = vld [vmem:[#allocation5 + $0x594] sm:$0xf] }
 0x4f1   : > { %8092 = vmatpush.bf16.msra.mxu0 %v9781_v57  ;;  %8105 = vmatpush.bf16.msrb.mxu1 %v9845_v63  ;;  %v18186_v6 = vpop.f32.mrf.mxu2  ;;  %v18188_v38 = vpop.f32.mrf.mxu3  ;;  %v10396_v57 = vld [vmem:[#allocation5 + $0x4a4] sm:$0xf]  ;;  %v9674_v63 = vld [vmem:[#allocation5 + $0x4a8] sm:$0xf0]  ;;  %v9613_v32 = vor.u32 %v10380_v46, %v9610_v54  ;;  %v9794_v37 = vld [vmem:[#allocation5 + $0x598] sm:$0xf0] }
 0x4f2   : > { %8048 = vmatmul.bf16.vlgmr.msrb.gmra.mxu0 %v18054_v53  ;;  %8061 = vmatmul.bf16.vlgmr.msra.gmra.mxu1 %v18056_v35  ;;  %v9754_v53 = vld [vmem:[#allocation5 + $0x548] sm:$0xf0]  ;;  %v9677_v40 = vor.u32 %v10396_v57, %v9674_v63  ;;  %v10452_v57 = vld [vmem:[#allocation5 + $0x664] sm:$0xf] }
 0x4f3   : > { %v9818_v35 = vld [vmem:[#allocation5 + $0x5c8] sm:$0xf0]  ;;  %v9757_v23 = vor.u32 %v10416_v25, %v9754_v53  ;;  %v18197_v25 = vld [vmem:[%s18343_s7] sm:$0x3]  ;;  %v9733_v53 = vor.u32 %v10410_v22, %v9730_v8 }
 0x4f4   : > { %8067 = vmatpush.bf16.msrb.mxu2 %v9645_v21  ;;  %8080 = vmatpush.bf16.msra.mxu3 %v9709_v56  ;;  %v9821_v33 = vor.u32 %v10432_v13, %v9818_v35  ;;  %v7791_v51 = vpop.f32.mrf.mxu0  ;;  %v7804_v1 = vpop.f32.mrf.mxu1  ;;  %v10378_v21 = vld [vmem:[#allocation5 + $0x414] sm:$0xf]  ;;  %v9602_v56 = vld [vmem:[#allocation5 + $0x418] sm:$0xf0]  ;;  %v9797_v13 = vor.u32 %v10426_v31, %v9794_v37  ;;  %v10408_v35 = vld [vmem:[#allocation5 + $0x504] sm:$0xf] }
 0x4f5   : > { %8093 = vmatpush.bf16.msra.mxu0 %v9773_v29  ;;  %8106 = vmatpush.bf16.msrb.mxu1 %v9837_v42  ;;  %v6470_v54 = vperm.slane %v18197_v25, 0  ;;  %v9898_v63 = vld [vmem:[#allocation5 + $0x668] sm:$0xf0]  ;;  %v10466_v31 = vld [vmem:[#allocation5 + $0x6d4] sm:$0xf] }
 0x4f6   : > { %v9954_v37 = vld [vmem:[#allocation5 + $0x6d8] sm:$0xf0] }
 0x4f8   : > { %8068 = vmatpush.bf16.msrb.mxu2 %v9637_v41  ;;  %8081 = vmatpush.bf16.msra.mxu3 %v9701_v10  ;;  %v10376_v41 = vld [vmem:[#allocation5 + $0x404] sm:$0xf]  ;;  %v9605_v10 = vor.u32 %v10378_v21, %v9602_v56  ;;  %v10026_v56 = vld [vmem:[#allocation5 + $0x768] sm:$0xf0] }
 0x4f9   : > { %8094 = vmatpush.bf16.msra.mxu0 %v9765_v4  ;;  %8107 = vmatpush.bf16.msrb.mxu1 %v9829_v19  ;;  %v7765_v29 = vpop.f32.mrf.mxu2  ;;  %v7778_v42 = vpop.f32.mrf.mxu3  ;;  %v9594_v19 = vld [vmem:[#allocation5 + $0x408] sm:$0xf0] }
 0x4fa   : > { %v9597_v49 = vor.u32 %v10376_v41, %v9594_v19  ;;  %v9901_v29 = vor.u32 %v10452_v57, %v9898_v63  ;;  %v9965_v42 = vor.u32 %v10468_v58, %v9962_v50  ;;  %v10482_v41 = vld [vmem:[#allocation5 + $0x754] sm:$0xf]  ;;  %v10066_v63 = vld [vmem:[#allocation5 + $0x7b8] sm:$0xf0]  ;;  %v10444_v58 = vld [vmem:[#allocation5 + $0x624] sm:$0xf] }
 0x4fb   : > { %v10498_v19 = vld [vmem:[#allocation5 + $0x7d4] sm:$0xf]  ;;  %v9866_v50 = vld [vmem:[#allocation5 + $0x628] sm:$0xf0] }
 0x4fc   : > { %8069 = vmatpush.bf16.msrb.mxu2 %v9629_v15  ;;  %8082 = vmatpush.bf16.msra.mxu3 %v9693_v11  ;;  %v18190_v24 = vpop.f32.mrf.mxu0  ;;  %v18192_v4 = vpop.f32.mrf.mxu1  ;;  %v9722_v15 = vld [vmem:[#allocation5 + $0x508] sm:$0xf0]  ;;  %v10424_v11 = vld [vmem:[#allocation5 + $0x584] sm:$0xf]  ;;  %v10494_v57 = vld [vmem:[#allocation5 + $0x7b4] sm:$0xf] }
 0x4fd   : > { %8095 = vmatpush.bf16.msra.mxu0 %v9757_v23  ;;  %8108 = vmatpush.bf16.msrb.mxu1 %v9821_v33  ;;  %v9906_v23 = vld [vmem:[#allocation5 + $0x678] sm:$0xf0]  ;;  %v10470_v33 = vld [vmem:[#allocation5 + $0x6f4] sm:$0xf]  ;;  %v9789_v51 = vor.u32 %v10424_v11, %v9786_v27  ;;  %v9882_v11 = vld [vmem:[#allocation5 + $0x648] sm:$0xf0] }
 0x4fe   : > { %v9946_v27 = vld [vmem:[#allocation5 + $0x6c8] sm:$0xf0] }
 0x500   : > { %8070 = vmatpush.bf16.msrb.mxu2 %v9621_v18  ;;  %8083 = vmatpush.bf16.msra.mxu3 %v9685_v48  ;;  %v10098_v18 = vld [vmem:[#allocation5 + $0x7f8] sm:$0xf0]  ;;  %v9725_v48 = vor.u32 %v10408_v35, %v9722_v15  ;;  %v9957_v35 = vor.u32 %v10466_v31, %v9954_v37  ;;  %v10448_v15 = vld [vmem:[#allocation5 + $0x644] sm:$0xf]  ;;  %v9869_v37 = vor.u32 %v10444_v58, %v9866_v50  ;;  %v8180_v58 = vld [vmem:[%s18344_s8 + $0x40] sm:$0xff] }
 0x501   : > { %8096 = vmatpush.bf16.msra.mxu0 %v9749_v7  ;;  %8109 = vmatpush.bf16.msrb.mxu1 %v9813_v12  ;;  %v18199_v1 = vpop.f32.mrf.mxu2  ;;  %v18201_v46 = vpop.f32.mrf.mxu3  ;;  %v9909_v7 = vor.u32 %v10454_v45, %v9906_v23  ;;  %v9973_v12 = vor.u32 %v10470_v33, %v9970_v28  ;;  %v10101_v30 = vor.u32 %v10502_v5, %v10098_v18  ;;  %v10480_v45 = vld [vmem:[#allocation5 + $0x744] sm:$0xf]  ;;  %v9874_v5 = vld [vmem:[#allocation5 + $0x638] sm:$0xf0] }
 0x502   : > { %v10496_v33 = vld [vmem:[#allocation5 + $0x7c4] sm:$0xf] }
 0x504   : > { %8071 = vmatpush.bf16.msrb.mxu2 %v9613_v32  ;;  %8084 = vmatpush.bf16.msra.mxu3 %v9677_v40  ;;  %v10484_v32 = vld [vmem:[#allocation5 + $0x764] sm:$0xf]  ;;  %v7843_v40 = vpop.f32.mrf.mxu0  ;;  %v7856_v21 = vpop.f32.mrf.mxu1 }
 0x505   : > { %8097 = vmatpush.bf16.msra.mxu0 %v9741_v16  ;;  %8110 = vmatpush.bf16.msrb.mxu1 %v9805_v60  ;;  %v10500_v16 = vld [vmem:[#allocation5 + $0x7e4] sm:$0xf]  ;;  %v10090_v60 = vld [vmem:[#allocation5 + $0x7e8] sm:$0xf0]  ;;  %v10029_v22 = vor.u32 %v10484_v32, %v10026_v56  ;;  %v10069_v40 = vor.u32 %v10494_v57, %v10066_v63  ;;  %v8184_v63 = vld [vmem:[%s18344_s8 + $0x60] sm:$0xff] }
 0x506   : > { %v10093_v8 = vor.u32 %v10500_v16, %v10090_v60  ;;  %v10460_v16 = vld [vmem:[#allocation5 + $0x6a4] sm:$0xf]  ;;  %v9930_v60 = vld [vmem:[#allocation5 + $0x6a8] sm:$0xf0] }
 0x508   : > { %8072 = vmatpush.bf16.msrb.mxu2 %v9605_v10  ;;  %8085 = vmatpush.bf16.msra.mxu3 %v9669_v55  ;;  %v7764_v10 = vadd.f32 %v18186_v6, %v6470_v54  ;;  %v10018_v55 = vld [vmem:[#allocation5 + $0x758] sm:$0xf0]  ;;  %v10085_v6 = vor.u32 %v10498_v19, %v10082_v34 }
 0x509   : > { %8098 = vmatpush.bf16.msra.mxu0 %v9733_v53  ;;  %8111 = vmatpush.bf16.msrb.mxu1 %v9797_v13  ;;  %v7817_v44 = vpop.f32.mrf.mxu2  ;;  %v7830_v53 = vpop.f32.mrf.mxu3  ;;  %v9893_v13 = vor.u32 %v10450_v14, %v9890_v59  ;;  %v9938_v54 = vld [vmem:[#allocation5 + $0x6b8] sm:$0xf0]  ;;  %v10492_v14 = vld [vmem:[#allocation5 + $0x7a4] sm:$0xf]  ;;  %v10058_v59 = vld [vmem:[#allocation5 + $0x7a8] sm:$0xf0] }
 0x50a   : > { %v7777_v23 = vadd.f32 %v18188_v38, %v7764_v10  ;;  %v10478_v38 = vld [vmem:[#allocation5 + $0x734] sm:$0xf]  ;;  %v10061_v34 = vor.u32 %v10492_v14, %v10058_v59  ;;  %v9922_v53 = vld [vmem:[#allocation5 + $0x698] sm:$0xf0] }
 0x50b   : > { %v10442_v10 = vld [vmem:[#allocation5 + $0x614] sm:$0xf] }
 0x50c   : > { %8073 = vmatpush.bf16.msrb.mxu2 %v9597_v49  ;;  %8086 = vmatpush.bf16.msra.mxu3 %v9661_v39  ;;  %v9885_v49 = vor.u32 %v10448_v15, %v9882_v11  ;;  %v10458_v44 = vld [vmem:[#allocation5 + $0x694] sm:$0xf]  ;;  %v10050_v15 = vld [vmem:[#allocation5 + $0x798] sm:$0xf0] }
 0x50d   : > { %8099 = vmatpush.bf16.msra.mxu0 %v9725_v48  ;;  %8112 = vmatpush.bf16.msrb.mxu1 %v9789_v51  ;;  %v10462_v51 = vld [vmem:[#allocation5 + $0x6b4] sm:$0xf] }
 0x50f   : > { %8074 = vmatmul.bf16.vlgmr.msrb.gmra.mxu2 %v18150_v20  ;;  %8087 = vmatmul.bf16.vlgmr.msra.gmra.mxu3 %v18152_v3  ;;  %v10021_v20 = vor.u32 %v10482_v41, %v10018_v55  ;;  %v10464_v3 = vld [vmem:[#allocation5 + $0x6c4] sm:$0xf]  ;;  %v18210_v28 = vpop.f32.mrf.mxu0  ;;  %v18212_v43 = vpop.f32.mrf.mxu1  ;;  %v9933_v41 = vor.u32 %v10460_v16, %v9930_v60  ;;  %v9858_v55 = vld [vmem:[#allocation5 + $0x618] sm:$0xf0] }
 0x510   : > { %8118 = vmatpush.bf16.msra.mxu2 %v9909_v7  ;;  %8131 = vmatpush.bf16.msrb.mxu3 %v9973_v12  ;;  %v9949_v39 = vor.u32 %v10464_v3, %v9946_v27  ;;  %v7790_v7 = vadd.f32 %v18182_v47, %v7777_v23  ;;  %v10002_v12 = vld [vmem:[#allocation5 + $0x738] sm:$0xf0]  ;;  %v9861_v11 = vor.u32 %v10442_v10, %v9858_v55  ;;  %v9850_v3 = vld [vmem:[#allocation5 + $0x608] sm:$0xf0] }
 0x511   : > { %8144 = vmatpush.bf16.msrb.mxu0 %v10037_v36  ;;  %8157 = vmatpush.bf16.msra.mxu1 %v10101_v30  ;;  %v9877_v36 = vor.u32 %v10446_v0, %v9874_v5  ;;  %v9941_v30 = vor.u32 %v10462_v51, %v9938_v54  ;;  %v10005_v32 = vor.u32 %v10478_v38, %v10002_v12  ;;  %v10488_v0 = vld [vmem:[#allocation5 + $0x784] sm:$0xf]  ;;  %v10042_v5 = vld [vmem:[#allocation5 + $0x788] sm:$0xf0] }
 0x512   : > { %8100 = vmatmul.bf16.vlgmr.msra.gmra.mxu0 %v18154_v61  ;;  %8113 = vmatmul.bf16.vlgmr.msrb.gmra.mxu1 %v18156_v52  ;;  %v10010_v61 = vld [vmem:[#allocation5 + $0x748] sm:$0xf0]  ;;  %v7867_v21 = vpop.f32.mrf.mxu2  ;;  %v18215_v56 = vpop.f32.mrf.mxu3  ;;  %v7803_v47 = vadd.f32 %v18184_v17, %v7790_v7  ;;  %v10474_v17 = vld [vmem:[#allocation5 + $0x714] sm:$0xf]  ;;  %v10045_v54 = vor.u32 %v10488_v0, %v10042_v5  ;;  %v8201_v0 = vld [vmem:[%s18344_s8 + $0xe8] sm:$0xff] }
 0x513   : > { %v10074_v52 = vld [vmem:[#allocation5 + $0x7c8] sm:$0xf0]  ;;  %v10013_v18 = vor.u32 %v10480_v45, %v10010_v61  ;;  %v8200_v5 = vld [vmem:[%s18344_s8 + $0xe0] sm:$0xff] }
 0x514   : > { %8119 = vmatpush.bf16.msra.mxu2 %v9901_v29  ;;  %8132 = vmatpush.bf16.msrb.mxu3 %v9965_v42  ;;  %v10077_v48 = vor.u32 %v10496_v33, %v10074_v52  ;;  %v10476_v29 = vld [vmem:[#allocation5 + $0x724] sm:$0xf]  ;;  %v9994_v42 = vld [vmem:[#allocation5 + $0x728] sm:$0xf0] }
 0x515   : > { %8145 = vmatpush.bf16.msrb.mxu0 %v10029_v22  ;;  %8158 = vmatpush.bf16.msra.mxu1 %v10093_v8  ;;  %v7816_v22 = vadd.f32 %v18199_v1, %v7803_v47  ;;  %v9997_v19 = vor.u32 %v10476_v29, %v9994_v42  ;;  %v10456_v33 = vld [vmem:[#allocation5 + $0x684] sm:$0xf]  ;;  %v9914_v52 = vld [vmem:[#allocation5 + $0x688] sm:$0xf0]  ;;  %v8176_v47 = vld [vmem:[%s18344_s8 + $0x20] sm:$0xff] }
 0x516   : > { %v8187_v38 = vld [vmem:[%s18344_s8 + $0x78] sm:$0xff] }
 0x517   : > { %v7895_v8 = vpop.f32.mrf.mxu0  ;;  %v7908_v31 = vpop.f32.mrf.mxu1  ;;  %v7829_v1 = vadd.f32 %v18201_v46, %v7816_v22  ;;  %v8175_v22 = vld [vmem:[%s18344_s8 + $0x18] sm:$0xff] }
 0x518   : > { %8120 = vmatpush.bf16.msra.mxu2 %v9893_v13  ;;  %8133 = vmatpush.bf16.msrb.mxu3 %v9957_v35  ;;  %v9986_v13 = vld [vmem:[#allocation5 + $0x718] sm:$0xf0]  ;;  %v10490_v35 = vld [vmem:[#allocation5 + $0x794] sm:$0xf]  ;;  %v8174_v8 = vld [vmem:[%s18344_s8 + $0x10] sm:$0xff] }
 0x519   : > { %8146 = vmatpush.bf16.msrb.mxu0 %v10021_v20  ;;  %8159 = vmatpush.bf16.msra.mxu1 %v10085_v6  ;;  %v9925_v20 = vor.u32 %v10458_v44, %v9922_v53  ;;  %v10440_v6 = vld [vmem:[#allocation5 + $0x604] sm:$0xf]  ;;  %v9989_v27 = vor.u32 %v10474_v17, %v9986_v13  ;;  %v10053_v45 = vor.u32 %v10490_v35, %v10050_v15 }
 0x51a   : > { %v7869_v23 = vpop.f32.mrf.mxu2  ;;  %v7882_v61 = vpop.f32.mrf.mxu3  ;;  %v7842_v46 = vadd.f32 %v18190_v24, %v7829_v1  ;;  %v8186_v24 = vld [vmem:[%s18344_s8 + $0x70] sm:$0xff] }
 0x51c   : > { %8121 = vmatpush.bf16.msra.mxu2 %v9885_v49  ;;  %8134 = vmatpush.bf16.msrb.mxu3 %v9949_v39  ;;  %v10472_v49 = vld [vmem:[#allocation5 + $0x704] sm:$0xf]  ;;  %v9978_v39 = vld [vmem:[#allocation5 + $0x708] sm:$0xf0]  ;;  %v7855_v7 = vadd.f32 %v18192_v4, %v7842_v46  ;;  %v8185_v4 = vld [vmem:[%s18344_s8 + $0x68] sm:$0xff] }
 0x51d   : > { %8147 = vmatpush.bf16.msrb.mxu0 %v10013_v18  ;;  %8160 = vmatpush.bf16.msra.mxu1 %v10077_v48  ;;  %v9853_v18 = vor.u32 %v10440_v6, %v9850_v3  ;;  %v9917_v48 = vor.u32 %v10456_v33, %v9914_v52  ;;  %v9981_v51 = vor.u32 %v10472_v49, %v9978_v39  ;;  %v8202_v52 = vld [vmem:[%s18344_s8 + $0xf0] sm:$0xff]  ;;  %v8199_v46 = vld [vmem:[%s18344_s8 + $0xd8] sm:$0xff] }
 0x51e   : > { %v7868_v12 = vadd.f32 %v7867_v21, %v7855_v7 }
 0x520   : > { %8122 = vmatpush.bf16.msra.mxu2 %v9877_v36  ;;  %8135 = vmatpush.bf16.msrb.mxu3 %v9941_v30  ;;  %v7881_v57 = vadd.f32 %v18215_v56, %v7868_v12  ;;  %v8181_v30 = vld [vmem:[%s18344_s8 + $0x48] sm:$0xff]  ;;  %v8178_v56 = vld [vmem:[%s18344_s8 + $0x30] sm:$0xff] }
 0x521   : > { %8148 = vmatpush.bf16.msrb.mxu0 %v10005_v32  ;;  %8161 = vmatpush.bf16.msra.mxu1 %v10069_v40  ;;  %v8179_v40 = vld [vmem:[%s18344_s8 + $0x38] sm:$0xff] }
 0x524   : > { %8123 = vmatpush.bf16.msra.mxu2 %v9869_v37  ;;  %8136 = vmatpush.bf16.msrb.mxu3 %v9933_v41  ;;  %v8173_v37 = vld [vmem:[%s18344_s8 + $0x8] sm:$0xff]  ;;  %v8172_v41 = vld [vmem:[%s18344_s8] sm:$0xff] }
 0x525   : > { %8149 = vmatpush.bf16.msrb.mxu0 %v9997_v19  ;;  %8162 = vmatpush.bf16.msra.mxu1 %v10061_v34  ;;  %v6471_v34 = vperm.slane %v18197_v25, 1  ;;  %v8203_v25 = vld [vmem:[%s18344_s8 + $0xf8] sm:$0xff] }
 0x528   : > { %8124 = vmatpush.bf16.msra.mxu2 %v9861_v11  ;;  %8137 = vmatpush.bf16.msrb.mxu3 %v9925_v20 }
 0x529   : > { %8150 = vmatpush.bf16.msrb.mxu0 %v9989_v27  ;;  %8163 = vmatpush.bf16.msra.mxu1 %v10053_v45 }
 0x52c   : > { %8125 = vmatpush.bf16.msra.mxu2 %v9853_v18  ;;  %8138 = vmatpush.bf16.msrb.mxu3 %v9917_v48  ;;  %v8198_v18 = vld [vmem:[%s18344_s8 + $0xd0] sm:$0xff]  ;;  %v8197_v48 = vld [vmem:[%s18344_s8 + $0xc8] sm:$0xff] }
 0x52d   : > { %8151 = vmatpush.bf16.msrb.mxu0 %v9981_v51  ;;  %8164 = vmatpush.bf16.msra.mxu1 %v10045_v54  ;;  %v8196_v51 = vld [vmem:[%s18344_s8 + $0xc0] sm:$0xff]  ;;  %v8195_v54 = vld [vmem:[%s18344_s8 + $0xb8] sm:$0xff] }
 0x52f   : > { %8126 = vmatmul.bf16.vlgmr.msra.gmra.mxu2 %v18162_v2  ;;  %8139 = vmatmul.bf16.vlgmr.msrb.gmra.mxu3 %v18164_v26  ;;  %v8183_v2 = vld [vmem:[%s18344_s8 + $0x58] sm:$0xff]  ;;  %v7894_v26 = vadd.f32 %v18210_v28, %v7881_v57  ;;  %v7958_v36 = vpop.f32.mrf.mxu1 }
 0x530   : > { %8208 = vmatpush.msrb.mxu2 %v8187_v38  ;;  %8152 = vmatmul.bf16.vlgmr.msrb.gmra.mxu0 %v18166_v62  ;;  %v8182_v62 = vld [vmem:[%s18344_s8 + $0x50] sm:$0xff] }
 0x531   : > { %8165 = vmatmul.bf16.vlgmr.msra.gmra.mxu1 %v18168_v9  ;;  %v7945_v9 = vpop.f32.mrf.mxu0  ;;  %v7907_v50 = vadd.f32 %v18212_v43, %v7894_v26  ;;  %v8177_v43 = vld [vmem:[%s18344_s8 + $0x28] sm:$0xff]  ;;  %8228 = vmatpush.msra.mxu3 %v8203_v25  ;;  %v8194_v38 = vld [vmem:[%s18344_s8 + $0xb0] sm:$0xff] }
 0x532   : > { %8209 = vmatpush.msrb.mxu2 %v8186_v24  ;;  %v7919_v28 = vpop.f32.mrf.mxu2  ;;  %v7932_v32 = vpop.f32.mrf.mxu3 }
 0x533   : > { %v7920_v21 = vadd.f32 %v7919_v28, %v7907_v50  ;;  %8229 = vmatpush.msra.mxu3 %v8202_v52  ;;  %v8190_v28 = vld [vmem:[%s18344_s8 + $0x90] sm:$0xff] }
 0x534   : > { %8210 = vmatpush.msrb.mxu2 %v8185_v4 }
 0x535   : > { %v7933_v29 = vadd.f32 %v7932_v32, %v7920_v21  ;;  %8230 = vmatpush.msra.mxu3 %v8201_v0  ;;  %v8189_v32 = vld [vmem:[%s18344_s8 + $0x88] sm:$0xff]  ;;  %v8188_v21 = vld [vmem:[%s18344_s8 + $0x80] sm:$0xff] }
 0x536   : > { %8211 = vmatpush.msrb.mxu2 %v8184_v63 }
 0x537   : > { %v7960_v60 = vpop.f32.mrf.mxu1  ;;  %v7946_v59 = vadd.f32 %v7945_v9, %v7933_v29  ;;  %8231 = vmatpush.msra.mxu3 %v8200_v5  ;;  %v8192_v9 = vld [vmem:[%s18344_s8 + $0xa0] sm:$0xff] }
 0x538   : > { %8212 = vmatpush.msrb.mxu2 %v8183_v2 }
 0x539   : > { %v7947_v16 = vpop.f32.mrf.mxu0  ;;  %v7959_v31 = vadd.f32 %v7958_v36, %v7946_v59  ;;  %8232 = vmatpush.msra.mxu3 %v8199_v46 }
 0x53a   : > { %8213 = vmatpush.msrb.mxu2 %v8182_v62  ;;  %v7921_v42 = vpop.f32.mrf.mxu2  ;;  %v7934_v14 = vpop.f32.mrf.mxu3  ;;  %v8193_v62 = vld [vmem:[%s18344_s8 + $0xa8] sm:$0xff] }
 0x53b   : > { %v8170_v10 = vmax.f32 %v7959_v31, 0.0  ;;  %8233 = vmatpush.msra.mxu3 %v8198_v18 }
 0x53c   : > { %8214 = vmatpush.msrb.mxu2 %v8181_v30 }
 0x53d   : > { %8234 = vmatpush.msra.mxu3 %v8197_v48 }
 0x53e   : > { %8215 = vmatpush.msrb.mxu2 %v8180_v58  ;;  %v8191_v58 = vld [vmem:[%s18344_s8 + $0x98] sm:$0xff] }
 0x53f   : > { %8235 = vmatpush.msra.mxu3 %v8196_v51 }
 0x540   : > { %8216 = vmatpush.msrb.mxu2 %v8179_v40 }
 0x541   : > { %8236 = vmatpush.msra.mxu3 %v8195_v54 }
 0x542   : > { %8217 = vmatpush.msrb.mxu2 %v8178_v56 }
 0x543   : > { %8237 = vmatpush.msra.mxu3 %v8194_v38 }
 0x544   : > { %8218 = vmatpush.msrb.mxu2 %v8177_v43 }
 0x545   : > { %8238 = vmatpush.msra.mxu3 %v8193_v62 }
 0x546   : > { %8219 = vmatpush.msrb.mxu2 %v8176_v47 }
 0x547   : > { %8239 = vmatpush.msra.mxu3 %v8192_v9 }
 0x548   : > { %8220 = vmatpush.msrb.mxu2 %v8175_v22 }
 0x549   : > { %8240 = vmatpush.msra.mxu3 %v8191_v58 }
 0x54a   : > { %8221 = vmatpush.msrb.mxu2 %v8174_v8 }
 0x54b   : > { %8241 = vmatpush.msra.mxu3 %v8190_v28 }
 0x54c   : > { %8222 = vmatpush.msrb.mxu2 %v8173_v37 }
 0x54d   : > { %8242 = vmatpush.msra.mxu3 %v8189_v32 }
 0x54e   : > { %8223 = vmatpush.msrb.mxu2 %v8172_v41 }
 0x54f   : > { %8224 = vmatmul.f32.vlgmr.msrb.gmra.mxu2 %v8170_v10  ;;  %v7997_v55 = vpop.f32.mrf.mxu0  ;;  %v8010_v19 = vpop.f32.mrf.mxu1  ;;  %8243 = vmatpush.msra.mxu3 %v8188_v21 }
 0x552   : > { %v7971_v44 = vpop.f32.mrf.mxu2  ;;  %v7984_v53 = vpop.f32.mrf.mxu3 }
 0x553   : > { %v7972_v17 = vadd.f32 %v7971_v44, %v6471_v34  ;;  %v10563_v34 = vld [vmem:[%s18345_s9] ss:$0 sm:$0xff] }
 0x555   : > { %v7985_v13 = vadd.f32 %v7984_v53, %v7972_v17 }
 0x557   : > { %v7999_v35 = vpop.f32.mrf.mxu0  ;;  %v8012_v15 = vpop.f32.mrf.mxu1  ;;  %v7998_v1 = vadd.f32 %v7997_v55, %v7985_v13 }
 0x559   : > { %v8011_v11 = vadd.f32 %v8010_v19, %v7998_v1 }
 0x55a   : > { %v7973_v20 = vpop.f32.mrf.mxu2  ;;  %v7986_v6 = vpop.f32.mrf.mxu3 }
 0x56f   : > { %v8049_v3 = vpop.f32.mrf.mxu0  ;;  %v8062_v27 = vpop.f32.mrf.mxu1 }
 0x572   : > { %v8023_v45 = vpop.f32.mrf.mxu2  ;;  %v8036_v23 = vpop.f32.mrf.mxu3 }
 0x573   : > { %v8024_v57 = vadd.f32 %v8023_v45, %v8011_v11 }
 0x575   : > { %v8037_v26 = vadd.f32 %v8036_v23, %v8024_v57 }
 0x577   : > { %v8051_v61 = vpop.f32.mrf.mxu0  ;;  %v8064_v33 = vpop.f32.mrf.mxu1  ;;  %v8050_v50 = vadd.f32 %v8049_v3, %v8037_v26 }
 0x579   : > { %v8063_v40 = vadd.f32 %v8062_v27, %v8050_v50 }
 0x57a   : > { %v8025_v49 = vpop.f32.mrf.mxu2  ;;  %v8038_v39 = vpop.f32.mrf.mxu3 }
 0x58f   : > { %v8101_v7 = vpop.f32.mrf.mxu0  ;;  %v8114_v12 = vpop.f32.mrf.mxu1 }
 0x592   : > { %v8075_v24 = vpop.f32.mrf.mxu2  ;;  %v8088_v4 = vpop.f32.mrf.mxu3 }
 0x593   : > { %v8076_v56 = vadd.f32 %v8075_v24, %v8063_v40 }
 0x595   : > { %v8089_v16 = vadd.f32 %v8088_v4, %v8076_v56 }
 0x597   : > { %v8103_v63 = vpop.f32.mrf.mxu0  ;;  %v8116_v2 = vpop.f32.mrf.mxu1  ;;  %v8102_v60 = vadd.f32 %v8101_v7, %v8089_v16 }
 0x599   : > { %v8115_v47 = vadd.f32 %v8114_v12, %v8102_v60 }
 0x59a   : > { %v8077_v36 = vpop.f32.mrf.mxu2  ;;  %v8090_v30 = vpop.f32.mrf.mxu3 }
 0x5ad   : > { %v8153_v29 = vpop.f32.mrf.mxu0 }
 0x5ae   : > { %v8166_v43 = vpop.f32.mrf.mxu1 }
 0x5b2   : > { %v8127_v42 = vpop.f32.mrf.mxu2  ;;  %v8140_v14 = vpop.f32.mrf.mxu3 }
 0x5b3   : > { %v8128_v59 = vadd.f32 %v8127_v42, %v8115_v47 }
 0x5b5   : > { %v8141_v22 = vadd.f32 %v8140_v14, %v8128_v59  ;;  %v8155_v8 = vpop.f32.mrf.mxu0 }
 0x5b6   : > { %v8168_v31 = vpop.f32.mrf.mxu1 }
 0x5b7   : > { %v8154_v37 = vadd.f32 %v8153_v29, %v8141_v22 }
 0x5b9   : > { %v8167_v41 = vadd.f32 %v8166_v43, %v8154_v37 }
 0x5ba   : > { %v8129_v10 = vpop.f32.mrf.mxu2  ;;  %v8142_v55 = vpop.f32.mrf.mxu3 }
 0x5bb   : > { %v8171_v19 = vmax.f32 %v8167_v41, 0.0 }
 0x5bd   : > { %8244 = vmatmul.f32.vlgmr.msra.gmra.mxu3 %v8171_v19 }
 0x5d2   : > { %v8225_v44 = vpop.f32.mrf.mxu2 }
 0x5d3   : > { %v8226_v53 = vadd.f32 %v10563_v34, %v8225_v44 }
 0x640   : > { %v8245_v17 = vpop.f32.mrf.mxu3 }
 0x641   : > { %v8246_v13 = vadd.f32 %v8245_v17, %v8226_v53 }
 0x643   : > { %8248 = vst [vmem:[%s371_s30] sm:$0xff] %v8246_v13 }
 0x644 PF: > { %s21_s13 = sadd.s32 1, %s10604_s13  }
 0x645   : > { %p18_p7 = scmp.ge.s32.totalorder %s21_s13, 4  }
 0x647   :  { %20 = sbr.rel (!%p18_p7) target bundleno = 1 (0x1), region = 127 }
 0x64c   :  { %8268 = vsyncpa [#allocation6], 1 }
 0x64d   :  { %8270 = vsyncpa [#allocation6 + $0x1], 1 }

</bundles_post_ra>
